<compile_context>
chip_gen: v7x
topology: tpu7x:2x2x1
jax: 0.10.0
libtpu: 0.0.40
codegen_flags: <defaults>
</compile_context>

<pallas_src>
import functools

import jax
import jax.numpy as jnp
from jax.experimental import pallas as pl
from jax.experimental.pallas import tpu as pltpu

_COMPUTE_DTYPE = jnp.bfloat16          # MXU operand dtype (accumulation stays f32)
_VMEM_LIMIT_BYTES = 48 * 1024 * 1024   # safe on v5e/v6e (128 MiB) and v7x (64 MiB)


def _cparams(*dim_semantics):
    return pltpu.CompilerParams(
        dimension_semantics=tuple(dim_semantics),
        vmem_limit_bytes=_VMEM_LIMIT_BYTES,
    )


# ----------------------------------------------------------------------------
# In-kernel helpers
# ----------------------------------------------------------------------------
def _nearest_up2(t):
    """(h, w, c) -> (2h, 2w, c) nearest-neighbor upsample, entirely in VMEM/vregs."""
    h, w, c = t.shape
    t = jnp.broadcast_to(t[:, None, :, :], (h, 2, w, c)).reshape(2 * h, w, c)
    t = jnp.broadcast_to(t[:, :, None, :], (2 * h, w, 2, c)).reshape(2 * h, 2 * w, c)
    return t


def _conv3x3_same_body(px_f32, w3_ref, b3_ref, out_ref, pad_ref, acc_ref, H, W, Cout):
    """3x3 SAME conv of px_f32 (H, W, Cout) -> out_ref[0] (H, W, Cout).

    pad_ref: VMEM (H+2, W+2, Cout) bf16 zero-halo scratch (no HBM pad round trip)
    acc_ref: VMEM (H*W, Cout) f32 accumulator (bias folded into init)
    """
    pad_ref[...] = jnp.zeros_like(pad_ref)
    pad_ref[1:H + 1, 1:W + 1, :] = px_f32.astype(pad_ref.dtype)

    acc_ref[...] = jnp.broadcast_to(b3_ref[...], acc_ref.shape)   # bias fold

    # TODO(synk): the kw shift below crosses the 8-sublane tile boundary and
    # costs a relayout per tap; switch to pltpu.roll on the sublane axis (XLU)
    # once that path is validated on all chips.  W <= 16 here so the cost is small.
    for kh in range(3):
        for kw in range(3):
            patch = pad_ref[kh:kh + H, kw:kw + W, :]               # (H, W, Cout) bf16
            acc_ref[...] += jnp.dot(
                patch.reshape(H * W, Cout), w3_ref[kh, kw],
                preferred_element_type=jnp.float32)

    out_ref[0] = acc_ref[...].reshape(H, W, Cout).astype(out_ref.dtype)


# ----------------------------------------------------------------------------
# Fused per-level kernels
# ----------------------------------------------------------------------------
def _level_top_kernel(x_ref, w1_ref, b1_ref, w3_ref, b3_ref,
                      px_ref, out_ref, pad_ref, acc_ref, *, H, W, Cin, Cout):
    # Topmost level (P5): px = conv1x1(x) + b ;  out = conv3x3(px) + b3
    x = x_ref[0].reshape(H * W, Cin).astype(_COMPUTE_DTYPE)
    px = jnp.dot(x, w1_ref[...], preferred_element_type=jnp.float32) + b1_ref[...]
    px = px.reshape(H, W, Cout)
    px_ref[0] = px.astype(px_ref.dtype)
    _conv3x3_same_body(px, w3_ref, b3_ref, out_ref, pad_ref, acc_ref, H, W, Cout)


def _level_mid_kernel(x_ref, skip_ref, w1_ref, b1_ref, w3_ref, b3_ref,
                      px_ref, out_ref, pad_ref, acc_ref, *, H, W, Cin, Cout):
    # Mid/bottom level: px = conv1x1(x) + b + up2(skip) ;  out = conv3x3(px) + b3
    x = x_ref[0].reshape(H * W, Cin).astype(_COMPUTE_DTYPE)
    px = jnp.dot(x, w1_ref[...], preferred_element_type=jnp.float32) + b1_ref[...]
    px = px.reshape(H, W, Cout) + _nearest_up2(skip_ref[0])        # f32 add
    px_ref[0] = px.astype(px_ref.dtype)
    _conv3x3_same_body(px, w3_ref, b3_ref, out_ref, pad_ref, acc_ref, H, W, Cout)


# ----------------------------------------------------------------------------
# Wrapper: one pallas_call per pyramid level
# ----------------------------------------------------------------------------
def _fpn_level(x_nhwc, skip_nhwc, w1, b1, w3, b3):
    """Returns (px, out): the lateral(+add) result and the 3x3-conv output."""
    B, H, W, Cin = x_nhwc.shape
    Cout = w1.shape[1]

    in_specs = [pl.BlockSpec((1, H, W, Cin), lambda bi: (bi, 0, 0, 0))]
    operands = [x_nhwc]
    if skip_nhwc is not None:
        Bs, Hs, Ws, Cs = skip_nhwc.shape
        assert (Bs, 2 * Hs, 2 * Ws, Cs) == (B, H, W, Cout), \
            "skip must be the coarser (half resolution) pyramid level"
        in_specs.append(pl.BlockSpec((1, Hs, Ws, Cout), lambda bi: (bi, 0, 0, 0)))
        operands.append(skip_nhwc)

    in_specs += [
        pl.BlockSpec((Cin, Cout), lambda bi: (0, 0)),
        pl.BlockSpec((1, Cout), lambda bi: (0, 0)),
        pl.BlockSpec((3, 3, Cout, Cout), lambda bi: (0, 0, 0, 0)),
        pl.BlockSpec((1, Cout), lambda bi: (0, 0)),
    ]
    operands += [
        w1.astype(_COMPUTE_DTYPE),
        b1.reshape(1, Cout).astype(jnp.float32),
        w3.astype(_COMPUTE_DTYPE),
        b3.reshape(1, Cout).astype(jnp.float32),
    ]

    kernel_fn = _level_top_kernel if skip_nhwc is None else _level_mid_kernel
    kernel = functools.partial(kernel_fn, H=H, W=W, Cin=Cin, Cout=Cout)

    # TODO(synk): for feature maps much larger than P2PNet's (H, W <= 16) the
    # whole-image per-batch block would need spatial tiling with an overlapping
    # halo; sized here for the small FPN levels this decoder actually sees.
    px, out = pl.pallas_call(
        kernel,
        grid_spec=pltpu.PrefetchScalarGridSpec(
            num_scalar_prefetch=0,
            grid=(B,),
            in_specs=in_specs,
            out_specs=[
                pl.BlockSpec((1, H, W, Cout), lambda bi: (bi, 0, 0, 0)),
                pl.BlockSpec((1, H, W, Cout), lambda bi: (bi, 0, 0, 0)),
            ],
            scratch_shapes=[
                pltpu.VMEM((H + 2, W + 2, Cout), _COMPUTE_DTYPE),  # zero-halo image
                pltpu.VMEM((H * W, Cout), jnp.float32),            # f32 accumulator
            ]),
        out_shape=(jax.ShapeDtypeStruct((B, H, W, Cout), x_nhwc.dtype),
                   jax.ShapeDtypeStruct((B, H, W, Cout), x_nhwc.dtype)),
        compiler_params=_cparams("parallel"),
    )(*operands)
    return px, out


# ----------------------------------------------------------------------------
# Parameters / weight layout helpers
# ----------------------------------------------------------------------------
def torch_conv_weight_to_pallas(w_oihw):
    """PyTorch Conv2d weight (Cout, Cin, kh, kw) -> this module's layout:
    (Cin, Cout) for 1x1 convs, (kh, kw, Cin, Cout) for 3x3 convs."""
    w = jnp.transpose(jnp.asarray(w_oihw), (2, 3, 1, 0))
    if w.shape[0] == 1 and w.shape[1] == 1:
        return w[0, 0]
    return w


def init_decoder_params(key, C3_size, C4_size, C5_size, feature_size=256,
                        dtype=jnp.float32):
    ks = jax.random.split(key, 12)
    w1 = lambda k, cin: jax.random.normal(k, (cin, feature_size), dtype) * 0.05
    w3 = lambda k: jax.random.normal(k, (3, 3, feature_size, feature_size), dtype) * 0.05
    bias = lambda k: jax.random.normal(k, (feature_size,), dtype) * 0.01
    return {
        "P5_1_w": w1(ks[0], C5_size), "P5_1_b": bias(ks[1]),
        "P5_2_w": w3(ks[2]),          "P5_2_b": bias(ks[3]),
        "P4_1_w": w1(ks[4], C4_size), "P4_1_b": bias(ks[5]),
        "P4_2_w": w3(ks[6]),          "P4_2_b": bias(ks[7]),
        "P3_1_w": w1(ks[8], C3_size), "P3_1_b": bias(ks[9]),
        "P3_2_w": w3(ks[10]),         "P3_2_b": bias(ks[11]),
    }


# ----------------------------------------------------------------------------
# Decoder forward
# ----------------------------------------------------------------------------
def decoder_forward_nhwc(params, C3, C4, C5):
    """FPN top-down pass; NHWC in / NHWC out (preferred TPU entry point)."""
    P5_x, P5_out = _fpn_level(C5, None, params["P5_1_w"], params["P5_1_b"],
                              params["P5_2_w"], params["P5_2_b"])
    P4_x, P4_out = _fpn_level(C4, P5_x, params["P4_1_w"], params["P4_1_b"],
                              params["P4_2_w"], params["P4_2_b"])
    _, P3_out = _fpn_level(C3, P4_x, params["P3_1_w"], params["P3_1_b"],
                           params["P3_2_w"], params["P3_2_b"])
    return [P3_out, P4_out, P5_out]


def decoder_forward(params, C3_nchw, C4_nchw, C5_nchw):
    """NCHW wrapper matching the PyTorch Decoder interface."""
    # TODO(synk): the NCHW<->NHWC transposes below are XLA glue (one HBM round
    # trip per tensor); use decoder_forward_nhwc directly in an NHWC pipeline.
    to_nhwc = lambda t: jnp.transpose(t, (0, 2, 3, 1))
    to_nchw = lambda t: jnp.transpose(t, (0, 3, 1, 2))
    outs = decoder_forward_nhwc(params, to_nhwc(C3_nchw), to_nhwc(C4_nchw),
                                to_nhwc(C5_nchw))
    return [to_nchw(t) for t in outs]


# ----------------------------------------------------------------------------
# Pure-JAX reference (f32) for a correctness check
# ----------------------------------------------------------------------------
def _decoder_reference_nhwc(params, C3, C4, C5):
    hi = jax.lax.Precision.HIGHEST
    conv1 = lambda x, w, b: jnp.einsum("bhwc,cf->bhwf", x, w, precision=hi) + b

    def conv3(x, w, b):
        return jax.lax.conv_general_dilated(
            x, w, (1, 1), "SAME",
            dimension_numbers=("NHWC", "HWIO", "NHWC"), precision=hi) + b

    up2 = lambda x: jnp.repeat(jnp.repeat(x, 2, axis=1), 2, axis=2)

    P5_x = conv1(C5, params["P5_1_w"], params["P5_1_b"])
    P5_out = conv3(P5_x, params["P5_2_w"], params["P5_2_b"])
    P4_x = conv1(C4, params["P4_1_w"], params["P4_1_b"]) + up2(P5_x)
    P4_out = conv3(P4_x, params["P4_2_w"], params["P4_2_b"])
    P3_x = conv1(C3, params["P3_1_w"], params["P3_1_b"]) + up2(P4_x)
    P3_out = conv3(P3_x, params["P3_2_w"], params["P3_2_b"])
    return [P3_out, P4_out, P5_out]


if __name__ == "__main__":
    key = jax.random.PRNGKey(0)
    k1, k2, k3, kp = jax.random.split(key, 4)

    # Small FPN pyramid: C3 spatial is 2x C4, which is 2x C5 (so the nearest
    # 2x upsample adds line up). feature_size=128 keeps outputs lane-dense.
    B = 2
    C3_size, C4_size, C5_size, feature_size = 16, 32, 64, 128
    C3 = jax.random.normal(k1, (B, C3_size, 16, 16), jnp.float32)   # NCHW
    C4 = jax.random.normal(k2, (B, C4_size, 8, 8), jnp.float32)
    C5 = jax.random.normal(k3, (B, C5_size, 4, 4), jnp.float32)

    params = init_decoder_params(kp, C3_size, C4_size, C5_size, feature_size)

    fwd = jax.jit(decoder_forward)
    P3_out, P4_out, P5_out = fwd(params, C3, C4, C5)
    jax.block_until_ready((P3_out, P4_out, P5_out))

    assert P3_out.shape == (B, feature_size, 16, 16)
    assert P4_out.shape == (B, feature_size, 8, 8)
    assert P5_out.shape == (B, feature_size, 4, 4)

    # Correctness vs pure-JAX f32 reference (bf16 MXU operands => small tolerance).
    to_nhwc = lambda t: jnp.transpose(t, (0, 2, 3, 1))
    refs = _decoder_reference_nhwc(params, to_nhwc(C3), to_nhwc(C4), to_nhwc(C5))
    outs = [to_nhwc(P3_out), to_nhwc(P4_out), to_nhwc(P5_out)]
    for got, ref in zip(outs, refs):
        err = float(jnp.max(jnp.abs(got - ref)))
        assert err < 0.1, f"max abs error vs reference too large: {err}"

    print("KERNEL_OK")
</pallas_src>

<mosaic_0001>
module attributes {stable_mosaic.version = 11 : i64} {
  func.func @_level_mid_kernel(%arg0: i32, %arg1: memref<1x16x16x16xf32, #tpu.memory_space<vmem>>, %arg2: memref<1x8x8x128xf32, #tpu.memory_space<vmem>>, %arg3: memref<16x128xbf16, #tpu.memory_space<vmem>>, %arg4: memref<1x128xf32, #tpu.memory_space<vmem>>, %arg5: memref<3x3x128x128xbf16, #tpu.memory_space<vmem>>, %arg6: memref<1x128xf32, #tpu.memory_space<vmem>>, %arg7: memref<1x16x16x128xf32, #tpu.memory_space<vmem>>, %arg8: memref<1x16x16x128xf32, #tpu.memory_space<vmem>>, %arg9: memref<18x18x128xbf16, #tpu.memory_space<vmem>>, %arg10: memref<256x128xf32, #tpu.memory_space<vmem>>) attributes {dimension_semantics = [#tpu.dimension_semantics<parallel>], iteration_bounds = array<i64: 2>, scalar_prefetch = 0 : i64, scratch_operands = 2 : i64, tpu.core_type = #tpu.core_type<tc>, window_params = [{transform_indices = @transform_0, window_bounds = array<i64: 1, 16, 16, 16>}, {transform_indices = @transform_1, window_bounds = array<i64: 1, 8, 8, 128>}, {pipeline_mode = #tpu.pipeline_mode<synchronous>, transform_indices = @transform_2, window_bounds = array<i64: 16, 128>}, {pipeline_mode = #tpu.pipeline_mode<synchronous>, transform_indices = @transform_3, window_bounds = array<i64: 1, 128>}, {pipeline_mode = #tpu.pipeline_mode<synchronous>, transform_indices = @transform_4, window_bounds = array<i64: 3, 3, 128, 128>}, {pipeline_mode = #tpu.pipeline_mode<synchronous>, transform_indices = @transform_5, window_bounds = array<i64: 1, 128>}, {transform_indices = @transform_6, window_bounds = array<i64: 1, 16, 16, 128>}, {transform_indices = @transform_7, window_bounds = array<i64: 1, 16, 16, 128>}]} {
    %c0 = arith.constant 0 : index
    %c0_0 = arith.constant 0 : index
    %c0_1 = arith.constant 0 : index
    %c0_2 = arith.constant 0 : index
    %0 = vector.load %arg1[%c0, %c0_0, %c0_1, %c0_2] : memref<1x16x16x16xf32, #tpu.memory_space<vmem>>, vector<1x16x16x16xf32>
    %1 = vector.shape_cast %0 : vector<1x16x16x16xf32> to vector<16x16x16xf32>
    %2 = vector.shape_cast %1 : vector<16x16x16xf32> to vector<256x16xf32>
    %3 = arith.truncf %2 : vector<256x16xf32> to vector<256x16xbf16>
    %c0_3 = arith.constant 0 : index
    %c0_4 = arith.constant 0 : index
    %4 = vector.load %arg3[%c0_3, %c0_4] : memref<16x128xbf16, #tpu.memory_space<vmem>>, vector<16x128xbf16>
    %cst = arith.constant dense<0.000000e+00> : vector<256x128xf32>
    %5 = tpu.matmul %3, %4, %cst {dimension_numbers = #tpu.dot_dimension_numbers<[1], [0], [0], [1], [0, 0, 1, 1], [], []>} : vector<256x16xbf16>, vector<16x128xbf16>, vector<256x128xf32> -> vector<256x128xf32>
    %c0_5 = arith.constant 0 : index
    %c0_6 = arith.constant 0 : index
    %6 = vector.load %arg4[%c0_5, %c0_6] : memref<1x128xf32, #tpu.memory_space<vmem>>, vector<1x128xf32>
    %7 = vector.broadcast %6 : vector<1x128xf32> to vector<256x128xf32>
    %8 = arith.addf %5, %7 : vector<256x128xf32>
    %9 = vector.shape_cast %8 : vector<256x128xf32> to vector<16x16x128xf32>
    %c0_7 = arith.constant 0 : index
    %c0_8 = arith.constant 0 : index
    %c0_9 = arith.constant 0 : index
    %c0_10 = arith.constant 0 : index
    %10 = vector.load %arg2[%c0_7, %c0_8, %c0_9, %c0_10] : memref<1x8x8x128xf32, #tpu.memory_space<vmem>>, vector<1x8x8x128xf32>
    %11 = vector.shape_cast %10 : vector<1x8x8x128xf32> to vector<8x8x128xf32>
    %12 = vector.shape_cast %11 : vector<8x8x128xf32> to vector<8x1x8x128xf32>
    %13 = vector.shape_cast %12 : vector<8x1x8x128xf32> to vector<8x1x8x128xf32>
    %14 = vector.broadcast %13 : vector<8x1x8x128xf32> to vector<8x2x8x128xf32>
    %15 = vector.shape_cast %14 : vector<8x2x8x128xf32> to vector<16x8x128xf32>
    %16 = vector.shape_cast %15 : vector<16x8x128xf32> to vector<16x8x1x128xf32>
    %17 = vector.shape_cast %16 : vector<16x8x1x128xf32> to vector<16x8x1x128xf32>
    %18 = vector.broadcast %17 : vector<16x8x1x128xf32> to vector<16x8x2x128xf32>
    %19 = vector.shape_cast %18 : vector<16x8x2x128xf32> to vector<16x16x128xf32>
    %20 = arith.addf %9, %19 : vector<16x16x128xf32>
    %c0_11 = arith.constant 0 : index
    %c0_12 = arith.constant 0 : index
    %c0_13 = arith.constant 0 : index
    %c0_14 = arith.constant 0 : index
    %21 = vector.load %arg7[%c0_11, %c0_12, %c0_13, %c0_14] : memref<1x16x16x128xf32, #tpu.memory_space<vmem>>, vector<1x16x16x128xf32>
    %22 = vector.shape_cast %21 : vector<1x16x16x128xf32> to vector<16x16x128xf32>
    %23 = vector.shape_cast %20 : vector<16x16x128xf32> to vector<1x16x16x128xf32>
    tpu.vector_store %arg7[%c0_11, %c0_12, %c0_13, %c0_14], %23 {strides = array<i32>} : memref<1x16x16x128xf32, #tpu.memory_space<vmem>>, vector<1x16x16x128xf32>,
    %cst_15 = arith.constant 0.000000e+00 : bf16
    %24 = vector.broadcast %cst_15 : bf16 to vector<18x18x128xbf16>
    %c0_16 = arith.constant 0 : index
    %c0_17 = arith.constant 0 : index
    %c0_18 = arith.constant 0 : index
    %25 = vector.load %arg9[%c0_16, %c0_17, %c0_18] : memref<18x18x128xbf16, #tpu.memory_space<vmem>>, vector<18x18x128xbf16>
    tpu.vector_store %arg9[%c0_16, %c0_17, %c0_18], %24 {strides = array<i32>} : memref<18x18x128xbf16, #tpu.memory_space<vmem>>, vector<18x18x128xbf16>,
    %26 = arith.truncf %20 : vector<16x16x128xf32> to vector<16x16x128xbf16>
    %c1 = arith.constant 1 : index
    %c1_19 = arith.constant 1 : index
    %c0_20 = arith.constant 0 : index
    %27 = vector.load %arg9[%c1, %c1_19, %c0_20] : memref<18x18x128xbf16, #tpu.memory_space<vmem>>, vector<16x16x128xbf16>
    tpu.vector_store %arg9[%c1, %c1_19, %c0_20], %26 {strides = array<i32>} : memref<18x18x128xbf16, #tpu.memory_space<vmem>>, vector<16x16x128xbf16>,
    %c0_21 = arith.constant 0 : index
    %c0_22 = arith.constant 0 : index
    %28 = vector.load %arg6[%c0_21, %c0_22] : memref<1x128xf32, #tpu.memory_space<vmem>>, vector<1x128xf32>
    %29 = vector.shape_cast %28 : vector<1x128xf32> to vector<1x128xf32>
    %30 = vector.broadcast %29 : vector<1x128xf32> to vector<256x128xf32>
    %c0_23 = arith.constant 0 : index
    %c0_24 = arith.constant 0 : index
    %31 = vector.load %arg10[%c0_23, %c0_24] : memref<256x128xf32, #tpu.memory_space<vmem>>, vector<256x128xf32>
    tpu.vector_store %arg10[%c0_23, %c0_24], %30 {strides = array<i32>} : memref<256x128xf32, #tpu.memory_space<vmem>>, vector<256x128xf32>,
    %c0_25 = arith.constant 0 : index
    %c0_26 = arith.constant 0 : index
    %c0_27 = arith.constant 0 : index
    %32 = vector.load %arg9[%c0_25, %c0_26, %c0_27] : memref<18x18x128xbf16, #tpu.memory_space<vmem>>, vector<16x16x128xbf16>
    %c0_28 = arith.constant 0 : index
    %c0_29 = arith.constant 0 : index
    %33 = vector.load %arg10[%c0_28, %c0_29] : memref<256x128xf32, #tpu.memory_space<vmem>>, vector<256x128xf32>
    %34 = vector.shape_cast %32 : vector<16x16x128xbf16> to vector<256x128xbf16>
    %c0_30 = arith.constant 0 : index
    %c0_31 = arith.constant 0 : index
    %c0_32 = arith.constant 0 : index
    %c0_33 = arith.constant 0 : index
    %35 = vector.load %arg5[%c0_30, %c0_31, %c0_32, %c0_33] : memref<3x3x128x128xbf16, #tpu.memory_space<vmem>>, vector<1x1x128x128xbf16>
    %36 = vector.shape_cast %35 : vector<1x1x128x128xbf16> to vector<128x128xbf16>
    %cst_34 = arith.constant dense<0.000000e+00> : vector<256x128xf32>
    %37 = tpu.matmul %34, %36, %cst_34 {dimension_numbers = #tpu.dot_dimension_numbers<[1], [0], [0], [1], [0, 0, 1, 1], [], []>} : vector<256x128xbf16>, vector<128x128xbf16>, vector<256x128xf32> -> vector<256x128xf32>
    %38 = arith.addf %33, %37 : vector<256x128xf32>
    %c0_35 = arith.constant 0 : index
    %c0_36 = arith.constant 0 : index
    %39 = vector.load %arg10[%c0_35, %c0_36] : memref<256x128xf32, #tpu.memory_space<vmem>>, vector<256x128xf32>
    tpu.vector_store %arg10[%c0_35, %c0_36], %38 {strides = array<i32>} : memref<256x128xf32, #tpu.memory_space<vmem>>, vector<256x128xf32>,
    %c0_37 = arith.constant 0 : index
    %c1_38 = arith.constant 1 : index
    %c0_39 = arith.constant 0 : index
    %40 = vector.load %arg9[%c0_37, %c1_38, %c0_39] : memref<18x18x128xbf16, #tpu.memory_space<vmem>>, vector<16x16x128xbf16>
    %c0_40 = arith.constant 0 : index
    %c0_41 = arith.constant 0 : index
    %41 = vector.load %arg10[%c0_40, %c0_41] : memref<256x128xf32, #tpu.memory_space<vmem>>, vector<256x128xf32>
    %42 = vector.shape_cast %40 : vector<16x16x128xbf16> to vector<256x128xbf16>
    %c0_42 = arith.constant 0 : index
    %c1_43 = arith.constant 1 : index
    %c0_44 = arith.constant 0 : index
    %c0_45 = arith.constant 0 : index
    %43 = vector.load %arg5[%c0_42, %c1_43, %c0_44, %c0_45] : memref<3x3x128x128xbf16, #tpu.memory_space<vmem>>, vector<1x1x128x128xbf16>
    %44 = vector.shape_cast %43 : vector<1x1x128x128xbf16> to vector<128x128xbf16>
    %cst_46 = arith.constant dense<0.000000e+00> : vector<256x128xf32>
    %45 = tpu.matmul %42, %44, %cst_46 {dimension_numbers = #tpu.dot_dimension_numbers<[1], [0], [0], [1], [0, 0, 1, 1], [], []>} : vector<256x128xbf16>, vector<128x128xbf16>, vector<256x128xf32> -> vector<256x128xf32>
    %46 = arith.addf %41, %45 : vector<256x128xf32>
    %c0_47 = arith.constant 0 : index
    %c0_48 = arith.constant 0 : index
    %47 = vector.load %arg10[%c0_47, %c0_48] : memref<256x128xf32, #tpu.memory_space<vmem>>, vector<256x128xf32>
    tpu.vector_store %arg10[%c0_47, %c0_48], %46 {strides = array<i32>} : memref<256x128xf32, #tpu.memory_space<vmem>>, vector<256x128xf32>,
    %c0_49 = arith.constant 0 : index
    %c2 = arith.constant 2 : index
    %c0_50 = arith.constant 0 : index
    %48 = vector.load %arg9[%c0_49, %c2, %c0_50] : memref<18x18x128xbf16, #tpu.memory_space<vmem>>, vector<16x16x128xbf16>
    %c0_51 = arith.constant 0 : index
    %c0_52 = arith.constant 0 : index
    %49 = vector.load %arg10[%c0_51, %c0_52] : memref<256x128xf32, #tpu.memory_space<vmem>>, vector<256x128xf32>
    %50 = vector.shape_cast %48 : vector<16x16x128xbf16> to vector<256x128xbf16>
    %c0_53 = arith.constant 0 : index
    %c2_54 = arith.constant 2 : index
    %c0_55 = arith.constant 0 : index
    %c0_56 = arith.constant 0 : index
    %51 = vector.load %arg5[%c0_53, %c2_54, %c0_55, %c0_56] : memref<3x3x128x128xbf16, #tpu.memory_space<vmem>>, vector<1x1x128x128xbf16>
    %52 = vector.shape_cast %51 : vector<1x1x128x128xbf16> to vector<128x128xbf16>
    %cst_57 = arith.constant dense<0.000000e+00> : vector<256x128xf32>
    %53 = tpu.matmul %50, %52, %cst_57 {dimension_numbers = #tpu.dot_dimension_numbers<[1], [0], [0], [1], [0, 0, 1, 1], [], []>} : vector<256x128xbf16>, vector<128x128xbf16>, vector<256x128xf32> -> vector<256x128xf32>
    %54 = arith.addf %49, %53 : vector<256x128xf32>
    %c0_58 = arith.constant 0 : index
    %c0_59 = arith.constant 0 : index
    %55 = vector.load %arg10[%c0_58, %c0_59] : memref<256x128xf32, #tpu.memory_space<vmem>>, vector<256x128xf32>
    tpu.vector_store %arg10[%c0_58, %c0_59], %54 {strides = array<i32>} : memref<256x128xf32, #tpu.memory_space<vmem>>, vector<256x128xf32>,
    %c1_60 = arith.constant 1 : index
    %c0_61 = arith.constant 0 : index
    %c0_62 = arith.constant 0 : index
    %56 = vector.load %arg9[%c1_60, %c0_61, %c0_62] : memref<18x18x128xbf16, #tpu.memory_space<vmem>>, vector<16x16x128xbf16>
    %c0_63 = arith.constant 0 : index
    %c0_64 = arith.constant 0 : index
    %57 = vector.load %arg10[%c0_63, %c0_64] : memref<256x128xf32, #tpu.memory_space<vmem>>, vector<256x128xf32>
    %58 = vector.shape_cast %56 : vector<16x16x128xbf16> to vector<256x128xbf16>
    %c1_65 = arith.constant 1 : index
    %c0_66 = arith.constant 0 : index
    %c0_67 = arith.constant 0 : index
    %c0_68 = arith.constant 0 : index
    %59 = vector.load %arg5[%c1_65, %c0_66, %c0_67, %c0_68] : memref<3x3x128x128xbf16, #tpu.memory_space<vmem>>, vector<1x1x128x128xbf16>
    %60 = vector.shape_cast %59 : vector<1x1x128x128xbf16> to vector<128x128xbf16>
    %cst_69 = arith.constant dense<0.000000e+00> : vector<256x128xf32>
    %61 = tpu.matmul %58, %60, %cst_69 {dimension_numbers = #tpu.dot_dimension_numbers<[1], [0], [0], [1], [0, 0, 1, 1], [], []>} : vector<256x128xbf16>, vector<128x128xbf16>, vector<256x128xf32> -> vector<256x128xf32>
    %62 = arith.addf %57, %61 : vector<256x128xf32>
    %c0_70 = arith.constant 0 : index
    %c0_71 = arith.constant 0 : index
    %63 = vector.load %arg10[%c0_70, %c0_71] : memref<256x128xf32, #tpu.memory_space<vmem>>, vector<256x128xf32>
    tpu.vector_store %arg10[%c0_70, %c0_71], %62 {strides = array<i32>} : memref<256x128xf32, #tpu.memory_space<vmem>>, vector<256x128xf32>,
    %c1_72 = arith.constant 1 : index
    %c1_73 = arith.constant 1 : index
    %c0_74 = arith.constant 0 : index
    %64 = vector.load %arg9[%c1_72, %c1_73, %c0_74] : memref<18x18x128xbf16, #tpu.memory_space<vmem>>, vector<16x16x128xbf16>
    %c0_75 = arith.constant 0 : index
    %c0_76 = arith.constant 0 : index
    %65 = vector.load %arg10[%c0_75, %c0_76] : memref<256x128xf32, #tpu.memory_space<vmem>>, vector<256x128xf32>
    %66 = vector.shape_cast %64 : vector<16x16x128xbf16> to vector<256x128xbf16>
    %c1_77 = arith.constant 1 : index
    %c1_78 = arith.constant 1 : index
    %c0_79 = arith.constant 0 : index
    %c0_80 = arith.constant 0 : index
    %67 = vector.load %arg5[%c1_77, %c1_78, %c0_79, %c0_80] : memref<3x3x128x128xbf16, #tpu.memory_space<vmem>>, vector<1x1x128x128xbf16>
    %68 = vector.shape_cast %67 : vector<1x1x128x128xbf16> to vector<128x128xbf16>
    %cst_81 = arith.constant dense<0.000000e+00> : vector<256x128xf32>
    %69 = tpu.matmul %66, %68, %cst_81 {dimension_numbers = #tpu.dot_dimension_numbers<[1], [0], [0], [1], [0, 0, 1, 1], [], []>} : vector<256x128xbf16>, vector<128x128xbf16>, vector<256x128xf32> -> vector<256x128xf32>
    %70 = arith.addf %65, %69 : vector<256x128xf32>
    %c0_82 = arith.constant 0 : index
    %c0_83 = arith.constant 0 : index
    %71 = vector.load %arg10[%c0_82, %c0_83] : memref<256x128xf32, #tpu.memory_space<vmem>>, vector<256x128xf32>
    tpu.vector_store %arg10[%c0_82, %c0_83], %70 {strides = array<i32>} : memref<256x128xf32, #tpu.memory_space<vmem>>, vector<256x128xf32>,
    %c1_84 = arith.constant 1 : index
    %c2_85 = arith.constant 2 : index
    %c0_86 = arith.constant 0 : index
    %72 = vector.load %arg9[%c1_84, %c2_85, %c0_86] : memref<18x18x128xbf16, #tpu.memory_space<vmem>>, vector<16x16x128xbf16>
    %c0_87 = arith.constant 0 : index
    %c0_88 = arith.constant 0 : index
    %73 = vector.load %arg10[%c0_87, %c0_88] : memref<256x128xf32, #tpu.memory_space<vmem>>, vector<256x128xf32>
    %74 = vector.shape_cast %72 : vector<16x16x128xbf16> to vector<256x128xbf16>
    %c1_89 = arith.constant 1 : index
    %c2_90 = arith.constant 2 : index
    %c0_91 = arith.constant 0 : index
    %c0_92 = arith.constant 0 : index
    %75 = vector.load %arg5[%c1_89, %c2_90, %c0_91, %c0_92] : memref<3x3x128x128xbf16, #tpu.memory_space<vmem>>, vector<1x1x128x128xbf16>
    %76 = vector.shape_cast %75 : vector<1x1x128x128xbf16> to vector<128x128xbf16>
    %cst_93 = arith.constant dense<0.000000e+00> : vector<256x128xf32>
    %77 = tpu.matmul %74, %76, %cst_93 {dimension_numbers = #tpu.dot_dimension_numbers<[1], [0], [0], [1], [0, 0, 1, 1], [], []>} : vector<256x128xbf16>, vector<128x128xbf16>, vector<256x128xf32> -> vector<256x128xf32>
    %78 = arith.addf %73, %77 : vector<256x128xf32>
    %c0_94 = arith.constant 0 : index
    %c0_95 = arith.constant 0 : index
    %79 = vector.load %arg10[%c0_94, %c0_95] : memref<256x128xf32, #tpu.memory_space<vmem>>, vector<256x128xf32>
    tpu.vector_store %arg10[%c0_94, %c0_95], %78 {strides = array<i32>} : memref<256x128xf32, #tpu.memory_space<vmem>>, vector<256x128xf32>,
    %c2_96 = arith.constant 2 : index
    %c0_97 = arith.constant 0 : index
    %c0_98 = arith.constant 0 : index
    %80 = vector.load %arg9[%c2_96, %c0_97, %c0_98] : memref<18x18x128xbf16, #tpu.memory_space<vmem>>, vector<16x16x128xbf16>
    %c0_99 = arith.constant 0 : index
    %c0_100 = arith.constant 0 : index
    %81 = vector.load %arg10[%c0_99, %c0_100] : memref<256x128xf32, #tpu.memory_space<vmem>>, vector<256x128xf32>
    %82 = vector.shape_cast %80 : vector<16x16x128xbf16> to vector<256x128xbf16>
    %c2_101 = arith.constant 2 : index
    %c0_102 = arith.constant 0 : index
    %c0_103 = arith.constant 0 : index
    %c0_104 = arith.constant 0 : index
    %83 = vector.load %arg5[%c2_101, %c0_102, %c0_103, %c0_104] : memref<3x3x128x128xbf16, #tpu.memory_space<vmem>>, vector<1x1x128x128xbf16>
    %84 = vector.shape_cast %83 : vector<1x1x128x128xbf16> to vector<128x128xbf16>
    %cst_105 = arith.constant dense<0.000000e+00> : vector<256x128xf32>
    %85 = tpu.matmul %82, %84, %cst_105 {dimension_numbers = #tpu.dot_dimension_numbers<[1], [0], [0], [1], [0, 0, 1, 1], [], []>} : vector<256x128xbf16>, vector<128x128xbf16>, vector<256x128xf32> -> vector<256x128xf32>
    %86 = arith.addf %81, %85 : vector<256x128xf32>
    %c0_106 = arith.constant 0 : index
    %c0_107 = arith.constant 0 : index
    %87 = vector.load %arg10[%c0_106, %c0_107] : memref<256x128xf32, #tpu.memory_space<vmem>>, vector<256x128xf32>
    tpu.vector_store %arg10[%c0_106, %c0_107], %86 {strides = array<i32>} : memref<256x128xf32, #tpu.memory_space<vmem>>, vector<256x128xf32>,
    %c2_108 = arith.constant 2 : index
    %c1_109 = arith.constant 1 : index
    %c0_110 = arith.constant 0 : index
    %88 = vector.load %arg9[%c2_108, %c1_109, %c0_110] : memref<18x18x128xbf16, #tpu.memory_space<vmem>>, vector<16x16x128xbf16>
    %c0_111 = arith.constant 0 : index
    %c0_112 = arith.constant 0 : index
    %89 = vector.load %arg10[%c0_111, %c0_112] : memref<256x128xf32, #tpu.memory_space<vmem>>, vector<256x128xf32>
    %90 = vector.shape_cast %88 : vector<16x16x128xbf16> to vector<256x128xbf16>
    %c2_113 = arith.constant 2 : index
    %c1_114 = arith.constant 1 : index
    %c0_115 = arith.constant 0 : index
    %c0_116 = arith.constant 0 : index
    %91 = vector.load %arg5[%c2_113, %c1_114, %c0_115, %c0_116] : memref<3x3x128x128xbf16, #tpu.memory_space<vmem>>, vector<1x1x128x128xbf16>
    %92 = vector.shape_cast %91 : vector<1x1x128x128xbf16> to vector<128x128xbf16>
    %cst_117 = arith.constant dense<0.000000e+00> : vector<256x128xf32>
    %93 = tpu.matmul %90, %92, %cst_117 {dimension_numbers = #tpu.dot_dimension_numbers<[1], [0], [0], [1], [0, 0, 1, 1], [], []>} : vector<256x128xbf16>, vector<128x128xbf16>, vector<256x128xf32> -> vector<256x128xf32>
    %94 = arith.addf %89, %93 : vector<256x128xf32>
    %c0_118 = arith.constant 0 : index
    %c0_119 = arith.constant 0 : index
    %95 = vector.load %arg10[%c0_118, %c0_119] : memref<256x128xf32, #tpu.memory_space<vmem>>, vector<256x128xf32>
    tpu.vector_store %arg10[%c0_118, %c0_119], %94 {strides = array<i32>} : memref<256x128xf32, #tpu.memory_space<vmem>>, vector<256x128xf32>,
    %c2_120 = arith.constant 2 : index
    %c2_121 = arith.constant 2 : index
    %c0_122 = arith.constant 0 : index
    %96 = vector.load %arg9[%c2_120, %c2_121, %c0_122] : memref<18x18x128xbf16, #tpu.memory_space<vmem>>, vector<16x16x128xbf16>
    %c0_123 = arith.constant 0 : index
    %c0_124 = arith.constant 0 : index
    %97 = vector.load %arg10[%c0_123, %c0_124] : memref<256x128xf32, #tpu.memory_space<vmem>>, vector<256x128xf32>
    %98 = vector.shape_cast %96 : vector<16x16x128xbf16> to vector<256x128xbf16>
    %c2_125 = arith.constant 2 : index
    %c2_126 = arith.constant 2 : index
    %c0_127 = arith.constant 0 : index
    %c0_128 = arith.constant 0 : index
    %99 = vector.load %arg5[%c2_125, %c2_126, %c0_127, %c0_128] : memref<3x3x128x128xbf16, #tpu.memory_space<vmem>>, vector<1x1x128x128xbf16>
    %100 = vector.shape_cast %99 : vector<1x1x128x128xbf16> to vector<128x128xbf16>
    %cst_129 = arith.constant dense<0.000000e+00> : vector<256x128xf32>
    %101 = tpu.matmul %98, %100, %cst_129 {dimension_numbers = #tpu.dot_dimension_numbers<[1], [0], [0], [1], [0, 0, 1, 1], [], []>} : vector<256x128xbf16>, vector<128x128xbf16>, vector<256x128xf32> -> vector<256x128xf32>
    %102 = arith.addf %97, %101 : vector<256x128xf32>
    %c0_130 = arith.constant 0 : index
    %c0_131 = arith.constant 0 : index
    %103 = vector.load %arg10[%c0_130, %c0_131] : memref<256x128xf32, #tpu.memory_space<vmem>>, vector<256x128xf32>
    tpu.vector_store %arg10[%c0_130, %c0_131], %102 {strides = array<i32>} : memref<256x128xf32, #tpu.memory_space<vmem>>, vector<256x128xf32>,
    %c0_132 = arith.constant 0 : index
    %c0_133 = arith.constant 0 : index
    %104 = vector.load %arg10[%c0_132, %c0_133] : memref<256x128xf32, #tpu.memory_space<vmem>>, vector<256x128xf32>
    %105 = vector.shape_cast %104 : vector<256x128xf32> to vector<16x16x128xf32>
    %c0_134 = arith.constant 0 : index
    %c0_135 = arith.constant 0 : index
    %c0_136 = arith.constant 0 : index
    %c0_137 = arith.constant 0 : index
    %106 = vector.load %arg8[%c0_134, %c0_135, %c0_136, %c0_137] : memref<1x16x16x128xf32, #tpu.memory_space<vmem>>, vector<1x16x16x128xf32>
    %107 = vector.shape_cast %106 : vector<1x16x16x128xf32> to vector<16x16x128xf32>
    %108 = vector.shape_cast %105 : vector<16x16x128xf32> to vector<1x16x16x128xf32>
    tpu.vector_store %arg8[%c0_134, %c0_135, %c0_136, %c0_137], %108 {strides = array<i32>} : memref<1x16x16x128xf32, #tpu.memory_space<vmem>>, vector<1x16x16x128xf32>,
    return
  }
  func.func @transform_0(%arg0: i32) -> (i32, i32, i32, i32) {
    %c0_i32 = arith.constant 0 : i32
    %c0_i32_0 = arith.constant 0 : i32
    %c0_i32_1 = arith.constant 0 : i32
    %c0_i32_2 = arith.constant 0 : i32
    return %arg0, %c0_i32, %c0_i32_0, %c0_i32_1 : i32, i32, i32, i32
  }
  func.func @transform_1(%arg0: i32) -> (i32, i32, i32, i32) {
    %c0_i32 = arith.constant 0 : i32
    %c0_i32_0 = arith.constant 0 : i32
    %c0_i32_1 = arith.constant 0 : i32
    %c0_i32_2 = arith.constant 0 : i32
    return %arg0, %c0_i32, %c0_i32_0, %c0_i32_1 : i32, i32, i32, i32
  }
  func.func @transform_2(%arg0: i32) -> (i32, i32) {
    %c0_i32 = arith.constant 0 : i32
    %c0_i32_0 = arith.constant 0 : i32
    %c0_i32_1 = arith.constant 0 : i32
    return %c0_i32, %c0_i32_0 : i32, i32
  }
  func.func @transform_3(%arg0: i32) -> (i32, i32) {
    %c0_i32 = arith.constant 0 : i32
    %c0_i32_0 = arith.constant 0 : i32
    %c0_i32_1 = arith.constant 0 : i32
    return %c0_i32, %c0_i32_0 : i32, i32
  }
  func.func @transform_4(%arg0: i32) -> (i32, i32, i32, i32) {
    %c0_i32 = arith.constant 0 : i32
    %c0_i32_0 = arith.constant 0 : i32
    %c0_i32_1 = arith.constant 0 : i32
    %c0_i32_2 = arith.constant 0 : i32
    %c0_i32_3 = arith.constant 0 : i32
    return %c0_i32, %c0_i32_0, %c0_i32_1, %c0_i32_2 : i32, i32, i32, i32
  }
  func.func @transform_5(%arg0: i32) -> (i32, i32) {
    %c0_i32 = arith.constant 0 : i32
    %c0_i32_0 = arith.constant 0 : i32
    %c0_i32_1 = arith.constant 0 : i32
    return %c0_i32, %c0_i32_0 : i32, i32
  }
  func.func @transform_6(%arg0: i32) -> (i32, i32, i32, i32) {
    %c0_i32 = arith.constant 0 : i32
    %c0_i32_0 = arith.constant 0 : i32
    %c0_i32_1 = arith.constant 0 : i32
    %c0_i32_2 = arith.constant 0 : i32
    return %arg0, %c0_i32, %c0_i32_0, %c0_i32_1 : i32, i32, i32, i32
  }
  func.func @transform_7(%arg0: i32) -> (i32, i32, i32, i32) {
    %c0_i32 = arith.constant 0 : i32
    %c0_i32_0 = arith.constant 0 : i32
    %c0_i32_1 = arith.constant 0 : i32
    %c0_i32_2 = arith.constant 0 : i32
    return %arg0, %c0_i32, %c0_i32_0, %c0_i32_1 : i32, i32, i32, i32
  }
}

module attributes {stable_mosaic.version = 11 : i64} {
  func.func @_level_mid_kernel(%arg0: i32, %arg1: memref<1x8x8x32xf32, #tpu.memory_space<vmem>>, %arg2: memref<1x4x4x128xf32, #tpu.memory_space<vmem>>, %arg3: memref<32x128xbf16, #tpu.memory_space<vmem>>, %arg4: memref<1x128xf32, #tpu.memory_space<vmem>>, %arg5: memref<3x3x128x128xbf16, #tpu.memory_space<vmem>>, %arg6: memref<1x128xf32, #tpu.memory_space<vmem>>, %arg7: memref<1x8x8x128xf32, #tpu.memory_space<vmem>>, %arg8: memref<1x8x8x128xf32, #tpu.memory_space<vmem>>, %arg9: memref<10x10x128xbf16, #tpu.memory_space<vmem>>, %arg10: memref<64x128xf32, #tpu.memory_space<vmem>>) attributes {dimension_semantics = [#tpu.dimension_semantics<parallel>], iteration_bounds = array<i64: 2>, scalar_prefetch = 0 : i64, scratch_operands = 2 : i64, tpu.core_type = #tpu.core_type<tc>, window_params = [{transform_indices = @transform_0, window_bounds = array<i64: 1, 8, 8, 32>}, {transform_indices = @transform_1, window_bounds = array<i64: 1, 4, 4, 128>}, {pipeline_mode = #tpu.pipeline_mode<synchronous>, transform_indices = @transform_2, window_bounds = array<i64: 32, 128>}, {pipeline_mode = #tpu.pipeline_mode<synchronous>, transform_indices = @transform_3, window_bounds = array<i64: 1, 128>}, {pipeline_mode = #tpu.pipeline_mode<synchronous>, transform_indices = @transform_4, window_bounds = array<i64: 3, 3, 128, 128>}, {pipeline_mode = #tpu.pipeline_mode<synchronous>, transform_indices = @transform_5, window_bounds = array<i64: 1, 128>}, {transform_indices = @transform_6, window_bounds = array<i64: 1, 8, 8, 128>}, {transform_indices = @transform_7, window_bounds = array<i64: 1, 8, 8, 128>}]} {
    %c0 = arith.constant 0 : index
    %c0_0 = arith.constant 0 : index
    %c0_1 = arith.constant 0 : index
    %c0_2 = arith.constant 0 : index
    %0 = vector.load %arg1[%c0, %c0_0, %c0_1, %c0_2] : memref<1x8x8x32xf32, #tpu.memory_space<vmem>>, vector<1x8x8x32xf32>
    %1 = vector.shape_cast %0 : vector<1x8x8x32xf32> to vector<8x8x32xf32>
    %2 = vector.shape_cast %1 : vector<8x8x32xf32> to vector<64x32xf32>
    %3 = arith.truncf %2 : vector<64x32xf32> to vector<64x32xbf16>
    %c0_3 = arith.constant 0 : index
    %c0_4 = arith.constant 0 : index
    %4 = vector.load %arg3[%c0_3, %c0_4] : memref<32x128xbf16, #tpu.memory_space<vmem>>, vector<32x128xbf16>
    %cst = arith.constant dense<0.000000e+00> : vector<64x128xf32>
    %5 = tpu.matmul %3, %4, %cst {dimension_numbers = #tpu.dot_dimension_numbers<[1], [0], [0], [1], [0, 0, 1, 1], [], []>} : vector<64x32xbf16>, vector<32x128xbf16>, vector<64x128xf32> -> vector<64x128xf32>
    %c0_5 = arith.constant 0 : index
    %c0_6 = arith.constant 0 : index
    %6 = vector.load %arg4[%c0_5, %c0_6] : memref<1x128xf32, #tpu.memory_space<vmem>>, vector<1x128xf32>
    %7 = vector.broadcast %6 : vector<1x128xf32> to vector<64x128xf32>
    %8 = arith.addf %5, %7 : vector<64x128xf32>
    %9 = vector.shape_cast %8 : vector<64x128xf32> to vector<8x8x128xf32>
    %c0_7 = arith.constant 0 : index
    %c0_8 = arith.constant 0 : index
    %c0_9 = arith.constant 0 : index
    %c0_10 = arith.constant 0 : index
    %10 = vector.load %arg2[%c0_7, %c0_8, %c0_9, %c0_10] : memref<1x4x4x128xf32, #tpu.memory_space<vmem>>, vector<1x4x4x128xf32>
    %11 = vector.shape_cast %10 : vector<1x4x4x128xf32> to vector<4x4x128xf32>
    %12 = vector.shape_cast %11 : vector<4x4x128xf32> to vector<4x1x4x128xf32>
    %13 = vector.shape_cast %12 : vector<4x1x4x128xf32> to vector<4x1x4x128xf32>
    %14 = vector.broadcast %13 : vector<4x1x4x128xf32> to vector<4x2x4x128xf32>
    %15 = vector.shape_cast %14 : vector<4x2x4x128xf32> to vector<8x4x128xf32>
    %16 = vector.shape_cast %15 : vector<8x4x128xf32> to vector<8x4x1x128xf32>
    %17 = vector.shape_cast %16 : vector<8x4x1x128xf32> to vector<8x4x1x128xf32>
    %18 = vector.broadcast %17 : vector<8x4x1x128xf32> to vector<8x4x2x128xf32>
    %19 = vector.shape_cast %18 : vector<8x4x2x128xf32> to vector<8x8x128xf32>
    %20 = arith.addf %9, %19 : vector<8x8x128xf32>
    %c0_11 = arith.constant 0 : index
    %c0_12 = arith.constant 0 : index
    %c0_13 = arith.constant 0 : index
    %c0_14 = arith.constant 0 : index
    %21 = vector.load %arg7[%c0_11, %c0_12, %c0_13, %c0_14] : memref<1x8x8x128xf32, #tpu.memory_space<vmem>>, vector<1x8x8x128xf32>
    %22 = vector.shape_cast %21 : vector<1x8x8x128xf32> to vector<8x8x128xf32>
    %23 = vector.shape_cast %20 : vector<8x8x128xf32> to vector<1x8x8x128xf32>
    tpu.vector_store %arg7[%c0_11, %c0_12, %c0_13, %c0_14], %23 {strides = array<i32>} : memref<1x8x8x128xf32, #tpu.memory_space<vmem>>, vector<1x8x8x128xf32>,
    %cst_15 = arith.constant 0.000000e+00 : bf16
    %24 = vector.broadcast %cst_15 : bf16 to vector<10x10x128xbf16>
    %c0_16 = arith.constant 0 : index
    %c0_17 = arith.constant 0 : index
    %c0_18 = arith.constant 0 : index
    %25 = vector.load %arg9[%c0_16, %c0_17, %c0_18] : memref<10x10x128xbf16, #tpu.memory_space<vmem>>, vector<10x10x128xbf16>
    tpu.vector_store %arg9[%c0_16, %c0_17, %c0_18], %24 {strides = array<i32>} : memref<10x10x128xbf16, #tpu.memory_space<vmem>>, vector<10x10x128xbf16>,
    %26 = arith.truncf %20 : vector<8x8x128xf32> to vector<8x8x128xbf16>
    %c1 = arith.constant 1 : index
    %c1_19 = arith.constant 1 : index
    %c0_20 = arith.constant 0 : index
    %27 = vector.load %arg9[%c1, %c1_19, %c0_20] : memref<10x10x128xbf16, #tpu.memory_space<vmem>>, vector<8x8x128xbf16>
    tpu.vector_store %arg9[%c1, %c1_19, %c0_20], %26 {strides = array<i32>} : memref<10x10x128xbf16, #tpu.memory_space<vmem>>, vector<8x8x128xbf16>,
    %c0_21 = arith.constant 0 : index
    %c0_22 = arith.constant 0 : index
    %28 = vector.load %arg6[%c0_21, %c0_22] : memref<1x128xf32, #tpu.memory_space<vmem>>, vector<1x128xf32>
    %29 = vector.shape_cast %28 : vector<1x128xf32> to vector<1x128xf32>
    %30 = vector.broadcast %29 : vector<1x128xf32> to vector<64x128xf32>
    %c0_23 = arith.constant 0 : index
    %c0_24 = arith.constant 0 : index
    %31 = vector.load %arg10[%c0_23, %c0_24] : memref<64x128xf32, #tpu.memory_space<vmem>>, vector<64x128xf32>
    tpu.vector_store %arg10[%c0_23, %c0_24], %30 {strides = array<i32>} : memref<64x128xf32, #tpu.memory_space<vmem>>, vector<64x128xf32>,
    %c0_25 = arith.constant 0 : index
    %c0_26 = arith.constant 0 : index
    %c0_27 = arith.constant 0 : index
    %32 = vector.load %arg9[%c0_25, %c0_26, %c0_27] : memref<10x10x128xbf16, #tpu.memory_space<vmem>>, vector<8x8x128xbf16>
    %c0_28 = arith.constant 0 : index
    %c0_29 = arith.constant 0 : index
    %33 = vector.load %arg10[%c0_28, %c0_29] : memref<64x128xf32, #tpu.memory_space<vmem>>, vector<64x128xf32>
    %34 = vector.shape_cast %32 : vector<8x8x128xbf16> to vector<64x128xbf16>
    %c0_30 = arith.constant 0 : index
    %c0_31 = arith.constant 0 : index
    %c0_32 = arith.constant 0 : index
    %c0_33 = arith.constant 0 : index
    %35 = vector.load %arg5[%c0_30, %c0_31, %c0_32, %c0_33] : memref<3x3x128x128xbf16, #tpu.memory_space<vmem>>, vector<1x1x128x128xbf16>
    %36 = vector.shape_cast %35 : vector<1x1x128x128xbf16> to vector<128x128xbf16>
    %cst_34 = arith.constant dense<0.000000e+00> : vector<64x128xf32>
    %37 = tpu.matmul %34, %36, %cst_34 {dimension_numbers = #tpu.dot_dimension_numbers<[1], [0], [0], [1], [0, 0, 1, 1], [], []>} : vector<64x128xbf16>, vector<128x128xbf16>, vector<64x128xf32> -> vector<64x128xf32>
    %38 = arith.addf %33, %37 : vector<64x128xf32>
    %c0_35 = arith.constant 0 : index
    %c0_36 = arith.constant 0 : index
    %39 = vector.load %arg10[%c0_35, %c0_36] : memref<64x128xf32, #tpu.memory_space<vmem>>, vector<64x128xf32>
    tpu.vector_store %arg10[%c0_35, %c0_36], %38 {strides = array<i32>} : memref<64x128xf32, #tpu.memory_space<vmem>>, vector<64x128xf32>,
    %c0_37 = arith.constant 0 : index
    %c1_38 = arith.constant 1 : index
    %c0_39 = arith.constant 0 : index
    %40 = vector.load %arg9[%c0_37, %c1_38, %c0_39] : memref<10x10x128xbf16, #tpu.memory_space<vmem>>, vector<8x8x128xbf16>
    %c0_40 = arith.constant 0 : index
    %c0_41 = arith.constant 0 : index
    %41 = vector.load %arg10[%c0_40, %c0_41] : memref<64x128xf32, #tpu.memory_space<vmem>>, vector<64x128xf32>
    %42 = vector.shape_cast %40 : vector<8x8x128xbf16> to vector<64x128xbf16>
    %c0_42 = arith.constant 0 : index
    %c1_43 = arith.constant 1 : index
    %c0_44 = arith.constant 0 : index
    %c0_45 = arith.constant 0 : index
    %43 = vector.load %arg5[%c0_42, %c1_43, %c0_44, %c0_45] : memref<3x3x128x128xbf16, #tpu.memory_space<vmem>>, vector<1x1x128x128xbf16>
    %44 = vector.shape_cast %43 : vector<1x1x128x128xbf16> to vector<128x128xbf16>
    %cst_46 = arith.constant dense<0.000000e+00> : vector<64x128xf32>
    %45 = tpu.matmul %42, %44, %cst_46 {dimension_numbers = #tpu.dot_dimension_numbers<[1], [0], [0], [1], [0, 0, 1, 1], [], []>} : vector<64x128xbf16>, vector<128x128xbf16>, vector<64x128xf32> -> vector<64x128xf32>
    %46 = arith.addf %41, %45 : vector<64x128xf32>
    %c0_47 = arith.constant 0 : index
    %c0_48 = arith.constant 0 : index
    %47 = vector.load %arg10[%c0_47, %c0_48] : memref<64x128xf32, #tpu.memory_space<vmem>>, vector<64x128xf32>
    tpu.vector_store %arg10[%c0_47, %c0_48], %46 {strides = array<i32>} : memref<64x128xf32, #tpu.memory_space<vmem>>, vector<64x128xf32>,
    %c0_49 = arith.constant 0 : index
    %c2 = arith.constant 2 : index
    %c0_50 = arith.constant 0 : index
    %48 = vector.load %arg9[%c0_49, %c2, %c0_50] : memref<10x10x128xbf16, #tpu.memory_space<vmem>>, vector<8x8x128xbf16>
    %c0_51 = arith.constant 0 : index
    %c0_52 = arith.constant 0 : index
    %49 = vector.load %arg10[%c0_51, %c0_52] : memref<64x128xf32, #tpu.memory_space<vmem>>, vector<64x128xf32>
    %50 = vector.shape_cast %48 : vector<8x8x128xbf16> to vector<64x128xbf16>
    %c0_53 = arith.constant 0 : index
    %c2_54 = arith.constant 2 : index
    %c0_55 = arith.constant 0 : index
    %c0_56 = arith.constant 0 : index
    %51 = vector.load %arg5[%c0_53, %c2_54, %c0_55, %c0_56] : memref<3x3x128x128xbf16, #tpu.memory_space<vmem>>, vector<1x1x128x128xbf16>
    %52 = vector.shape_cast %51 : vector<1x1x128x128xbf16> to vector<128x128xbf16>
    %cst_57 = arith.constant dense<0.000000e+00> : vector<64x128xf32>
    %53 = tpu.matmul %50, %52, %cst_57 {dimension_numbers = #tpu.dot_dimension_numbers<[1], [0], [0], [1], [0, 0, 1, 1], [], []>} : vector<64x128xbf16>, vector<128x128xbf16>, vector<64x128xf32> -> vector<64x128xf32>
    %54 = arith.addf %49, %53 : vector<64x128xf32>
    %c0_58 = arith.constant 0 : index
    %c0_59 = arith.constant 0 : index
    %55 = vector.load %arg10[%c0_58, %c0_59] : memref<64x128xf32, #tpu.memory_space<vmem>>, vector<64x128xf32>
    tpu.vector_store %arg10[%c0_58, %c0_59], %54 {strides = array<i32>} : memref<64x128xf32, #tpu.memory_space<vmem>>, vector<64x128xf32>,
    %c1_60 = arith.constant 1 : index
    %c0_61 = arith.constant 0 : index
    %c0_62 = arith.constant 0 : index
    %56 = vector.load %arg9[%c1_60, %c0_61, %c0_62] : memref<10x10x128xbf16, #tpu.memory_space<vmem>>, vector<8x8x128xbf16>
    %c0_63 = arith.constant 0 : index
    %c0_64 = arith.constant 0 : index
    %57 = vector.load %arg10[%c0_63, %c0_64] : memref<64x128xf32, #tpu.memory_space<vmem>>, vector<64x128xf32>
    %58 = vector.shape_cast %56 : vector<8x8x128xbf16> to vector<64x128xbf16>
    %c1_65 = arith.constant 1 : index
    %c0_66 = arith.constant 0 : index
    %c0_67 = arith.constant 0 : index
    %c0_68 = arith.constant 0 : index
    %59 = vector.load %arg5[%c1_65, %c0_66, %c0_67, %c0_68] : memref<3x3x128x128xbf16, #tpu.memory_space<vmem>>, vector<1x1x128x128xbf16>
    %60 = vector.shape_cast %59 : vector<1x1x128x128xbf16> to vector<128x128xbf16>
    %cst_69 = arith.constant dense<0.000000e+00> : vector<64x128xf32>
    %61 = tpu.matmul %58, %60, %cst_69 {dimension_numbers = #tpu.dot_dimension_numbers<[1], [0], [0], [1], [0, 0, 1, 1], [], []>} : vector<64x128xbf16>, vector<128x128xbf16>, vector<64x128xf32> -> vector<64x128xf32>
    %62 = arith.addf %57, %61 : vector<64x128xf32>
    %c0_70 = arith.constant 0 : index
    %c0_71 = arith.constant 0 : index
    %63 = vector.load %arg10[%c0_70, %c0_71] : memref<64x128xf32, #tpu.memory_space<vmem>>, vector<64x128xf32>
    tpu.vector_store %arg10[%c0_70, %c0_71], %62 {strides = array<i32>} : memref<64x128xf32, #tpu.memory_space<vmem>>, vector<64x128xf32>,
    %c1_72 = arith.constant 1 : index
    %c1_73 = arith.constant 1 : index
    %c0_74 = arith.constant 0 : index
    %64 = vector.load %arg9[%c1_72, %c1_73, %c0_74] : memref<10x10x128xbf16, #tpu.memory_space<vmem>>, vector<8x8x128xbf16>
    %c0_75 = arith.constant 0 : index
    %c0_76 = arith.constant 0 : index
    %65 = vector.load %arg10[%c0_75, %c0_76] : memref<64x128xf32, #tpu.memory_space<vmem>>, vector<64x128xf32>
    %66 = vector.shape_cast %64 : vector<8x8x128xbf16> to vector<64x128xbf16>
    %c1_77 = arith.constant 1 : index
    %c1_78 = arith.constant 1 : index
    %c0_79 = arith.constant 0 : index
    %c0_80 = arith.constant 0 : index
    %67 = vector.load %arg5[%c1_77, %c1_78, %c0_79, %c0_80] : memref<3x3x128x128xbf16, #tpu.memory_space<vmem>>, vector<1x1x128x128xbf16>
    %68 = vector.shape_cast %67 : vector<1x1x128x128xbf16> to vector<128x128xbf16>
    %cst_81 = arith.constant dense<0.000000e+00> : vector<64x128xf32>
    %69 = tpu.matmul %66, %68, %cst_81 {dimension_numbers = #tpu.dot_dimension_numbers<[1], [0], [0], [1], [0, 0, 1, 1], [], []>} : vector<64x128xbf16>, vector<128x128xbf16>, vector<64x128xf32> -> vector<64x128xf32>
    %70 = arith.addf %65, %69 : vector<64x128xf32>
    %c0_82 = arith.constant 0 : index
    %c0_83 = arith.constant 0 : index
    %71 = vector.load %arg10[%c0_82, %c0_83] : memref<64x128xf32, #tpu.memory_space<vmem>>, vector<64x128xf32>
    tpu.vector_store %arg10[%c0_82, %c0_83], %70 {strides = array<i32>} : memref<64x128xf32, #tpu.memory_space<vmem>>, vector<64x128xf32>,
    %c1_84 = arith.constant 1 : index
    %c2_85 = arith.constant 2 : index
    %c0_86 = arith.constant 0 : index
    %72 = vector.load %arg9[%c1_84, %c2_85, %c0_86] : memref<10x10x128xbf16, #tpu.memory_space<vmem>>, vector<8x8x128xbf16>
    %c0_87 = arith.constant 0 : index
    %c0_88 = arith.constant 0 : index
    %73 = vector.load %arg10[%c0_87, %c0_88] : memref<64x128xf32, #tpu.memory_space<vmem>>, vector<64x128xf32>
    %74 = vector.shape_cast %72 : vector<8x8x128xbf16> to vector<64x128xbf16>
    %c1_89 = arith.constant 1 : index
    %c2_90 = arith.constant 2 : index
    %c0_91 = arith.constant 0 : index
    %c0_92 = arith.constant 0 : index
    %75 = vector.load %arg5[%c1_89, %c2_90, %c0_91, %c0_92] : memref<3x3x128x128xbf16, #tpu.memory_space<vmem>>, vector<1x1x128x128xbf16>
    %76 = vector.shape_cast %75 : vector<1x1x128x128xbf16> to vector<128x128xbf16>
    %cst_93 = arith.constant dense<0.000000e+00> : vector<64x128xf32>
    %77 = tpu.matmul %74, %76, %cst_93 {dimension_numbers = #tpu.dot_dimension_numbers<[1], [0], [0], [1], [0, 0, 1, 1], [], []>} : vector<64x128xbf16>, vector<128x128xbf16>, vector<64x128xf32> -> vector<64x128xf32>
    %78 = arith.addf %73, %77 : vector<64x128xf32>
    %c0_94 = arith.constant 0 : index
    %c0_95 = arith.constant 0 : index
    %79 = vector.load %arg10[%c0_94, %c0_95] : memref<64x128xf32, #tpu.memory_space<vmem>>, vector<64x128xf32>
    tpu.vector_store %arg10[%c0_94, %c0_95], %78 {strides = array<i32>} : memref<64x128xf32, #tpu.memory_space<vmem>>, vector<64x128xf32>,
    %c2_96 = arith.constant 2 : index
    %c0_97 = arith.constant 0 : index
    %c0_98 = arith.constant 0 : index
    %80 = vector.load %arg9[%c2_96, %c0_97, %c0_98] : memref<10x10x128xbf16, #tpu.memory_space<vmem>>, vector<8x8x128xbf16>
    %c0_99 = arith.constant 0 : index
    %c0_100 = arith.constant 0 : index
    %81 = vector.load %arg10[%c0_99, %c0_100] : memref<64x128xf32, #tpu.memory_space<vmem>>, vector<64x128xf32>
    %82 = vector.shape_cast %80 : vector<8x8x128xbf16> to vector<64x128xbf16>
    %c2_101 = arith.constant 2 : index
    %c0_102 = arith.constant 0 : index
    %c0_103 = arith.constant 0 : index
    %c0_104 = arith.constant 0 : index
    %83 = vector.load %arg5[%c2_101, %c0_102, %c0_103, %c0_104] : memref<3x3x128x128xbf16, #tpu.memory_space<vmem>>, vector<1x1x128x128xbf16>
    %84 = vector.shape_cast %83 : vector<1x1x128x128xbf16> to vector<128x128xbf16>
    %cst_105 = arith.constant dense<0.000000e+00> : vector<64x128xf32>
    %85 = tpu.matmul %82, %84, %cst_105 {dimension_numbers = #tpu.dot_dimension_numbers<[1], [0], [0], [1], [0, 0, 1, 1], [], []>} : vector<64x128xbf16>, vector<128x128xbf16>, vector<64x128xf32> -> vector<64x128xf32>
    %86 = arith.addf %81, %85 : vector<64x128xf32>
    %c0_106 = arith.constant 0 : index
    %c0_107 = arith.constant 0 : index
    %87 = vector.load %arg10[%c0_106, %c0_107] : memref<64x128xf32, #tpu.memory_space<vmem>>, vector<64x128xf32>
    tpu.vector_store %arg10[%c0_106, %c0_107], %86 {strides = array<i32>} : memref<64x128xf32, #tpu.memory_space<vmem>>, vector<64x128xf32>,
    %c2_108 = arith.constant 2 : index
    %c1_109 = arith.constant 1 : index
    %c0_110 = arith.constant 0 : index
    %88 = vector.load %arg9[%c2_108, %c1_109, %c0_110] : memref<10x10x128xbf16, #tpu.memory_space<vmem>>, vector<8x8x128xbf16>
    %c0_111 = arith.constant 0 : index
    %c0_112 = arith.constant 0 : index
    %89 = vector.load %arg10[%c0_111, %c0_112] : memref<64x128xf32, #tpu.memory_space<vmem>>, vector<64x128xf32>
    %90 = vector.shape_cast %88 : vector<8x8x128xbf16> to vector<64x128xbf16>
    %c2_113 = arith.constant 2 : index
    %c1_114 = arith.constant 1 : index
    %c0_115 = arith.constant 0 : index
    %c0_116 = arith.constant 0 : index
    %91 = vector.load %arg5[%c2_113, %c1_114, %c0_115, %c0_116] : memref<3x3x128x128xbf16, #tpu.memory_space<vmem>>, vector<1x1x128x128xbf16>
    %92 = vector.shape_cast %91 : vector<1x1x128x128xbf16> to vector<128x128xbf16>
    %cst_117 = arith.constant dense<0.000000e+00> : vector<64x128xf32>
    %93 = tpu.matmul %90, %92, %cst_117 {dimension_numbers = #tpu.dot_dimension_numbers<[1], [0], [0], [1], [0, 0, 1, 1], [], []>} : vector<64x128xbf16>, vector<128x128xbf16>, vector<64x128xf32> -> vector<64x128xf32>
    %94 = arith.addf %89, %93 : vector<64x128xf32>
    %c0_118 = arith.constant 0 : index
    %c0_119 = arith.constant 0 : index
    %95 = vector.load %arg10[%c0_118, %c0_119] : memref<64x128xf32, #tpu.memory_space<vmem>>, vector<64x128xf32>
    tpu.vector_store %arg10[%c0_118, %c0_119], %94 {strides = array<i32>} : memref<64x128xf32, #tpu.memory_space<vmem>>, vector<64x128xf32>,
    %c2_120 = arith.constant 2 : index
    %c2_121 = arith.constant 2 : index
    %c0_122 = arith.constant 0 : index
    %96 = vector.load %arg9[%c2_120, %c2_121, %c0_122] : memref<10x10x128xbf16, #tpu.memory_space<vmem>>, vector<8x8x128xbf16>
    %c0_123 = arith.constant 0 : index
    %c0_124 = arith.constant 0 : index
    %97 = vector.load %arg10[%c0_123, %c0_124] : memref<64x128xf32, #tpu.memory_space<vmem>>, vector<64x128xf32>
    %98 = vector.shape_cast %96 : vector<8x8x128xbf16> to vector<64x128xbf16>
    %c2_125 = arith.constant 2 : index
    %c2_126 = arith.constant 2 : index
    %c0_127 = arith.constant 0 : index
    %c0_128 = arith.constant 0 : index
    %99 = vector.load %arg5[%c2_125, %c2_126, %c0_127, %c0_128] : memref<3x3x128x128xbf16, #tpu.memory_space<vmem>>, vector<1x1x128x128xbf16>
    %100 = vector.shape_cast %99 : vector<1x1x128x128xbf16> to vector<128x128xbf16>
    %cst_129 = arith.constant dense<0.000000e+00> : vector<64x128xf32>
    %101 = tpu.matmul %98, %100, %cst_129 {dimension_numbers = #tpu.dot_dimension_numbers<[1], [0], [0], [1], [0, 0, 1, 1], [], []>} : vector<64x128xbf16>, vector<128x128xbf16>, vector<64x128xf32> -> vector<64x128xf32>
    %102 = arith.addf %97, %101 : vector<64x128xf32>
    %c0_130 = arith.constant 0 : index
    %c0_131 = arith.constant 0 : index
    %103 = vector.load %arg10[%c0_130, %c0_131] : memref<64x128xf32, #tpu.memory_space<vmem>>, vector<64x128xf32>
    tpu.vector_store %arg10[%c0_130, %c0_131], %102 {strides = array<i32>} : memref<64x128xf32, #tpu.memory_space<vmem>>, vector<64x128xf32>,
    %c0_132 = arith.constant 0 : index
    %c0_133 = arith.constant 0 : index
    %104 = vector.load %arg10[%c0_132, %c0_133] : memref<64x128xf32, #tpu.memory_space<vmem>>, vector<64x128xf32>
    %105 = vector.shape_cast %104 : vector<64x128xf32> to vector<8x8x128xf32>
    %c0_134 = arith.constant 0 : index
    %c0_135 = arith.constant 0 : index
    %c0_136 = arith.constant 0 : index
    %c0_137 = arith.constant 0 : index
    %106 = vector.load %arg8[%c0_134, %c0_135, %c0_136, %c0_137] : memref<1x8x8x128xf32, #tpu.memory_space<vmem>>, vector<1x8x8x128xf32>
    %107 = vector.shape_cast %106 : vector<1x8x8x128xf32> to vector<8x8x128xf32>
    %108 = vector.shape_cast %105 : vector<8x8x128xf32> to vector<1x8x8x128xf32>
    tpu.vector_store %arg8[%c0_134, %c0_135, %c0_136, %c0_137], %108 {strides = array<i32>} : memref<1x8x8x128xf32, #tpu.memory_space<vmem>>, vector<1x8x8x128xf32>,
    return
  }
  func.func @transform_0(%arg0: i32) -> (i32, i32, i32, i32) {
    %c0_i32 = arith.constant 0 : i32
    %c0_i32_0 = arith.constant 0 : i32
    %c0_i32_1 = arith.constant 0 : i32
    %c0_i32_2 = arith.constant 0 : i32
    return %arg0, %c0_i32, %c0_i32_0, %c0_i32_1 : i32, i32, i32, i32
  }
  func.func @transform_1(%arg0: i32) -> (i32, i32, i32, i32) {
    %c0_i32 = arith.constant 0 : i32
    %c0_i32_0 = arith.constant 0 : i32
    %c0_i32_1 = arith.constant 0 : i32
    %c0_i32_2 = arith.constant 0 : i32
    return %arg0, %c0_i32, %c0_i32_0, %c0_i32_1 : i32, i32, i32, i32
  }
  func.func @transform_2(%arg0: i32) -> (i32, i32) {
    %c0_i32 = arith.constant 0 : i32
    %c0_i32_0 = arith.constant 0 : i32
    %c0_i32_1 = arith.constant 0 : i32
    return %c0_i32, %c0_i32_0 : i32, i32
  }
  func.func @transform_3(%arg0: i32) -> (i32, i32) {
    %c0_i32 = arith.constant 0 : i32
    %c0_i32_0 = arith.constant 0 : i32
    %c0_i32_1 = arith.constant 0 : i32
    return %c0_i32, %c0_i32_0 : i32, i32
  }
  func.func @transform_4(%arg0: i32) -> (i32, i32, i32, i32) {
    %c0_i32 = arith.constant 0 : i32
    %c0_i32_0 = arith.constant 0 : i32
    %c0_i32_1 = arith.constant 0 : i32
    %c0_i32_2 = arith.constant 0 : i32
    %c0_i32_3 = arith.constant 0 : i32
    return %c0_i32, %c0_i32_0, %c0_i32_1, %c0_i32_2 : i32, i32, i32, i32
  }
  func.func @transform_5(%arg0: i32) -> (i32, i32) {
    %c0_i32 = arith.constant 0 : i32
    %c0_i32_0 = arith.constant 0 : i32
    %c0_i32_1 = arith.constant 0 : i32
    return %c0_i32, %c0_i32_0 : i32, i32
  }
  func.func @transform_6(%arg0: i32) -> (i32, i32, i32, i32) {
    %c0_i32 = arith.constant 0 : i32
    %c0_i32_0 = arith.constant 0 : i32
    %c0_i32_1 = arith.constant 0 : i32
    %c0_i32_2 = arith.constant 0 : i32
    return %arg0, %c0_i32, %c0_i32_0, %c0_i32_1 : i32, i32, i32, i32
  }
  func.func @transform_7(%arg0: i32) -> (i32, i32, i32, i32) {
    %c0_i32 = arith.constant 0 : i32
    %c0_i32_0 = arith.constant 0 : i32
    %c0_i32_1 = arith.constant 0 : i32
    %c0_i32_2 = arith.constant 0 : i32
    return %arg0, %c0_i32, %c0_i32_0, %c0_i32_1 : i32, i32, i32, i32
  }
}

module attributes {stable_mosaic.version = 11 : i64} {
  func.func @_level_top_kernel(%arg0: i32, %arg1: memref<1x4x4x64xf32, #tpu.memory_space<vmem>>, %arg2: memref<64x128xbf16, #tpu.memory_space<vmem>>, %arg3: memref<1x128xf32, #tpu.memory_space<vmem>>, %arg4: memref<3x3x128x128xbf16, #tpu.memory_space<vmem>>, %arg5: memref<1x128xf32, #tpu.memory_space<vmem>>, %arg6: memref<1x4x4x128xf32, #tpu.memory_space<vmem>>, %arg7: memref<1x4x4x128xf32, #tpu.memory_space<vmem>>, %arg8: memref<6x6x128xbf16, #tpu.memory_space<vmem>>, %arg9: memref<16x128xf32, #tpu.memory_space<vmem>>) attributes {dimension_semantics = [#tpu.dimension_semantics<parallel>], iteration_bounds = array<i64: 2>, scalar_prefetch = 0 : i64, scratch_operands = 2 : i64, tpu.core_type = #tpu.core_type<tc>, window_params = [{transform_indices = @transform_0, window_bounds = array<i64: 1, 4, 4, 64>}, {pipeline_mode = #tpu.pipeline_mode<synchronous>, transform_indices = @transform_1, window_bounds = array<i64: 64, 128>}, {pipeline_mode = #tpu.pipeline_mode<synchronous>, transform_indices = @transform_2, window_bounds = array<i64: 1, 128>}, {pipeline_mode = #tpu.pipeline_mode<synchronous>, transform_indices = @transform_3, window_bounds = array<i64: 3, 3, 128, 128>}, {pipeline_mode = #tpu.pipeline_mode<synchronous>, transform_indices = @transform_4, window_bounds = array<i64: 1, 128>}, {transform_indices = @transform_5, window_bounds = array<i64: 1, 4, 4, 128>}, {transform_indices = @transform_6, window_bounds = array<i64: 1, 4, 4, 128>}]} {
    %c0 = arith.constant 0 : index
    %c0_0 = arith.constant 0 : index
    %c0_1 = arith.constant 0 : index
    %c0_2 = arith.constant 0 : index
    %0 = vector.load %arg1[%c0, %c0_0, %c0_1, %c0_2] : memref<1x4x4x64xf32, #tpu.memory_space<vmem>>, vector<1x4x4x64xf32>
    %1 = vector.shape_cast %0 : vector<1x4x4x64xf32> to vector<4x4x64xf32>
    %2 = vector.shape_cast %1 : vector<4x4x64xf32> to vector<16x64xf32>
    %3 = arith.truncf %2 : vector<16x64xf32> to vector<16x64xbf16>
    %c0_3 = arith.constant 0 : index
    %c0_4 = arith.constant 0 : index
    %4 = vector.load %arg2[%c0_3, %c0_4] : memref<64x128xbf16, #tpu.memory_space<vmem>>, vector<64x128xbf16>
    %cst = arith.constant dense<0.000000e+00> : vector<16x128xf32>
    %5 = tpu.matmul %3, %4, %cst {dimension_numbers = #tpu.dot_dimension_numbers<[1], [0], [0], [1], [0, 0, 1, 1], [], []>} : vector<16x64xbf16>, vector<64x128xbf16>, vector<16x128xf32> -> vector<16x128xf32>
    %c0_5 = arith.constant 0 : index
    %c0_6 = arith.constant 0 : index
    %6 = vector.load %arg3[%c0_5, %c0_6] : memref<1x128xf32, #tpu.memory_space<vmem>>, vector<1x128xf32>
    %7 = vector.broadcast %6 : vector<1x128xf32> to vector<16x128xf32>
    %8 = arith.addf %5, %7 : vector<16x128xf32>
    %9 = vector.shape_cast %8 : vector<16x128xf32> to vector<4x4x128xf32>
    %c0_7 = arith.constant 0 : index
    %c0_8 = arith.constant 0 : index
    %c0_9 = arith.constant 0 : index
    %c0_10 = arith.constant 0 : index
    %10 = vector.load %arg6[%c0_7, %c0_8, %c0_9, %c0_10] : memref<1x4x4x128xf32, #tpu.memory_space<vmem>>, vector<1x4x4x128xf32>
    %11 = vector.shape_cast %10 : vector<1x4x4x128xf32> to vector<4x4x128xf32>
    %12 = vector.shape_cast %9 : vector<4x4x128xf32> to vector<1x4x4x128xf32>
    tpu.vector_store %arg6[%c0_7, %c0_8, %c0_9, %c0_10], %12 {strides = array<i32>} : memref<1x4x4x128xf32, #tpu.memory_space<vmem>>, vector<1x4x4x128xf32>,
    %cst_11 = arith.constant 0.000000e+00 : bf16
    %13 = vector.broadcast %cst_11 : bf16 to vector<6x6x128xbf16>
    %c0_12 = arith.constant 0 : index
    %c0_13 = arith.constant 0 : index
    %c0_14 = arith.constant 0 : index
    %14 = vector.load %arg8[%c0_12, %c0_13, %c0_14] : memref<6x6x128xbf16, #tpu.memory_space<vmem>>, vector<6x6x128xbf16>
    tpu.vector_store %arg8[%c0_12, %c0_13, %c0_14], %13 {strides = array<i32>} : memref<6x6x128xbf16, #tpu.memory_space<vmem>>, vector<6x6x128xbf16>,
    %15 = arith.truncf %9 : vector<4x4x128xf32> to vector<4x4x128xbf16>
    %c1 = arith.constant 1 : index
    %c1_15 = arith.constant 1 : index
    %c0_16 = arith.constant 0 : index
    %16 = vector.load %arg8[%c1, %c1_15, %c0_16] : memref<6x6x128xbf16, #tpu.memory_space<vmem>>, vector<4x4x128xbf16>
    tpu.vector_store %arg8[%c1, %c1_15, %c0_16], %15 {strides = array<i32>} : memref<6x6x128xbf16, #tpu.memory_space<vmem>>, vector<4x4x128xbf16>,
    %c0_17 = arith.constant 0 : index
    %c0_18 = arith.constant 0 : index
    %17 = vector.load %arg5[%c0_17, %c0_18] : memref<1x128xf32, #tpu.memory_space<vmem>>, vector<1x128xf32>
    %18 = vector.shape_cast %17 : vector<1x128xf32> to vector<1x128xf32>
    %19 = vector.broadcast %18 : vector<1x128xf32> to vector<16x128xf32>
    %c0_19 = arith.constant 0 : index
    %c0_20 = arith.constant 0 : index
    %20 = vector.load %arg9[%c0_19, %c0_20] : memref<16x128xf32, #tpu.memory_space<vmem>>, vector<16x128xf32>
    tpu.vector_store %arg9[%c0_19, %c0_20], %19 {strides = array<i32>} : memref<16x128xf32, #tpu.memory_space<vmem>>, vector<16x128xf32>,
    %c0_21 = arith.constant 0 : index
    %c0_22 = arith.constant 0 : index
    %c0_23 = arith.constant 0 : index
    %21 = vector.load %arg8[%c0_21, %c0_22, %c0_23] : memref<6x6x128xbf16, #tpu.memory_space<vmem>>, vector<4x4x128xbf16>
    %c0_24 = arith.constant 0 : index
    %c0_25 = arith.constant 0 : index
    %22 = vector.load %arg9[%c0_24, %c0_25] : memref<16x128xf32, #tpu.memory_space<vmem>>, vector<16x128xf32>
    %23 = vector.shape_cast %21 : vector<4x4x128xbf16> to vector<16x128xbf16>
    %c0_26 = arith.constant 0 : index
    %c0_27 = arith.constant 0 : index
    %c0_28 = arith.constant 0 : index
    %c0_29 = arith.constant 0 : index
    %24 = vector.load %arg4[%c0_26, %c0_27, %c0_28, %c0_29] : memref<3x3x128x128xbf16, #tpu.memory_space<vmem>>, vector<1x1x128x128xbf16>
    %25 = vector.shape_cast %24 : vector<1x1x128x128xbf16> to vector<128x128xbf16>
    %cst_30 = arith.constant dense<0.000000e+00> : vector<16x128xf32>
    %26 = tpu.matmul %23, %25, %cst_30 {dimension_numbers = #tpu.dot_dimension_numbers<[1], [0], [0], [1], [0, 0, 1, 1], [], []>} : vector<16x128xbf16>, vector<128x128xbf16>, vector<16x128xf32> -> vector<16x128xf32>
    %27 = arith.addf %22, %26 : vector<16x128xf32>
    %c0_31 = arith.constant 0 : index
    %c0_32 = arith.constant 0 : index
    %28 = vector.load %arg9[%c0_31, %c0_32] : memref<16x128xf32, #tpu.memory_space<vmem>>, vector<16x128xf32>
    tpu.vector_store %arg9[%c0_31, %c0_32], %27 {strides = array<i32>} : memref<16x128xf32, #tpu.memory_space<vmem>>, vector<16x128xf32>,
    %c0_33 = arith.constant 0 : index
    %c1_34 = arith.constant 1 : index
    %c0_35 = arith.constant 0 : index
    %29 = vector.load %arg8[%c0_33, %c1_34, %c0_35] : memref<6x6x128xbf16, #tpu.memory_space<vmem>>, vector<4x4x128xbf16>
    %c0_36 = arith.constant 0 : index
    %c0_37 = arith.constant 0 : index
    %30 = vector.load %arg9[%c0_36, %c0_37] : memref<16x128xf32, #tpu.memory_space<vmem>>, vector<16x128xf32>
    %31 = vector.shape_cast %29 : vector<4x4x128xbf16> to vector<16x128xbf16>
    %c0_38 = arith.constant 0 : index
    %c1_39 = arith.constant 1 : index
    %c0_40 = arith.constant 0 : index
    %c0_41 = arith.constant 0 : index
    %32 = vector.load %arg4[%c0_38, %c1_39, %c0_40, %c0_41] : memref<3x3x128x128xbf16, #tpu.memory_space<vmem>>, vector<1x1x128x128xbf16>
    %33 = vector.shape_cast %32 : vector<1x1x128x128xbf16> to vector<128x128xbf16>
    %cst_42 = arith.constant dense<0.000000e+00> : vector<16x128xf32>
    %34 = tpu.matmul %31, %33, %cst_42 {dimension_numbers = #tpu.dot_dimension_numbers<[1], [0], [0], [1], [0, 0, 1, 1], [], []>} : vector<16x128xbf16>, vector<128x128xbf16>, vector<16x128xf32> -> vector<16x128xf32>
    %35 = arith.addf %30, %34 : vector<16x128xf32>
    %c0_43 = arith.constant 0 : index
    %c0_44 = arith.constant 0 : index
    %36 = vector.load %arg9[%c0_43, %c0_44] : memref<16x128xf32, #tpu.memory_space<vmem>>, vector<16x128xf32>
    tpu.vector_store %arg9[%c0_43, %c0_44], %35 {strides = array<i32>} : memref<16x128xf32, #tpu.memory_space<vmem>>, vector<16x128xf32>,
    %c0_45 = arith.constant 0 : index
    %c2 = arith.constant 2 : index
    %c0_46 = arith.constant 0 : index
    %37 = vector.load %arg8[%c0_45, %c2, %c0_46] : memref<6x6x128xbf16, #tpu.memory_space<vmem>>, vector<4x4x128xbf16>
    %c0_47 = arith.constant 0 : index
    %c0_48 = arith.constant 0 : index
    %38 = vector.load %arg9[%c0_47, %c0_48] : memref<16x128xf32, #tpu.memory_space<vmem>>, vector<16x128xf32>
    %39 = vector.shape_cast %37 : vector<4x4x128xbf16> to vector<16x128xbf16>
    %c0_49 = arith.constant 0 : index
    %c2_50 = arith.constant 2 : index
    %c0_51 = arith.constant 0 : index
    %c0_52 = arith.constant 0 : index
    %40 = vector.load %arg4[%c0_49, %c2_50, %c0_51, %c0_52] : memref<3x3x128x128xbf16, #tpu.memory_space<vmem>>, vector<1x1x128x128xbf16>
    %41 = vector.shape_cast %40 : vector<1x1x128x128xbf16> to vector<128x128xbf16>
    %cst_53 = arith.constant dense<0.000000e+00> : vector<16x128xf32>
    %42 = tpu.matmul %39, %41, %cst_53 {dimension_numbers = #tpu.dot_dimension_numbers<[1], [0], [0], [1], [0, 0, 1, 1], [], []>} : vector<16x128xbf16>, vector<128x128xbf16>, vector<16x128xf32> -> vector<16x128xf32>
    %43 = arith.addf %38, %42 : vector<16x128xf32>
    %c0_54 = arith.constant 0 : index
    %c0_55 = arith.constant 0 : index
    %44 = vector.load %arg9[%c0_54, %c0_55] : memref<16x128xf32, #tpu.memory_space<vmem>>, vector<16x128xf32>
    tpu.vector_store %arg9[%c0_54, %c0_55], %43 {strides = array<i32>} : memref<16x128xf32, #tpu.memory_space<vmem>>, vector<16x128xf32>,
    %c1_56 = arith.constant 1 : index
    %c0_57 = arith.constant 0 : index
    %c0_58 = arith.constant 0 : index
    %45 = vector.load %arg8[%c1_56, %c0_57, %c0_58] : memref<6x6x128xbf16, #tpu.memory_space<vmem>>, vector<4x4x128xbf16>
    %c0_59 = arith.constant 0 : index
    %c0_60 = arith.constant 0 : index
    %46 = vector.load %arg9[%c0_59, %c0_60] : memref<16x128xf32, #tpu.memory_space<vmem>>, vector<16x128xf32>
    %47 = vector.shape_cast %45 : vector<4x4x128xbf16> to vector<16x128xbf16>
    %c1_61 = arith.constant 1 : index
    %c0_62 = arith.constant 0 : index
    %c0_63 = arith.constant 0 : index
    %c0_64 = arith.constant 0 : index
    %48 = vector.load %arg4[%c1_61, %c0_62, %c0_63, %c0_64] : memref<3x3x128x128xbf16, #tpu.memory_space<vmem>>, vector<1x1x128x128xbf16>
    %49 = vector.shape_cast %48 : vector<1x1x128x128xbf16> to vector<128x128xbf16>
    %cst_65 = arith.constant dense<0.000000e+00> : vector<16x128xf32>
    %50 = tpu.matmul %47, %49, %cst_65 {dimension_numbers = #tpu.dot_dimension_numbers<[1], [0], [0], [1], [0, 0, 1, 1], [], []>} : vector<16x128xbf16>, vector<128x128xbf16>, vector<16x128xf32> -> vector<16x128xf32>
    %51 = arith.addf %46, %50 : vector<16x128xf32>
    %c0_66 = arith.constant 0 : index
    %c0_67 = arith.constant 0 : index
    %52 = vector.load %arg9[%c0_66, %c0_67] : memref<16x128xf32, #tpu.memory_space<vmem>>, vector<16x128xf32>
    tpu.vector_store %arg9[%c0_66, %c0_67], %51 {strides = array<i32>} : memref<16x128xf32, #tpu.memory_space<vmem>>, vector<16x128xf32>,
    %c1_68 = arith.constant 1 : index
    %c1_69 = arith.constant 1 : index
    %c0_70 = arith.constant 0 : index
    %53 = vector.load %arg8[%c1_68, %c1_69, %c0_70] : memref<6x6x128xbf16, #tpu.memory_space<vmem>>, vector<4x4x128xbf16>
    %c0_71 = arith.constant 0 : index
    %c0_72 = arith.constant 0 : index
    %54 = vector.load %arg9[%c0_71, %c0_72] : memref<16x128xf32, #tpu.memory_space<vmem>>, vector<16x128xf32>
    %55 = vector.shape_cast %53 : vector<4x4x128xbf16> to vector<16x128xbf16>
    %c1_73 = arith.constant 1 : index
    %c1_74 = arith.constant 1 : index
    %c0_75 = arith.constant 0 : index
    %c0_76 = arith.constant 0 : index
    %56 = vector.load %arg4[%c1_73, %c1_74, %c0_75, %c0_76] : memref<3x3x128x128xbf16, #tpu.memory_space<vmem>>, vector<1x1x128x128xbf16>
    %57 = vector.shape_cast %56 : vector<1x1x128x128xbf16> to vector<128x128xbf16>
    %cst_77 = arith.constant dense<0.000000e+00> : vector<16x128xf32>
    %58 = tpu.matmul %55, %57, %cst_77 {dimension_numbers = #tpu.dot_dimension_numbers<[1], [0], [0], [1], [0, 0, 1, 1], [], []>} : vector<16x128xbf16>, vector<128x128xbf16>, vector<16x128xf32> -> vector<16x128xf32>
    %59 = arith.addf %54, %58 : vector<16x128xf32>
    %c0_78 = arith.constant 0 : index
    %c0_79 = arith.constant 0 : index
    %60 = vector.load %arg9[%c0_78, %c0_79] : memref<16x128xf32, #tpu.memory_space<vmem>>, vector<16x128xf32>
    tpu.vector_store %arg9[%c0_78, %c0_79], %59 {strides = array<i32>} : memref<16x128xf32, #tpu.memory_space<vmem>>, vector<16x128xf32>,
    %c1_80 = arith.constant 1 : index
    %c2_81 = arith.constant 2 : index
    %c0_82 = arith.constant 0 : index
    %61 = vector.load %arg8[%c1_80, %c2_81, %c0_82] : memref<6x6x128xbf16, #tpu.memory_space<vmem>>, vector<4x4x128xbf16>
    %c0_83 = arith.constant 0 : index
    %c0_84 = arith.constant 0 : index
    %62 = vector.load %arg9[%c0_83, %c0_84] : memref<16x128xf32, #tpu.memory_space<vmem>>, vector<16x128xf32>
    %63 = vector.shape_cast %61 : vector<4x4x128xbf16> to vector<16x128xbf16>
    %c1_85 = arith.constant 1 : index
    %c2_86 = arith.constant 2 : index
    %c0_87 = arith.constant 0 : index
    %c0_88 = arith.constant 0 : index
    %64 = vector.load %arg4[%c1_85, %c2_86, %c0_87, %c0_88] : memref<3x3x128x128xbf16, #tpu.memory_space<vmem>>, vector<1x1x128x128xbf16>
    %65 = vector.shape_cast %64 : vector<1x1x128x128xbf16> to vector<128x128xbf16>
    %cst_89 = arith.constant dense<0.000000e+00> : vector<16x128xf32>
    %66 = tpu.matmul %63, %65, %cst_89 {dimension_numbers = #tpu.dot_dimension_numbers<[1], [0], [0], [1], [0, 0, 1, 1], [], []>} : vector<16x128xbf16>, vector<128x128xbf16>, vector<16x128xf32> -> vector<16x128xf32>
    %67 = arith.addf %62, %66 : vector<16x128xf32>
    %c0_90 = arith.constant 0 : index
    %c0_91 = arith.constant 0 : index
    %68 = vector.load %arg9[%c0_90, %c0_91] : memref<16x128xf32, #tpu.memory_space<vmem>>, vector<16x128xf32>
    tpu.vector_store %arg9[%c0_90, %c0_91], %67 {strides = array<i32>} : memref<16x128xf32, #tpu.memory_space<vmem>>, vector<16x128xf32>,
    %c2_92 = arith.constant 2 : index
    %c0_93 = arith.constant 0 : index
    %c0_94 = arith.constant 0 : index
    %69 = vector.load %arg8[%c2_92, %c0_93, %c0_94] : memref<6x6x128xbf16, #tpu.memory_space<vmem>>, vector<4x4x128xbf16>
    %c0_95 = arith.constant 0 : index
    %c0_96 = arith.constant 0 : index
    %70 = vector.load %arg9[%c0_95, %c0_96] : memref<16x128xf32, #tpu.memory_space<vmem>>, vector<16x128xf32>
    %71 = vector.shape_cast %69 : vector<4x4x128xbf16> to vector<16x128xbf16>
    %c2_97 = arith.constant 2 : index
    %c0_98 = arith.constant 0 : index
    %c0_99 = arith.constant 0 : index
    %c0_100 = arith.constant 0 : index
    %72 = vector.load %arg4[%c2_97, %c0_98, %c0_99, %c0_100] : memref<3x3x128x128xbf16, #tpu.memory_space<vmem>>, vector<1x1x128x128xbf16>
    %73 = vector.shape_cast %72 : vector<1x1x128x128xbf16> to vector<128x128xbf16>
    %cst_101 = arith.constant dense<0.000000e+00> : vector<16x128xf32>
    %74 = tpu.matmul %71, %73, %cst_101 {dimension_numbers = #tpu.dot_dimension_numbers<[1], [0], [0], [1], [0, 0, 1, 1], [], []>} : vector<16x128xbf16>, vector<128x128xbf16>, vector<16x128xf32> -> vector<16x128xf32>
    %75 = arith.addf %70, %74 : vector<16x128xf32>
    %c0_102 = arith.constant 0 : index
    %c0_103 = arith.constant 0 : index
    %76 = vector.load %arg9[%c0_102, %c0_103] : memref<16x128xf32, #tpu.memory_space<vmem>>, vector<16x128xf32>
    tpu.vector_store %arg9[%c0_102, %c0_103], %75 {strides = array<i32>} : memref<16x128xf32, #tpu.memory_space<vmem>>, vector<16x128xf32>,
    %c2_104 = arith.constant 2 : index
    %c1_105 = arith.constant 1 : index
    %c0_106 = arith.constant 0 : index
    %77 = vector.load %arg8[%c2_104, %c1_105, %c0_106] : memref<6x6x128xbf16, #tpu.memory_space<vmem>>, vector<4x4x128xbf16>
    %c0_107 = arith.constant 0 : index
    %c0_108 = arith.constant 0 : index
    %78 = vector.load %arg9[%c0_107, %c0_108] : memref<16x128xf32, #tpu.memory_space<vmem>>, vector<16x128xf32>
    %79 = vector.shape_cast %77 : vector<4x4x128xbf16> to vector<16x128xbf16>
    %c2_109 = arith.constant 2 : index
    %c1_110 = arith.constant 1 : index
    %c0_111 = arith.constant 0 : index
    %c0_112 = arith.constant 0 : index
    %80 = vector.load %arg4[%c2_109, %c1_110, %c0_111, %c0_112] : memref<3x3x128x128xbf16, #tpu.memory_space<vmem>>, vector<1x1x128x128xbf16>
    %81 = vector.shape_cast %80 : vector<1x1x128x128xbf16> to vector<128x128xbf16>
    %cst_113 = arith.constant dense<0.000000e+00> : vector<16x128xf32>
    %82 = tpu.matmul %79, %81, %cst_113 {dimension_numbers = #tpu.dot_dimension_numbers<[1], [0], [0], [1], [0, 0, 1, 1], [], []>} : vector<16x128xbf16>, vector<128x128xbf16>, vector<16x128xf32> -> vector<16x128xf32>
    %83 = arith.addf %78, %82 : vector<16x128xf32>
    %c0_114 = arith.constant 0 : index
    %c0_115 = arith.constant 0 : index
    %84 = vector.load %arg9[%c0_114, %c0_115] : memref<16x128xf32, #tpu.memory_space<vmem>>, vector<16x128xf32>
    tpu.vector_store %arg9[%c0_114, %c0_115], %83 {strides = array<i32>} : memref<16x128xf32, #tpu.memory_space<vmem>>, vector<16x128xf32>,
    %c2_116 = arith.constant 2 : index
    %c2_117 = arith.constant 2 : index
    %c0_118 = arith.constant 0 : index
    %85 = vector.load %arg8[%c2_116, %c2_117, %c0_118] : memref<6x6x128xbf16, #tpu.memory_space<vmem>>, vector<4x4x128xbf16>
    %c0_119 = arith.constant 0 : index
    %c0_120 = arith.constant 0 : index
    %86 = vector.load %arg9[%c0_119, %c0_120] : memref<16x128xf32, #tpu.memory_space<vmem>>, vector<16x128xf32>
    %87 = vector.shape_cast %85 : vector<4x4x128xbf16> to vector<16x128xbf16>
    %c2_121 = arith.constant 2 : index
    %c2_122 = arith.constant 2 : index
    %c0_123 = arith.constant 0 : index
    %c0_124 = arith.constant 0 : index
    %88 = vector.load %arg4[%c2_121, %c2_122, %c0_123, %c0_124] : memref<3x3x128x128xbf16, #tpu.memory_space<vmem>>, vector<1x1x128x128xbf16>
    %89 = vector.shape_cast %88 : vector<1x1x128x128xbf16> to vector<128x128xbf16>
    %cst_125 = arith.constant dense<0.000000e+00> : vector<16x128xf32>
    %90 = tpu.matmul %87, %89, %cst_125 {dimension_numbers = #tpu.dot_dimension_numbers<[1], [0], [0], [1], [0, 0, 1, 1], [], []>} : vector<16x128xbf16>, vector<128x128xbf16>, vector<16x128xf32> -> vector<16x128xf32>
    %91 = arith.addf %86, %90 : vector<16x128xf32>
    %c0_126 = arith.constant 0 : index
    %c0_127 = arith.constant 0 : index
    %92 = vector.load %arg9[%c0_126, %c0_127] : memref<16x128xf32, #tpu.memory_space<vmem>>, vector<16x128xf32>
    tpu.vector_store %arg9[%c0_126, %c0_127], %91 {strides = array<i32>} : memref<16x128xf32, #tpu.memory_space<vmem>>, vector<16x128xf32>,
    %c0_128 = arith.constant 0 : index
    %c0_129 = arith.constant 0 : index
    %93 = vector.load %arg9[%c0_128, %c0_129] : memref<16x128xf32, #tpu.memory_space<vmem>>, vector<16x128xf32>
    %94 = vector.shape_cast %93 : vector<16x128xf32> to vector<4x4x128xf32>
    %c0_130 = arith.constant 0 : index
    %c0_131 = arith.constant 0 : index
    %c0_132 = arith.constant 0 : index
    %c0_133 = arith.constant 0 : index
    %95 = vector.load %arg7[%c0_130, %c0_131, %c0_132, %c0_133] : memref<1x4x4x128xf32, #tpu.memory_space<vmem>>, vector<1x4x4x128xf32>
    %96 = vector.shape_cast %95 : vector<1x4x4x128xf32> to vector<4x4x128xf32>
    %97 = vector.shape_cast %94 : vector<4x4x128xf32> to vector<1x4x4x128xf32>
    tpu.vector_store %arg7[%c0_130, %c0_131, %c0_132, %c0_133], %97 {strides = array<i32>} : memref<1x4x4x128xf32, #tpu.memory_space<vmem>>, vector<1x4x4x128xf32>,
    return
  }
  func.func @transform_0(%arg0: i32) -> (i32, i32, i32, i32) {
    %c0_i32 = arith.constant 0 : i32
    %c0_i32_0 = arith.constant 0 : i32
    %c0_i32_1 = arith.constant 0 : i32
    %c0_i32_2 = arith.constant 0 : i32
    return %arg0, %c0_i32, %c0_i32_0, %c0_i32_1 : i32, i32, i32, i32
  }
  func.func @transform_1(%arg0: i32) -> (i32, i32) {
    %c0_i32 = arith.constant 0 : i32
    %c0_i32_0 = arith.constant 0 : i32
    %c0_i32_1 = arith.constant 0 : i32
    return %c0_i32, %c0_i32_0 : i32, i32
  }
  func.func @transform_2(%arg0: i32) -> (i32, i32) {
    %c0_i32 = arith.constant 0 : i32
    %c0_i32_0 = arith.constant 0 : i32
    %c0_i32_1 = arith.constant 0 : i32
    return %c0_i32, %c0_i32_0 : i32, i32
  }
  func.func @transform_3(%arg0: i32) -> (i32, i32, i32, i32) {
    %c0_i32 = arith.constant 0 : i32
    %c0_i32_0 = arith.constant 0 : i32
    %c0_i32_1 = arith.constant 0 : i32
    %c0_i32_2 = arith.constant 0 : i32
    %c0_i32_3 = arith.constant 0 : i32
    return %c0_i32, %c0_i32_0, %c0_i32_1, %c0_i32_2 : i32, i32, i32, i32
  }
  func.func @transform_4(%arg0: i32) -> (i32, i32) {
    %c0_i32 = arith.constant 0 : i32
    %c0_i32_0 = arith.constant 0 : i32
    %c0_i32_1 = arith.constant 0 : i32
    return %c0_i32, %c0_i32_0 : i32, i32
  }
  func.func @transform_5(%arg0: i32) -> (i32, i32, i32, i32) {
    %c0_i32 = arith.constant 0 : i32
    %c0_i32_0 = arith.constant 0 : i32
    %c0_i32_1 = arith.constant 0 : i32
    %c0_i32_2 = arith.constant 0 : i32
    return %arg0, %c0_i32, %c0_i32_0, %c0_i32_1 : i32, i32, i32, i32
  }
  func.func @transform_6(%arg0: i32) -> (i32, i32, i32, i32) {
    %c0_i32 = arith.constant 0 : i32
    %c0_i32_0 = arith.constant 0 : i32
    %c0_i32_1 = arith.constant 0 : i32
    %c0_i32_2 = arith.constant 0 : i32
    return %arg0, %c0_i32, %c0_i32_0, %c0_i32_1 : i32, i32, i32, i32
  }
}

</mosaic_0001>

<bundles_post_ra>
// kernel: decoder_forward.4
= control target key start
LH: loop header
LB: loop body
LE: loop exit
PB: predicated region body
PF: predicated region fallthrough
CT: control target
= control target key end

     0   :  { %13 = vsyncpa [#allocation5], 0  ;;  %s4721_s0 = inlined_call_operand.vmem [shape: f32[2,8,8,32], index: 0, kind: input, shape index: {}]   ;;  %s4722_s1 = inlined_call_operand.vmem [shape: f32[2,4,4,128], index: 1, kind: input, shape index: {}]   ;;  %s4723_s2 = inlined_call_operand.vmem [shape: bf16[32,128], index: 2, kind: input, shape index: {}]   ;;  %s4724_s3 = inlined_call_operand.vmem [shape: f32[1,128], index: 3, kind: input, shape index: {}]   ;;  %s4725_s4 = inlined_call_operand.vmem [shape: bf16[3,3,128,128], index: 4, kind: input, shape index: {}]   ;;  %s4726_s5 = inlined_call_operand.vmem [shape: f32[1,128], index: 5, kind: input, shape index: {}]   ;;  %s4727_s6 = inlined_call_operand.vmem [shape: f32[2,8,8,128], index: 6, kind: output, shape index: {0}]   ;;  %s4728_s7 = inlined_call_operand.hbm [shape: f32[2,8,8,128], index: 7, kind: output, shape index: {1}]  }
   0x1   :  { %15 = vsyncpa [#allocation5 + $0x1], 0  ;;  %s4141_s24 = smov 0   ;;  %s4143_s25 = smov 0  }
   0x2   :  { %s4145_s26 = smov 0   ;;  %s4147_s27 = smov 0  }
   0x3 LB: > { %s4162_s28 = sadd.s32 4294967295, %s4093_s27   ;;  %s3179_s29 = sadd.s32 4294967294, %s4093_s27   ;;  %s4093_s27 = sphi %s4147_s27, %s4742_s27   ;;  %s4089_s26 = sphi %s4145_s26, %s4741_s26   ;;  %s4085_s25 = sphi %s4143_s25, %s4740_s25   ;;  %s4081_s24 = sphi %s4141_s24, %s4739_s24  }
   0x4   : > { %s4166_s30 = sadd.s32 1, %s4093_s27   ;;  %s190_s8 = sadd.s32 1, %s4089_s26 }
   0x5   : > { %s187_s9 = ssub.s32 %s4093_s27, %s4166_s30  ;;  %p200_p0 = scmp.ne.s32.totalorder %s4089_s26, %s4085_s25 }
   0x6   : > { %p188_p1 = scmp.eq.s32.totalorder %s187_s9, 0  ;;  %p201_p2 = scmp.eq.s32.totalorder %s4162_s28, 1 }
   0x7   : > { %p206_p3 = scmp.ne.s32.totalorder %s4085_s25, %s4081_s24  ;;  %p207_p4 = scmp.eq.s32.totalorder %s3179_s29, 1 }
   0x8   : > { %s4177_s10 = scalar_select %p188_p1, %s4089_s26, %s190_s8  }
   0x9   : > { %p4179_p5 = por %p201_p2, %p200_p0  ;;  %p4183_p6 = por %p207_p4, %p206_p3 }
   0xa   : > { %p3182_p7 = scmp.ge.s32.totalorder %s4093_s27, 1  ;;  %p253_p8 = scmp.lt.s32.totalorder %s4093_s27, 3 }
   0xc   : > { %p254_p9 = pnand %p3182_p7, %p253_p8 }
   0xd   : > { %v3945_v0 = vld [vmem:[%s4723_s2] sm:$0xff] (!%p254_p9)   ;;  %p295_p10 = scmp.lt.s32.totalorder (!%p254_p9), %s4162_s28, 1  ;;  %v3946_v1 = vld [vmem:[%s4723_s2 + $0x8] sm:$0xff] (!%p254_p9)   ;;  %vm346_vm0 = vcmask (!%p254_p9), 261120   ;;  %v3949_v16 = vld [vmem:[%s4725_s4 + $0x10] sm:$0xff] (!%p254_p9)   ;;  %v4095_v19 = vmov (!%p254_p9), 0   ;;  %v443_v35 = vlaneseq (!%p254_p9) }
   0xe   : > { %257 = sbr.rel (%p254_p9) target bundleno = 656 (0x290), region = 44  ;;  %3601 = vmatprep.subr.bf16.mxu0 (!%p254_p9), %v3945_v0  ;;  %v3947_v2 = vld [vmem:[%s4725_s4] sm:$0xff] (!%p254_p9)   ;;  %v3948_v12 = vld [vmem:[%s4725_s4 + $0x8] sm:$0xff] (!%p254_p9)   ;;  %v3951_v18 = vld [vmem:[%s4725_s4 + $0x18] sm:$0xff] (!%p254_p9)   ;;  %686 = vst [vmem:[#allocation2 + $0x18] sm:$0xf] (!%p254_p9), %v4095_v19 }
   0xf   : > { %3602 = vmatpush3.bf16.msra.mxu0 (!%p254_p9), %v3945_v0  ;;  %v3950_v17 = vld [vmem:[%s4725_s4 + $0x100] sm:$0xff] (!%p254_p9)   ;;  %687 = vst [vmem:[#allocation2 + $0x1c] sm:$0x1] (!%p254_p9), %v4095_v19  ;;  %680 = vst [vmem:[#allocation2] sm:$0xf] (!%p254_p9), %v4095_v19  ;;  %v3952_v20 = vld [vmem:[%s4725_s4 + $0x108] sm:$0xff] (!%p254_p9)  }
  0x10   : > { %3603 = vmatprep.subr.bf16.mxu0 (!%p254_p9), %v3946_v1  ;;  %3709 = vmatprep.subr.bf16.mxu1 (!%p254_p9), %v3950_v17  ;;  %681 = vst [vmem:[#allocation2 + $0x4] sm:$0x1] (!%p254_p9), %v4095_v19  ;;  %682 = vst [vmem:[#allocation2 + $0x8] sm:$0xf] (!%p254_p9), %v4095_v19  ;;  %v3953_v21 = vld [vmem:[%s4725_s4 + $0x20] sm:$0xff] (!%p254_p9)   ;;  %v3954_v22 = vld [vmem:[%s4725_s4 + $0x110] sm:$0xff] (!%p254_p9)  }
  0x11   : > { %683 = vst [vmem:[#allocation2 + $0xc] sm:$0x1] (!%p254_p9), %v4095_v19  ;;  %684 = vst [vmem:[#allocation2 + $0x10] sm:$0xf] (!%p254_p9), %v4095_v19  ;;  %3710 = vmatpush3.bf16.msra.mxu1 (!%p254_p9), %v3950_v17  ;;  %v3955_v23 = vld [vmem:[%s4725_s4 + $0x28] sm:$0xff] (!%p254_p9)   ;;  %v3956_v24 = vld [vmem:[%s4725_s4 + $0x118] sm:$0xff] (!%p254_p9)  }
  0x12   : > { %685 = vst [vmem:[#allocation2 + $0x14] sm:$0x1] (!%p254_p9), %v4095_v19  ;;  %688 = vst [vmem:[#allocation2 + $0x20] sm:$0xf] (!%p254_p9), %v4095_v19  ;;  %3711 = vmatprep.subr.bf16.mxu1 (!%p254_p9), %v3952_v20  ;;  %v3957_v25 = vld [vmem:[%s4725_s4 + $0x30] sm:$0xff] (!%p254_p9)   ;;  %v3958_v26 = vld [vmem:[%s4725_s4 + $0x120] sm:$0xff] (!%p254_p9)  }
  0x13   : > { %3604 = vmatpush3.bf16.msra.mxu0 (!%p254_p9), %v3946_v1  ;;  %689 = vst [vmem:[#allocation2 + $0x24] sm:$0x1] (!%p254_p9), %v4095_v19  ;;  %690 = vst [vmem:[#allocation2 + $0x28] sm:$0xf] (!%p254_p9), %v4095_v19  ;;  %v3959_v27 = vld [vmem:[%s4725_s4 + $0x38] sm:$0xff] (!%p254_p9)   ;;  %v3960_v28 = vld [vmem:[%s4725_s4 + $0x128] sm:$0xff] (!%p254_p9)  }
  0x14   : > { %3613 = vmatprep.subr.bf16.mxu0 (!%p254_p9), %v3947_v2  ;;  %691 = vst [vmem:[#allocation2 + $0x2c] sm:$0x1] (!%p254_p9), %v4095_v19  ;;  %692 = vst [vmem:[#allocation2 + $0x30] sm:$0xf] (!%p254_p9), %v4095_v19  ;;  %v4254_v29 = vld [vmem:[%s4725_s4 + $0x40] sm:$0xff] (!%p254_p9)   ;;  %v3964_v30 = vld [vmem:[%s4725_s4 + $0x130] sm:$0xff] (!%p254_p9)  }
  0x15   : > { %s4197_s17 = scalar_select %p295_p10, %s4162_s28, 1  ;;  %693 = vst [vmem:[#allocation2 + $0x34] sm:$0x1] %v4095_v19  ;;  %694 = vst [vmem:[#allocation2 + $0x38] sm:$0xf] %v4095_v19  ;;  %3712 = vmatpush3.bf16.msra.mxu1 %v3952_v20  ;;  %v3966_v31 = vld [vmem:[%s4725_s4 + $0x138] sm:$0xff]  }
  0x16   : > { %695 = vst [vmem:[#allocation2 + $0x3c] sm:$0x1] %v4095_v19  ;;  %696 = vst [vmem:[#allocation2 + $0x40] sm:$0xf] %v4095_v19  ;;  %3713 = vmatprep.subr.bf16.mxu1 %v3954_v22  ;;  %v4266_v32 = vld [vmem:[%s4725_s4 + $0x140] sm:$0xff]   ;;  %v444_v37 = vshrl.u32 %v443_v35, 7 }
  0x17   : > { %s3475_s18 = sshll.u32 %s4197_s17, 6  ;;  %697 = vst [vmem:[#allocation2 + $0x44] sm:$0x1] %v4095_v19  ;;  %698 = vst [vmem:[#allocation2 + $0x48] sm:$0xf] %v4095_v19  ;;  %s3476_s22 = sshll.u32 %s4197_s17, 4 }
  0x18   : > { %s299_s23 = scalar_lea.vmem %s4721_s0, %s3475_s18  ;;  %699 = vst [vmem:[#allocation2 + $0x4c] sm:$0x1] %v4095_v19  ;;  %v4096_v33 = vmov 1966171168   ;;  %s304_s8 = scalar_lea.vmem %s4722_s1, %s3476_s22  ;;  %v530_v50 = vsub.s32 0, %v444_v37  ;;  %vm813_vm1 = vcmask 1043456  }
  0x19   : > { %v311_v3 = vld [vmem:[%s299_s23] sm:$0xff]  ;;  %v312_v4 = vld [vmem:[%s299_s23 + $0x8] sm:$0xff]  ;;  %v313_v5 = vld [vmem:[%s299_s23 + $0x10] sm:$0xff]  ;;  %3714 = vmatpush3.bf16.msra.mxu1 %v3954_v22  ;;  %v441_v34 = vunpack.c.l.s4 %v4096_v33  ;;  %v4097_v54 = vmov 1983009808   ;;  %s4284_s16 = scalar_lea.vmem %s4727_s6, %s3475_s18  ;;  %vm819_vm3 = vcmask 1040384  }
  0x1a   : > { %v319_v6 = vpack.c.bf16 %v312_v4, %v311_v3  ;;  %v314_v7 = vld [vmem:[%s299_s23 + $0x18] sm:$0xff]  ;;  %v315_v8 = vld [vmem:[%s299_s23 + $0x20] sm:$0xff]  ;;  %v316_v9 = vld [vmem:[%s299_s23 + $0x28] sm:$0xff]  ;;  %3715 = vmatprep.subr.bf16.mxu1 %v3956_v24  ;;  %v595_v55 = vunpack.c.l.s4 %v4097_v54  ;;  %vm814_vm2 = vsmask.f32 7938  ;;  %vm1408_vm10 = vcmask 1042432  }
  0x1b   : > { %v320_v10 = vpack.c.bf16 %v314_v7, %v313_v5  ;;  %v321_v11 = vpack.c.bf16 %v316_v9, %v315_v8  ;;  %v317_v13 = vld [vmem:[%s299_s23 + $0x30] sm:$0xff]  ;;  %v318_v14 = vld [vmem:[%s299_s23 + $0x38] sm:$0xff]  ;;  %v442_v36 = vunpack.c.0.s8 %v441_v34  ;;  %v3198_v38 = vld.sshfl [vmem:[%s304_s8 + $0x4] sm:$0x33 pattern:$0x75316420] }
  0x1c   : > { %3605 = vmatprep.mubr.msk.bf16.mxu0 %vm346_vm0, %v319_v6  ;;  %v322_v15 = vpack.c.bf16 %v318_v14, %v317_v13  ;;  %v3197_v39 = vld.sshfl [vmem:[%s304_s8] sm:$0x33 pattern:$0x75316420]  ;;  %v463_v41 = vcombine.high %v3198_v38, %v3198_v38  ;;  %vm820_vm4 = vsmask.f32 256  ;;  %vm4308_vm5 = vmand %vm813_vm1, %vm814_vm2 }
  0x1d   : > { %3606 = vmatmul.mubr.msk.bf16.vlgmr.msra.gmra.mrb[0].mxu0 %vm346_vm0, %v320_v10  ;;  %3716 = vmatpush3.bf16.msra.mxu1 %v3956_v24  ;;  %v445_v40 = vsub.s32 %v442_v36, %v444_v37  ;;  %v439_v42 = vcombine.high %v3197_v39, %v3197_v39  ;;  %v3199_v43 = vld.sshfl [vmem:[%s304_s8 + $0x8] sm:$0x33 pattern:$0x75316420]  ;;  %vm4315_vm6 = vmand %vm819_vm3, %vm820_vm4  ;;  %vm1091_vm7 = vsmask.f32 3328 }
  0x1e   : > { %3609 = vmatprep.mubr.msk.bf16.mxu0 %vm346_vm0, %v321_v11  ;;  %3614 = vmatpush3.bf16.msra.mxu0 %v3947_v2  ;;  %v3200_v46 = vld.sshfl [vmem:[%s304_s8 + $0xc] sm:$0x33 pattern:$0x75316420]  ;;  %v487_v49 = vcombine.high %v3199_v43, %v3199_v43  ;;  %v596_v2 = vunpack.c.0.s8 %v595_v55  ;;  %vm1092_vm8 = vsmask.f32 7440 }
  0x1f   : > { %3615 = vmatprep.subr.bf16.mxu0 %v3948_v12  ;;  %3717 = vmatprep.subr.bf16.mxu1 %v3958_v26  ;;  %v470_v44 = vrot.slane %v3198_v38, %v445_v40  ;;  %v477_v45 = vrot.slane %v463_v41, %v445_v40  ;;  %v446_v47 = vrot.slane %v3197_v39, %v445_v40  ;;  %vm4380_vm9 = vmor %vm1091_vm7, %vm1092_vm8  ;;  %vm1409_vm11 = vcmask 1046532   ;;  %s292_s13 = sand.u32 1, %s4085_s25   ;;  %s3486_s18 = sshll.u32 %s4162_s28, 10 }
  0x20   : > { %v453_v48 = vrot.slane %v439_v42, %v445_v40  ;;  %v511_v51 = vcombine.high %v3200_v46, %v3200_v46  ;;  %v494_v58 = vrot.slane %v3199_v43, %v445_v40  ;;  %v501_v59 = vrot.slane %v487_v49, %v445_v40  ;;  %vm4432_vm12 = vmor %vm1408_vm10, %vm1409_vm11  ;;  %s4674_s22 = scalar_lea.hbm %s4728_s7, %s3486_s18  ;;  %s4680_s28 = scalar_lea.sflag [#allocation5], %s292_s13 }
  0x21   : > { %3718 = vmatpush3.bf16.msra.mxu1 %v3958_v26  ;;  %v478_v52 = vcombine.high %v470_v44, %v470_v44  ;;  %v479_v53 = vcombine.high %v477_v45, %v477_v45  ;;  %v454_v56 = vcombine.high %v446_v47, %v446_v47  ;;  %v547_v60 = vrot.slane %v470_v44, %v530_v50  ;;  %s4098_s29 = smov [#allocation4]  }
  0x22   : > { %3616 = vmatpush3.bf16.msra.mxu0 %v3948_v12  ;;  %3719 = vmatprep.subr.bf16.mxu1 %v3960_v28  ;;  %v455_v57 = vcombine.high %v453_v48, %v453_v48  ;;  %v518_v61 = vrot.slane %v3200_v46, %v445_v40  ;;  %v525_v62 = vrot.slane %v511_v51, %v445_v40  ;;  %s4035_s8 = sshll.u32 %s4098_s29, 4  ;;  %s4036_s8 = int_to_ptr.vmem [resolvable:$false] %s4035_s8 }
  0x23   : > { %3617 = vmatprep.subr.bf16.mxu0 %v3949_v16  ;;  %v551_v63 = vrot.slane %v477_v45, %v530_v50  ;;  %v555_v0 = vrot.slane %v478_v52, %v530_v50  ;;  %v559_v1 = vrot.slane %v479_v53, %v530_v50  ;;  %v531_v3 = vrot.slane %v446_v47, %v530_v50  ;;  %s4037_s9 = scalar_lea.vmem %s4036_s8, 2048 }
  0x24   : > { %v535_v4 = vrot.slane %v453_v48, %v530_v50  ;;  %v539_v5 = vrot.slane %v454_v56, %v530_v50  ;;  %v543_v6 = vrot.slane %v455_v57, %v530_v50  ;;  %v502_v7 = vcombine.high %v494_v58, %v494_v58  ;;  %v4293_v56 = vld [vmem:[#allocation2 + $0x4] sm:$0x1] }
  0x25   : > { %3610 = vmatmul.mubr.msk.bf16.gmra.mrb[4].mxu0 %vm346_vm0, %v322_v15  ;;  %3720 = vmatpush3.bf16.msra.mxu1 %v3960_v28  ;;  %v503_v8 = vcombine.high %v501_v59, %v501_v59  ;;  %v526_v9 = vcombine.high %v518_v61, %v518_v61  ;;  %v527_v10 = vcombine.high %v525_v62, %v525_v62  ;;  %v1067_v28 = vld [vmem:[#allocation2] sm:$0xf] }
  0x26   : > { %3618 = vmatpush3.bf16.msra.mxu0 %v3949_v16  ;;  %3721 = vmatprep.subr.bf16.mxu1 %v3964_v30  ;;  %v599_v11 = vsub.s32 %v596_v2, %v444_v37  ;;  %v609_v12 = vcombine.low %v547_v60, %v551_v63  ;;  %v610_v13 = vcombine.low %v555_v0, %v559_v1  ;;  %v1095_v37 = vshrl.u32 %v1067_v28, 16 }
  0x27   : > { %3619 = vmatprep.subr.bf16.mxu0 %v3951_v18  ;;  %v592_v14 = vcombine.low %v531_v3, %v535_v4  ;;  %v593_v15 = vcombine.low %v539_v5, %v543_v6  ;;  %v563_v16 = vrot.slane %v494_v58, %v530_v50  ;;  %v567_v17 = vrot.slane %v501_v59, %v530_v50  ;;  %v831_v4 = vld [vmem:[#allocation2 + $0x18] sm:$0xf] }
  0x28   : > { %v575_v19 = vrot.slane %v503_v8, %v530_v50  ;;  %v579_v20 = vrot.slane %v518_v61, %v530_v50  ;;  %v587_v22 = vrot.slane %v526_v9, %v530_v50  ;;  %v617_v24 = vrot.slane %v609_v12, %v599_v11 }
  0x29   : > { %3722 = vmatpush3.bf16.msra.mxu1 %v3964_v30  ;;  %v600_v26 = vrot.slane %v592_v14, %v599_v11  ;;  %v626_v30 = vcombine.low %v563_v16, %v567_v17  ;;  %v1098_v38 = vshll.u32 %v1067_v28, 16  ;;  %v4288_v52 = vrot.slane %v1095_v37, 4 }
  0x2a   : > { %3620 = vmatpush3.bf16.msra.mxu0 %v3951_v18  ;;  %3723 = vmatprep.subr.bf16.mxu1 %v3966_v31  ;;  %v571_v18 = vrot.slane %v502_v7, %v530_v50  ;;  %v1104_v2 = vshll.u32 %v4293_v56, 16 }
  0x2b   : > { %3621 = vmatprep.subr.bf16.mxu0 %v3953_v21  ;;  %v634_v43 = vrot.slane %v626_v30, %v599_v11  ;;  %v4290_v53 = vrot.slane %v1098_v38, 5 }
  0x2c   : > { %v627_v35 = vcombine.low %v571_v18, %v575_v19  ;;  %v816_v18 = vld [vmem:[#allocation2 + $0x8] sm:$0xf] }
  0x2d   : > { %3724 = vmatpush3.bf16.msra.mxu1 %v3966_v31  ;;  %v4276_v31 = vld [vmem:[%s4724_s3] ss:$0 sm:$0xff]  ;;  %v1101_v1 = vor.u32 %v4290_v53, %v4288_v52 }
  0x2e   : > { %3622 = vmatpush3.bf16.msra.mxu0 %v3953_v21  ;;  %3733 = vmatprep.subr.bf16.mxu1 %v4266_v32  ;;  %v583_v21 = vrot.slane %v525_v62, %v530_v50  ;;  %v641_v48 = vrot.slane %v627_v35, %v599_v11  ;;  %v840_v35 = vld [vmem:[#allocation2 + $0x24] sm:$0x1] }
  0x2f   : > { %3623 = vmatprep.subr.bf16.mxu0 %v3955_v23 }
  0x30   : > { %v643_v33 = vcombine.low %v579_v20, %v583_v21  ;;  %v4299_v62 = vcombine.low %v634_v43, %v641_v48  ;;  %v828_v43 = vld [vmem:[#allocation2 + $0x14] sm:$0x1] }
  0x32   : > { %3624 = vmatpush3.bf16.msra.mxu0 %v3955_v23  ;;  %v591_v23 = vrot.slane %v527_v10, %v530_v50  ;;  %v651_v46 = vrot.slane %v643_v33, %v599_v11 }
  0x33   : > { %3625 = vmatprep.subr.bf16.mxu0 %v3957_v25 }
  0x34   : > { %v644_v34 = vcombine.low %v587_v22, %v591_v23 }
  0x36   : > { %3626 = vmatpush3.bf16.msra.mxu0 %v3957_v25  ;;  %v624_v25 = vrot.slane %v610_v13, %v599_v11  ;;  %v658_v47 = vrot.slane %v644_v34, %v599_v11  ;;  %v837_v34 = vld [vmem:[#allocation2 + $0x20] sm:$0xf] }
  0x37   : > { %3627 = vmatprep.subr.bf16.mxu0 %v3959_v27 }
  0x38   : > { %v625_v36 = vcombine.low %v617_v24, %v624_v25  ;;  %v4297_v61 = vcombine.low %v651_v46, %v658_v47  ;;  %v822_v25 = vld [vmem:[#allocation2 + $0xc] sm:$0x1] }
  0x3a   : > { %3628 = vmatpush3.bf16.msra.mxu0 %v3959_v27  ;;  %v607_v27 = vrot.slane %v593_v15, %v599_v11  ;;  %v834_v11 = vld [vmem:[#allocation2 + $0x1c] sm:$0x1] }
  0x3b   : > { %3637 = vmatprep.subr.bf16.mxu0 %v4254_v29 }
  0x3c   : > { %v608_v40 = vcombine.low %v600_v26, %v607_v27 }
  0xf0   : > { %v3607_v39 = vpop.f32.mrb[0].mxu0 }
  0xf1   : > { %v402_v41 = vadd.f32 %v3607_v39, %v4276_v31  ;;  %v393_v42 = vpop.f32.mrb[1].mxu0 }
  0xf2   : > { %v394_v44 = vadd.f32 %v4276_v31, %v393_v42  ;;  %v3608_v45 = vpop.f32.mrb[2].mxu0  ;;  %v825_v42 = vld [vmem:[#allocation2 + $0x10] sm:$0xf] }
  0xf3   : > { %v666_v49 = vadd.f32 %v625_v36, %v402_v41  ;;  %v405_v50 = vadd.f32 %v3608_v45, %v4276_v31  ;;  %v396_v51 = vpop.f32.mrb[3].mxu0 }
  0xf4   : > { %v664_v54 = vadd.f32 %v608_v40, %v394_v44  ;;  %v397_v55 = vadd.f32 %v4276_v31, %v396_v51 }
  0xf5   : > { %674 = vst [vmem:[%s4284_s16 + $0x10] sm:$0xff] %v666_v49  ;;  %v3480_v57 = vpack.c.bf16 %v666_v49, %v666_v49  ;;  %v667_v58 = vadd.f32 %v625_v36, %v405_v50 }
  0xf6   : > { %672 = vst [vmem:[%s4284_s16] sm:$0xff] %v664_v54  ;;  %v3478_v59 = vpack.c.bf16 %v664_v54, %v664_v54  ;;  %v665_v60 = vadd.f32 %v608_v40, %v397_v55 }
  0xf7   : > { %v749_v63 = vshrl.u32 %v3480_v57, 16  ;;  %675 = vst [vmem:[%s4284_s16 + $0x18] sm:$0xff] %v667_v58  ;;  %v3481_v0 = vpack.c.bf16 %v667_v58, %v667_v58  ;;  %v752_v3 = vshll.u32 %v3480_v57, 16 }
  0xf8   : > { %v733_v5 = vshrl.u32 %v3478_v59, 16  ;;  %v736_v6 = vshll.u32 %v3478_v59, 16  ;;  %673 = vst [vmem:[%s4284_s16 + $0x8] sm:$0xff] %v665_v60  ;;  %v3479_v7 = vpack.c.bf16 %v665_v60, %v665_v60  ;;  %v3611_v8 = vpop.f32.mrb[4].mxu0 }
  0xf9   : > { %v751_v9 = vrot.slane %v749_v63, 7  ;;  %v757_v12 = vshrl.u32 %v3481_v0, 16  ;;  %v760_v13 = vshll.u32 %v3481_v0, 16  ;;  %v418_v14 = vadd.f32 %v3611_v8, %v4276_v31  ;;  %v409_v15 = vpop.f32.mrb[5].mxu0 }
  0xfa   : > { %v735_v17 = vrot.slane %v733_v5, 7  ;;  %v741_v19 = vshrl.u32 %v3479_v7, 16  ;;  %v744_v20 = vshll.u32 %v3479_v7, 16  ;;  %v410_v21 = vadd.f32 %v4276_v31, %v409_v15  ;;  %v3612_v22 = vpop.f32.mrb[6].mxu0 }
  0xfb   : > { %v754_v23 = vor.u32 %v752_v3, %v751_v9  ;;  %v755_v24 = vrot.slane %v751_v9, 4  ;;  %v759_v26 = vrot.slane %v757_v12, 7  ;;  %v670_v27 = vadd.f32 %v4297_v61, %v418_v14  ;;  %v412_v28 = vpop.f32.mrb[7].mxu0  ;;  %v855_v3 = vld [vmem:[#allocation2 + $0x38] sm:$0xf] }
  0xfc   : > { %v738_v30 = vor.u32 %v736_v6, %v735_v17  ;;  %v739_v33 = vrot.slane %v735_v17, 4  ;;  %v743_v36 = vrot.slane %v741_v19, 7  ;;  %v668_v37 = vadd.f32 %v4299_v62, %v410_v21  ;;  %v858_v9 = vld [vmem:[#allocation2 + $0x3c] sm:$0x1] }
  0xfd   : > { %v832_v38 = vsel %vm4308_vm5, %v754_v23, %v831_v4  ;;  %v835_v39 = vsel %vm4315_vm6, %v755_v24, %v834_v11  ;;  %v762_v40 = vor.u32 %v760_v13, %v759_v26  ;;  %v763_v41 = vrot.slane %v759_v26, 4  ;;  %678 = vst [vmem:[%s4284_s16 + $0x30] sm:$0xff] %v670_v27  ;;  %v843_v4 = vld [vmem:[#allocation2 + $0x28] sm:$0xf]  ;;  %v864_v23 = vld [vmem:[#allocation2 + $0x44] sm:$0x1] }
  0xfe   : > { %833 = vst [vmem:[#allocation2 + $0x18] sm:$0xf] %v832_v38  ;;  %836 = vst [vmem:[#allocation2 + $0x1c] sm:$0x1] %v835_v39  ;;  %v817_v44 = vsel %vm4308_vm5, %v738_v30, %v816_v18  ;;  %v823_v45 = vsel %vm4315_vm6, %v739_v33, %v822_v25  ;;  %v746_v46 = vor.u32 %v744_v20, %v743_v36  ;;  %v747_v47 = vrot.slane %v743_v36, 4 }
  0xff   : > { %676 = vst [vmem:[%s4284_s16 + $0x20] sm:$0xff] %v668_v37  ;;  %818 = vst [vmem:[#allocation2 + $0x8] sm:$0xf] %v817_v44  ;;  %v838_v48 = vsel %vm4308_vm5, %v762_v40, %v837_v34  ;;  %v841_v49 = vsel %vm4315_vm6, %v763_v41, %v840_v35  ;;  %v3484_v50 = vpack.c.bf16 %v670_v27, %v670_v27  ;;  %v4349_v13 = vrot.slane %v1101_v1, 4  ;;  %v849_v24 = vld [vmem:[#allocation2 + $0x30] sm:$0xf] }
 0x100   : > { %824 = vst [vmem:[#allocation2 + $0xc] sm:$0x1] %v823_v45  ;;  %v3482_v51 = vpack.c.bf16 %v668_v37, %v668_v37  ;;  %839 = vst [vmem:[#allocation2 + $0x20] sm:$0xf] %v838_v48  ;;  %v826_v54 = vsel %vm4308_vm5, %v746_v46, %v825_v42  ;;  %v829_v55 = vsel %vm4315_vm6, %v747_v47, %v828_v43  ;;  %v852_v25 = vld [vmem:[#allocation2 + $0x34] sm:$0x1] }
 0x101   : > { %842 = vst [vmem:[#allocation2 + $0x24] sm:$0x1] %v841_v49  ;;  %v421_v57 = vadd.f32 %v3612_v22, %v4276_v31  ;;  %v413_v58 = vadd.f32 %v4276_v31, %v412_v28  ;;  %827 = vst [vmem:[#allocation2 + $0x10] sm:$0xf] %v826_v54  ;;  %v781_v59 = vshrl.u32 %v3484_v50, 16  ;;  %v784_v60 = vshll.u32 %v3484_v50, 16 }
 0x102   : > { %830 = vst [vmem:[#allocation2 + $0x14] sm:$0x1] %v829_v55  ;;  %v765_v63 = vshrl.u32 %v3482_v51, 16  ;;  %v768_v0 = vshll.u32 %v3482_v51, 16  ;;  %v846_v31 = vld [vmem:[#allocation2 + $0x2c] sm:$0x1] }
 0x103   : > { %v671_v5 = vadd.f32 %v4297_v61, %v421_v57  ;;  %v669_v6 = vadd.f32 %v4299_v62, %v413_v58  ;;  %v783_v7 = vrot.slane %v781_v59, 7  ;;  %v4353_v61 = vrot.slane %v1104_v2, 5  ;;  %v3965_v22 = vld [vmem:[%s4725_s4 + $0x48] sm:$0xff]   ;;  %v861_v2 = vld [vmem:[#allocation2 + $0x40] sm:$0xf] }
 0x104   : > { %v767_v8 = vrot.slane %v765_v63, 7  ;;  %v4027_v55 = vld [vmem:[%s4725_s4 + $0x220] sm:$0xff]  }
 0x105   : > { %679 = vst [vmem:[%s4284_s16 + $0x38] sm:$0xff] %v671_v5  ;;  %v3485_v11 = vpack.c.bf16 %v671_v5, %v671_v5  ;;  %677 = vst [vmem:[%s4284_s16 + $0x28] sm:$0xff] %v669_v6  ;;  %v3483_v12 = vpack.c.bf16 %v669_v6, %v669_v6  ;;  %v786_v62 = vor.u32 %v784_v60, %v783_v7  ;;  %v787_v14 = vrot.slane %v783_v7, 4  ;;  %v1795_v57 = vld [vmem:[#allocation2 + $0x18] sm:$0xf]  ;;  %s3183_s16 = sshll.u32 %s292_s13, 6 }
 0x106   : > { %v770_v15 = vor.u32 %v768_v0, %v767_v8  ;;  %v771_v17 = vrot.slane %v767_v8, 4  ;;  %v3961_v26 = vld [vmem:[#allocation2] ss:$8 sps:$4 sm:$0xff]   ;;  %v1796_v60 = vld [vmem:[#allocation2 + $0x1c] sm:$0x1]  ;;  %v1107_v7 = vsel %vm4380_vm9, %v4349_v13, %v4353_v61  ;;  %s294_s17 = scalar_lea.vmem [#allocation4], %s3183_s16 }
 0x107   : > { %v789_v18 = vshrl.u32 %v3485_v11, 16  ;;  %v792_v19 = vshll.u32 %v3485_v11, 16  ;;  %v773_v20 = vshrl.u32 %v3483_v12, 16  ;;  %v776_v21 = vshll.u32 %v3483_v12, 16  ;;  %v1069_v27 = vld [vmem:[#allocation2 + $0x8] sm:$0xf]  ;;  %3629 = vmatprep.mubr.bf16.mxu0 %v3961_v26 }
 0x108   : > { %v856_v52 = vsel %vm4308_vm5, %v786_v62, %v855_v3  ;;  %v859_v53 = vsel %vm4315_vm6, %v787_v14, %v858_v9  ;;  %v844_v56 = vsel %vm4308_vm5, %v770_v15, %v843_v4  ;;  %v847_v1 = vsel %vm4315_vm6, %v771_v17, %v846_v31  ;;  %v3963_v33 = vld [vmem:[#allocation2 + $0x10] ss:$8 sps:$4 sm:$0xff]   ;;  %v1070_v34 = vld [vmem:[#allocation2 + $0xc] sm:$0x1]  ;;  %v1791_v37 = vld [vmem:[#allocation2 + $0x8] sm:$0xf] }
 0x109   : > { %857 = vst [vmem:[#allocation2 + $0x38] sm:$0xf] %v856_v52  ;;  %860 = vst [vmem:[#allocation2 + $0x3c] sm:$0x1] %v859_v53  ;;  %v791_v28 = vrot.slane %v789_v18, 7  ;;  %v775_v30 = vrot.slane %v773_v20, 7  ;;  %3630 = vmatmul.mubr.bf16.vlgmr.msra.gmra.mrb[8].mxu0 %v3963_v33 }
 0x10a   : > { %845 = vst [vmem:[#allocation2 + $0x28] sm:$0xf] %v844_v56  ;;  %848 = vst [vmem:[#allocation2 + $0x2c] sm:$0x1] %v847_v1  ;;  %v1109_v35 = vshrl.u32 %v1069_v27, 16  ;;  %v1112_v36 = vshll.u32 %v1069_v27, 16  ;;  %3638 = vmatpush3.bf16.msra.mxu0 %v4254_v29 }
 0x10b   : > { %v794_v38 = vor.u32 %v792_v19, %v791_v28  ;;  %v795_v39 = vrot.slane %v791_v28, 4  ;;  %v778_v40 = vor.u32 %v776_v21, %v775_v30  ;;  %v779_v41 = vrot.slane %v775_v30, 4  ;;  %v1792_v42 = vld [vmem:[#allocation2 + $0xc] sm:$0x1]  ;;  %v1793_v43 = vld [vmem:[#allocation2 + $0x10] sm:$0xf]  ;;  %3639 = vmatprep.subr.bf16.mxu0 %v3965_v22 }
 0x10c   : > { %v1111_v44 = vrot.slane %v1109_v35, 4  ;;  %v1114_v45 = vrot.slane %v1112_v36, 5  ;;  %v1118_v46 = vshll.u32 %v1070_v34, 16  ;;  %v1794_v47 = vld [vmem:[#allocation2 + $0x14] sm:$0x1]  ;;  %v1816_v48 = vshrl.u32 %v1791_v37, 16 }
 0x10d   : > { %v862_v49 = vsel %vm4308_vm5, %v794_v38, %v861_v2  ;;  %v865_v50 = vsel %vm4315_vm6, %v795_v39, %v864_v23  ;;  %v850_v51 = vsel %vm4308_vm5, %v778_v40, %v849_v24  ;;  %v853_v54 = vsel %vm4315_vm6, %v779_v41, %v852_v25  ;;  %v3968_v29 = vld [vmem:[%s4725_s4 + $0x50] sm:$0xff]   ;;  %v1797_v5 = vld [vmem:[#allocation2 + $0x20] sm:$0xf]  ;;  %v3971_v12 = vld [vmem:[%s4725_s4 + $0x58] sm:$0xff]   ;;  %s3080_s19 = sshll.u32 %s294_s17, 4  ;;  %s4676_s19 = int_to_ptr.vmem [resolvable:$true] %s3080_s19 }
 0x10e   : > { %863 = vst [vmem:[#allocation2 + $0x40] sm:$0xf] %v862_v49  ;;  %866 = vst [vmem:[#allocation2 + $0x44] sm:$0x1] %v865_v50  ;;  %v1115_v10 = vor.u32 %v1114_v45, %v1111_v44  ;;  %v1120_v58 = vrot.slane %v1118_v46, 5  ;;  %v1818_v16 = vrot.slane %v1816_v48, 4  ;;  %3640 = vmatpush3.bf16.msra.mxu0 %v3965_v22  ;;  %p4038_p0 = scmp.lt.s32.totalorder %s4676_s19, %s4036_s8 }
 0x10f   : > { %851 = vst [vmem:[#allocation2 + $0x30] sm:$0xf] %v850_v51  ;;  %854 = vst [vmem:[#allocation2 + $0x34] sm:$0x1] %v853_v54  ;;  %v1819_v59 = vshll.u32 %v1791_v37, 16  ;;  %v1825_v63 = vshll.u32 %v1792_v42, 16  ;;  %3641 = vmatprep.subr.bf16.mxu0 %v3968_v29 }
 0x110   : > { %v1830_v0 = vshrl.u32 %v1793_v43, 16  ;;  %v1833_v3 = vshll.u32 %v1793_v43, 16  ;;  %v1839_v4 = vshll.u32 %v1794_v47, 16  ;;  %v1116_v8 = vrot.slane %v1115_v10, 4  ;;  %v1798_v20 = vld [vmem:[#allocation2 + $0x24] sm:$0x1] }
 0x111   : > { %v3967_v6 = vld [vmem:[#allocation2 + $0x20] ss:$8 sps:$4 sm:$0xff]   ;;  %v1821_v9 = vrot.slane %v1819_v59, 5  ;;  %v1827_v31 = vrot.slane %v1825_v63, 5  ;;  %v1844_v15 = vshrl.u32 %v1795_v57, 16  ;;  %v1847_v17 = vshll.u32 %v1795_v57, 16 }
 0x112   : > { %v1832_v11 = vrot.slane %v1830_v0, 4  ;;  %3633 = vmatprep.mubr.bf16.mxu0 %v3967_v6  ;;  %v1835_v62 = vrot.slane %v1833_v3, 5  ;;  %v1841_v14 = vrot.slane %v1839_v4, 5  ;;  %v1121_v18 = vsel %vm4380_vm9, %v1116_v8, %v1120_v58  ;;  %v3973_v21 = vld [vmem:[%s4725_s4 + $0x60] sm:$0xff]   ;;  %3642 = vmatpush3.bf16.msra.mxu0 %v3968_v29  ;;  %v1799_v1 = vld [vmem:[#allocation2 + $0x28] sm:$0xf] }
 0x113   : > { %v1822_v19 = vor.u32 %v1821_v9, %v1818_v16  ;;  %v1853_v13 = vshll.u32 %v1796_v60, 16  ;;  %v1858_v61 = vshrl.u32 %v1797_v5, 16  ;;  %v3238_v22 = vcombine.low %v1107_v7, %v1121_v18  ;;  %v1800_v2 = vld [vmem:[#allocation2 + $0x2c] sm:$0x1]  ;;  %3643 = vmatprep.subr.bf16.mxu0 %v3971_v12  ;;  %v1803_v33 = vld [vmem:[#allocation2 + $0x38] sm:$0xf] }
 0x114   : > { %v1836_v52 = vor.u32 %v1835_v62, %v1832_v11  ;;  %v1846_v53 = vrot.slane %v1844_v15, 4  ;;  %v1849_v56 = vrot.slane %v1847_v17, 5  ;;  %v1861_v30 = vshll.u32 %v1797_v5, 16  ;;  %v1804_v48 = vld [vmem:[#allocation2 + $0x3c] sm:$0x1]  ;;  %v3975_v49 = vld [vmem:[%s4725_s4 + $0x68] sm:$0xff]  }
 0x115   : > { %v1823_v24 = vrot.slane %v1822_v19, 4  ;;  %v1855_v25 = vrot.slane %v1853_v13, 5  ;;  %v1860_v28 = vrot.slane %v1858_v61, 4  ;;  %v1867_v35 = vshll.u32 %v1798_v20, 16  ;;  %v1805_v16 = vld [vmem:[#allocation2 + $0x40] sm:$0xf] }
 0x116   : > { %v3969_v23 = vld [vmem:[#allocation2 + $0x30] ss:$8 sps:$4 sm:$0xff]   ;;  %v1837_v26 = vrot.slane %v1836_v52, 4  ;;  %v1850_v27 = vor.u32 %v1849_v56, %v1846_v53  ;;  %v1872_v37 = vshrl.u32 %v1799_v1, 16  ;;  %v1875_v38 = vshll.u32 %v1799_v1, 16  ;;  %3644 = vmatpush3.bf16.msra.mxu0 %v3971_v12  ;;  %v3972_v20 = vld [vmem:[%s4725_s4 + $0x148] sm:$0xff]  }
 0x117   : > { %3634 = vmatmul.mubr.bf16.gmra.mrb[12].mxu0 %v3969_v23  ;;  %v1828_v34 = vsel %vm4380_vm9, %v1823_v24, %v1827_v31  ;;  %v1801_v36 = vld [vmem:[#allocation2 + $0x30] sm:$0xf]  ;;  %v1863_v41 = vrot.slane %v1861_v30, 5  ;;  %v1802_v42 = vld [vmem:[#allocation2 + $0x34] sm:$0x1]  ;;  %v1881_v43 = vshll.u32 %v1800_v2, 16  ;;  %3645 = vmatprep.subr.bf16.mxu0 %v3973_v21 }
 0x118   : > { %3653 = vmatprep.mubr.bf16.mxu0 %v3238_v22  ;;  %v1842_v39 = vsel %vm4380_vm9, %v1837_v26, %v1841_v14  ;;  %v1851_v40 = vrot.slane %v1850_v27, 4  ;;  %v1869_v45 = vrot.slane %v1867_v35, 5  ;;  %v1874_v46 = vrot.slane %v1872_v37, 4  ;;  %v2089_v60 = vld [vmem:[#allocation2 + $0x8] sm:$0xe]  ;;  %v3977_v63 = vld [vmem:[%s4725_s4 + $0x70] sm:$0xff]  }
 0x119   : > { %v3330_v44 = vcombine.low %v1828_v34, %v1842_v39  ;;  %v1877_v47 = vrot.slane %v1875_v38, 5  ;;  %v1864_v51 = vor.u32 %v1863_v41, %v1860_v28  ;;  %v4405_v54 = vrot.slane %v1881_v43, 5  ;;  %v2090_v6 = vld [vmem:[#allocation2 + $0xc] sm:$0x1]  ;;  %v1806_v31 = vld [vmem:[#allocation2 + $0x44] sm:$0x1] }
 0x11a   : > { %v1856_v50 = vsel %vm4380_vm9, %v1851_v40, %v1855_v25  ;;  %v1886_v29 = vshrl.u32 %v1801_v36, 16  ;;  %v1889_v10 = vshll.u32 %v1801_v36, 16  ;;  %v1895_v58 = vshll.u32 %v1802_v42, 16  ;;  %3646 = vmatpush3.bf16.msra.mxu0 %v3973_v21  ;;  %v4410_v12 = vld [vmem:[#allocation2] sm:$0xe]  ;;  %v3979_v23 = vld [vmem:[%s4725_s4 + $0x78] sm:$0xff]  }
 0x11b   : > { %3725 = vmatprep.mubr.bf16.mxu1 %v3330_v44  ;;  %v1878_v57 = vor.u32 %v1877_v47, %v1874_v46  ;;  %v1900_v59 = vshrl.u32 %v1803_v33, 16  ;;  %v1865_v0 = vrot.slane %v1864_v51, 4  ;;  %v1903_v4 = vshll.u32 %v1803_v33, 16  ;;  %3647 = vmatprep.subr.bf16.mxu0 %v3975_v49  ;;  %v2091_v18 = vld [vmem:[#allocation2 + $0x10] sm:$0xe]  ;;  %s4031_s23 = scalar_lea.vmem %s4676_s19, 1024 }
 0x11c   : > { %v1888_v3 = vrot.slane %v1886_v29, 4  ;;  %v1909_v5 = vshll.u32 %v1804_v48, 16  ;;  %v1891_v8 = vrot.slane %v1889_v10, 5  ;;  %v1897_v9 = vrot.slane %v1895_v58, 5  ;;  %v2092_v22 = vld [vmem:[#allocation2 + $0x14] sm:$0x1]  ;;  %p4032_p11 = scmp.ne.s32.totalorder %s4676_s19, %s4031_s23  ;;  %p4039_p1 = scmp.lt.s32.totalorder %s4037_s9, %s4031_s23 }
 0x11d   : > { %v1879_v7 = vrot.slane %v1878_v57, 4  ;;  %v1902_v11 = vrot.slane %v1900_v59, 4  ;;  %v1870_v62 = vsel %vm4380_vm9, %v1865_v0, %v1869_v45  ;;  %v1905_v14 = vrot.slane %v1903_v4, 5  ;;  %v1071_v52 = vld [vmem:[#allocation2 + $0x10] sm:$0xf] }
 0x11e   : > { %v4414_v15 = vrot.slane %v1909_v5, 5  ;;  %v1914_v17 = vshrl.u32 %v1805_v16, 16  ;;  %v3331_v19 = vcombine.low %v1856_v50, %v1870_v62  ;;  %v1892_v61 = vor.u32 %v1891_v8, %v1888_v3  ;;  %3648 = vmatpush3.bf16.msra.mxu0 %v3975_v49  ;;  %v4428_v25 = vld [vmem:[%s4725_s4 + $0x150] sm:$0xff]   ;;  %v1073_v36 = vld [vmem:[#allocation2 + $0x18] sm:$0xf]  ;;  %p4033_p12 = pnand %p4032_p11, %p4179_p5  ;;  %p4040_p2 = por %p4039_p1, %p4038_p0 }
 0x11f   : > { %v1884_v13 = vsel %vm4380_vm9, %v1879_v7, %v4405_v54  ;;  %v1917_v21 = vshll.u32 %v1805_v16, 16  ;;  %v1906_v53 = vor.u32 %v1905_v14, %v1902_v11  ;;  %v1923_v1 = vshll.u32 %v1806_v31, 16  ;;  %3649 = vmatprep.subr.bf16.mxu0 %v3977_v63  ;;  %v1072_v33 = vld [vmem:[#allocation2 + $0x14] sm:$0x1]  ;;  %v1074_v42 = vld [vmem:[#allocation2 + $0x1c] sm:$0x1] }
 0x120   : > { %v1916_v56 = vrot.slane %v1914_v17, 4  ;;  %v3342_v2 = vrot.slane %v2089_v60, 9  ;;  %3726 = vmatmul.mubr.bf16.vlgmr.msra.gmra.mrb[0].mxu1 %v3331_v19  ;;  %v1893_v24 = vrot.slane %v1892_v61, 4  ;;  %v2131_v28 = vrot.slane %v2090_v6, 5  ;;  %v1075_v44 = vld [vmem:[#allocation2 + $0x20] sm:$0xf]  ;;  %p4034_p13 = pneg %p4033_p12 }
 0x121   : > { %v1919_v26 = vrot.slane %v1917_v21, 5  ;;  %v3343_v30 = vrot.slane %v2091_v18, 9  ;;  %3734 = vmatpush3.bf16.msra.mxu1 %v4266_v32  ;;  %v1907_v34 = vrot.slane %v1906_v53, 4  ;;  %v2135_v35 = vrot.slane %v2092_v22, 5  ;;  %v4450_v54 = vld [vmem:[%s4725_s4 + $0x80] sm:$0xff]   ;;  %v3976_v6 = vld [vmem:[%s4725_s4 + $0x158] sm:$0xff]  }
 0x122   : > { %v1123_v37 = vshrl.u32 %v1071_v52, 16  ;;  %v3250_v38 = vrot.slane %v4410_v12, 9  ;;  %3735 = vmatprep.subr.bf16.mxu1 %v3972_v20  ;;  %v1898_v39 = vsel %vm4380_vm9, %v1893_v24, %v1897_v9  ;;  %v1925_v41 = vrot.slane %v1923_v1, 5  ;;  %3650 = vmatpush3.bf16.msra.mxu0 %v3977_v63  ;;  %v1076_v58 = vld [vmem:[#allocation2 + $0x24] sm:$0x1]  ;;  %p4041_p3 = pnand %p4040_p2, %p4034_p13 }
 0x123   : > { %v1920_v40 = vor.u32 %v1919_v26, %v1916_v56  ;;  %v1126_v43 = vshll.u32 %v1071_v52, 16  ;;  %v3332_v45 = vcombine.low %v1884_v13, %v1898_v39  ;;  %v2132_v46 = vsel %vm4432_vm12, %v3342_v2, %v2131_v28  ;;  %3651 = vmatprep.subr.bf16.mxu0 %v3979_v23  ;;  %v1077_v0 = vld [vmem:[#allocation2 + $0x28] sm:$0xf]  ;;  %v1078_v3 = vld [vmem:[#allocation2 + $0x2c] sm:$0x1]  ;;  %v3978_v17 = vld [vmem:[%s4725_s4 + $0x160] sm:$0xff]  }
 0x124   : > { %v2136_v32 = vsel %vm4432_vm12, %v3343_v30, %v2135_v35  ;;  %v1125_v47 = vrot.slane %v1123_v37, 4  ;;  %v1912_v48 = vsel %vm4380_vm9, %v1907_v34, %v4414_v15  ;;  %v1132_v51 = vshll.u32 %v1072_v33, 16  ;;  %v1079_v31 = vld [vmem:[#allocation2 + $0x30] sm:$0xf]  ;;  %v1080_v61 = vld [vmem:[#allocation2 + $0x34] sm:$0x1] }
 0x125   : > { %v1921_v49 = vrot.slane %v1920_v40, 4  ;;  %v1128_v50 = vrot.slane %v1126_v43, 5  ;;  %3736 = vmatpush3.bf16.msra.mxu1 %v3972_v20  ;;  %3729 = vmatprep.mubr.bf16.mxu1 %v3332_v45  ;;  %v1137_v29 = vshrl.u32 %v1073_v36, 16  ;;  %v1140_v57 = vshll.u32 %v1073_v36, 16  ;;  %v1369_v21 = vld [vmem:[#allocation2 + $0x4] sm:$0x1] }
 0x126   : > { %v1146_v10 = vshll.u32 %v1074_v42, 16  ;;  %v1151_v16 = vshrl.u32 %v1075_v44, 16  ;;  %3737 = vmatprep.subr.bf16.mxu1 %v4428_v25  ;;  %v3366_v60 = vcombine.low %v2132_v46, %v2136_v32  ;;  %v1154_v4 = vshll.u32 %v1075_v44, 16  ;;  %3652 = vmatpush3.bf16.msra.mxu0 %v3979_v23  ;;  %v1081_v56 = vld [vmem:[#allocation2 + $0x38] sm:$0xf]  ;;  %v3983_v44 = vld [vmem:[%s4725_s4 + $0x88] sm:$0xff]  }
 0x127   : > { %v1926_v59 = vsel %vm4380_vm9, %v1921_v49, %v1925_v41  ;;  %v1129_v63 = vor.u32 %v1128_v50, %v1125_v47  ;;  %v1134_v7 = vrot.slane %v1132_v51, 5  ;;  %v1139_v8 = vrot.slane %v1137_v29, 4  ;;  %3661 = vmatprep.subr.bf16.mxu0 %v4450_v54  ;;  %v1082_v1 = vld [vmem:[#allocation2 + $0x3c] sm:$0x1]  ;;  %v1370_v30 = vld [vmem:[#allocation2 + $0x8] sm:$0xe] }
 0x128   : > { %v3333_v5 = vcombine.low %v1912_v48, %v1926_v59  ;;  %v1142_v9 = vrot.slane %v1140_v57, 5  ;;  %v1148_v62 = vrot.slane %v1146_v10, 5  ;;  %v1153_v14 = vrot.slane %v1151_v16, 4  ;;  %v3980_v32 = vld [vmem:[%s4725_s4 + $0x168] sm:$0xff]  }
 0x129   : > { %v1130_v11 = vrot.slane %v1129_v63, 4  ;;  %v1156_v15 = vrot.slane %v1154_v4, 5  ;;  %v1165_v19 = vshrl.u32 %v1077_v0, 16  ;;  %v1168_v20 = vshll.u32 %v1077_v0, 16  ;;  %3738 = vmatpush3.bf16.msra.mxu1 %v4428_v25  ;;  %v1371_v25 = vld [vmem:[#allocation2 + $0xc] sm:$0x1] }
 0x12a   : > { %3730 = vmatmul.mubr.bf16.gmra.mrb[4].mxu1 %v3333_v5  ;;  %v1143_v18 = vor.u32 %v1142_v9, %v1139_v8  ;;  %v1174_v13 = vshll.u32 %v1078_v3, 16  ;;  %v1160_v53 = vshll.u32 %v1076_v58, 16  ;;  %v1179_v2 = vshrl.u32 %v1079_v31, 16  ;;  %3739 = vmatprep.subr.bf16.mxu1 %v3976_v6  ;;  %v3985_v3 = vld [vmem:[%s4725_s4 + $0x90] sm:$0xff]   ;;  %v2095_v8 = vld [vmem:[#allocation2 + $0x20] sm:$0xe] }
 0x12b   : > { %3749 = vmatprep.mubr.bf16.mxu1 %v3366_v60  ;;  %v1135_v22 = vsel %vm4380_vm9, %v1130_v11, %v1134_v7  ;;  %v1157_v52 = vor.u32 %v1156_v15, %v1153_v14  ;;  %v1167_v24 = vrot.slane %v1165_v19, 4  ;;  %v1170_v26 = vrot.slane %v1168_v20, 5  ;;  %v3982_v4 = vld [vmem:[%s4725_s4 + $0x170] sm:$0xff]   ;;  %v2096_v9 = vld [vmem:[#allocation2 + $0x24] sm:$0x1] }
 0x12c   : > { %v1144_v23 = vrot.slane %v1143_v18, 4  ;;  %v1176_v28 = vrot.slane %v1174_v13, 5  ;;  %v1181_v34 = vrot.slane %v1179_v2, 4  ;;  %v1182_v35 = vshll.u32 %v1079_v31, 16  ;;  %v3987_v31 = vld [vmem:[%s4725_s4 + $0x98] sm:$0xff]  }
 0x12d   : > { %v1158_v33 = vrot.slane %v1157_v52, 4  ;;  %v1188_v36 = vshll.u32 %v1080_v61, 16  ;;  %v1171_v39 = vor.u32 %v1170_v26, %v1167_v24  ;;  %v1193_v40 = vshrl.u32 %v1081_v56, 16  ;;  %3740 = vmatpush3.bf16.msra.mxu1 %v3976_v6  ;;  %v2098_v14 = vld [vmem:[#allocation2 + $0x2c] sm:$0x1] }
 0x12e   : > { %v1149_v37 = vsel %vm4380_vm9, %v1144_v23, %v1148_v62  ;;  %v1196_v41 = vshll.u32 %v1081_v56, 16  ;;  %v1162_v43 = vrot.slane %v1160_v53, 5  ;;  %v1184_v45 = vrot.slane %v1182_v35, 5  ;;  %3741 = vmatprep.subr.bf16.mxu1 %v3978_v17  ;;  %v2097_v62 = vld [vmem:[#allocation2 + $0x28] sm:$0xe]  ;;  %v3989_v56 = vld [vmem:[%s4725_s4 + $0xa0] sm:$0xff]  }
 0x12f   : > { %v3239_v42 = vcombine.low %v1135_v22, %v1149_v37  ;;  %v1413_v46 = vrot.slane %v1369_v21, 5  ;;  %v1172_v47 = vrot.slane %v1171_v39, 4  ;;  %v1195_v48 = vrot.slane %v1193_v40, 4  ;;  %v2099_v15 = vld [vmem:[#allocation2 + $0x30] sm:$0xe]  ;;  %v3986_v23 = vld [vmem:[%s4725_s4 + $0x180] sm:$0xff]  }
 0x130   : > { %v1198_v49 = vrot.slane %v1196_v41, 5  ;;  %v1202_v50 = vshll.u32 %v1082_v1, 16  ;;  %v1185_v51 = vor.u32 %v1184_v45, %v1181_v34  ;;  %v1190_v29 = vrot.slane %v1188_v36, 5  ;;  %v2093_v19 = vld [vmem:[#allocation2 + $0x18] sm:$0xe]  ;;  %v3988_v37 = vld [vmem:[%s4725_s4 + $0x188] sm:$0xff]  }
 0x131   : > { %3654 = vmatmul.mubr.bf16.vlgmr.msra.gmra.mrb[8].mxu0 %v3239_v42  ;;  %v3251_v57 = vrot.slane %v1370_v30, 9  ;;  %v1417_v10 = vrot.slane %v1371_v25, 5  ;;  %v1163_v58 = vsel %vm4380_vm9, %v1158_v33, %v1162_v43  ;;  %v1177_v16 = vsel %vm4380_vm9, %v1172_v47, %v1176_v28  ;;  %3742 = vmatpush3.bf16.msra.mxu1 %v3978_v17  ;;  %v3984_v17 = vld [vmem:[%s4725_s4 + $0x178] sm:$0xff]   ;;  %v2103_v34 = vld [vmem:[#allocation2 + $0x40] sm:$0xe]  ;;  %v3992_v40 = vld [vmem:[%s4725_s4 + $0xa8] sm:$0xff]  }
 0x132   : > { %3662 = vmatpush3.bf16.msra.mxu0 %v4450_v54  ;;  %v1199_v59 = vor.u32 %v1198_v49, %v1195_v48  ;;  %v1204_v60 = vrot.slane %v1202_v50, 5  ;;  %v3240_v63 = vcombine.low %v1163_v58, %v1177_v16  ;;  %v1186_v0 = vrot.slane %v1185_v51, 4  ;;  %3743 = vmatprep.subr.bf16.mxu1 %v3980_v32  ;;  %v2094_v20 = vld [vmem:[#allocation2 + $0x1c] sm:$0x1]  ;;  %v2101_v26 = vld [vmem:[#allocation2 + $0x38] sm:$0xe] }
 0x133   : > { %3663 = vmatprep.subr.bf16.mxu0 %v3983_v44  ;;  %v1414_v6 = vsel %vm4432_vm12, %v3250_v38, %v1413_v46  ;;  %v1418_v7 = vsel %vm4432_vm12, %v3251_v57, %v1417_v10  ;;  %v2100_v38 = vld [vmem:[#allocation2 + $0x34] sm:$0x1]  ;;  %v3345_v13 = vrot.slane %v2095_v8, 9  ;;  %v2143_v61 = vrot.slane %v2096_v9, 5  ;;  %v2102_v33 = vld [vmem:[#allocation2 + $0x3c] sm:$0x1] }
 0x134   : > { %v1200_v5 = vrot.slane %v1199_v59, 4  ;;  %3657 = vmatprep.mubr.bf16.mxu0 %v3240_v63  ;;  %v1191_v54 = vsel %vm4380_vm9, %v1186_v0, %v1190_v29  ;;  %v3274_v18 = vcombine.low %v1414_v6, %v1418_v7  ;;  %v3346_v21 = vrot.slane %v2097_v62, 9  ;;  %v2104_v35 = vld [vmem:[#allocation2 + $0x44] sm:$0x1]  ;;  %v3994_v45 = vld [vmem:[%s4725_s4 + $0xb0] sm:$0xff]   ;;  %v3993_v50 = vld [vmem:[%s4725_s4 + $0x198] sm:$0xff]  }
 0x135   : > { %3744 = vmatpush3.bf16.msra.mxu1 %v3980_v32  ;;  %v2147_v22 = vrot.slane %v2098_v14, 5  ;;  %v3347_v52 = vrot.slane %v2099_v15, 9  ;;  %v2151_v53 = vrot.slane %v2100_v38, 5  ;;  %v3344_v1 = vrot.slane %v2093_v19, 9  ;;  %v3990_v46 = vld [vmem:[%s4725_s4 + $0x190] sm:$0xff]   ;;  %v3996_v57 = vld [vmem:[%s4725_s4 + $0xb8] sm:$0xff]  }
 0x136   : > { %3664 = vmatpush3.bf16.msra.mxu0 %v3983_v44  ;;  %v1205_v11 = vsel %vm4380_vm9, %v1200_v5, %v1204_v60  ;;  %3745 = vmatprep.subr.bf16.mxu1 %v3982_v4  ;;  %v2139_v2 = vrot.slane %v2094_v20, 5  ;;  %v2144_v24 = vsel %vm4432_vm12, %v3345_v13, %v2143_v61  ;;  %v3348_v39 = vrot.slane %v2101_v26, 9  ;;  %v1372_v48 = vld [vmem:[#allocation2 + $0x10] sm:$0xe]  ;;  %v1373_v49 = vld [vmem:[#allocation2 + $0x14] sm:$0x1] }
 0x137   : > { %v3241_v12 = vcombine.low %v1191_v54, %v1205_v11  ;;  %3665 = vmatprep.subr.bf16.mxu0 %v3985_v3  ;;  %v2148_v28 = vsel %vm4432_vm12, %v3346_v21, %v2147_v22  ;;  %v2152_v30 = vsel %vm4432_vm12, %v3347_v52, %v2151_v53  ;;  %v2155_v42 = vrot.slane %v2102_v33, 5  ;;  %v1378_v51 = vld [vmem:[#allocation2 + $0x28] sm:$0xe]  ;;  %v1379_v29 = vld [vmem:[#allocation2 + $0x2c] sm:$0x1]  ;;  %v3998_v7 = vld [vmem:[%s4725_s4 + $0xc0] sm:$0xff]  }
 0x138   : > { %v2140_v36 = vsel %vm4432_vm12, %v3344_v1, %v2139_v2  ;;  %v3368_v41 = vcombine.low %v2148_v28, %v2152_v30  ;;  %v3349_v43 = vrot.slane %v2103_v34, 9  ;;  %v2159_v44 = vrot.slane %v2104_v35, 5  ;;  %v1374_v10 = vld [vmem:[#allocation2 + $0x18] sm:$0xe]  ;;  %v1375_v58 = vld [vmem:[#allocation2 + $0x1c] sm:$0x1] }
 0x139   : > { %3658 = vmatmul.mubr.bf16.gmra.mrb[12].mxu0 %v3241_v12  ;;  %3746 = vmatpush3.bf16.msra.mxu1 %v3982_v4  ;;  %v3367_v25 = vcombine.low %v2140_v36, %v2144_v24  ;;  %v2156_v32 = vsel %vm4432_vm12, %v3348_v39, %v2155_v42  ;;  %v3252_v59 = vrot.slane %v1372_v48, 9  ;;  %v1421_v60 = vrot.slane %v1373_v49, 5  ;;  %v1376_v63 = vld [vmem:[#allocation2 + $0x20] sm:$0xe]  ;;  %v1377_v0 = vld [vmem:[#allocation2 + $0x24] sm:$0x1] }
 0x13a   : > { %3666 = vmatpush3.bf16.msra.mxu0 %v3985_v3  ;;  %3677 = vmatprep.mubr.bf16.mxu0 %v3274_v18  ;;  %v2160_v47 = vsel %vm4432_vm12, %v3349_v43, %v2159_v44  ;;  %v3991_v3 = vld [vmem:[#allocation2 + $0x10] ss:$8 sps:$4 sm:$0xff]   ;;  %v3255_v4 = vrot.slane %v1378_v51, 9  ;;  %v1433_v5 = vrot.slane %v1379_v29, 5  ;;  %v3253_v54 = vrot.slane %v1374_v10, 9  ;;  %v4000_v20 = vld [vmem:[%s4725_s4 + $0xc8] sm:$0xff]  }
 0x13b   : > { %3667 = vmatprep.subr.bf16.mxu0 %v3987_v31  ;;  %3747 = vmatprep.subr.bf16.mxu1 %v3984_v17  ;;  %v3369_v16 = vcombine.low %v2156_v32, %v2160_v47  ;;  %v1425_v6 = vrot.slane %v1375_v58, 5  ;;  %v3254_v8 = vrot.slane %v1376_v63, 9  ;;  %v1429_v9 = vrot.slane %v1377_v0, 5  ;;  %v1380_v62 = vld [vmem:[#allocation2 + $0x30] sm:$0xe]  ;;  %v3997_v61 = vld [vmem:[%s4725_s4 + $0x1a8] sm:$0xff]  }
 0x13c   : > { %v1422_v11 = vsel %vm4432_vm12, %v3252_v59, %v1421_v60  ;;  %v1434_v14 = vsel %vm4432_vm12, %v3255_v4, %v1433_v5  ;;  %v1381_v15 = vld [vmem:[#allocation2 + $0x34] sm:$0x1]  ;;  %v1382_v12 = vld [vmem:[#allocation2 + $0x38] sm:$0xe]  ;;  %v1383_v38 = vld [vmem:[#allocation2 + $0x3c] sm:$0x1] }
 0x13d   : > { %3748 = vmatpush3.bf16.msra.mxu1 %v3984_v17  ;;  %v1426_v17 = vsel %vm4432_vm12, %v3253_v54, %v1425_v6  ;;  %v1430_v19 = vsel %vm4432_vm12, %v3254_v8, %v1429_v9  ;;  %v3256_v13 = vrot.slane %v1380_v62, 9  ;;  %v1437_v22 = vrot.slane %v1381_v15, 5  ;;  %v2510_v1 = vld [vmem:[#allocation2 + $0x10] sm:$0xf]  ;;  %v2512_v26 = vld [vmem:[#allocation2 + $0x18] sm:$0xf] }
 0x13e   : > { %3668 = vmatpush3.bf16.msra.mxu0 %v3987_v31  ;;  %3757 = vmatprep.subr.bf16.mxu1 %v3986_v23  ;;  %v3995_v31 = vld [vmem:[%s4725_s4 + $0x1a0] sm:$0xff]   ;;  %v3275_v18 = vcombine.low %v1422_v11, %v1426_v17  ;;  %v3276_v21 = vcombine.low %v1430_v19, %v1434_v14  ;;  %v3257_v52 = vrot.slane %v1382_v12, 9  ;;  %v1441_v53 = vrot.slane %v1383_v38, 5  ;;  %v3999_v2 = vld [vmem:[%s4725_s4 + $0x1b0] sm:$0xff]   ;;  %v4007_v34 = vld [vmem:[%s4725_s4 + $0xd8] sm:$0xff]  }
 0x13f   : > { %3669 = vmatprep.subr.bf16.mxu0 %v3989_v56  ;;  %v2535_v28 = vshrl.u32 %v2510_v1, 16  ;;  %v2538_v30 = vshll.u32 %v2510_v1, 16  ;;  %v4001_v35 = vld [vmem:[%s4725_s4 + $0x1b8] sm:$0xff]   ;;  %v4003_v36 = vld [vmem:[#allocation2 + $0x8] ss:$8 sps:$4 sm:$0xff]   ;;  %v4005_v42 = vld [vmem:[%s4725_s4 + $0x1c0] sm:$0xff]  }
 0x140   : > { %3750 = vmatmul.mubr.bf16.vlgmr.msra.gmra.mrb[0].mxu1 %v3367_v25  ;;  %v1442_v24 = vsel %vm4432_vm12, %v3257_v52, %v1441_v53  ;;  %v2549_v25 = vshrl.u32 %v2512_v26, 16  ;;  %v2513_v32 = vld [vmem:[#allocation2 + $0x1c] sm:$0x1]  ;;  %v4004_v47 = vld [vmem:[#allocation2 + $0x20] ss:$8 sps:$4 sm:$0xff]   ;;  %v4014_v58 = vld [vmem:[%s4725_s4 + $0xf0] sm:$0xff]  }
 0x141   : > { %3753 = vmatprep.mubr.bf16.mxu1 %v3368_v41  ;;  %3758 = vmatpush3.bf16.msra.mxu1 %v3986_v23  ;;  %v1438_v23 = vsel %vm4432_vm12, %v3256_v13, %v1437_v22  ;;  %v2537_v39 = vrot.slane %v2535_v28, 4  ;;  %v4009_v41 = vld [vmem:[%s4725_s4 + $0xe0] sm:$0xff]   ;;  %v4008_v48 = vld [vmem:[%s4725_s4 + $0x1c8] sm:$0xff]   ;;  %v4006_v29 = vld [vmem:[#allocation2 + $0x30] ss:$8 sps:$4 sm:$0xff]   ;;  %v2558_v10 = vshll.u32 %v2513_v32, 16 }
 0x142   : > { %3670 = vmatpush3.bf16.msra.mxu0 %v3989_v56  ;;  %3759 = vmatprep.subr.bf16.mxu1 %v3988_v37  ;;  %v4002_v56 = vld [vmem:[%s4725_s4 + $0xd0] sm:$0xff]   ;;  %v3277_v33 = vcombine.low %v1438_v23, %v1442_v24  ;;  %v2551_v43 = vrot.slane %v2549_v25, 4  ;;  %v4012_v51 = vld [vmem:[%s4725_s4 + $0xe8] sm:$0xff]   ;;  %v4013_v5 = vld [vmem:[%s4725_s4 + $0x1d8] sm:$0xff]  }
 0x143   : > { %3671 = vmatprep.subr.bf16.mxu0 %v3992_v40  ;;  %v2560_v0 = vrot.slane %v2558_v10, 5  ;;  %v4016_v54 = vld [vmem:[%s4725_s4 + $0xf8] sm:$0xff]   ;;  %v2518_v8 = vld [vmem:[#allocation2 + $0x30] sm:$0xf]  ;;  %v2514_v11 = vld [vmem:[#allocation2 + $0x20] sm:$0xf] }
 0x144   : > { %v2520_v9 = vld [vmem:[#allocation2 + $0x38] sm:$0xf]  ;;  %v2591_v15 = vshrl.u32 %v2518_v8, 16  ;;  %v2594_v12 = vshll.u32 %v2518_v8, 16  ;;  %v2563_v19 = vshrl.u32 %v2514_v11, 16  ;;  %v4017_v13 = vld [vmem:[%s4725_s4 + $0x1e8] sm:$0xff]  }
 0x145   : > { %3760 = vmatpush3.bf16.msra.mxu1 %v3988_v37  ;;  %v2552_v37 = vshll.u32 %v2512_v26, 16  ;;  %v2605_v38 = vshrl.u32 %v2520_v9, 16  ;;  %v2608_v17 = vshll.u32 %v2520_v9, 16  ;;  %v2524_v53 = vld [vmem:[#allocation2 + $0x48] sm:$0xf] }
 0x146   : > { %3672 = vmatpush3.bf16.msra.mxu0 %v3992_v40  ;;  %3761 = vmatprep.subr.bf16.mxu1 %v3990_v46  ;;  %v2540_v40 = vrot.slane %v2538_v30, 5  ;;  %v2596_v1 = vrot.slane %v2594_v12, 5  ;;  %v2522_v24 = vld [vmem:[#allocation2 + $0x40] sm:$0xf]  ;;  %v2565_v26 = vrot.slane %v2563_v19, 4 }
 0x147   : > { %3673 = vmatprep.subr.bf16.mxu0 %v3994_v45  ;;  %v2554_v44 = vrot.slane %v2552_v37, 5  ;;  %v2610_v23 = vrot.slane %v2608_v17, 5  ;;  %v2519_v30 = vld [vmem:[#allocation2 + $0x34] sm:$0x1]  ;;  %v2515_v25 = vld [vmem:[#allocation2 + $0x24] sm:$0x1] }
 0x148   : > { %3754 = vmatmul.mubr.bf16.gmra.mrb[4].mxu1 %v3369_v16  ;;  %v4011_v16 = vld [vmem:[%s4725_s4 + $0x1d0] sm:$0xff]  }
 0x149   : > { %3762 = vmatpush3.bf16.msra.mxu1 %v3990_v46  ;;  %3773 = vmatprep.mubr.bf16.mxu1 %v3991_v3  ;;  %v2541_v46 = vor.u32 %v2540_v40, %v2537_v39  ;;  %v4010_v3 = vld [vmem:[#allocation2 + $0x40] ss:$8 sps:$4 sm:$0xff]   ;;  %v2619_v40 = vshrl.u32 %v2522_v24, 16 }
 0x14a   : > { %3674 = vmatpush3.bf16.msra.mxu0 %v3994_v45  ;;  %3763 = vmatprep.subr.bf16.mxu1 %v3993_v50  ;;  %v2511_v45 = vld [vmem:[#allocation2 + $0x14] sm:$0x1] }
 0x14b   : > { %3675 = vmatprep.subr.bf16.mxu0 %v3996_v57  ;;  %v2544_v49 = vshll.u32 %v2511_v45, 16  ;;  %v2621_v10 = vrot.slane %v2619_v40, 4  ;;  %v2818_v40 = vld [vmem:[#allocation2 + $0x38] sm:$0xe] }
 0x14d   : > { %3764 = vmatpush3.bf16.msra.mxu1 %v3993_v50  ;;  %v2555_v50 = vor.u32 %v2554_v44, %v2551_v43  ;;  %v2546_v59 = vrot.slane %v2544_v49, 5  ;;  %v2600_v43 = vshll.u32 %v2519_v30, 16  ;;  %v4026_v30 = vld [vmem:[%s4725_s4 + $0x218] sm:$0xff]  }
 0x14e   : > { %3676 = vmatpush3.bf16.msra.mxu0 %v3996_v57  ;;  %3765 = vmatprep.subr.bf16.mxu1 %v3995_v31  ;;  %v2542_v57 = vrot.slane %v2541_v46, 4  ;;  %v4022_v46 = vld [vmem:[#allocation2 + $0x38] ss:$8 sps:$4 sm:$0xff]  }
 0x14f   : > { %3685 = vmatprep.subr.bf16.mxu0 %v3998_v7  ;;  %v2556_v60 = vrot.slane %v2555_v50, 4 }
 0x150   : > { %v2547_v63 = vsel %vm4380_vm9, %v2542_v57, %v2546_v59  ;;  %v2525_v57 = vld [vmem:[#allocation2 + $0x4c] sm:$0x1]  ;;  %v2602_v59 = vrot.slane %v2600_v43, 5  ;;  %v2812_v43 = vld [vmem:[#allocation2 + $0x20] sm:$0xe] }
 0x151   : > { %3678 = vmatmul.mubr.bf16.vlgmr.msra.gmra.mrb[8].mxu0 %v3275_v18  ;;  %3766 = vmatpush3.bf16.msra.mxu1 %v3995_v31  ;;  %v2561_v4 = vsel %vm4380_vm9, %v2556_v60, %v2560_v0  ;;  %v4015_v31 = vld [vmem:[%s4725_s4 + $0x1e0] sm:$0xff]  }
 0x152   : > { %3681 = vmatprep.mubr.bf16.mxu0 %v3276_v21  ;;  %3686 = vmatpush3.bf16.msra.mxu0 %v3998_v7  ;;  %v3422_v6 = vcombine.low %v2547_v63, %v2561_v4  ;;  %v2516_v7 = vld [vmem:[#allocation2 + $0x28] sm:$0xf]  ;;  %v4018_v18 = vld [vmem:[#allocation2 + $0x18] ss:$8 sps:$4 sm:$0xff]   ;;  %v2517_v21 = vld [vmem:[#allocation2 + $0x2c] sm:$0x1] }
 0x153   : > { %3687 = vmatprep.subr.bf16.mxu0 %v4000_v20  ;;  %3767 = vmatprep.subr.bf16.mxu1 %v3997_v61  ;;  %v2577_v62 = vshrl.u32 %v2516_v7, 16  ;;  %v2580_v14 = vshll.u32 %v2516_v7, 16  ;;  %v2586_v39 = vshll.u32 %v2517_v21, 16  ;;  %v2523_v0 = vld [vmem:[#allocation2 + $0x44] sm:$0x1] }
 0x154   : > { %v4023_v4 = vld [vmem:[%s4725_s4 + $0x200] sm:$0xff]   ;;  %v2628_v9 = vshll.u32 %v2523_v0, 16  ;;  %v2811_v21 = vld [vmem:[#allocation2 + $0x1c] sm:$0x1] }
 0x155   : > { %3768 = vmatpush3.bf16.msra.mxu1 %v3997_v61  ;;  %v4019_v61 = vld [vmem:[#allocation2 + $0x28] ss:$8 sps:$4 sm:$0xff]   ;;  %v2579_v22 = vrot.slane %v2577_v62, 4  ;;  %v2582_v52 = vrot.slane %v2580_v14, 5 }
 0x156   : > { %3688 = vmatpush3.bf16.msra.mxu0 %v4000_v20  ;;  %3769 = vmatprep.subr.bf16.mxu1 %v3999_v2  ;;  %v2566_v20 = vshll.u32 %v2514_v11, 16  ;;  %v2808_v14 = vld [vmem:[#allocation2 + $0x10] sm:$0xe] }
 0x157   : > { %3689 = vmatprep.subr.bf16.mxu0 %v4002_v56  ;;  %v2583_v37 = vor.u32 %v2582_v52, %v2579_v22  ;;  %v3434_v22 = vrot.slane %v2808_v14, 9 }
 0x158   : > { %v2568_v28 = vrot.slane %v2566_v20, 5 }
 0x159   : > { %3682 = vmatmul.mubr.bf16.gmra.mrb[12].mxu0 %v3277_v33  ;;  %3770 = vmatpush3.bf16.msra.mxu1 %v3999_v2  ;;  %v2607_v2 = vrot.slane %v2605_v38, 4  ;;  %v2521_v33 = vld [vmem:[#allocation2 + $0x3c] sm:$0x1]  ;;  %v4024_v38 = vld [vmem:[%s4725_s4 + $0x208] sm:$0xff]  }
 0x15a   : > { %3690 = vmatpush3.bf16.msra.mxu0 %v4002_v56  ;;  %3701 = vmatprep.mubr.bf16.mxu0 %v4003_v36  ;;  %v2593_v56 = vrot.slane %v2591_v15, 4  ;;  %v2636_v36 = vshll.u32 %v2524_v53, 16  ;;  %v2614_v45 = vshll.u32 %v2521_v33, 16  ;;  %v2569_v32 = vor.u32 %v2568_v28, %v2565_v26  ;;  %v2809_v15 = vld [vmem:[#allocation2 + $0x14] sm:$0x1] }
 0x15b   : > { %3691 = vmatprep.subr.bf16.mxu0 %v4007_v34  ;;  %3771 = vmatprep.subr.bf16.mxu1 %v4001_v35  ;;  %v2611_v44 = vor.u32 %v2610_v23, %v2607_v2  ;;  %v2850_v52 = vrot.slane %v2809_v15, 5 }
 0x15c   : > { %v2638_v50 = vrot.slane %v2636_v36, 5  ;;  %v2616_v63 = vrot.slane %v2614_v45, 5  ;;  %v2814_v36 = vld [vmem:[#allocation2 + $0x28] sm:$0xe] }
 0x15d   : > { %3772 = vmatpush3.bf16.msra.mxu1 %v4001_v35  ;;  %v2633_v35 = vshrl.u32 %v2524_v53, 16  ;;  %v2612_v60 = vrot.slane %v2611_v44, 4  ;;  %v4025_v53 = vld [vmem:[%s4725_s4 + $0x210] sm:$0xff]   ;;  %v2813_v44 = vld [vmem:[#allocation2 + $0x24] sm:$0x1]  ;;  %v3437_v45 = vrot.slane %v2814_v36, 9 }
 0x15e   : > { %3692 = vmatpush3.bf16.msra.mxu0 %v4007_v34  ;;  %3781 = vmatprep.subr.bf16.mxu1 %v4005_v42  ;;  %v4020_v34 = vld [vmem:[%s4725_s4 + $0x1f0] sm:$0xff]  }
 0x15f   : > { %3693 = vmatprep.subr.bf16.mxu0 %v4009_v41  ;;  %v2635_v49 = vrot.slane %v2633_v35, 4  ;;  %v2617_v11 = vsel %vm4380_vm9, %v2612_v60, %v2616_v63  ;;  %v4029_v35 = vld [vmem:[%s4725_s4 + $0x230] sm:$0xff]   ;;  %v2823_v60 = vld [vmem:[#allocation2 + $0x4c] sm:$0x1] }
 0x160   : > { %3774 = vmatmul.mubr.bf16.vlgmr.msra.gmra.mrb[0].mxu1 %v4004_v47  ;;  %v4021_v47 = vld [vmem:[%s4725_s4 + $0x1f8] sm:$0xff]  }
 0x161   : > { %3777 = vmatprep.mubr.bf16.mxu1 %v4006_v29  ;;  %3782 = vmatpush3.bf16.msra.mxu1 %v4005_v42  ;;  %v2597_v42 = vor.u32 %v2596_v1, %v2593_v56  ;;  %v2588_v29 = vrot.slane %v2586_v39, 5  ;;  %v2854_v1 = vrot.slane %v2811_v21, 5  ;;  %v2817_v39 = vld [vmem:[#allocation2 + $0x34] sm:$0x1] }
 0x162   : > { %3694 = vmatpush3.bf16.msra.mxu0 %v4009_v41  ;;  %3783 = vmatprep.subr.bf16.mxu1 %v4008_v48  ;;  %v2622_v41 = vshll.u32 %v2522_v24, 16  ;;  %v2851_v24 = vsel %vm4432_vm12, %v3434_v22, %v2850_v52 }
 0x163   : > { %3695 = vmatprep.subr.bf16.mxu0 %v4012_v51 }
 0x165   : > { %3784 = vmatpush3.bf16.msra.mxu1 %v4008_v48  ;;  %v2572_v48 = vshll.u32 %v2515_v25, 16  ;;  %v2815_v25 = vld [vmem:[#allocation2 + $0x2c] sm:$0x1] }
 0x166   : > { %3696 = vmatpush3.bf16.msra.mxu0 %v4012_v51  ;;  %3785 = vmatprep.subr.bf16.mxu1 %v4011_v16  ;;  %v2584_v51 = vrot.slane %v2583_v37, 4  ;;  %v2816_v37 = vld [vmem:[#allocation2 + $0x30] sm:$0xe] }
 0x167   : > { %3697 = vmatprep.subr.bf16.mxu0 %v4014_v58 }
 0x168   : > { %3778 = vmatmul.mubr.bf16.gmra.mrb[4].mxu1 %v4010_v3  ;;  %v2570_v3 = vrot.slane %v2569_v32, 4  ;;  %v2589_v7 = vsel %vm4380_vm9, %v2584_v51, %v2588_v29  ;;  %v3438_v32 = vrot.slane %v2816_v37, 9  ;;  %v2858_v51 = vrot.slane %v2813_v44, 5 }
 0x169   : > { %3786 = vmatpush3.bf16.msra.mxu1 %v4011_v16  ;;  %3797 = vmatprep.mubr.bf16.mxu1 %v3422_v6  ;;  %v2598_v16 = vrot.slane %v2597_v42, 4  ;;  %v2574_v6 = vrot.slane %v2572_v48, 5  ;;  %v4030_v42 = vld [vmem:[%s4725_s4 + $0x238] sm:$0xff]   ;;  %v3439_v48 = vrot.slane %v2818_v40, 9 }
 0x16a   : > { %3698 = vmatpush3.bf16.msra.mxu0 %v4014_v58  ;;  %3787 = vmatprep.subr.bf16.mxu1 %v4013_v5  ;;  %v2624_v58 = vrot.slane %v2622_v41, 5  ;;  %v2819_v41 = vld [vmem:[#allocation2 + $0x3c] sm:$0x1] }
 0x16b   : > { %3699 = vmatprep.subr.bf16.mxu0 %v4016_v54  ;;  %v2575_v62 = vsel %vm4380_vm9, %v2570_v3, %v2574_v6  ;;  %v2878_v6 = vrot.slane %v2823_v60, 5 }
 0x16c   : > { %v2625_v8 = vor.u32 %v2624_v58, %v2621_v10  ;;  %v3423_v12 = vcombine.low %v2575_v62, %v2589_v7 }
 0x16d   : > { %3788 = vmatpush3.bf16.msra.mxu1 %v4013_v5  ;;  %v2639_v5 = vor.u32 %v2638_v50, %v2635_v49  ;;  %v2870_v49 = vrot.slane %v2819_v41, 5  ;;  %v3436_v50 = vrot.slane %v2812_v43, 9 }
 0x16e   : > { %3700 = vmatpush3.bf16.msra.mxu0 %v4016_v54  ;;  %3789 = vmatprep.subr.bf16.mxu1 %v4015_v31  ;;  %v2642_v54 = vshll.u32 %v2525_v57, 16  ;;  %v2626_v20 = vrot.slane %v2625_v8, 4  ;;  %v2822_v57 = vld [vmem:[#allocation2 + $0x48] sm:$0xe] }
 0x16f   : > { %v2640_v17 = vrot.slane %v2639_v5, 4  ;;  %v2871_v58 = vsel %vm4432_vm12, %v3439_v48, %v2870_v49  ;;  %v2859_v63 = vsel %vm4432_vm12, %v3436_v50, %v2858_v51  ;;  %v3441_v3 = vrot.slane %v2822_v57, 9 }
 0x171   : > { %3702 = vmatmul.mubr.bf16.vlgmr.msra.gmra.mrb[8].mxu0 %v4018_v18  ;;  %3790 = vmatpush3.bf16.msra.mxu1 %v4015_v31  ;;  %v2603_v31 = vsel %vm4380_vm9, %v2598_v16, %v2602_v59  ;;  %v2644_v18 = vrot.slane %v2642_v54, 5  ;;  %v2820_v16 = vld [vmem:[#allocation2 + $0x40] sm:$0xe]  ;;  %v2821_v59 = vld [vmem:[#allocation2 + $0x44] sm:$0x1]  ;;  %v2879_v8 = vsel %vm4432_vm12, %v3441_v3, %v2878_v6 }
 0x172   : > { %3705 = vmatprep.mubr.bf16.mxu0 %v4019_v61  ;;  %3791 = vmatprep.subr.bf16.mxu1 %v4017_v13  ;;  %v3424_v19 = vcombine.low %v2603_v31, %v2617_v11  ;;  %v2810_v61 = vld [vmem:[#allocation2 + $0x18] sm:$0xe]  ;;  %v3440_v5 = vrot.slane %v2820_v16, 9  ;;  %v2874_v54 = vrot.slane %v2821_v59, 5 }
 0x173   : > { %v3435_v56 = vrot.slane %v2810_v61, 9  ;;  %v2645_v23 = vsel %vm4380_vm9, %v2640_v17, %v2644_v18  ;;  %v3209_v18 = vld [vmem:[%s4726_s5] ss:$0 sm:$0xff] }
 0x174   : > { %v2875_v7 = vsel %vm4432_vm12, %v3440_v5, %v2874_v54 }
 0x175   : > { %3792 = vmatpush3.bf16.msra.mxu1 %v4017_v13  ;;  %v2630_v13 = vrot.slane %v2628_v9, 5  ;;  %v2855_v28 = vsel %vm4432_vm12, %v3435_v56, %v2854_v1  ;;  %v3461_v9 = vcombine.low %v2875_v7, %v2879_v8 }
 0x176   : > { %3793 = vmatprep.subr.bf16.mxu1 %v4020_v34  ;;  %v3458_v33 = vcombine.low %v2851_v24, %v2855_v28 }
 0x177   : > { %v2631_v2 = vsel %vm4380_vm9, %v2626_v20, %v2630_v13 }
 0x178   : > { %v3425_v26 = vcombine.low %v2631_v2, %v2645_v23 }
 0x179   : > { %3706 = vmatmul.mubr.bf16.gmra.mrb[12].mxu0 %v4022_v46  ;;  %3794 = vmatpush3.bf16.msra.mxu1 %v4020_v34  ;;  %v4028_v34 = vld [vmem:[%s4725_s4 + $0x228] sm:$0xff]   ;;  %v2862_v46 = vrot.slane %v2815_v25, 5 }
 0x17a   : > { %3795 = vmatprep.subr.bf16.mxu1 %v4021_v47 }
 0x17b   : > { %v2863_v29 = vsel %vm4432_vm12, %v3437_v45, %v2862_v46 }
 0x17c   : > { %v3459_v0 = vcombine.low %v2859_v63, %v2863_v29 }
 0x17d   : > { %3796 = vmatpush3.bf16.msra.mxu1 %v4021_v47  ;;  %v2866_v47 = vrot.slane %v2817_v39, 5 }
 0x17e   : > { %3805 = vmatprep.subr.bf16.mxu1 %v4023_v4 }
 0x17f   : > { %v2867_v10 = vsel %vm4432_vm12, %v3438_v32, %v2866_v47 }
 0x180   : > { %3798 = vmatmul.mubr.bf16.vlgmr.msra.gmra.mrb[0].mxu1 %v3423_v12 }
 0x181   : > { %3801 = vmatprep.mubr.bf16.mxu1 %v3424_v19  ;;  %3806 = vmatpush3.bf16.msra.mxu1 %v4023_v4  ;;  %v3460_v4 = vcombine.low %v2867_v10, %v2871_v58 }
 0x182   : > { %3807 = vmatprep.subr.bf16.mxu1 %v4024_v38 }
 0x185   : > { %3808 = vmatpush3.bf16.msra.mxu1 %v4024_v38 }
 0x186   : > { %3809 = vmatprep.subr.bf16.mxu1 %v4025_v53 }
 0x188   : > { %3802 = vmatmul.mubr.bf16.gmra.mrb[4].mxu1 %v3425_v26 }
 0x189   : > { %3810 = vmatpush3.bf16.msra.mxu1 %v4025_v53  ;;  %3821 = vmatprep.mubr.bf16.mxu1 %v3458_v33 }
 0x18a   : > { %3811 = vmatprep.subr.bf16.mxu1 %v4026_v30 }
 0x18d   : > { %3812 = vmatpush3.bf16.msra.mxu1 %v4026_v30 }
 0x18e   : > { %3813 = vmatprep.subr.bf16.mxu1 %v4027_v55 }
 0x191   : > { %3814 = vmatpush3.bf16.msra.mxu1 %v4027_v55 }
 0x192   : > { %3815 = vmatprep.subr.bf16.mxu1 %v4028_v34 }
 0x195   : > { %3816 = vmatpush3.bf16.msra.mxu1 %v4028_v34 }
 0x196   : > { %3817 = vmatprep.subr.bf16.mxu1 %v4029_v35 }
 0x199   : > { %3818 = vmatpush3.bf16.msra.mxu1 %v4029_v35 }
 0x19a   : > { %3819 = vmatprep.subr.bf16.mxu1 %v4030_v42 }
 0x19d   : > { %3820 = vmatpush3.bf16.msra.mxu1 %v4030_v42 }
 0x1a0   : > { %3822 = vmatmul.mubr.bf16.vlgmr.msra.gmra.mrb[0].mxu1 %v3459_v0 }
 0x1a1   : > { %3825 = vmatprep.mubr.bf16.mxu1 %v3460_v4 }
 0x1a8   : > { %3826 = vmatmul.mubr.bf16.gmra.mrb[4].mxu1 %v3461_v9 }
 0x244   : > { %v3703_v31 = vpop.f32.mrb[8].mxu0 }
 0x245   : > { %v1744_v11 = vpop.f32.mrb[9].mxu0  ;;  %v3829_v19 = vadd.f32 %v3703_v31, %v3209_v18 }
 0x246   : > { %v3704_v62 = vpop.f32.mrb[10].mxu0  ;;  %v3831_v27 = vadd.f32 %v3209_v18, %v1744_v11 }
 0x247   : > { %v1747_v14 = vpop.f32.mrb[11].mxu0  ;;  %v3833_v13 = vadd.f32 %v3704_v62, %v3209_v18 }
 0x248   : > { %v3835_v22 = vadd.f32 %v3209_v18, %v1747_v14 }
 0x24c   : > { %v3707_v15 = vpop.f32.mrb[12].mxu0 }
 0x24d   : > { %v1760_v12 = vpop.f32.mrb[13].mxu0  ;;  %v3837_v23 = vadd.f32 %v3707_v15, %v3209_v18 }
 0x24e   : > { %v3708_v38 = vpop.f32.mrb[14].mxu0  ;;  %v3839_v24 = vadd.f32 %v3209_v18, %v1760_v12 }
 0x24f   : > { %v1763_v17 = vpop.f32.mrb[15].mxu0  ;;  %v3841_v28 = vadd.f32 %v3708_v38, %v3209_v18 }
 0x250   : > { %v3843_v55 = vadd.f32 %v3209_v18, %v1763_v17 }
 0x273   : > { %v3823_v20 = vpop.f32.mrb[0].mxu1 }
 0x274   : > { %v3830_v61 = vadd.f32 %v3829_v19, %v3823_v20  ;;  %v2995_v21 = vpop.f32.mrb[1].mxu1 }
 0x275   : > { %v3832_v52 = vadd.f32 %v3831_v27, %v2995_v21  ;;  %v3824_v53 = vpop.f32.mrb[2].mxu1 }
 0x276   : > { %3052 = vst [vmem:[%s294_s17 + $0x10] sm:$0xff] %v3830_v61  ;;  %v3834_v56 = vadd.f32 %v3833_v13, %v3824_v53  ;;  %v2998_v1 = vpop.f32.mrb[3].mxu1 }
 0x277   : > { %3050 = vst [vmem:[%s294_s17] sm:$0xff] %v3832_v52  ;;  %v3836_v2 = vadd.f32 %v3835_v22, %v2998_v1 }
 0x278   : > { %3053 = vst [vmem:[%s294_s17 + $0x18] sm:$0xff] %v3834_v56 }
 0x279   : > { %3051 = vst [vmem:[%s294_s17 + $0x8] sm:$0xff] %v3836_v2 }
 0x27b   : > { %v3827_v26 = vpop.f32.mrb[4].mxu1 }
 0x27c   : > { %v3838_v30 = vadd.f32 %v3837_v23, %v3827_v26  ;;  %v3011_v33 = vpop.f32.mrb[5].mxu1 }
 0x27d   : > { %v3840_v34 = vadd.f32 %v3839_v24, %v3011_v33  ;;  %v3828_v35 = vpop.f32.mrb[6].mxu1 }
 0x27e   : > { %3056 = vst [vmem:[%s294_s17 + $0x30] sm:$0xff] %v3838_v30  ;;  %v3842_v36 = vadd.f32 %v3841_v28, %v3828_v35  ;;  %v3014_v25 = vpop.f32.mrb[7].mxu1 }
 0x27f   : > { %3054 = vst [vmem:[%s294_s17 + $0x20] sm:$0xff] %v3840_v34  ;;  %v3844_v37 = vadd.f32 %v3843_v55, %v3014_v25 }
 0x280   : > { %3057 = vst [vmem:[%s294_s17 + $0x38] sm:$0xff] %v3842_v36 }
 0x281   : > { %3055 = vst [vmem:[%s294_s17 + $0x28] sm:$0xff] %v3844_v37 }
 0x282   : > { %4044 = shalt.err (!%p4041_p3)
}
 0x283   : > { %s4045_s13 = scalar_lea.hbm %s4674_s22, 1024  ;;  %s4049_s16 = scalar_lea.hbm %s4728_s7, 2048 }
 0x284   : > { %p4046_p4 = scmp.ne.s32.totalorder %s4674_s22, %s4045_s13  ;;  %p4050_p9 = scmp.lt.u32.totalorder %s4674_s22, %s4728_s7 }
 0x285   : > { %p4051_p10 = scmp.lt.u32.totalorder %s4049_s16, %s4045_s13  ;;  %p4053_p12 = scmp.lt.u32.totalorder %s4045_s13, %s4674_s22 }
 0x286   : > { %p4047_p7 = pnand %p4046_p4, %p4179_p5 }
 0x287   : > { %p4052_p11 = por %p4051_p10, %p4050_p9 }
 0x288   : > { %p4048_p8 = pneg %p4047_p7 }
 0x289   : > { %p4054_p13 = por %p4053_p12, %p4052_p11 }
 0x28b   : > { %p4055_p0 = pnand %p4054_p13, %p4048_p8 }
 0x28d   : > { %4058 = shalt.err (!%p4055_p0)
}
 0x28e   : > { %s4099_s20 = smov 128   ;;  %s4100_s21 = smov 8  }
 0x28f   : > { %3901 = dma.vmem_to_hbm [thread:$0]  (%p4179_p5), %s4676_s19, 1024, %s4674_s22, %s4680_s28, %s4099_s20, %s4099_s20, %s4100_s21  }
 0x290 PF: > { %p3907_p1 = scmp.ge.s32.totalorder %s4093_s27, 2  ;;  %s3103_s23 = sand.u32 1, %s4081_s24  }
 0x291   : > { %s3104_s29 = scalar_lea.sflag [#allocation5], %s3103_s23 }
 0x292   : > { %p3904_p2 = pnand %p3907_p1, %p4183_p6 }
 0x294   : > { %4076 = dma.done.wait (!%p3904_p2), %s3104_s29, 1024  }
 0x295   : > { %4078 = vsyncadd (!%p3904_p2), %s3104_s29, 4294966272  ;;  %p18_p3 = scmp.ge.s32.totalorder %s4166_s30, 4   ;;  %s4739_s24 = smov %s4085_s25 }
 0x296   : > { %s4740_s25 = smov %s4089_s26  ;;  %s4741_s26 = smov %s4177_s10 }
 0x297   : > { %s4742_s27 = smov %s4166_s30  ;;  %20 = sbr.rel (!%p18_p3) target bundleno = 3 (0x3), region = 104 }
 0x29e   :  { %3109 = vsyncpa [#allocation5], 1 }
 0x29f   :  { %3111 = vsyncpa [#allocation5 + $0x1], 1 }

// kernel: decoder_forward.3
= control target key start
LH: loop header
LB: loop body
LE: loop exit
PB: predicated region body
PF: predicated region fallthrough
CT: control target
= control target key end

     0   :  { %12 = vsyncpa [#allocation5], 0  ;;  %s3636_s0 = inlined_call_operand.vmem [shape: f32[2,4,4,64], index: 0, kind: input, shape index: {}]   ;;  %s3637_s1 = inlined_call_operand.vmem [shape: bf16[64,128], index: 1, kind: input, shape index: {}]   ;;  %s3638_s2 = inlined_call_operand.vmem [shape: f32[1,128], index: 2, kind: input, shape index: {}]   ;;  %s3639_s3 = inlined_call_operand.vmem [shape: bf16[3,3,128,128], index: 3, kind: input, shape index: {}]   ;;  %s3640_s4 = inlined_call_operand.vmem [shape: f32[1,128], index: 4, kind: input, shape index: {}]   ;;  %s3641_s5 = inlined_call_operand.vmem [shape: f32[2,4,4,128], index: 5, kind: output, shape index: {0}]   ;;  %s3642_s6 = inlined_call_operand.hbm [shape: f32[2,4,4,128], index: 6, kind: output, shape index: {1}]  }
   0x1   :  { %14 = vsyncpa [#allocation5 + $0x1], 0  ;;  %s3054_s21 = smov 0   ;;  %s3056_s22 = smov 0  }
   0x2   :  { %s3058_s23 = smov 0   ;;  %s3060_s24 = smov 0  }
   0x3 LB: > { %s3075_s25 = sadd.s32 4294967295, %s3010_s24   ;;  %s2235_s26 = sadd.s32 4294967294, %s3010_s24   ;;  %s3010_s24 = sphi %s3060_s24, %s3660_s24   ;;  %s3006_s23 = sphi %s3058_s23, %s3659_s23   ;;  %s3002_s22 = sphi %s3056_s22, %s3658_s22   ;;  %s2998_s21 = sphi %s3054_s21, %s3657_s21  }
   0x4   : > { %s3079_s27 = sadd.s32 1, %s3010_s24   ;;  %s163_s28 = sadd.s32 1, %s3006_s23 }
   0x5   : > { %s160_s29 = ssub.s32 %s3010_s24, %s3079_s27  ;;  %p173_p0 = scmp.ne.s32.totalorder %s3006_s23, %s3002_s22 }
   0x6   : > { %p161_p1 = scmp.eq.s32.totalorder %s160_s29, 0  ;;  %p174_p2 = scmp.eq.s32.totalorder %s3075_s25, 1 }
   0x7   : > { %p179_p3 = scmp.ne.s32.totalorder %s3002_s22, %s2998_s21  ;;  %p180_p4 = scmp.eq.s32.totalorder %s2235_s26, 1 }
   0x8   : > { %s3090_s30 = scalar_select %p161_p1, %s3006_s23, %s163_s28  }
   0x9   : > { %p3092_p5 = por %p174_p2, %p173_p0  ;;  %p3096_p6 = por %p180_p4, %p179_p3 }
   0xa   : > { %p2238_p7 = scmp.ge.s32.totalorder %s3010_s24, 1  ;;  %p218_p8 = scmp.lt.s32.totalorder %s3010_s24, 3 }
   0xc   : > { %p219_p9 = pnand %p2238_p7, %p218_p8 }
   0xd   : > { %v2858_v0 = vld [vmem:[%s3637_s1] sm:$0xff] (!%p219_p9)   ;;  %v3012_v1 = vmov (!%p219_p9), 0.0   ;;  %v2859_v2 = vld [vmem:[%s3637_s1 + $0x8] sm:$0xff] (!%p219_p9)   ;;  %vm3013_vm0 = vmmov (!%p219_p9), 0   ;;  %p253_p10 = scmp.lt.s32.totalorder (!%p219_p9), %s3075_s25, 1  ;;  %v2860_v3 = vld [vmem:[%s3637_s1 + $0x10] sm:$0xff] (!%p219_p9)   ;;  %v481_v54 = vlaneseq (!%p219_p9) }
   0xe   : > { %222 = sbr.rel (%p219_p9) target bundleno = 644 (0x284), region = 40  ;;  %2589 = vmatprep.subr.bf16.mxu0 (!%p219_p9), %v3012_v1  ;;  %2681 = vmatprep.subr.bf16.mxu1 (!%p219_p9), %v3012_v1  ;;  %v2861_v4 = vld [vmem:[%s3637_s1 + $0x18] sm:$0xff] (!%p219_p9)   ;;  %vm316_vm1 = vcmask (!%p219_p9), 523264   ;;  %v2864_v7 = vld [vmem:[%s3639_s3] sm:$0xff] (!%p219_p9)   ;;  %v2865_v9 = vld [vmem:[%s3639_s3 + $0x8] sm:$0xff] (!%p219_p9)   ;;  %v3014_v11 = vmov (!%p219_p9), 0  }
   0xf   : > { %2590 = vmatpush3.bf16.msra.mxu0 (!%p219_p9), %v2858_v0  ;;  %2597 = vmatprep.mubr.msk.bf16.mxu0 (!%p219_p9), %vm3013_vm0, %v3012_v1  ;;  %v2866_v10 = vld [vmem:[%s3639_s3 + $0x10] sm:$0xff] (!%p219_p9)   ;;  %371 = vst [vmem:[#allocation2] sm:$0x7] (!%p219_p9), %v3014_v11  ;;  %372 = vst [vmem:[#allocation2 + $0x4] sm:$0x7] (!%p219_p9), %v3014_v11  ;;  %v2867_v12 = vld [vmem:[%s3639_s3 + $0x100] sm:$0xff] (!%p219_p9)  }
  0x10   : > { %2591 = vmatprep.subr.bf16.mxu0 (!%p219_p9), %v3012_v1  ;;  %2697 = vmatprep.mubr.msk.bf16.mxu1 (!%p219_p9), %vm3013_vm0, %v3012_v1  ;;  %373 = vst [vmem:[#allocation2 + $0x8] sm:$0x7] (!%p219_p9), %v3014_v11  ;;  %376 = vst [vmem:[#allocation2 + $0x14] sm:$0x7] (!%p219_p9), %v3014_v11  ;;  %v2868_v13 = vld [vmem:[%s3639_s3 + $0x18] sm:$0xff] (!%p219_p9)   ;;  %v2869_v14 = vld [vmem:[%s3639_s3 + $0x108] sm:$0xff] (!%p219_p9)  }
  0x11   : > { %374 = vst [vmem:[#allocation2 + $0xc] sm:$0x7] (!%p219_p9), %v3014_v11  ;;  %375 = vst [vmem:[#allocation2 + $0x10] sm:$0x7] (!%p219_p9), %v3014_v11  ;;  %2682 = vmatpush3.bf16.msra.mxu1 (!%p219_p9), %v2867_v12  ;;  %v2870_v15 = vld [vmem:[%s3639_s3 + $0x20] sm:$0xff] (!%p219_p9)   ;;  %v2871_v16 = vld [vmem:[%s3639_s3 + $0x110] sm:$0xff] (!%p219_p9)  }
  0x12   : > { %2683 = vmatprep.subr.bf16.mxu1 (!%p219_p9), %v3012_v1  ;;  %v2872_v17 = vld [vmem:[%s3639_s3 + $0x28] sm:$0xff] (!%p219_p9)   ;;  %v2873_v18 = vld [vmem:[%s3639_s3 + $0x118] sm:$0xff] (!%p219_p9)   ;;  %v2874_v19 = vld [vmem:[%s3639_s3 + $0x30] sm:$0xff] (!%p219_p9)   ;;  %vm426_vm2 = vcmask (!%p219_p9), 1042432   ;;  %vm427_vm3 = vsmask.f32 (!%p219_p9), 2306 }
  0x13   : > { %2592 = vmatpush3.bf16.msra.mxu0 (!%p219_p9), %v2859_v2  ;;  %v2875_v20 = vld [vmem:[%s3639_s3 + $0x120] sm:$0xff] (!%p219_p9)   ;;  %v2876_v21 = vld [vmem:[%s3639_s3 + $0x38] sm:$0xff] (!%p219_p9)   ;;  %v2877_v22 = vld [vmem:[%s3639_s3 + $0x128] sm:$0xff] (!%p219_p9)   ;;  %v3015_v52 = vmov (!%p219_p9), 1983009808   ;;  %vm862_vm9 = vcmask (!%p219_p9), 1040384  }
  0x14   : > { %2593 = vmatprep.subr.bf16.mxu0 (!%p219_p9), %v3012_v1  ;;  %v2881_v23 = vld [vmem:[%s3639_s3 + $0x130] sm:$0xff] (!%p219_p9)   ;;  %v2883_v24 = vld [vmem:[%s3639_s3 + $0x138] sm:$0xff] (!%p219_p9)   ;;  %v2244_v25 = vld [vmem:[%s3638_s2] ss:$0 sm:$0xff] (!%p219_p9)  ;;  %v479_v53 = vunpack.c.l.s4 (!%p219_p9), %v3015_v52  ;;  %vm629_vm5 = vsmask.f32 (!%p219_p9), 1280 }
  0x15   : > { %s3117_s13 = scalar_select %p253_p10, %s3075_s25, 1  ;;  %2684 = vmatpush3.bf16.msra.mxu1 %v2869_v14  ;;  %vm3208_vm4 = vmand %vm426_vm2, %vm427_vm3  ;;  %vm630_vm6 = vsmask.f32 3336  ;;  %vm632_vm7 = vsmask.f32 5392  ;;  %vm863_vm10 = vcmask 1042434  }
  0x16   : > { %2685 = vmatprep.subr.bf16.mxu1 %v3012_v1  ;;  %v429_v43 = vld [vmem:[#allocation2 + $0x4] sm:$0x7]  ;;  %vm634_vm8 = vsmask.f32 7448  ;;  %vm3233_vm11 = vmor %vm629_vm5, %vm630_vm6  ;;  %vm865_vm12 = vcmask 1044484   ;;  %vm867_vm14 = vcmask 1046534  }
  0x17   : > { %s2496_s16 = sshll.u32 %s3117_s13, 4  ;;  %2594 = vmatpush3.bf16.msra.mxu0 %v2860_v3  ;;  %v432_v49 = vld [vmem:[#allocation2 + $0x8] sm:$0x7]  ;;  %vm3244_vm13 = vmor %vm3233_vm11, %vm632_vm7  ;;  %s250_s10 = sand.u32 1, %s3002_s22  }
  0x18   : > { %s257_s19 = scalar_lea.vmem %s3636_s0, %s2496_s16  ;;  %2595 = vmatprep.subr.bf16.mxu0 %v3012_v1  ;;  %v435_v59 = vld [vmem:[#allocation2 + $0xc] sm:$0x7]  ;;  %v438_v61 = vld [vmem:[#allocation2 + $0x10] sm:$0x7]  ;;  %vm3259_vm15 = vmor %vm3244_vm13, %vm634_vm8  ;;  %s2239_s14 = sshll.u32 %s250_s10, 4 }
  0x19   : > { %v2862_v5 = vld [vmem:[%s257_s19] sm:$0xff]   ;;  %v2863_v6 = vld [vmem:[%s257_s19 + $0x8] sm:$0xff]   ;;  %2686 = vmatpush3.bf16.msra.mxu1 %v2871_v16  ;;  %s262_s19 = scalar_lea.vmem %s3641_s5, %s2496_s16  ;;  %v2434_v0 = vld.sshfl [vmem:[#allocation2 + $0x14] sm:$0x13 pattern:$0x76325410] }
  0x1a   : > { %v276_v8 = vpack.c.bf16 %v2863_v6, %v2862_v5  ;;  %2687 = vmatprep.subr.bf16.mxu1 %v3012_v1  ;;  %v3218_v3 = vld.sshfl [vmem:[#allocation2] sm:$0x13 pattern:$0x76325410]  ;;  %v480_v5 = vunpack.c.0.s8 %v479_v53  ;;  %v482_v6 = vshrl.u32 %v481_v54, 7  ;;  %v1790_v14 = vshll.u32 %v2434_v0, 16 }
  0x1b   : > { %2596 = vmatpush3.bf16.msra.mxu0 %v2861_v4  ;;  %v1743_v16 = vcombine.high %v2434_v0, %v2434_v0  ;;  %s252_s15 = scalar_lea.vmem [#allocation4], %s2239_s14  ;;  %s2502_s18 = sshll.u32 %s3075_s25, 8 }
  0x1c   : > { %2601 = vmatprep.subr.bf16.mxu0 %v3012_v1  ;;  %v3224_v11 = vsub.s32 %v480_v5, %v482_v6  ;;  %v2884_v6 = vld [vmem:[%s3639_s3 + $0x50] sm:$0xff]   ;;  %s2148_s17 = sshll.u32 %s252_s15, 4  ;;  %s3593_s16 = scalar_lea.hbm %s3642_s6, %s2502_s18  ;;  %s3588_s17 = int_to_ptr.vmem [resolvable:$true] %s2148_s17 }
  0x1d   : > { %2688 = vmatpush3.bf16.msra.mxu1 %v2873_v18  ;;  %s3595_s20 = scalar_lea.sflag [#allocation5], %s250_s10  ;;  %s2948_s25 = scalar_lea.vmem %s3588_s17, 256 }
  0x1e   : > { %2598 = vmatmul.mubr.msk.bf16.vlgmr.msra.gmra.mrb[0].mxu0 %vm316_vm1, %v276_v8  ;;  %2689 = vmatprep.subr.bf16.mxu1 %v3012_v1  ;;  %v637_v8 = vshrl.u32 %v3218_v3, 16  ;;  %vm864_vm1 = vmor %vm862_vm9, %vm863_vm10  ;;  %p2949_p11 = scmp.ne.s32.totalorder %s3588_s17, %s2948_s25  ;;  %s3016_s26 = smov [#allocation4]  }
  0x1f   : > { %2602 = vmatpush3.bf16.msra.mxu0 %v2864_v7  ;;  %2617 = vmatprep.mubr.msk.bf16.mxu0 %vm3013_vm0, %v3012_v1  ;;  %v1787_v7 = vshrl.u32 %v2434_v0, 16  ;;  %vm3284_vm2 = vmor %vm864_vm1, %vm865_vm12  ;;  %s2952_s28 = sshll.u32 %s3016_s26, 4  ;;  %s2953_s28 = int_to_ptr.vmem [resolvable:$false] %s2952_s28 }
  0x20   : > { %2603 = vmatprep.subr.bf16.mxu0 %v3012_v1  ;;  %vm3303_vm3 = vmor %vm3284_vm2, %vm867_vm14  ;;  %p2950_p12 = pnand %p2949_p11, %p3092_p5  ;;  %s2954_s29 = scalar_lea.vmem %s2953_s28, 512 }
  0x21   : > { %2690 = vmatpush3.bf16.msra.mxu1 %v2875_v20  ;;  %v2880_v20 = vld [vmem:[%s3639_s3 + $0x40] sm:$0xff]   ;;  %p2955_p0 = scmp.lt.s32.totalorder %s3588_s17, %s2953_s28  ;;  %p2956_p1 = scmp.lt.s32.totalorder %s2954_s29, %s2948_s25 }
  0x22   : > { %2691 = vmatprep.subr.bf16.mxu1 %v3012_v1  ;;  %p2951_p13 = pneg %p2950_p12 }
  0x23   : > { %2604 = vmatpush3.bf16.msra.mxu0 %v2865_v9  ;;  %v640_v9 = vshll.u32 %v3218_v3, 16  ;;  %p2957_p2 = por %p2956_p1, %p2955_p0 }
  0x24   : > { %2605 = vmatprep.subr.bf16.mxu0 %v3012_v1 }
  0x25   : > { %2692 = vmatpush3.bf16.msra.mxu1 %v2877_v22  ;;  %p2958_p3 = pnand %p2957_p2, %p2951_p13 }
  0x26   : > { %2693 = vmatprep.subr.bf16.mxu1 %v3012_v1 }
  0x27   : > { %2606 = vmatpush3.bf16.msra.mxu0 %v2866_v10 }
  0x28   : > { %2607 = vmatprep.subr.bf16.mxu0 %v3012_v1 }
  0x29   : > { %2694 = vmatpush3.bf16.msra.mxu1 %v2881_v23 }
  0x2a   : > { %2695 = vmatprep.subr.bf16.mxu1 %v3012_v1 }
  0x2b   : > { %2608 = vmatpush3.bf16.msra.mxu0 %v2868_v13  ;;  %v3226_v13 = vrot.slane %v1787_v7, 6 }
  0x2c   : > { %2609 = vmatprep.subr.bf16.mxu0 %v3012_v1 }
  0x2d   : > { %2696 = vmatpush3.bf16.msra.mxu1 %v2883_v24 }
  0x2e   : > { %2701 = vmatprep.subr.bf16.mxu1 %v3012_v1 }
  0x2f   : > { %2610 = vmatpush3.bf16.msra.mxu0 %v2870_v15 }
  0x30   : > { %2611 = vmatprep.subr.bf16.mxu0 %v3012_v1 }
  0x33   : > { %2612 = vmatpush3.bf16.msra.mxu0 %v2872_v17 }
  0x34   : > { %2613 = vmatprep.subr.bf16.mxu0 %v3012_v1 }
  0x37   : > { %2614 = vmatpush3.bf16.msra.mxu0 %v2874_v19 }
  0x38   : > { %2615 = vmatprep.subr.bf16.mxu0 %v3012_v1 }
  0x3b   : > { %2616 = vmatpush3.bf16.msra.mxu0 %v2876_v21 }
  0x3c   : > { %2621 = vmatprep.subr.bf16.mxu0 %v3012_v1 }
  0xf1   : > { %v354_v26 = vpop.f32.mrb[0].mxu0 }
  0xf2   : > { %v355_v27 = vadd.f32 %v2244_v25, %v354_v26  ;;  %v2599_v28 = vpop.f32.mrb[1].mxu0 }
  0xf3   : > { %v357_v29 = vpop.f32.mrb[2].mxu0 }
  0xf4   : > { %v363_v30 = vcombine.high %v355_v27, %v355_v27  ;;  %367 = vst [vmem:[%s262_s19] sm:$0xf] %v355_v27  ;;  %v2498_v31 = vpack.c.bf16 %v355_v27, %v355_v27  ;;  %v358_v32 = vadd.f32 %v2244_v25, %v357_v29  ;;  %v2600_v33 = vpop.f32.mrb[3].mxu0  ;;  %v604_v29 = vcombine.high %v3218_v3, %v3218_v3 }
  0xf5   : > { %v3237_v33 = vshll.u32 %v1743_v16, 16 }
  0xf6   : > { %368 = vst [vmem:[%s262_s19 + $0x4] sm:$0xf] %v363_v30  ;;  %v2499_v34 = vpack.c.bf16 %v363_v30, %v363_v30  ;;  %v394_v35 = vshrl.u32 %v2498_v31, 16  ;;  %v364_v36 = vcombine.high %v358_v32, %v358_v32  ;;  %369 = vst [vmem:[%s262_s19 + $0x8] sm:$0xf] %v358_v32  ;;  %v2500_v37 = vpack.c.bf16 %v358_v32, %v358_v32 }
  0xf7   : > { %v397_v39 = vshll.u32 %v2498_v31, 16  ;;  %v1792_v32 = vrot.slane %v1790_v14, 7 }
  0xf8   : > { %v396_v38 = vrot.slane %v394_v35, 7  ;;  %v401_v40 = vshrl.u32 %v2499_v34, 16  ;;  %370 = vst [vmem:[%s262_s19 + $0xc] sm:$0xf] %v364_v36  ;;  %v2501_v41 = vpack.c.bf16 %v364_v36, %v364_v36  ;;  %v408_v44 = vshrl.u32 %v2500_v37, 16 }
  0xf9   : > { %v404_v47 = vshll.u32 %v2499_v34, 16  ;;  %v411_v51 = vshll.u32 %v2500_v37, 16 }
  0xfa   : > { %v399_v45 = vor.u32 %v397_v39, %v396_v38  ;;  %v403_v46 = vrot.slane %v401_v40, 7  ;;  %v415_v48 = vshrl.u32 %v2501_v41, 16  ;;  %v410_v50 = vrot.slane %v408_v44, 7 }
  0xfb   : > { %v418_v58 = vshll.u32 %v2501_v41, 16  ;;  %v3239_v38 = vld.sshfl [vmem:[#allocation2 + $0x14] sm:$0x12 pattern:$0x76325410] }
  0xfc   : > { %v406_v55 = vor.u32 %v404_v47, %v403_v46  ;;  %v430_v56 = vsel %vm3208_vm4, %v399_v45, %v429_v43  ;;  %v417_v57 = vrot.slane %v415_v48, 7  ;;  %v413_v60 = vor.u32 %v411_v51, %v410_v50  ;;  %v2882_v48 = vld [vmem:[%s3639_s3 + $0x48] sm:$0xff]   ;;  %v2888_v43 = vld [vmem:[%s3639_s3 + $0x60] sm:$0xff]  }
  0xfd   : > { %431 = vst [vmem:[#allocation2 + $0x4] sm:$0x7] %v430_v56  ;;  %v1969_v56 = vcombine.high %v3239_v38, %v3239_v38 }
  0xfe   : > { %v433_v62 = vsel %vm3208_vm4, %v406_v55, %v432_v49  ;;  %v420_v63 = vor.u32 %v418_v58, %v417_v57  ;;  %v436_v2 = vsel %vm3208_vm4, %v413_v60, %v435_v59 }
  0xff   : > { %434 = vst [vmem:[#allocation2 + $0x8] sm:$0x7] %v433_v62  ;;  %437 = vst [vmem:[#allocation2 + $0xc] sm:$0x7] %v436_v2  ;;  %v1793_v62 = vor.u32 %v1792_v32, %v3226_v13  ;;  %v2466_v13 = vrot.slane %v3239_v38, 9  ;;  %v2909_v38 = vld [vmem:[%s3639_s3 + $0x1a0] sm:$0xff]  }
 0x100   : > { %v439_v4 = vsel %vm3208_vm4, %v420_v63, %v438_v61 }
 0x101   : > { %440 = vst [vmem:[#allocation2 + $0x10] sm:$0x7] %v439_v4 }
 0x104   : > { %v2942_v10 = vld.sshfl [vmem:[#allocation2] sm:$0xf pattern:$0x76325410] }
 0x105   : > { %v2347_v12 = vld.sshfl [vmem:[#allocation2 + $0x4] sm:$0x13 pattern:$0x76325410] }
 0x106   : > { %v2348_v15 = vld.sshfl [vmem:[#allocation2 + $0x8] sm:$0x13 pattern:$0x76325410]  ;;  %v1194_v18 = vshrl.u32 %v2347_v12, 16  ;;  %v1197_v19 = vshll.u32 %v2347_v12, 16  ;;  %v1168_v22 = vcombine.high %v2347_v12, %v2347_v12 }
 0x107   : > { %v2943_v17 = vld.sshfl [vmem:[#allocation2 + $0x8] sm:$0xf pattern:$0x76325410]  ;;  %v1176_v23 = vcombine.high %v2348_v15, %v2348_v15  ;;  %v1208_v24 = vshrl.u32 %v2348_v15, 16  ;;  %v1211_v31 = vshll.u32 %v2348_v15, 16 }
 0x108   : > { %v2349_v21 = vld.sshfl [vmem:[#allocation2 + $0xc] sm:$0x13 pattern:$0x76325410]  ;;  %v1196_v27 = vrot.slane %v1194_v18, 6  ;;  %v1199_v28 = vrot.slane %v1197_v19, 7  ;;  %v492_v34 = vcombine.low %v2942_v10, %v2943_v17 }
 0x109   : > { %v2350_v25 = vld.sshfl [vmem:[#allocation2 + $0x10] sm:$0x13 pattern:$0x76325410]  ;;  %v1184_v26 = vcombine.high %v2349_v21, %v2349_v21  ;;  %v1210_v30 = vrot.slane %v1208_v24, 6  ;;  %v1222_v37 = vshrl.u32 %v2349_v21, 16 }
 0x10a   : > { %v1192_v35 = vcombine.high %v2350_v25, %v2350_v25  ;;  %v1200_v36 = vor.u32 %v1199_v28, %v1196_v27  ;;  %v1213_v39 = vrot.slane %v1211_v31, 7  ;;  %v1217_v40 = vshll.u32 %v1176_v23, 16  ;;  %2618 = vmatmul.mubr.bf16.vlgmr.msra.gmra.mrb[4].mxu0 %v492_v34  ;;  %v2376_v55 = vld.sshfl [vmem:[#allocation2 + $0x8] sm:$0x12 pattern:$0x76325410] }
 0x10b   : > { %v1225_v41 = vshll.u32 %v2349_v21, 16  ;;  %v1236_v42 = vshrl.u32 %v2350_v25, 16  ;;  %v1203_v44 = vshll.u32 %v1168_v22, 16  ;;  %v1224_v45 = vrot.slane %v1222_v37, 6  ;;  %2622 = vmatpush3.bf16.msra.mxu0 %v2880_v20  ;;  %2637 = vmatprep.mubr.msk.bf16.mxu0 %vm3013_vm0, %v3012_v1  ;;  %v2886_v28 = vld [vmem:[%s3639_s3 + $0x58] sm:$0xff]  }
 0x10c   : > { %v1231_v46 = vshll.u32 %v1184_v26, 16  ;;  %v1239_v47 = vshll.u32 %v2350_v25, 16  ;;  %v1201_v49 = vrot.slane %v1200_v36, 2  ;;  %v1214_v50 = vor.u32 %v1213_v39, %v1210_v30  ;;  %2623 = vmatprep.subr.bf16.mxu0 %v3012_v1  ;;  %v2902_v24 = vld [vmem:[%s3639_s3 + $0x98] sm:$0xff]  }
 0x10d   : > { %v1227_v51 = vrot.slane %v1225_v41, 7  ;;  %v1238_v52 = vrot.slane %v1236_v42, 6  ;;  %v1245_v54 = vshll.u32 %v1192_v35, 16  ;;  %v1219_v59 = vrot.slane %v1217_v40, 7 }
 0x10e   : > { %v1241_v53 = vrot.slane %v1239_v47, 7  ;;  %v1215_v58 = vrot.slane %v1214_v50, 2  ;;  %v2377_v61 = vld.sshfl [vmem:[#allocation2 + $0xc] sm:$0x12 pattern:$0x76325410]  ;;  %v1402_v4 = vcombine.high %v2376_v55, %v2376_v55 }
 0x10f   : > { %v1228_v60 = vor.u32 %v1227_v51, %v1224_v45  ;;  %v1205_v63 = vrot.slane %v1203_v44, 7  ;;  %v2378_v2 = vld.sshfl [vmem:[#allocation2 + $0x10] sm:$0x12 pattern:$0x76325410]  ;;  %v1410_v5 = vcombine.high %v2377_v61, %v2377_v61  ;;  %2624 = vmatpush3.bf16.msra.mxu0 %v2882_v48  ;;  %v1233_v12 = vrot.slane %v1231_v46, 7 }
 0x110   : > { %v1242_v0 = vor.u32 %v1241_v53, %v1238_v52  ;;  %v1220_v7 = vsel %vm3259_vm15, %v1215_v58, %v1219_v59  ;;  %2625 = vmatprep.subr.bf16.mxu0 %v3012_v1  ;;  %v1247_v16 = vrot.slane %v1245_v54, 7  ;;  %v1418_v17 = vcombine.high %v2378_v2, %v2378_v2  ;;  %v2887_v50 = vld [vmem:[%s3639_s3 + $0x148] sm:$0xff]   ;;  %v2375_v57 = vld.sshfl [vmem:[#allocation2 + $0x4] sm:$0x12 pattern:$0x76325410] }
 0x111   : > { %v1229_v10 = vrot.slane %v1228_v60, 2  ;;  %v3275_v14 = vsel %vm3259_vm15, %v1201_v49, %v1205_v63  ;;  %v1794_v19 = vrot.slane %v1793_v62, 2  ;;  %v1798_v20 = vrot.slane %v3237_v33, 7  ;;  %v2890_v53 = vld [vmem:[%s3639_s3 + $0x68] sm:$0xff]   ;;  %v2892_v62 = vld [vmem:[%s3639_s3 + $0x70] sm:$0xff]  }
 0x112   : > { %v1243_v15 = vrot.slane %v1242_v0, 2  ;;  %v1266_v18 = vcombine.low %v3275_v14, %v1220_v7  ;;  %v1984_v21 = vrot.slane %v1969_v56, 7  ;;  %v1425_v25 = vrot.slane %v1402_v4, 7  ;;  %v2891_v0 = vld [vmem:[%s3639_s3 + $0x158] sm:$0xff]  }
 0x113   : > { %v1234_v22 = vsel %vm3259_vm15, %v1229_v10, %v1233_v12  ;;  %v1429_v26 = vrot.slane %v1410_v5, 7  ;;  %2626 = vmatpush3.bf16.msra.mxu0 %v2884_v6  ;;  %v639_v30 = vrot.slane %v637_v8, 6  ;;  %v642_v31 = vrot.slane %v640_v9, 7  ;;  %v2885_v8 = vld [vmem:[%s3639_s3 + $0x140] sm:$0xff]   ;;  %v2894_v4 = vld [vmem:[%s3639_s3 + $0x78] sm:$0xff]  }
 0x114   : > { %v1248_v23 = vsel %vm3259_vm15, %v1243_v15, %v1247_v16  ;;  %2627 = vmatprep.subr.bf16.mxu0 %v3012_v1  ;;  %v2380_v32 = vrot.slane %v2376_v55, 9  ;;  %v2381_v33 = vrot.slane %v2377_v61, 9  ;;  %v2382_v34 = vrot.slane %v2378_v2, 9  ;;  %v2889_v61 = vld [vmem:[%s3639_s3 + $0x150] sm:$0xff]   ;;  %v2893_v5 = vld [vmem:[%s3639_s3 + $0x160] sm:$0xff]  }
 0x115   : > { %v1267_v27 = vcombine.low %v1234_v22, %v1248_v23  ;;  %v1433_v35 = vrot.slane %v1418_v17, 7  ;;  %v1274_v36 = vrot.slane %v1266_v18, %v3224_v11  ;;  %v1799_v3 = vsel %vm3259_vm15, %v1794_v19, %v1798_v20  ;;  %v2897_v16 = vld [vmem:[%s3639_s3 + $0x170] sm:$0xff]  }
 0x116   : > { %v3314_v9 = vsel %vm3303_vm3, %v2380_v32, %v1425_v25  ;;  %v3318_v39 = vsel %vm3303_vm3, %v2381_v33, %v1429_v26  ;;  %v1985_v41 = vsel %vm3303_vm3, %v2466_v13, %v1984_v21  ;;  %v643_v44 = vor.u32 %v642_v31, %v639_v30  ;;  %v2895_v13 = vld [vmem:[%s3639_s3 + $0x168] sm:$0xff]   ;;  %v2900_v18 = vld [vmem:[%s3639_s3 + $0x90] sm:$0xff]   ;;  %v2291_v25 = vld.sshfl [vmem:[#allocation2] sm:$0x12 pattern:$0x76325410] }
 0x117   : > { %v1281_v37 = vrot.slane %v1267_v27, %v3224_v11  ;;  %v3322_v40 = vsel %vm3303_vm3, %v2382_v34, %v1433_v35  ;;  %2628 = vmatpush3.bf16.msra.mxu0 %v2886_v28  ;;  %v646_v45 = vshll.u32 %v604_v29, 16  ;;  %v1817_v46 = vcombine.low %v1220_v7, %v1234_v22  ;;  %v2896_v7 = vld [vmem:[%s3639_s3 + $0x80] sm:$0xff]   ;;  %v2899_v22 = vld [vmem:[%s3639_s3 + $0x178] sm:$0xff]   ;;  %v2903_v31 = vld [vmem:[%s3639_s3 + $0x188] sm:$0xff]  }
 0x118   : > { %2629 = vmatprep.subr.bf16.mxu0 %v3012_v1  ;;  %v1818_v47 = vcombine.low %v1248_v23, %v1799_v3  ;;  %v2003_v48 = vcombine.low %v3314_v9, %v3318_v39  ;;  %v2004_v49 = vcombine.low %v3322_v40, %v1985_v41  ;;  %v644_v54 = vrot.slane %v643_v44, 2  ;;  %v2901_v27 = vld [vmem:[%s3639_s3 + $0x180] sm:$0xff]   ;;  %v2906_v32 = vld [vmem:[%s3639_s3 + $0xa8] sm:$0xff]   ;;  %v2905_v35 = vld [vmem:[%s3639_s3 + $0x190] sm:$0xff]  }
 0x119   : > { %v1282_v42 = vcombine.low %v1274_v36, %v1281_v37  ;;  %v3339_v51 = vrot.slane %v1817_v46, %v3224_v11  ;;  %v648_v55 = vrot.slane %v646_v45, 7  ;;  %v1394_v12 = vcombine.high %v2375_v57, %v2375_v57  ;;  %v2904_v29 = vld [vmem:[%s3639_s3 + $0xa0] sm:$0xff]   ;;  %v2908_v36 = vld [vmem:[%s3639_s3 + $0xb0] sm:$0xff]   ;;  %v2907_v3 = vld [vmem:[%s3639_s3 + $0x198] sm:$0xff]  }
 0x11a   : > { %v3342_v52 = vrot.slane %v1818_v47, %v3224_v11  ;;  %v3349_v56 = vrot.slane %v2003_v48, %v3224_v11  ;;  %v3352_v58 = vrot.slane %v2004_v49, %v3224_v11  ;;  %v2379_v17 = vrot.slane %v2375_v57, 9  ;;  %v2916_v44 = vld [vmem:[%s3639_s3 + $0xd0] sm:$0xff]   ;;  %v2945_v46 = vld.sshfl [vmem:[#allocation2 + $0x8] sm:$0xf pattern:$0x76325410] }
 0x11b   : > { %2698 = vmatmul.mubr.bf16.vlgmr.msra.gmra.mrb[0].mxu1 %v1282_v42  ;;  %2630 = vmatpush3.bf16.msra.mxu0 %v2888_v43  ;;  %v649_v63 = vsel %vm3259_vm15, %v644_v54, %v648_v55  ;;  %v1421_v15 = vrot.slane %v1394_v12, 7  ;;  %v1453_v19 = vcombine.low %v3318_v39, %v3322_v40  ;;  %v837_v30 = vcombine.high %v2291_v25, %v2291_v25  ;;  %v2912_v40 = vld [vmem:[%s3639_s3 + $0xc0] sm:$0xff]   ;;  %v2911_v42 = vld [vmem:[%s3639_s3 + $0x1a8] sm:$0xff]   ;;  %v2913_v43 = vld [vmem:[%s3639_s3 + $0x1b0] sm:$0xff]  }
 0x11c   : > { %2702 = vmatpush3.bf16.msra.mxu1 %v2885_v8  ;;  %2717 = vmatprep.mubr.msk.bf16.mxu1 %vm3013_vm0, %v3012_v1  ;;  %v1833_v59 = vcombine.low %v3339_v51, %v3342_v52  ;;  %v2019_v60 = vcombine.low %v3349_v56, %v3352_v58  ;;  %v709_v2 = vcombine.low %v649_v63, %v3275_v14  ;;  %v2898_v14 = vld [vmem:[%s3639_s3 + $0x88] sm:$0xff]   ;;  %v2295_v33 = vrot.slane %v2291_v25, 9  ;;  %v2944_v45 = vld.sshfl [vmem:[#allocation2 + $0x10] sm:$0xf pattern:$0x76325410] }
 0x11d   : > { %2703 = vmatprep.subr.bf16.mxu1 %v3012_v1  ;;  %2631 = vmatprep.subr.bf16.mxu0 %v3012_v1  ;;  %v1422_v20 = vsel %vm3303_vm3, %v2379_v17, %v1421_v15  ;;  %v1467_v23 = vrot.slane %v1453_v19, %v3224_v11  ;;  %v871_v34 = vrot.slane %v837_v30, 7  ;;  %v2915_v47 = vld [vmem:[%s3639_s3 + $0x1b8] sm:$0xff]   ;;  %v2919_v49 = vld [vmem:[%s3639_s3 + $0x1c0] sm:$0xff]   ;;  %v2921_v54 = vld [vmem:[%s3639_s3 + $0x1c8] sm:$0xff]  }
 0x11e   : > { %v717_v6 = vrot.slane %v709_v2, %v3224_v11  ;;  %v1452_v21 = vcombine.low %v1422_v20, %v3314_v9  ;;  %v2910_v9 = vld [vmem:[%s3639_s3 + $0xb8] sm:$0xff]   ;;  %v2924_v55 = vld [vmem:[%s3639_s3 + $0xe8] sm:$0xff]   ;;  %v2927_v57 = vld [vmem:[%s3639_s3 + $0x1e0] sm:$0xff]  }
 0x11f   : > { %2632 = vmatpush3.bf16.msra.mxu0 %v2890_v53  ;;  %v872_v37 = vsel %vm3303_vm3, %v2295_v33, %v871_v34  ;;  %v2920_v48 = vld [vmem:[%s3639_s3 + $0xd8] sm:$0xff]   ;;  %v2922_v53 = vld [vmem:[%s3639_s3 + $0xe0] sm:$0xff]   ;;  %v2946_v63 = vld.sshfl [vmem:[#allocation2 + $0xc] sm:$0xf pattern:$0x76325410] }
 0x120   : > { %2704 = vmatpush3.bf16.msra.mxu1 %v2887_v50  ;;  %2633 = vmatprep.subr.bf16.mxu0 %v3012_v1  ;;  %v725_v10 = vcombine.low %v717_v6, %v3339_v51  ;;  %v1460_v26 = vrot.slane %v1452_v21, %v3224_v11  ;;  %v902_v8 = vcombine.low %v872_v37, %v1422_v20  ;;  %v2947_v2 = vld.sshfl [vmem:[#allocation2 + $0x4] sm:$0xf pattern:$0x76325410]  ;;  %v2937_v51 = vld [vmem:[%s3639_s3 + $0x218] sm:$0xff]   ;;  %v2940_v15 = vld [vmem:[%s3639_s3 + $0x230] sm:$0xff]  }
 0x121   : > { %2705 = vmatprep.subr.bf16.mxu1 %v3012_v1  ;;  %v1607_v50 = vcombine.low %v2945_v46, %v2944_v45  ;;  %v2931_v6 = vld [vmem:[%s3639_s3 + $0x1e8] sm:$0xff]   ;;  %v2934_v12 = vld [vmem:[%s3639_s3 + $0x200] sm:$0xff]  }
 0x122   : > { %v1468_v28 = vcombine.low %v1460_v26, %v1467_v23  ;;  %v910_v39 = vrot.slane %v902_v8, %v3224_v11  ;;  %v2914_v11 = vld [vmem:[%s3639_s3 + $0xc8] sm:$0xff]   ;;  %v2938_v52 = vld [vmem:[%s3639_s3 + $0x220] sm:$0xff]  }
 0x123   : > { %2634 = vmatpush3.bf16.msra.mxu0 %v2892_v62  ;;  %v2926_v62 = vld [vmem:[%s3639_s3 + $0xf0] sm:$0xff]   ;;  %v2254_v21 = vld [vmem:[%s3640_s4] ss:$0 sm:$0xff] }
 0x124   : > { %2706 = vmatpush3.bf16.msra.mxu1 %v2889_v61  ;;  %2635 = vmatprep.subr.bf16.mxu0 %v3012_v1  ;;  %v918_v41 = vcombine.low %v910_v39, %v3349_v56  ;;  %v2923_v61 = vld [vmem:[%s3639_s3 + $0x1d0] sm:$0xff]  }
 0x125   : > { %2707 = vmatprep.subr.bf16.mxu1 %v3012_v1 }
 0x127   : > { %2636 = vmatpush3.bf16.msra.mxu0 %v2894_v4  ;;  %v2928_v4 = vld [vmem:[%s3639_s3 + $0xf8] sm:$0xff]  }
 0x128   : > { %2708 = vmatpush3.bf16.msra.mxu1 %v2891_v0  ;;  %2641 = vmatprep.subr.bf16.mxu0 %v3012_v1  ;;  %v2925_v0 = vld [vmem:[%s3639_s3 + $0x1d8] sm:$0xff]  }
 0x129   : > { %2709 = vmatprep.subr.bf16.mxu1 %v3012_v1 }
 0x12a   : > { %2638 = vmatmul.mubr.bf16.vlgmr.msra.gmra.mrb[4].mxu0 %v725_v10  ;;  %v2933_v10 = vld [vmem:[%s3639_s3 + $0x1f8] sm:$0xff]  }
 0x12b   : > { %2642 = vmatpush3.bf16.msra.mxu0 %v2896_v7  ;;  %2657 = vmatprep.mubr.msk.bf16.mxu0 %vm3013_vm0, %v3012_v1  ;;  %v2932_v7 = vld [vmem:[%s3639_s3 + $0x1f0] sm:$0xff]  }
 0x12c   : > { %2710 = vmatpush3.bf16.msra.mxu1 %v2893_v5  ;;  %2643 = vmatprep.subr.bf16.mxu0 %v3012_v1  ;;  %v1056_v5 = vcombine.low %v2947_v2, %v2946_v63 }
 0x12d   : > { %2711 = vmatprep.subr.bf16.mxu1 %v3012_v1 }
 0x12f   : > { %2644 = vmatpush3.bf16.msra.mxu0 %v2898_v14  ;;  %v2936_v14 = vld [vmem:[%s3639_s3 + $0x210] sm:$0xff]  }
 0x130   : > { %2712 = vmatpush3.bf16.msra.mxu1 %v2895_v13  ;;  %2645 = vmatprep.subr.bf16.mxu0 %v3012_v1  ;;  %v2935_v13 = vld [vmem:[%s3639_s3 + $0x208] sm:$0xff]  }
 0x131   : > { %2713 = vmatprep.subr.bf16.mxu1 %v3012_v1 }
 0x133   : > { %2646 = vmatpush3.bf16.msra.mxu0 %v2900_v18 }
 0x134   : > { %2714 = vmatpush3.bf16.msra.mxu1 %v2897_v16  ;;  %2647 = vmatprep.subr.bf16.mxu0 %v3012_v1  ;;  %v2941_v16 = vld [vmem:[%s3639_s3 + $0x238] sm:$0xff]  }
 0x135   : > { %2715 = vmatprep.subr.bf16.mxu1 %v3012_v1 }
 0x137   : > { %2648 = vmatpush3.bf16.msra.mxu0 %v2902_v24 }
 0x138   : > { %2716 = vmatpush3.bf16.msra.mxu1 %v2899_v22  ;;  %2649 = vmatprep.subr.bf16.mxu0 %v3012_v1 }
 0x139   : > { %2721 = vmatprep.subr.bf16.mxu1 %v3012_v1 }
 0x13b   : > { %2718 = vmatmul.mubr.bf16.vlgmr.msra.gmra.mrb[0].mxu1 %v1468_v28  ;;  %2650 = vmatpush3.bf16.msra.mxu0 %v2904_v29 }
 0x13c   : > { %2722 = vmatpush3.bf16.msra.mxu1 %v2901_v27  ;;  %2737 = vmatprep.mubr.msk.bf16.mxu1 %vm3013_vm0, %v3012_v1 }
 0x13d   : > { %2723 = vmatprep.subr.bf16.mxu1 %v3012_v1  ;;  %2651 = vmatprep.subr.bf16.mxu0 %v3012_v1 }
 0x13f   : > { %2652 = vmatpush3.bf16.msra.mxu0 %v2906_v32 }
 0x140   : > { %2724 = vmatpush3.bf16.msra.mxu1 %v2903_v31  ;;  %2653 = vmatprep.subr.bf16.mxu0 %v3012_v1 }
 0x141   : > { %2725 = vmatprep.subr.bf16.mxu1 %v3012_v1 }
 0x143   : > { %2654 = vmatpush3.bf16.msra.mxu0 %v2908_v36 }
 0x144   : > { %2726 = vmatpush3.bf16.msra.mxu1 %v2905_v35  ;;  %2655 = vmatprep.subr.bf16.mxu0 %v3012_v1 }
 0x145   : > { %2727 = vmatprep.subr.bf16.mxu1 %v3012_v1 }
 0x147   : > { %2656 = vmatpush3.bf16.msra.mxu0 %v2910_v9 }
 0x148   : > { %2728 = vmatpush3.bf16.msra.mxu1 %v2907_v3  ;;  %2661 = vmatprep.subr.bf16.mxu0 %v3012_v1 }
 0x149   : > { %2729 = vmatprep.subr.bf16.mxu1 %v3012_v1 }
 0x14a   : > { %2658 = vmatmul.mubr.bf16.vlgmr.msra.gmra.mrb[4].mxu0 %v918_v41 }
 0x14b   : > { %2662 = vmatpush3.bf16.msra.mxu0 %v2912_v40  ;;  %2677 = vmatprep.mubr.msk.bf16.mxu0 %vm3013_vm0, %v3012_v1 }
 0x14c   : > { %2730 = vmatpush3.bf16.msra.mxu1 %v2909_v38  ;;  %2663 = vmatprep.subr.bf16.mxu0 %v3012_v1 }
 0x14d   : > { %2731 = vmatprep.subr.bf16.mxu1 %v3012_v1 }
 0x14f   : > { %2664 = vmatpush3.bf16.msra.mxu0 %v2914_v11 }
 0x150   : > { %2732 = vmatpush3.bf16.msra.mxu1 %v2911_v42  ;;  %2665 = vmatprep.subr.bf16.mxu0 %v3012_v1 }
 0x151   : > { %2733 = vmatprep.subr.bf16.mxu1 %v3012_v1 }
 0x153   : > { %2666 = vmatpush3.bf16.msra.mxu0 %v2916_v44 }
 0x154   : > { %2734 = vmatpush3.bf16.msra.mxu1 %v2913_v43  ;;  %2667 = vmatprep.subr.bf16.mxu0 %v3012_v1 }
 0x155   : > { %2735 = vmatprep.subr.bf16.mxu1 %v3012_v1 }
 0x157   : > { %2668 = vmatpush3.bf16.msra.mxu0 %v2920_v48 }
 0x158   : > { %2736 = vmatpush3.bf16.msra.mxu1 %v2915_v47  ;;  %2669 = vmatprep.subr.bf16.mxu0 %v3012_v1 }
 0x159   : > { %2741 = vmatprep.subr.bf16.mxu1 %v3012_v1 }
 0x15b   : > { %2738 = vmatmul.mubr.bf16.vlgmr.msra.gmra.mrb[0].mxu1 %v1607_v50  ;;  %2670 = vmatpush3.bf16.msra.mxu0 %v2922_v53 }
 0x15c   : > { %2742 = vmatpush3.bf16.msra.mxu1 %v2919_v49  ;;  %2757 = vmatprep.mubr.msk.bf16.mxu1 %vm3013_vm0, %v3012_v1 }
 0x15d   : > { %2743 = vmatprep.subr.bf16.mxu1 %v3012_v1  ;;  %2671 = vmatprep.subr.bf16.mxu0 %v3012_v1 }
 0x15f   : > { %2672 = vmatpush3.bf16.msra.mxu0 %v2924_v55 }
 0x160   : > { %2744 = vmatpush3.bf16.msra.mxu1 %v2921_v54  ;;  %2673 = vmatprep.subr.bf16.mxu0 %v3012_v1 }
 0x161   : > { %2745 = vmatprep.subr.bf16.mxu1 %v3012_v1 }
 0x163   : > { %2674 = vmatpush3.bf16.msra.mxu0 %v2926_v62 }
 0x164   : > { %2746 = vmatpush3.bf16.msra.mxu1 %v2923_v61  ;;  %2675 = vmatprep.subr.bf16.mxu0 %v3012_v1 }
 0x165   : > { %2747 = vmatprep.subr.bf16.mxu1 %v3012_v1 }
 0x167   : > { %2676 = vmatpush3.bf16.msra.mxu0 %v2928_v4 }
 0x168   : > { %2748 = vmatpush3.bf16.msra.mxu1 %v2925_v0 }
 0x169   : > { %2749 = vmatprep.subr.bf16.mxu1 %v3012_v1 }
 0x16a   : > { %2678 = vmatmul.mubr.bf16.vlgmr.msra.gmra.mrb[4].mxu0 %v1056_v5 }
 0x16c   : > { %2750 = vmatpush3.bf16.msra.mxu1 %v2927_v57 }
 0x16d   : > { %2751 = vmatprep.subr.bf16.mxu1 %v3012_v1 }
 0x170   : > { %2752 = vmatpush3.bf16.msra.mxu1 %v2931_v6 }
 0x171   : > { %2753 = vmatprep.subr.bf16.mxu1 %v3012_v1 }
 0x174   : > { %2754 = vmatpush3.bf16.msra.mxu1 %v2932_v7 }
 0x175   : > { %2755 = vmatprep.subr.bf16.mxu1 %v3012_v1 }
 0x178   : > { %2756 = vmatpush3.bf16.msra.mxu1 %v2933_v10 }
 0x179   : > { %2761 = vmatprep.subr.bf16.mxu1 %v3012_v1 }
 0x17b   : > { %2758 = vmatmul.mubr.bf16.vlgmr.msra.gmra.mrb[0].mxu1 %v1833_v59  ;;  %v2939_v59 = vld [vmem:[%s3639_s3 + $0x228] sm:$0xff]  }
 0x17c   : > { %2762 = vmatpush3.bf16.msra.mxu1 %v2934_v12  ;;  %2777 = vmatprep.mubr.msk.bf16.mxu1 %vm3013_vm0, %v3012_v1 }
 0x17d   : > { %2763 = vmatprep.subr.bf16.mxu1 %v3012_v1 }
 0x180   : > { %2764 = vmatpush3.bf16.msra.mxu1 %v2935_v13 }
 0x181   : > { %2765 = vmatprep.subr.bf16.mxu1 %v3012_v1 }
 0x184   : > { %2766 = vmatpush3.bf16.msra.mxu1 %v2936_v14 }
 0x185   : > { %2767 = vmatprep.subr.bf16.mxu1 %v3012_v1 }
 0x188   : > { %2768 = vmatpush3.bf16.msra.mxu1 %v2937_v51 }
 0x189   : > { %2769 = vmatprep.subr.bf16.mxu1 %v3012_v1 }
 0x18c   : > { %2770 = vmatpush3.bf16.msra.mxu1 %v2938_v52 }
 0x18d   : > { %2771 = vmatprep.subr.bf16.mxu1 %v3012_v1 }
 0x190   : > { %2772 = vmatpush3.bf16.msra.mxu1 %v2939_v59 }
 0x191   : > { %2773 = vmatprep.subr.bf16.mxu1 %v3012_v1 }
 0x194   : > { %2774 = vmatpush3.bf16.msra.mxu1 %v2940_v15 }
 0x195   : > { %2775 = vmatprep.subr.bf16.mxu1 %v3012_v1 }
 0x198   : > { %2776 = vmatpush3.bf16.msra.mxu1 %v2941_v16 }
 0x19b   : > { %2778 = vmatmul.mubr.bf16.vlgmr.msra.gmra.mrb[0].mxu1 %v2019_v60 }
 0x23d   : > { %v1140_v17 = vpop.f32.mrb[4].mxu0 }
 0x23e   : > { %v2679_v18 = vpop.f32.mrb[5].mxu0  ;;  %v2781_v22 = vadd.f32 %v2254_v21, %v1140_v17 }
 0x23f   : > { %v1143_v19 = vpop.f32.mrb[6].mxu0 }
 0x240   : > { %v2680_v20 = vpop.f32.mrb[7].mxu0  ;;  %v2783_v24 = vadd.f32 %v2254_v21, %v1143_v19 }
 0x26e   : > { %v2103_v23 = vpop.f32.mrb[0].mxu1 }
 0x26f   : > { %v2782_v1 = vadd.f32 %v2781_v22, %v2103_v23  ;;  %v2779_v25 = vpop.f32.mrb[1].mxu1 }
 0x270   : > { %v2106_v56 = vpop.f32.mrb[2].mxu1 }
 0x271   : > { %v2118_v58 = vcombine.high %v2782_v1, %v2782_v1  ;;  %2122 = vst [vmem:[%s252_s15] sm:$0xf] %v2782_v1  ;;  %v2784_v60 = vadd.f32 %v2783_v24, %v2106_v56  ;;  %v2780_v26 = vpop.f32.mrb[3].mxu1 }
 0x273   : > { %2123 = vst [vmem:[%s252_s15 + $0x4] sm:$0xf] %v2118_v58  ;;  %v2119_v27 = vcombine.high %v2784_v60, %v2784_v60  ;;  %2124 = vst [vmem:[%s252_s15 + $0x8] sm:$0xf] %v2784_v60 }
 0x275   : > { %2125 = vst [vmem:[%s252_s15 + $0xc] sm:$0xf] %v2119_v27 }
 0x276   : > { %2961 = shalt.err (!%p2958_p3)
}
 0x277   : > { %s2962_s9 = scalar_lea.hbm %s3593_s16, 256  ;;  %s2966_s12 = scalar_lea.hbm %s3642_s6, 512 }
 0x278   : > { %p2963_p4 = scmp.ne.s32.totalorder %s3593_s16, %s2962_s9  ;;  %p2967_p9 = scmp.lt.u32.totalorder %s3593_s16, %s3642_s6 }
 0x279   : > { %p2968_p10 = scmp.lt.u32.totalorder %s2966_s12, %s2962_s9  ;;  %p2970_p12 = scmp.lt.u32.totalorder %s2962_s9, %s3593_s16 }
 0x27a   : > { %p2964_p7 = pnand %p2963_p4, %p3092_p5 }
 0x27b   : > { %p2969_p11 = por %p2968_p10, %p2967_p9 }
 0x27c   : > { %p2965_p8 = pneg %p2964_p7 }
 0x27d   : > { %p2971_p13 = por %p2970_p12, %p2969_p11 }
 0x27f   : > { %p2972_p0 = pnand %p2971_p13, %p2965_p8 }
 0x281   : > { %2975 = shalt.err (!%p2972_p0)
}
 0x282   : > { %s3017_s18 = smov 64   ;;  %s3018_s19 = smov 4  }
 0x283   : > { %2813 = dma.vmem_to_hbm [thread:$0]  (%p3092_p5), %s3588_s17, 256, %s3593_s16, %s3595_s20, %s3017_s18, %s3017_s18, %s3018_s19  }
 0x284 PF: > { %p2819_p1 = scmp.ge.s32.totalorder %s3010_s24, 2  ;;  %s2171_s13 = sand.u32 1, %s2998_s21  }
 0x285   : > { %s2172_s25 = scalar_lea.sflag [#allocation5], %s2171_s13 }
 0x286   : > { %p2816_p2 = pnand %p2819_p1, %p3096_p6 }
 0x288   : > { %2993 = dma.done.wait (!%p2816_p2), %s2172_s25, 256  }
 0x289   : > { %2995 = vsyncadd (!%p2816_p2), %s2172_s25, 4294967040  ;;  %p17_p3 = scmp.ge.s32.totalorder %s3079_s27, 4   ;;  %s3657_s21 = smov %s3002_s22 }
 0x28a   : > { %s3658_s22 = smov %s3006_s23  ;;  %s3659_s23 = smov %s3090_s30 }
 0x28b   : > { %s3660_s24 = smov %s3079_s27  ;;  %19 = sbr.rel (!%p17_p3) target bundleno = 3 (0x3), region = 97 }
 0x292   :  { %2177 = vsyncpa [#allocation5], 1 }
 0x293   :  { %2179 = vsyncpa [#allocation5 + $0x1], 1 }

// kernel: decoder_forward.5
= control target key start
LH: loop header
LB: loop body
LE: loop exit
PB: predicated region body
PF: predicated region fallthrough
CT: control target
= control target key end

     0   :  { %13 = vsyncpa [#allocation5], 0  ;;  %s11524_s0 = inlined_call_operand.vmem [shape: f32[2,16,16,16], index: 0, kind: input, shape index: {}]   ;;  %s11525_s1 = inlined_call_operand.vmem [shape: f32[2,8,8,128], index: 1, kind: input, shape index: {}]   ;;  %s11526_s2 = inlined_call_operand.vmem [shape: bf16[16,128], index: 2, kind: input, shape index: {}]   ;;  %s11527_s3 = inlined_call_operand.vmem [shape: f32[1,128], index: 3, kind: input, shape index: {}]   ;;  %s11528_s4 = inlined_call_operand.vmem [shape: bf16[3,3,128,128], index: 4, kind: input, shape index: {}]   ;;  %s11529_s5 = inlined_call_operand.vmem [shape: f32[1,128], index: 5, kind: input, shape index: {}]   ;;  %s11530_s6 = inlined_call_operand.hbm [shape: f32[2,16,16,128], index: 6, kind: output, shape index: {0}]   ;;  %s11531_s7 = inlined_call_operand.hbm [shape: f32[2,16,16,128], index: 7, kind: output, shape index: {1}]  }
   0x1   :  { %15 = vsyncpa [#allocation5 + $0x1], 0 }
   0x2   :  { %16 = vsyncpa [#allocation7], 0 }
   0x3   :  { %18 = vsyncpa [#allocation7 + $0x1], 0  ;;  %s9856_s24 = smov 0   ;;  %s9858_s25 = smov 0  }
   0x4   :  { %s9860_s26 = smov 0   ;;  %s9862_s27 = smov 0  }
   0x5 LB: > { %s9877_s28 = sadd.s32 4294967295, %s9807_s27   ;;  %s8025_s29 = sadd.s32 4294967294, %s9807_s27   ;;  %s9807_s27 = sphi %s9862_s27, %s11547_s27   ;;  %s9803_s26 = sphi %s9860_s26, %s11546_s26   ;;  %s9799_s25 = sphi %s9858_s25, %s11545_s25   ;;  %s9795_s24 = sphi %s9856_s24, %s11544_s24  }
   0x6   : > { %s9881_s30 = sadd.s32 1, %s9807_s27   ;;  %s167_s8 = sadd.s32 1, %s9803_s26 }
   0x7   : > { %s164_s9 = ssub.s32 %s9807_s27, %s9881_s30  ;;  %p177_p0 = scmp.ne.s32.totalorder %s9803_s26, %s9799_s25 }
   0x8   : > { %p165_p1 = scmp.eq.s32.totalorder %s164_s9, 0  ;;  %p178_p2 = scmp.eq.s32.totalorder %s9877_s28, 1 }
   0x9   : > { %p183_p3 = scmp.ne.s32.totalorder %s9799_s25, %s9795_s24  ;;  %p184_p4 = scmp.eq.s32.totalorder %s8025_s29, 1 }
   0xa   : > { %s9892_s10 = scalar_select %p165_p1, %s9803_s26, %s167_s8  }
   0xb   : > { %p9894_p5 = por %p178_p2, %p177_p0  ;;  %p9898_p6 = por %p184_p4, %p183_p3 }
   0xc   : > { %p8028_p7 = scmp.ge.s32.totalorder %s9807_s27, 1  ;;  %p256_p8 = scmp.lt.s32.totalorder %s9807_s27, 3 }
   0xe   : > { %p257_p9 = pnand %p8028_p7, %p256_p8 }
   0xf   : > { %v9574_v0 = vld [vmem:[%s11526_s2] sm:$0xff] (!%p257_p9)   ;;  %p298_p10 = scmp.lt.s32.totalorder (!%p257_p9), %s9877_s28, 1  ;;  %vm372_vm0 = vcmask (!%p257_p9), 130048   ;;  %v9576_v11 = vld [vmem:[%s11528_s4 + $0x8] sm:$0xff] (!%p257_p9)   ;;  %v9578_v51 = vld [vmem:[%s11528_s4 + $0x10] sm:$0xff] (!%p257_p9)   ;;  %v9809_v53 = vmov (!%p257_p9), 0  }
  0x10   : > { %260 = sbr.rel (%p257_p9) target bundleno = 912 (0x390), region = 44  ;;  %v9575_v1 = vld [vmem:[%s11528_s4] sm:$0xff] (!%p257_p9)   ;;  %8755 = vmatprep.subr.bf16.mxu0 (!%p257_p9), %v9574_v0  ;;  %v9579_v52 = vld [vmem:[%s11528_s4 + $0x18] sm:$0xff] (!%p257_p9)   ;;  %1604 = vst [vmem:[#allocation2 + $0x18] sm:$0xf] (!%p257_p9), %v9809_v53  ;;  %v9583_v56 = vld [vmem:[%s11528_s4 + $0x28] sm:$0xff] (!%p257_p9)  }
  0x11   : > { %8756 = vmatpush3.bf16.msra.mxu0 (!%p257_p9), %v9574_v0  ;;  %1598 = vst [vmem:[#allocation2] sm:$0xf] (!%p257_p9), %v9809_v53  ;;  %1599 = vst [vmem:[#allocation2 + $0x4] sm:$0xf] (!%p257_p9), %v9809_v53  ;;  %v9581_v54 = vld [vmem:[%s11528_s4 + $0x20] sm:$0xff] (!%p257_p9)   ;;  %v9584_v57 = vld [vmem:[%s11528_s4 + $0x108] sm:$0xff] (!%p257_p9)  }
  0x12   : > { %8789 = vmatprep.subr.bf16.mxu0 (!%p257_p9), %v9575_v1  ;;  %1600 = vst [vmem:[#allocation2 + $0x8] sm:$0x1] (!%p257_p9), %v9809_v53  ;;  %1601 = vst [vmem:[#allocation2 + $0xc] sm:$0xf] (!%p257_p9), %v9809_v53  ;;  %v9582_v55 = vld [vmem:[%s11528_s4 + $0x100] sm:$0xff] (!%p257_p9)   ;;  %v9586_v58 = vld [vmem:[%s11528_s4 + $0x30] sm:$0xff] (!%p257_p9)  }
  0x13   : > { %1602 = vst [vmem:[#allocation2 + $0x10] sm:$0xf] (!%p257_p9), %v9809_v53  ;;  %1603 = vst [vmem:[#allocation2 + $0x14] sm:$0x1] (!%p257_p9), %v9809_v53  ;;  %9221 = vmatprep.subr.bf16.mxu1 (!%p257_p9), %v9582_v55  ;;  %v9587_v59 = vld [vmem:[%s11528_s4 + $0x110] sm:$0xff] (!%p257_p9)   ;;  %v9588_v60 = vld [vmem:[%s11528_s4 + $0x38] sm:$0xff] (!%p257_p9)  }
  0x14   : > { %1605 = vst [vmem:[#allocation2 + $0x1c] sm:$0xf] (!%p257_p9), %v9809_v53  ;;  %1606 = vst [vmem:[#allocation2 + $0x20] sm:$0x1] (!%p257_p9), %v9809_v53  ;;  %9229 = vmatpush3.bf16.msra.mxu1 (!%p257_p9), %v9582_v55  ;;  %v9589_v61 = vld [vmem:[%s11528_s4 + $0x118] sm:$0xff] (!%p257_p9)   ;;  %v9594_v63 = vld [vmem:[%s11528_s4 + $0x120] sm:$0xff] (!%p257_p9)  }
  0x15   : > { %1607 = vst [vmem:[#allocation2 + $0x24] sm:$0xf] (!%p257_p9), %v9809_v53  ;;  %1608 = vst [vmem:[#allocation2 + $0x28] sm:$0xf] (!%p257_p9), %v9809_v53  ;;  %9222 = vmatprep.subr.bf16.mxu1 (!%p257_p9), %v9584_v57  ;;  %v9595_v0 = vld [vmem:[%s11528_s4 + $0x128] sm:$0xff] (!%p257_p9)   ;;  %s10208_s20 = sand.u32 (!%p257_p9), 1, %s9799_s25  }
  0x16   : > { %1609 = vst [vmem:[#allocation2 + $0x2c] sm:$0x1] (!%p257_p9), %v9809_v53  ;;  %1610 = vst [vmem:[#allocation2 + $0x30] sm:$0xf] (!%p257_p9), %v9809_v53  ;;  %s8029_s23 = sshll.u32 (!%p257_p9), %s10208_s20, 8  ;;  %vm2072_vm1 = vcmask (!%p257_p9), 1043456  }
  0x17   : > { %s9912_s17 = scalar_select %p298_p10, %s9877_s28, 1  ;;  %1611 = vst [vmem:[#allocation2 + $0x34] sm:$0xf] %v9809_v53  ;;  %1612 = vst [vmem:[#allocation2 + $0x38] sm:$0x1] %v9809_v53  ;;  %vm2079_vm5 = vcmask 1040384  }
  0x18   : > { %1613 = vst [vmem:[#allocation2 + $0x3c] sm:$0xf] %v9809_v53  ;;  %1614 = vst [vmem:[#allocation2 + $0x40] sm:$0xf] %v9809_v53  ;;  %9230 = vmatpush3.bf16.msra.mxu1 %v9584_v57  ;;  %v9591_v62 = vld [vmem:[#allocation2] sm:$0xff]   ;;  %vm3626_vm12 = vcmask 1042432  }
  0x19   : > { %s8486_s18 = sshll.u32 %s9912_s17, 8  ;;  %1615 = vst [vmem:[#allocation2 + $0x44] sm:$0x1] %v9809_v53  ;;  %1616 = vst [vmem:[#allocation2 + $0x48] sm:$0xf] %v9809_v53  ;;  %9223 = vmatprep.subr.bf16.mxu1 %v9587_v59  ;;  %s8487_s29 = sshll.u32 %s9912_s17, 6 }
  0x1a   : > { %s9918_s21 = scalar_lea.vmem %s11524_s0, %s8486_s18  ;;  %1617 = vst [vmem:[#allocation2 + $0x4c] sm:$0xf] %v9809_v53  ;;  %1618 = vst [vmem:[#allocation2 + $0x50] sm:$0x1] %v9809_v53  ;;  %s10017_s15 = scalar_lea.vmem %s11525_s1, %s8487_s29  ;;  %vm2073_vm2 = vsmask.f32 7938 }
  0x1b   : > { %v309_v2 = vld [vmem:[%s9918_s21] sm:$0xff]  ;;  %v310_v3 = vld [vmem:[%s9918_s21 + $0x8] sm:$0xff]  ;;  %v311_v4 = vld [vmem:[%s9918_s21 + $0x10] sm:$0xff]  ;;  %1619 = vst [vmem:[#allocation2 + $0x54] sm:$0xf] %v9809_v53  ;;  %s10249_s29 = scalar_lea.vmem [#allocation4], %s8029_s23 }
  0x1c   : > { %v341_v5 = vpack.c.bf16 %v310_v3, %v309_v2  ;;  %v312_v6 = vld [vmem:[%s9918_s21 + $0x18] sm:$0xff]  ;;  %v313_v7 = vld [vmem:[%s9918_s21 + $0x20] sm:$0xff]  ;;  %v314_v8 = vld [vmem:[%s9918_s21 + $0x28] sm:$0xff]  ;;  %1620 = vst [vmem:[#allocation2 + $0x58] sm:$0xf] %v9809_v53  ;;  %9231 = vmatpush3.bf16.msra.mxu1 %v9587_v59  ;;  %v602_v3 = vlaneseq  ;;  %vm3627_vm13 = vcmask 1046532  }
  0x1d   : > { %v342_v9 = vpack.c.bf16 %v312_v6, %v311_v4  ;;  %v343_v10 = vpack.c.bf16 %v314_v8, %v313_v7  ;;  %v315_v12 = vld [vmem:[%s9918_s21 + $0x30] sm:$0xff]  ;;  %v316_v13 = vld [vmem:[%s9918_s21 + $0x38] sm:$0xff]  ;;  %v317_v14 = vld [vmem:[%s9918_s21 + $0x40] sm:$0xff]  ;;  %1621 = vst [vmem:[#allocation2 + $0x5c] sm:$0x1] %v9809_v53  ;;  %9224 = vmatprep.subr.bf16.mxu1 %v9589_v61  ;;  %s8520_s18 = sshll.u32 %s9877_s28, 12 }
  0x1e   : > { %8757 = vmatprep.mubr.msk.bf16.mxu0 %vm372_vm0, %v341_v5  ;;  %v318_v15 = vld [vmem:[%s9918_s21 + $0x48] sm:$0xff]  ;;  %v344_v16 = vpack.c.bf16 %v316_v13, %v315_v12  ;;  %v319_v18 = vld [vmem:[%s9918_s21 + $0x50] sm:$0xff]  ;;  %v320_v19 = vld [vmem:[%s9918_s21 + $0x58] sm:$0xff]  ;;  %1622 = vst [vmem:[#allocation2 + $0x60] sm:$0xf] %v9809_v53  ;;  %v603_v6 = vshrl.u32 %v602_v3, 7  ;;  %s11293_s22 = scalar_lea.hbm %s11530_s6, %s8520_s18 }
  0x1f   : > { %8758 = vmatmul.mubr.msk.bf16.vlgmr.msra.gmra.mrb[0].mxu0 %vm372_vm0, %v342_v9  ;;  %v345_v17 = vpack.c.bf16 %v318_v15, %v317_v14  ;;  %v321_v20 = vld [vmem:[%s9918_s21 + $0x60] sm:$0xff]  ;;  %v322_v21 = vld [vmem:[%s9918_s21 + $0x68] sm:$0xff]  ;;  %v346_v22 = vpack.c.bf16 %v320_v19, %v319_v18  ;;  %v323_v24 = vld [vmem:[%s9918_s21 + $0x70] sm:$0xff]  ;;  %1623 = vst [vmem:[#allocation2 + $0x64] sm:$0xf] %v9809_v53  ;;  %s7903_s8 = sshll.u32 %s10249_s29, 4  ;;  %s11296_s8 = int_to_ptr.vmem [resolvable:$true] %s7903_s8 }
  0x20   : > { %8761 = vmatprep.mubr.msk.bf16.mxu0 %vm372_vm0, %v343_v10  ;;  %8790 = vmatpush3.bf16.msra.mxu0 %v9575_v1  ;;  %v347_v23 = vpack.c.bf16 %v322_v21, %v321_v20  ;;  %v324_v25 = vld [vmem:[%s9918_s21 + $0x78] sm:$0xff]  ;;  %v325_v26 = vld [vmem:[%s9918_s21 + $0x80] sm:$0xff]  ;;  %v326_v27 = vld [vmem:[%s9918_s21 + $0x88] sm:$0xff]  ;;  %1624 = vst [vmem:[#allocation2 + $0x68] sm:$0x1] %v9809_v53  ;;  %v10028_v20 = vsub.s32 0, %v603_v6 }
  0x21   : > { %8791 = vmatprep.subr.bf16.mxu0 %v9576_v11  ;;  %v348_v28 = vpack.c.bf16 %v324_v25, %v323_v24  ;;  %v349_v29 = vpack.c.bf16 %v326_v27, %v325_v26  ;;  %v327_v30 = vld [vmem:[%s9918_s21 + $0x90] sm:$0xff]  ;;  %v328_v31 = vld [vmem:[%s9918_s21 + $0x98] sm:$0xff]  ;;  %v329_v32 = vld [vmem:[%s9918_s21 + $0xa0] sm:$0xff]  ;;  %1625 = vst [vmem:[#allocation2 + $0x6c] sm:$0xf] %v9809_v53  ;;  %9232 = vmatpush3.bf16.msra.mxu1 %v9589_v61  ;;  %s7885_s9 = scalar_lea.sflag [#allocation5], %s10208_s20 }
  0x22   : > { %v330_v33 = vld [vmem:[%s9918_s21 + $0xa8] sm:$0xff]  ;;  %v350_v34 = vpack.c.bf16 %v328_v31, %v327_v30  ;;  %v331_v36 = vld [vmem:[%s9918_s21 + $0xb0] sm:$0xff]  ;;  %v332_v37 = vld [vmem:[%s9918_s21 + $0xb8] sm:$0xff]  ;;  %1626 = vst [vmem:[#allocation2 + $0x70] sm:$0xf] %v9809_v53  ;;  %9225 = vmatprep.subr.bf16.mxu1 %v9594_v63  ;;  %s9713_s13 = scalar_lea.vmem %s11296_s8, 4096 }
  0x23   : > { %v351_v35 = vpack.c.bf16 %v330_v33, %v329_v32  ;;  %v333_v38 = vld [vmem:[%s9918_s21 + $0xc0] sm:$0xff]  ;;  %v334_v39 = vld [vmem:[%s9918_s21 + $0xc8] sm:$0xff]  ;;  %v352_v40 = vpack.c.bf16 %v332_v37, %v331_v36  ;;  %v335_v42 = vld [vmem:[%s9918_s21 + $0xd0] sm:$0xff]  ;;  %1627 = vst [vmem:[#allocation2 + $0x74] sm:$0x1] %v9809_v53  ;;  %p9714_p11 = scmp.ne.s32.totalorder %s11296_s8, %s9713_s13  ;;  %s9812_s14 = smov [#allocation4]  }
  0x24   : > { %8792 = vmatpush3.bf16.msra.mxu0 %v9576_v11  ;;  %v353_v41 = vpack.c.bf16 %v334_v39, %v333_v38  ;;  %v336_v43 = vld [vmem:[%s9918_s21 + $0xd8] sm:$0xff]  ;;  %v337_v44 = vld [vmem:[%s9918_s21 + $0xe0] sm:$0xff]  ;;  %v338_v45 = vld [vmem:[%s9918_s21 + $0xe8] sm:$0xff]  ;;  %1628 = vst [vmem:[#allocation2 + $0x78] sm:$0xf] %v9809_v53 }
  0x25   : > { %v354_v46 = vpack.c.bf16 %v336_v43, %v335_v42  ;;  %v355_v47 = vpack.c.bf16 %v338_v45, %v337_v44  ;;  %v339_v48 = vld [vmem:[%s9918_s21 + $0xf0] sm:$0xff]  ;;  %v340_v49 = vld [vmem:[%s9918_s21 + $0xf8] sm:$0xff]  ;;  %8793 = vmatprep.subr.bf16.mxu0 %v9578_v51  ;;  %1629 = vst [vmem:[#allocation2 + $0x7c] sm:$0xf] %v9809_v53  ;;  %1630 = vst [vmem:[#allocation2 + $0x80] sm:$0x1] %v9809_v53  ;;  %9233 = vmatpush3.bf16.msra.mxu1 %v9594_v63  ;;  %p9715_p12 = pnand %p9714_p11, %p9894_p5 }
  0x26   : > { %v356_v50 = vpack.c.bf16 %v340_v49, %v339_v48  ;;  %1631 = vst [vmem:[#allocation2 + $0x84] sm:$0xf] %v9809_v53  ;;  %1632 = vst [vmem:[#allocation2 + $0x88] sm:$0xf] %v9809_v53  ;;  %9226 = vmatprep.subr.bf16.mxu1 %v9595_v0  ;;  %v9810_v1 = vmov 1966171168  }
  0x27   : > { %8762 = vmatmul.mubr.msk.bf16.gmra.mrb[4].mxu0 %vm372_vm0, %v344_v16  ;;  %1633 = vst [vmem:[#allocation2 + $0x8c] sm:$0x1] %v9809_v53  ;;  %1634 = vst [vmem:[#allocation2 + $0x90] sm:$0xf] %v9809_v53  ;;  %v600_v2 = vunpack.c.l.s4 %v9810_v1  ;;  %v9599_v4 = vld [vmem:[%s11528_s4 + $0x130] sm:$0xff]   ;;  %v9600_v7 = vld [vmem:[%s11528_s4 + $0x138] sm:$0xff]   ;;  %p9716_p13 = pneg %p9715_p12 }
  0x28   : > { %8765 = vmatprep.mubr.msk.bf16.mxu0 %vm372_vm0, %v345_v17  ;;  %8794 = vmatpush3.bf16.msra.mxu0 %v9578_v51  ;;  %1635 = vst [vmem:[#allocation2 + $0x94] sm:$0xf] %v9809_v53  ;;  %1636 = vst [vmem:[#allocation2 + $0x98] sm:$0x1] %v9809_v53  ;;  %v582_v9 = vld [vmem:[%s10017_s15] sm:$0xff]  ;;  %v583_v13 = vld [vmem:[%s10017_s15 + $0x8] sm:$0xff] }
  0x29   : > { %1637 = vst [vmem:[#allocation2 + $0x9c] sm:$0xf] %v9809_v53  ;;  %1638 = vst [vmem:[#allocation2 + $0xa0] sm:$0xf] %v9809_v53  ;;  %8795 = vmatprep.subr.bf16.mxu0 %v9579_v52  ;;  %9234 = vmatpush3.bf16.msra.mxu1 %v9595_v0  ;;  %v601_v5 = vunpack.c.0.s8 %v600_v2  ;;  %v598_v11 = vcombine.high %v582_v9, %v582_v9  ;;  %v647_v18 = vcombine.high %v583_v13, %v583_v13  ;;  %v584_v25 = vld [vmem:[%s10017_s15 + $0x10] sm:$0xff]  ;;  %v9604_v33 = vld [vmem:[%s11528_s4 + $0x140] sm:$0xff]  }
  0x2a   : > { %1639 = vst [vmem:[#allocation2 + $0xa4] sm:$0x1] %v9809_v53  ;;  %1640 = vst [vmem:[#allocation2 + $0xa8] sm:$0xf] %v9809_v53  ;;  %9227 = vmatprep.subr.bf16.mxu1 %v9599_v4  ;;  %v9811_v26 = vmov 1983009808  }
  0x2b   : > { %1641 = vst [vmem:[#allocation2 + $0xac] sm:$0xf] %v9809_v53  ;;  %1642 = vst [vmem:[#allocation2 + $0xb0] sm:$0x1] %v9809_v53  ;;  %v10019_v8 = vsub.s32 %v601_v5, %v603_v6  ;;  %v1249_v27 = vunpack.c.l.s4 %v9811_v26  ;;  %v585_v39 = vld [vmem:[%s10017_s15 + $0x18] sm:$0xff] }
  0x2c   : > { %1643 = vst [vmem:[#allocation2 + $0xb4] sm:$0xf] %v9809_v53  ;;  %1644 = vst [vmem:[#allocation2 + $0xb8] sm:$0xf] %v9809_v53  ;;  %8796 = vmatpush3.bf16.msra.mxu0 %v9579_v52  ;;  %v745_v49 = vcombine.high %v585_v39, %v585_v39  ;;  %vm1748_vm3 = vsmask.f32 256 }
  0x2d   : > { %1645 = vst [vmem:[#allocation2 + $0xbc] sm:$0x1] %v9809_v53  ;;  %1646 = vst [vmem:[#allocation2 + $0xc0] sm:$0xf] %v9809_v53  ;;  %8797 = vmatprep.subr.bf16.mxu0 %v9581_v54  ;;  %9235 = vmatpush3.bf16.msra.mxu1 %v9599_v4  ;;  %v605_v10 = vrot.slane %v582_v9, %v10019_v8  ;;  %v612_v14 = vrot.slane %v598_v11, %v10019_v8  ;;  %vm1749_vm4 = vsmask.f32 4368 }
  0x2e   : > { %1647 = vst [vmem:[#allocation2 + $0xc4] sm:$0xf] %v9809_v53  ;;  %1648 = vst [vmem:[#allocation2 + $0xc8] sm:$0x1] %v9809_v53  ;;  %9228 = vmatprep.subr.bf16.mxu1 %v9600_v7  ;;  %v654_v15 = vrot.slane %v583_v13, %v10019_v8  ;;  %v661_v24 = vrot.slane %v647_v18, %v10019_v8  ;;  %v703_v45 = vrot.slane %v584_v25, %v10019_v8  ;;  %vm2757_vm9 = vsmask.f32 3328 }
  0x2f   : > { %8766 = vmatmul.mubr.msk.bf16.gmra.mrb[8].mxu0 %vm372_vm0, %v346_v22  ;;  %1649 = vst [vmem:[#allocation2 + $0xcc] sm:$0xf] %v9809_v53  ;;  %1650 = vst [vmem:[#allocation2 + $0xd0] sm:$0xf] %v9809_v53  ;;  %v613_v12 = vcombine.high %v605_v10, %v605_v10  ;;  %v621_v16 = vrot.slane %v605_v10, %v10019_v8  ;;  %v614_v19 = vcombine.high %v612_v14, %v612_v14  ;;  %vm2758_vm10 = vsmask.f32 7440 }
  0x30   : > { %8769 = vmatprep.mubr.msk.bf16.mxu0 %vm372_vm0, %v347_v23  ;;  %1651 = vst [vmem:[#allocation2 + $0xd4] sm:$0x1] %v9809_v53  ;;  %8798 = vmatpush3.bf16.msra.mxu0 %v9581_v54  ;;  %v662_v21 = vcombine.high %v654_v15, %v654_v15  ;;  %v670_v32 = vrot.slane %v654_v15, %v10019_v8  ;;  %vm10272_vm6 = vmand %vm2072_vm1, %vm2073_vm2 }
  0x31   : > { %8799 = vmatprep.subr.bf16.mxu0 %v9583_v56  ;;  %9236 = vmatpush3.bf16.msra.mxu1 %v9600_v7  ;;  %v635_v17 = vrot.slane %v613_v12, %v10019_v8  ;;  %v643_v22 = vcombine.high %v621_v16, %v621_v16  ;;  %v993_v30 = vrot.slane %v621_v16, %v10028_v20  ;;  %vm10279_vm7 = vmor %vm1748_vm3, %vm1749_vm4 }
  0x32   : > { %v663_v38 = vcombine.high %v661_v24, %v661_v24  ;;  %9029 = vmatprep.subr.bf16.mxu1 %v9604_v33  ;;  %v692_v44 = vcombine.high %v670_v32, %v670_v32  ;;  %v752_v53 = vrot.slane %v585_v39, %v10019_v8  ;;  %v711_v61 = vcombine.high %v703_v45, %v703_v45  ;;  %vm10286_vm8 = vmand %vm2079_vm5, %vm1748_vm3 }
  0x33   : > { %v645_v23 = vcombine.high %v635_v17, %v635_v17  ;;  %v997_v31 = vrot.slane %v635_v17, %v10028_v20  ;;  %v1001_v36 = vrot.slane %v643_v22, %v10028_v20  ;;  %v759_v1 = vrot.slane %v745_v49, %v10019_v8  ;;  %vm10511_vm11 = vmor %vm2757_vm9, %vm2758_vm10 }
  0x34   : > { %8800 = vmatpush3.bf16.msra.mxu0 %v9583_v56  ;;  %v691_v52 = vrot.slane %v663_v38, %v10019_v8  ;;  %v760_v5 = vcombine.high %v752_v53, %v752_v53  ;;  %v719_v10 = vrot.slane %v703_v45, %v10019_v8  ;;  %v733_v13 = vrot.slane %v711_v61, %v10019_v8  ;;  %v587_v61 = vld [vmem:[%s10017_s15 + $0x28] sm:$0xff]  ;;  %vm10683_vm14 = vmor %vm3626_vm12, %vm3627_vm13 }
  0x35   : > { %8801 = vmatprep.subr.bf16.mxu0 %v9586_v58  ;;  %v1005_v37 = vrot.slane %v645_v23, %v10028_v20  ;;  %v1246_v43 = vcombine.low %v993_v30, %v997_v31  ;;  %v761_v18 = vcombine.high %v759_v1, %v759_v1  ;;  %v768_v22 = vrot.slane %v752_v53, %v10019_v8  ;;  %v586_v31 = vld [vmem:[%s10017_s15 + $0x20] sm:$0xff] }
  0x36   : > { %v695_v2 = vcombine.high %v691_v52, %v691_v52  ;;  %v1045_v4 = vrot.slane %v691_v52, %v10028_v20  ;;  %v782_v23 = vrot.slane %v760_v5, %v10019_v8  ;;  %v741_v26 = vcombine.high %v719_v10, %v719_v10 }
  0x37   : > { %8770 = vmatmul.mubr.msk.bf16.gmra.mrb[12].mxu0 %vm372_vm0, %v348_v28  ;;  %v628_v28 = vrot.slane %v612_v14, %v10019_v8  ;;  %v790_v38 = vcombine.high %v768_v22, %v768_v22  ;;  %v1089_v52 = vrot.slane %v768_v22, %v10028_v20 }
  0x38   : > { %8773 = vmatprep.mubr.msk.bf16.mxu0 %vm372_vm0, %v349_v29  ;;  %8802 = vmatpush3.bf16.msra.mxu0 %v9586_v58  ;;  %v642_v29 = vrot.slane %v614_v19, %v10019_v8  ;;  %v1025_v58 = vrot.slane %v670_v32, %v10028_v20  ;;  %v1053_v19 = vrot.slane %v695_v2, %v10028_v20 }
  0x39   : > { %8803 = vmatprep.subr.bf16.mxu0 %v9588_v60  ;;  %v1009_v51 = vrot.slane %v628_v28, %v10028_v20  ;;  %v792_v39 = vcombine.high %v782_v23, %v782_v23  ;;  %v1093_v53 = vrot.slane %v782_v23, %v10028_v20 }
  0x3a   : > { %v646_v42 = vcombine.high %v642_v29, %v642_v29  ;;  %v1013_v55 = vrot.slane %v642_v29, %v10028_v20  ;;  %v743_v29 = vcombine.high %v733_v13, %v733_v13 }
  0x3c   : > { %8804 = vmatpush3.bf16.msra.mxu0 %v9588_v60  ;;  %v1021_v57 = vrot.slane %v646_v42, %v10028_v20  ;;  %v1033_v60 = vrot.slane %v692_v44, %v10028_v20  ;;  %v1263_v9 = vcombine.low %v1009_v51, %v1013_v55  ;;  %v1065_v42 = vrot.slane %v741_v26, %v10028_v20 }
  0x3d   : > { %v1069_v44 = vrot.slane %v743_v29, %v10028_v20  ;;  %v794_v51 = vcombine.high %v586_v31, %v586_v31  ;;  %v1097_v55 = vrot.slane %v790_v38, %v10028_v20 }
  0x3f   : > { %8774 = vmatmul.mubr.msk.bf16.gmra.mrb[16].mxu0 %vm372_vm0, %v350_v34  ;;  %v684_v34 = vrot.slane %v662_v21, %v10019_v8  ;;  %v808_v5 = vrot.slane %v794_v51, %v10019_v8 }
  0x40   : > { %8777 = vmatprep.mubr.msk.bf16.mxu0 %vm372_vm0, %v351_v35  ;;  %v696_v35 = vcombine.high %v584_v25, %v584_v25 }
  0x41   : > { %v1029_v59 = vrot.slane %v684_v34, %v10028_v20  ;;  %v810_v26 = vcombine.high %v808_v5, %v808_v5 }
  0x42   : > { %v710_v48 = vrot.slane %v696_v35, %v10019_v8  ;;  %v789_v35 = vrot.slane %v761_v18, %v10019_v8 }
  0x43   : > { %v1280_v12 = vcombine.low %v1025_v58, %v1029_v59 }
  0x44   : > { %v712_v0 = vcombine.high %v710_v48, %v710_v48  ;;  %v726_v14 = vrot.slane %v710_v48, %v10019_v8  ;;  %v1109_v59 = vrot.slane %v789_v35, %v10028_v20 }
  0x46   : > { %v740_v17 = vrot.slane %v712_v0, %v10019_v8  ;;  %v742_v30 = vcombine.high %v726_v14, %v726_v14  ;;  %v1073_v45 = vrot.slane %v726_v14, %v10028_v20  ;;  %v1315_v0 = vcombine.low %v1065_v42, %v1069_v44 }
  0x47   : > { %8778 = vmatmul.mubr.msk.bf16.gmra.mrb[20].mxu0 %vm372_vm0, %v352_v40  ;;  %v1250_v40 = vunpack.c.0.s8 %v1249_v27  ;;  %v10136_v42 = vrot.slane %v810_v26, %v10019_v8 }
  0x48   : > { %8781 = vmatprep.mubr.msk.bf16.mxu0 %vm372_vm0, %v353_v41  ;;  %v644_v41 = vcombine.high %v628_v28, %v628_v28  ;;  %v744_v33 = vcombine.high %v740_v17, %v740_v17 }
  0x49   : > { %v10050_v54 = vsub.s32 %v1250_v40, %v603_v6  ;;  %v1057_v40 = vrot.slane %v719_v10, %v10028_v20 }
  0x4a   : > { %v1017_v56 = vrot.slane %v644_v41, %v10028_v20  ;;  %v1061_v41 = vrot.slane %v733_v13, %v10028_v20  ;;  %v1085_v48 = vrot.slane %v744_v33, %v10028_v20 }
  0x4b   : > { %v1254_v6 = vrot.slane %v1246_v43, %v10050_v54  ;;  %v1271_v25 = vrot.slane %v1263_v9, %v10050_v54  ;;  %v1288_v28 = vrot.slane %v1280_v12, %v10050_v54  ;;  %v801_v43 = vrot.slane %v586_v31, %v10019_v8 }
  0x4c   : > { %v1264_v11 = vcombine.low %v1017_v56, %v1021_v57  ;;  %v1101_v56 = vrot.slane %v792_v39, %v10028_v20  ;;  %v1348_v9 = vcombine.low %v1089_v52, %v1093_v53  ;;  %v1329_v18 = vrot.slane %v1315_v0, %v10050_v54 }
  0x4d   : > { %v817_v14 = vrot.slane %v801_v43, %v10019_v8 }
  0x4e   : > { %v1278_v27 = vrot.slane %v1264_v11, %v10050_v54  ;;  %v1349_v10 = vcombine.low %v1097_v55, %v1101_v56  ;;  %v843_v11 = vcombine.high %v587_v61, %v587_v61 }
  0x4f   : > { %8782 = vmatmul.mubr.msk.bf16.gmra.mrb[24].mxu0 %vm372_vm0, %v354_v46  ;;  %v694_v46 = vcombine.high %v684_v34, %v684_v34  ;;  %v775_v34 = vrot.slane %v759_v1, %v10019_v8  ;;  %v839_v33 = vcombine.high %v817_v14, %v817_v14 }
  0x50   : > { %8785 = vmatprep.mubr.msk.bf16.mxu0 %vm372_vm0, %v355_v47  ;;  %v677_v47 = vrot.slane %v661_v24, %v10019_v8  ;;  %v1363_v29 = vrot.slane %v1349_v10, %v10050_v54 }
  0x51   : > { %v791_v49 = vcombine.high %v775_v34, %v775_v34  ;;  %v1105_v58 = vrot.slane %v775_v34, %v10028_v20 }
  0x52   : > { %v693_v63 = vcombine.high %v677_v47, %v677_v47  ;;  %v1041_v3 = vrot.slane %v677_v47, %v10028_v20  ;;  %v1081_v47 = vrot.slane %v742_v30, %v10028_v20  ;;  %v857_v30 = vrot.slane %v843_v11, %v10019_v8 }
  0x53   : > { %v1365_v13 = vcombine.low %v1105_v58, %v1109_v59  ;;  %v842_v59 = vcombine.high %v10136_v42, %v10136_v42 }
  0x54   : > { %v1049_v16 = vrot.slane %v693_v63, %v10028_v20  ;;  %v1297_v21 = vcombine.low %v1041_v3, %v1045_v4  ;;  %v1314_v63 = vcombine.low %v1057_v40, %v1061_v41  ;;  %v1332_v2 = vcombine.low %v1081_v47, %v1085_v48 }
  0x55   : > { %v1113_v3 = vrot.slane %v791_v49, %v10028_v20  ;;  %v10133_v41 = vrot.slane %v808_v5, %v10019_v8  ;;  %v10147_v49 = vrot.slane %v839_v33, %v10028_v20 }
  0x56   : > { %v1346_v23 = vrot.slane %v1332_v2, %v10050_v54 }
  0x57   : > { %8786 = vmatmul.mubr.msk.bf16.gmra.mrb[28].mxu0 %vm372_vm0, %v356_v50  ;;  %v1247_v50 = vcombine.low %v1001_v36, %v1005_v37  ;;  %v1298_v36 = vcombine.low %v1049_v16, %v1053_v19  ;;  %v1305_v37 = vrot.slane %v1297_v21, %v10050_v54  ;;  %v589_v16 = vld [vmem:[%s10017_s15 + $0x38] sm:$0xff]  ;;  %v850_v19 = vrot.slane %v587_v61, %v10019_v8 }
  0x58   : > { %8805 = vmatprep.mubr.bf16.mxu0 %v9591_v62  ;;  %v1037_v62 = vrot.slane %v694_v46, %v10028_v20  ;;  %v1077_v46 = vrot.slane %v740_v17, %v10028_v20  ;;  %v1322_v17 = vrot.slane %v1314_v63, %v10050_v54  ;;  %v941_v31 = vcombine.high %v589_v16, %v589_v16 }
  0x59   : > { %v1261_v7 = vrot.slane %v1247_v50, %v10050_v54  ;;  %v793_v50 = vcombine.high %v789_v35, %v789_v35  ;;  %v1312_v57 = vrot.slane %v1298_v36, %v10050_v54  ;;  %v1121_v36 = vrot.slane %v817_v14, %v10028_v20 }
  0x5a   : > { %v1281_v15 = vcombine.low %v1033_v60, %v1037_v62  ;;  %v809_v60 = vcombine.high %v801_v43, %v801_v43  ;;  %v10099_v62 = vcombine.low %v1271_v25, %v1278_v27  ;;  %v1331_v1 = vcombine.low %v1073_v45, %v1077_v46  ;;  %v10120_v27 = vld [vmem:[%s11528_s4 + $0x40] sm:$0xff]  }
  0x5b   : > { %v10072_v24 = vcombine.low %v1254_v6, %v1261_v7  ;;  %v1117_v4 = vrot.slane %v793_v50, %v10028_v20  ;;  %v588_v6 = vld [vmem:[%s10017_s15 + $0x30] sm:$0xff]  ;;  %v10107_v12 = vcombine.low %v1305_v37, %v1312_v57  ;;  %8837 = vmatprep.subr.bf16.mxu0 %v10120_v27  ;;  %v858_v38 = vcombine.high %v850_v19, %v850_v19  ;;  %s9717_s15 = sshll.u32 %s9812_s14, 4  ;;  %s9718_s15 = int_to_ptr.vmem [resolvable:$false] %s9717_s15 }
  0x5c   : > { %v1295_v32 = vrot.slane %v1281_v15, %v10050_v54  ;;  %v831_v15 = vrot.slane %v809_v60, %v10019_v8  ;;  %v892_v21 = vcombine.high %v588_v6, %v588_v6  ;;  %v1339_v22 = vrot.slane %v1331_v1, %v10050_v54  ;;  %s9719_s17 = scalar_lea.vmem %s9718_s15, 8192  ;;  %p9720_p0 = scmp.lt.s32.totalorder %s11296_s8, %s9718_s15 }
  0x5d   : > { %v1366_v25 = vcombine.low %v1113_v3, %v1117_v4  ;;  %v899_v35 = vrot.slane %v588_v6, %v10019_v8  ;;  %v948_v43 = vrot.slane %v589_v16, %v10019_v8  ;;  %v10139_v44 = vcombine.low %v1322_v17, %v1329_v18  ;;  %p9721_p1 = scmp.lt.s32.totalorder %s9719_s17, %s9713_s13 }
  0x5e   : > { %v10105_v7 = vcombine.low %v1288_v28, %v1295_v32  ;;  %v1356_v28 = vrot.slane %v1348_v9, %v10050_v54  ;;  %v1373_v32 = vrot.slane %v1365_v13, %v10050_v54  ;;  %v841_v34 = vcombine.high %v831_v15, %v831_v15 }
  0x5f   : > { %v1125_v37 = vrot.slane %v831_v15, %v10028_v20  ;;  %v906_v39 = vrot.slane %v892_v21, %v10019_v8  ;;  %v1380_v40 = vrot.slane %v1366_v25, %v10050_v54  ;;  %v10141_v45 = vcombine.low %v1339_v22, %v1346_v23  ;;  %p9722_p2 = por %p9721_p1, %p9720_p0 }
  0x60   : > { %v859_v46 = vcombine.high %v857_v30, %v857_v30  ;;  %v955_v47 = vrot.slane %v941_v31, %v10019_v8  ;;  %v10144_v48 = vcombine.low %v1356_v28, %v1363_v29  ;;  %v10150_v50 = vrot.slane %v841_v34, %v10028_v20 }
  0x61   : > { %v907_v51 = vcombine.high %v899_v35, %v899_v35  ;;  %v10152_v52 = vcombine.low %v1121_v36, %v1125_v37  ;;  %v866_v53 = vrot.slane %v850_v19, %v10019_v8  ;;  %v880_v55 = vrot.slane %v858_v38, %v10019_v8  ;;  %p9723_p3 = pnand %p9722_p2, %p9716_p13 }
  0x62   : > { %v908_v56 = vcombine.high %v906_v39, %v906_v39  ;;  %v10156_v57 = vcombine.low %v1373_v32, %v1380_v40  ;;  %v840_v58 = vcombine.high %v10133_v41, %v10133_v41  ;;  %v956_v60 = vcombine.high %v948_v43, %v948_v43 }
  0x63   : > { %v1137_v61 = vrot.slane %v10133_v41, %v10028_v20  ;;  %v873_v63 = vrot.slane %v857_v30, %v10019_v8  ;;  %v887_v0 = vrot.slane %v859_v46, %v10019_v8  ;;  %v957_v1 = vcombine.high %v955_v47, %v955_v47 }
  0x64   : > { %v1383_v2 = vcombine.low %v10147_v49, %v10150_v50  ;;  %v1141_v3 = vrot.slane %v10136_v42, %v10028_v20  ;;  %v915_v4 = vrot.slane %v899_v35, %v10019_v8  ;;  %v929_v5 = vrot.slane %v907_v51, %v10019_v8 }
  0x65   : > { %v888_v6 = vcombine.high %v866_v53, %v866_v53  ;;  %v890_v9 = vcombine.high %v880_v55, %v880_v55  ;;  %v922_v10 = vrot.slane %v906_v39, %v10019_v8  ;;  %v936_v11 = vrot.slane %v908_v56, %v10019_v8 }
  0x66   : > { %v10175_v13 = vrot.slane %v840_v58, %v10028_v20  ;;  %v1149_v14 = vrot.slane %v842_v59, %v10028_v20  ;;  %v964_v15 = vrot.slane %v948_v43, %v10019_v8  ;;  %v978_v16 = vrot.slane %v956_v60, %v10019_v8 }
  0x67   : > { %v889_v17 = vcombine.high %v873_v63, %v873_v63  ;;  %v891_v18 = vcombine.high %v887_v0, %v887_v0  ;;  %v971_v19 = vrot.slane %v955_v47, %v10019_v8  ;;  %v985_v21 = vrot.slane %v957_v1, %v10019_v8 }
  0x68   : > { %v1153_v22 = vrot.slane %v866_v53, %v10028_v20  ;;  %v1157_v23 = vrot.slane %v880_v55, %v10028_v20  ;;  %v937_v25 = vcombine.high %v915_v4, %v915_v4  ;;  %v939_v26 = vcombine.high %v929_v5, %v929_v5 }
  0x69   : > { %v1161_v28 = vrot.slane %v888_v6, %v10028_v20  ;;  %v1165_v29 = vrot.slane %v890_v9, %v10028_v20  ;;  %v938_v30 = vcombine.high %v922_v10, %v922_v10  ;;  %v940_v31 = vcombine.high %v936_v11, %v936_v11 }
  0x6a   : > { %v1169_v32 = vrot.slane %v873_v63, %v10028_v20  ;;  %v1173_v33 = vrot.slane %v887_v0, %v10028_v20  ;;  %v986_v34 = vcombine.high %v964_v15, %v964_v15  ;;  %v988_v35 = vcombine.high %v978_v16, %v978_v16 }
  0x6b   : > { %v1177_v8 = vrot.slane %v889_v17, %v10028_v20  ;;  %v1181_v36 = vrot.slane %v891_v18, %v10028_v20  ;;  %v987_v37 = vcombine.high %v971_v19, %v971_v19  ;;  %v989_v38 = vcombine.high %v985_v21, %v985_v21 }
  0x6c   : > { %v1185_v39 = vrot.slane %v915_v4, %v10028_v20  ;;  %v1189_v40 = vrot.slane %v929_v5, %v10028_v20  ;;  %v1193_v41 = vrot.slane %v937_v25, %v10028_v20  ;;  %v1197_v42 = vrot.slane %v939_v26, %v10028_v20 }
  0x6d   : > { %v1201_v43 = vrot.slane %v922_v10, %v10028_v20  ;;  %v1205_v46 = vrot.slane %v936_v11, %v10028_v20  ;;  %v1209_v47 = vrot.slane %v938_v30, %v10028_v20  ;;  %v1213_v49 = vrot.slane %v940_v31, %v10028_v20 }
  0x6e   : > { %v1217_v50 = vrot.slane %v964_v15, %v10028_v20  ;;  %v1221_v51 = vrot.slane %v978_v16, %v10028_v20  ;;  %v1225_v53 = vrot.slane %v986_v34, %v10028_v20  ;;  %v1229_v55 = vrot.slane %v988_v35, %v10028_v20 }
  0x6f   : > { %v1233_v56 = vrot.slane %v971_v19, %v10028_v20  ;;  %v1237_v58 = vrot.slane %v985_v21, %v10028_v20  ;;  %v1241_v59 = vrot.slane %v987_v37, %v10028_v20  ;;  %v1245_v60 = vrot.slane %v989_v38, %v10028_v20  ;;  %v10215_v20 = vld [vmem:[%s11527_s3] ss:$0 sm:$0xff] }
  0x70   : > { %v1399_v63 = vcombine.low %v1137_v61, %v1141_v3  ;;  %v1400_v0 = vcombine.low %v10175_v13, %v1149_v14  ;;  %v1416_v1 = vcombine.low %v1153_v22, %v1157_v23  ;;  %v1417_v4 = vcombine.low %v1161_v28, %v1165_v29 }
  0x71   : > { %v1433_v5 = vcombine.low %v1169_v32, %v1173_v33  ;;  %v1434_v6 = vcombine.low %v1177_v8, %v1181_v36  ;;  %v1450_v9 = vcombine.low %v1185_v39, %v1189_v40  ;;  %v1451_v10 = vcombine.low %v1193_v41, %v1197_v42 }
  0x72   : > { %v1390_v11 = vrot.slane %v10152_v52, %v10050_v54  ;;  %v1467_v15 = vcombine.low %v1201_v43, %v1205_v46  ;;  %v1468_v16 = vcombine.low %v1209_v47, %v1213_v49  ;;  %v1484_v17 = vcombine.low %v1217_v50, %v1221_v51 }
  0x73   : > { %v1397_v61 = vrot.slane %v1383_v2, %v10050_v54  ;;  %v1485_v3 = vcombine.low %v1225_v53, %v1229_v55  ;;  %v1501_v13 = vcombine.low %v1233_v56, %v1237_v58  ;;  %v1502_v14 = vcombine.low %v1241_v59, %v1245_v60  ;;  %v10263_v58 = vld [vmem:[#allocation2] sm:$0xf] }
  0x74   : > { %v1407_v18 = vrot.slane %v1399_v63, %v10050_v54  ;;  %v1414_v52 = vrot.slane %v1400_v0, %v10050_v54  ;;  %v1424_v19 = vrot.slane %v1416_v1, %v10050_v54  ;;  %v1431_v21 = vrot.slane %v1417_v4, %v10050_v54 }
  0x75   : > { %v1441_v23 = vrot.slane %v1433_v5, %v10050_v54  ;;  %v1448_v2 = vrot.slane %v1434_v6, %v10050_v54  ;;  %v1458_v25 = vrot.slane %v1450_v9, %v10050_v54  ;;  %v1465_v26 = vrot.slane %v1451_v10, %v10050_v54 }
  0x76   : > { %v1475_v30 = vrot.slane %v1467_v15, %v10050_v54  ;;  %v1482_v31 = vrot.slane %v1468_v16, %v10050_v54  ;;  %v1492_v32 = vrot.slane %v1484_v17, %v10050_v54  ;;  %v1499_v35 = vrot.slane %v1485_v3, %v10050_v54 }
  0x77   : > { %v1509_v8 = vrot.slane %v1501_v13, %v10050_v54  ;;  %v1516_v36 = vrot.slane %v1502_v14, %v10050_v54  ;;  %v10237_v40 = vcombine.low %v1390_v11, %v1397_v61  ;;  %v10239_v41 = vcombine.low %v1407_v18, %v1414_v52  ;;  %v2084_v61 = vld [vmem:[#allocation2 + $0x18] sm:$0xf] }
  0x78   : > { %v10243_v46 = vcombine.low %v1424_v19, %v1431_v21  ;;  %v10245_v47 = vcombine.low %v1441_v23, %v1448_v2  ;;  %v10253_v50 = vcombine.low %v1458_v25, %v1465_v26  ;;  %v10259_v55 = vcombine.low %v1492_v32, %v1499_v35 }
  0x79   : > { %v10261_v56 = vcombine.low %v1509_v8, %v1516_v36  ;;  %v2761_v0 = vshrl.u32 %v10263_v58, 16  ;;  %v2764_v9 = vshll.u32 %v10263_v58, 16  ;;  %v2081_v36 = vld [vmem:[#allocation2 + $0x14] sm:$0x1] }
  0xf2   : > { %v8759_v22 = vpop.f32.mrb[0].mxu0 }
  0xf3   : > { %v464_v28 = vadd.f32 %v8759_v22, %v10215_v20  ;;  %v455_v29 = vpop.f32.mrb[1].mxu0  ;;  %v2075_v22 = vld [vmem:[#allocation2 + $0xc] sm:$0xf] }
  0xf4   : > { %v456_v33 = vadd.f32 %v10215_v20, %v455_v29  ;;  %v8760_v34 = vpop.f32.mrb[2].mxu0 }
  0xf5   : > { %v1536_v37 = vadd.f32 %v10072_v24, %v464_v28  ;;  %v467_v38 = vadd.f32 %v8760_v34, %v10215_v20  ;;  %v458_v39 = vpop.f32.mrb[3].mxu0 }
  0xf6   : > { %v1534_v42 = vadd.f32 %v10072_v24, %v456_v33  ;;  %v459_v43 = vadd.f32 %v10215_v20, %v458_v39  ;;  %v10255_v24 = vcombine.low %v1475_v30, %v1482_v31  ;;  %v2088_v31 = vld [vmem:[#allocation2 + $0x20] sm:$0x1] }
  0xf7   : > { %1568 = vst [vmem:[%s10249_s29 + $0x10] sm:$0xff] %v1536_v37  ;;  %v8490_v54 = vpack.c.bf16 %v1536_v37, %v1536_v37  ;;  %v1537_v49 = vadd.f32 %v10099_v62, %v467_v38 }
  0xf8   : > { %1566 = vst [vmem:[%s10249_s29] sm:$0xff] %v1534_v42  ;;  %v8488_v51 = vpack.c.bf16 %v1534_v42, %v1534_v42  ;;  %v1535_v53 = vadd.f32 %v10099_v62, %v459_v43 }
  0xf9   : > { %v1769_v59 = vshrl.u32 %v8490_v54, 16  ;;  %v1772_v60 = vshll.u32 %v8490_v54, 16  ;;  %1569 = vst [vmem:[%s10249_s29 + $0x18] sm:$0xff] %v1537_v49  ;;  %v8491_v63 = vpack.c.bf16 %v1537_v49, %v1537_v49 }
  0xfa   : > { %v1752_v1 = vshrl.u32 %v8488_v51, 16  ;;  %v1755_v4 = vshll.u32 %v8488_v51, 16  ;;  %1567 = vst [vmem:[%s10249_s29 + $0x8] sm:$0xff] %v1535_v53  ;;  %v8489_v5 = vpack.c.bf16 %v1535_v53, %v1535_v53  ;;  %v8763_v6 = vpop.f32.mrb[4].mxu0 }
  0xfb   : > { %v1771_v62 = vrot.slane %v1769_v59, 7  ;;  %v1777_v10 = vshrl.u32 %v8491_v63, 16  ;;  %v1780_v11 = vshll.u32 %v8491_v63, 16  ;;  %v480_v15 = vadd.f32 %v8763_v6, %v10215_v20  ;;  %v471_v16 = vpop.f32.mrb[5].mxu0 }
  0xfc   : > { %v1754_v3 = vrot.slane %v1752_v1, 7  ;;  %v1760_v13 = vshrl.u32 %v8489_v5, 16  ;;  %v1763_v14 = vshll.u32 %v8489_v5, 16  ;;  %v472_v18 = vadd.f32 %v10215_v20, %v471_v16  ;;  %v8764_v52 = vpop.f32.mrb[6].mxu0 }
  0xfd   : > { %v1774_v19 = vor.u32 %v1772_v60, %v1771_v62  ;;  %v1775_v21 = vrot.slane %v1771_v62, 4  ;;  %v1779_v2 = vrot.slane %v1777_v10, 7  ;;  %v1540_v25 = vadd.f32 %v10105_v7, %v480_v15  ;;  %v474_v26 = vpop.f32.mrb[7].mxu0 }
  0xfe   : > { %v1757_v28 = vor.u32 %v1755_v4, %v1754_v3  ;;  %v1758_v29 = vrot.slane %v1754_v3, 4  ;;  %v1762_v32 = vrot.slane %v1760_v13, 7  ;;  %v1538_v33 = vadd.f32 %v10105_v7, %v472_v18 }
  0xff   : > { %v2085_v34 = vsel %vm10272_vm6, %v1774_v19, %v2084_v61  ;;  %v1782_v35 = vor.u32 %v1780_v11, %v1779_v2  ;;  %v1784_v8 = vrot.slane %v1779_v2, 4  ;;  %1572 = vst [vmem:[%s10249_s29 + $0x30] sm:$0xff] %v1540_v25  ;;  %v8494_v37 = vpack.c.bf16 %v1540_v25, %v1540_v25  ;;  %v2098_v11 = vld [vmem:[#allocation2 + $0x30] sm:$0xf] }
 0x100   : > { %2086 = vst [vmem:[#allocation2 + $0x18] sm:$0xf] %v2085_v34  ;;  %v2076_v38 = vsel %vm10272_vm6, %v1757_v28, %v2075_v22  ;;  %v1765_v39 = vor.u32 %v1763_v14, %v1762_v32  ;;  %v1767_v42 = vrot.slane %v1762_v32, 4  ;;  %1570 = vst [vmem:[%s10249_s29 + $0x20] sm:$0xff] %v1538_v33  ;;  %v8492_v43 = vpack.c.bf16 %v1538_v33, %v1538_v33 }
 0x101   : > { %2077 = vst [vmem:[#allocation2 + $0xc] sm:$0xf] %v2076_v38  ;;  %v1783_v7 = vsel %vm10279_vm7, %v1775_v21, %v1782_v35  ;;  %v2089_v54 = vsel %vm10286_vm8, %v1784_v8, %v2088_v31  ;;  %v1803_v49 = vshrl.u32 %v8494_v37, 16  ;;  %v1806_v51 = vshll.u32 %v8494_v37, 16  ;;  %v2102_v37 = vld [vmem:[#allocation2 + $0x38] sm:$0x1] }
 0x102   : > { %2087 = vst [vmem:[#allocation2 + $0x1c] sm:$0xf] %v1783_v7  ;;  %2090 = vst [vmem:[#allocation2 + $0x20] sm:$0x1] %v2089_v54  ;;  %v1766_v53 = vsel %vm10279_vm7, %v1758_v29, %v1765_v39  ;;  %v2082_v59 = vsel %vm10286_vm8, %v1767_v42, %v2081_v36  ;;  %v1786_v60 = vshrl.u32 %v8492_v43, 16  ;;  %v1789_v63 = vshll.u32 %v8492_v43, 16 }
 0x103   : > { %v8767_v1 = vpop.f32.mrb[8].mxu0  ;;  %2078 = vst [vmem:[#allocation2 + $0x10] sm:$0xf] %v1766_v53  ;;  %2083 = vst [vmem:[#allocation2 + $0x14] sm:$0x1] %v2082_v59  ;;  %v10305_v4 = vrot.slane %v1803_v49, 7  ;;  %v483_v5 = vadd.f32 %v8764_v52, %v10215_v20  ;;  %v475_v6 = vadd.f32 %v10215_v20, %v474_v26 }
 0x104   : > { %v496_v62 = vadd.f32 %v8767_v1, %v10215_v20  ;;  %v487_v10 = vpop.f32.mrb[9].mxu0  ;;  %v10310_v15 = vrot.slane %v1786_v60, 7  ;;  %v10315_v3 = vrot.slane %v2761_v0, 4  ;;  %v10317_v13 = vrot.slane %v2764_v9, 5  ;;  %v2091_v52 = vld [vmem:[#allocation2 + $0x24] sm:$0xf] }
 0x105   : > { %v488_v16 = vadd.f32 %v10215_v20, %v487_v10  ;;  %v8768_v61 = vpop.f32.mrb[10].mxu0  ;;  %v1808_v14 = vor.u32 %v1806_v51, %v10305_v4  ;;  %v1809_v18 = vrot.slane %v10305_v4, 4  ;;  %v1541_v19 = vadd.f32 %v10107_v12, %v483_v5  ;;  %v2095_v38 = vld [vmem:[#allocation2 + $0x2c] sm:$0x1] }
 0x106   : > { %v1539_v21 = vadd.f32 %v10107_v12, %v475_v6  ;;  %v490_v22 = vpop.f32.mrb[11].mxu0  ;;  %v1791_v2 = vor.u32 %v1789_v63, %v10310_v15  ;;  %v1792_v58 = vrot.slane %v10310_v15, 4  ;;  %v1544_v0 = vadd.f32 %v10139_v44, %v496_v62  ;;  %v2112_v6 = vld [vmem:[#allocation2 + $0x48] sm:$0xf] }
 0x107   : > { %v1542_v9 = vadd.f32 %v10139_v44, %v488_v16  ;;  %v2099_v25 = vsel %vm10272_vm6, %v1808_v14, %v2098_v11  ;;  %1573 = vst [vmem:[%s10249_s29 + $0x38] sm:$0xff] %v1541_v19  ;;  %v8495_v26 = vpack.c.bf16 %v1541_v19, %v1541_v19  ;;  %v499_v29 = vadd.f32 %v8768_v61, %v10215_v20  ;;  %v9614_v44 = vld [vmem:[%s11528_s4 + $0x48] sm:$0xff]   ;;  %v2105_v19 = vld [vmem:[#allocation2 + $0x3c] sm:$0xf] }
 0x108   : > { %1571 = vst [vmem:[%s10249_s29 + $0x28] sm:$0xff] %v1539_v21  ;;  %v8493_v28 = vpack.c.bf16 %v1539_v21, %v1539_v21  ;;  %2100 = vst [vmem:[#allocation2 + $0x30] sm:$0xf] %v2099_v25  ;;  %v2092_v12 = vsel %vm10272_vm6, %v1791_v2, %v2091_v52  ;;  %v8498_v31 = vpack.c.bf16 %v1544_v0, %v1544_v0 }
 0x109   : > { %1576 = vst [vmem:[%s10249_s29 + $0x50] sm:$0xff] %v1544_v0  ;;  %1574 = vst [vmem:[%s10249_s29 + $0x40] sm:$0xff] %v1542_v9  ;;  %v8496_v32 = vpack.c.bf16 %v1542_v9, %v1542_v9  ;;  %v491_v33 = vadd.f32 %v10215_v20, %v490_v22  ;;  %v1811_v34 = vshrl.u32 %v8495_v26, 16  ;;  %v1814_v35 = vshll.u32 %v8495_v26, 16  ;;  %v9593_v1 = vld [vmem:[#allocation2 + $0x18] sm:$0xff]   ;;  %v9617_v9 = vld [vmem:[%s11528_s4 + $0x50] sm:$0xff]  }
 0x10a   : > { %2093 = vst [vmem:[#allocation2 + $0x24] sm:$0xf] %v2092_v12  ;;  %v1794_v8 = vshrl.u32 %v8493_v28, 16  ;;  %v1797_v36 = vshll.u32 %v8493_v28, 16  ;;  %v1837_v39 = vshrl.u32 %v8498_v31, 16  ;;  %v1840_v42 = vshll.u32 %v8498_v31, 16 }
 0x10b   : > { %v1820_v43 = vshrl.u32 %v8496_v32, 16  ;;  %v1823_v7 = vshll.u32 %v8496_v32, 16  ;;  %v8771_v54 = vpop.f32.mrb[12].mxu0  ;;  %v9592_v49 = vld [vmem:[#allocation2 + $0xc] sm:$0xff]   ;;  %v1813_v51 = vrot.slane %v1811_v34, 7  ;;  %v1545_v59 = vadd.f32 %v10141_v45, %v499_v29 }
 0x10c   : > { %v1796_v53 = vrot.slane %v1794_v8, 7  ;;  %v1543_v60 = vadd.f32 %v10141_v45, %v491_v33  ;;  %v503_v63 = vpop.f32.mrb[13].mxu0  ;;  %v10342_v5 = vrot.slane %v1837_v39, 7  ;;  %v512_v10 = vadd.f32 %v8771_v54, %v10215_v20  ;;  %8806 = vmatmul.mubr.bf16.vlgmr.msra.gmra.mrb[32].mxu0 %v9592_v49  ;;  %v2116_v39 = vld [vmem:[#allocation2 + $0x50] sm:$0x1] }
 0x10d   : > { %v10344_v62 = vrot.slane %v1820_v43, 7  ;;  %v504_v11 = vadd.f32 %v10215_v20, %v503_v63  ;;  %v8772_v15 = vpop.f32.mrb[14].mxu0  ;;  %v1816_v16 = vor.u32 %v1814_v35, %v1813_v51  ;;  %v1818_v61 = vrot.slane %v1813_v51, 4  ;;  %1577 = vst [vmem:[%s10249_s29 + $0x58] sm:$0xff] %v1545_v59  ;;  %8809 = vmatprep.mubr.bf16.mxu0 %v9593_v1  ;;  %8838 = vmatpush3.bf16.msra.mxu0 %v10120_v27 }
 0x10e   : > { %v1799_v14 = vor.u32 %v1797_v36, %v1796_v53  ;;  %v1801_v52 = vrot.slane %v1796_v53, 4  ;;  %1575 = vst [vmem:[%s10249_s29 + $0x48] sm:$0xff] %v1543_v60  ;;  %v506_v45 = vpop.f32.mrb[15].mxu0  ;;  %v1842_v21 = vor.u32 %v1840_v42, %v10342_v5  ;;  %v1843_v22 = vrot.slane %v10342_v5, 4  ;;  %8839 = vmatprep.subr.bf16.mxu0 %v9614_v44  ;;  %v2109_v42 = vld [vmem:[#allocation2 + $0x44] sm:$0x1] }
 0x10f   : > { %v1825_v2 = vor.u32 %v1823_v7, %v10344_v62  ;;  %v1826_v0 = vrot.slane %v10344_v62, 4  ;;  %v1817_v25 = vsel %vm10279_vm7, %v1809_v18, %v1816_v16  ;;  %v2103_v27 = vsel %vm10286_vm8, %v1818_v61, %v2102_v37 }
 0x110   : > { %v1800_v26 = vsel %vm10279_vm7, %v1792_v58, %v1799_v14  ;;  %v2096_v28 = vsel %vm10286_vm8, %v1801_v52, %v2095_v38  ;;  %2101 = vst [vmem:[#allocation2 + $0x34] sm:$0xf] %v1817_v25  ;;  %2104 = vst [vmem:[#allocation2 + $0x38] sm:$0x1] %v2103_v27  ;;  %v2113_v29 = vsel %vm10272_vm6, %v1842_v21, %v2112_v6  ;;  %v9619_v38 = vld [vmem:[%s11528_s4 + $0x58] sm:$0xff]  }
 0x111   : > { %2094 = vst [vmem:[#allocation2 + $0x28] sm:$0xf] %v1800_v26  ;;  %2097 = vst [vmem:[#allocation2 + $0x2c] sm:$0x1] %v2096_v28  ;;  %v2106_v4 = vsel %vm10272_vm6, %v1825_v2, %v2105_v19  ;;  %v8499_v18 = vpack.c.bf16 %v1545_v59, %v1545_v59  ;;  %v8497_v12 = vpack.c.bf16 %v1543_v60, %v1543_v60  ;;  %8840 = vmatpush3.bf16.msra.mxu0 %v9614_v44  ;;  %v2126_v52 = vld [vmem:[#allocation2 + $0x60] sm:$0xf] }
 0x112   : > { %2114 = vst [vmem:[#allocation2 + $0x48] sm:$0xf] %v2113_v29  ;;  %2107 = vst [vmem:[#allocation2 + $0x3c] sm:$0xf] %v2106_v4  ;;  %v1548_v58 = vadd.f32 %v10144_v48, %v512_v10  ;;  %v1546_v31 = vadd.f32 %v10144_v48, %v504_v11  ;;  %v515_v32 = vadd.f32 %v8772_v15, %v10215_v20  ;;  %v8775_v37 = vpop.f32.mrb[16].mxu0  ;;  %8841 = vmatprep.subr.bf16.mxu0 %v9617_v9 }
 0x113   : > { %v507_v33 = vadd.f32 %v10215_v20, %v506_v45  ;;  %v1845_v34 = vshrl.u32 %v8499_v18, 16  ;;  %v1848_v35 = vshll.u32 %v8499_v18, 16  ;;  %v1828_v8 = vshrl.u32 %v8497_v12, 16  ;;  %v519_v54 = vpop.f32.mrb[17].mxu0  ;;  %v2119_v19 = vld [vmem:[#allocation2 + $0x54] sm:$0xf] }
 0x114   : > { %v1831_v36 = vshll.u32 %v8497_v12, 16  ;;  %1580 = vst [vmem:[%s10249_s29 + $0x70] sm:$0xff] %v1548_v58  ;;  %v8502_v48 = vpack.c.bf16 %v1548_v58, %v1548_v58  ;;  %1578 = vst [vmem:[%s10249_s29 + $0x60] sm:$0xff] %v1546_v31  ;;  %v8500_v43 = vpack.c.bf16 %v1546_v31, %v1546_v31  ;;  %v1549_v44 = vadd.f32 %v10156_v57, %v515_v32  ;;  %v8776_v60 = vpop.f32.mrb[18].mxu0 }
 0x115   : > { %v1547_v7 = vadd.f32 %v10156_v57, %v507_v33  ;;  %v1847_v49 = vrot.slane %v1845_v34, 7  ;;  %v1830_v51 = vrot.slane %v1828_v8, 7  ;;  %v528_v53 = vadd.f32 %v8775_v37, %v10215_v20  ;;  %v522_v11 = vpop.f32.mrb[19].mxu0  ;;  %8842 = vmatpush3.bf16.msra.mxu0 %v9617_v9  ;;  %v9622_v57 = vld [vmem:[%s11528_s4 + $0x60] sm:$0xff]   ;;  %v9624_v37 = vld [vmem:[%s11528_s4 + $0x68] sm:$0xff]  }
 0x116   : > { %v520_v59 = vadd.f32 %v10215_v20, %v519_v54  ;;  %v1871_v63 = vshrl.u32 %v8502_v48, 16  ;;  %v1874_v1 = vshll.u32 %v8502_v48, 16  ;;  %v1854_v6 = vshrl.u32 %v8500_v43, 16  ;;  %1581 = vst [vmem:[%s10249_s29 + $0x78] sm:$0xff] %v1549_v44  ;;  %8843 = vmatprep.subr.bf16.mxu0 %v9619_v38 }
 0x117   : > { %v1857_v10 = vshll.u32 %v8500_v43, 16  ;;  %1579 = vst [vmem:[%s10249_s29 + $0x68] sm:$0xff] %v1547_v7  ;;  %v1850_v15 = vor.u32 %v1848_v35, %v1847_v49  ;;  %v1852_v16 = vrot.slane %v1847_v49, 4  ;;  %v1833_v61 = vor.u32 %v1831_v36, %v1830_v51  ;;  %v9598_v26 = vld [vmem:[#allocation2 + $0x30] sm:$0xff]  }
 0x118   : > { %v1835_v14 = vrot.slane %v1830_v51, 4  ;;  %v1873_v45 = vrot.slane %v1871_v63, 7  ;;  %v10390_v21 = vrot.slane %v1854_v6, 7  ;;  %v8503_v2 = vpack.c.bf16 %v1549_v44, %v1549_v44  ;;  %v9597_v27 = vld [vmem:[#allocation2 + $0x24] sm:$0xff]  }
 0x119   : > { %v8501_v25 = vpack.c.bf16 %v1547_v7, %v1547_v7  ;;  %v1851_v9 = vsel %vm10279_vm7, %v1843_v22, %v1850_v15  ;;  %v2117_v28 = vsel %vm10286_vm8, %v1852_v16, %v2116_v39  ;;  %v1834_v29 = vsel %vm10279_vm7, %v1826_v0, %v1833_v61  ;;  %8810 = vmatmul.mubr.bf16.gmra.mrb[36].mxu0 %v9597_v27  ;;  %v2130_v44 = vld [vmem:[#allocation2 + $0x68] sm:$0x1]  ;;  %v2123_v7 = vld [vmem:[#allocation2 + $0x5c] sm:$0x1]  ;;  %v9627_v16 = vld [vmem:[%s11528_s4 + $0x70] sm:$0xff]  }
 0x11a   : > { %v2110_v4 = vsel %vm10286_vm8, %v1835_v14, %v2109_v42  ;;  %2115 = vst [vmem:[#allocation2 + $0x4c] sm:$0xf] %v1851_v9  ;;  %2118 = vst [vmem:[#allocation2 + $0x50] sm:$0x1] %v2117_v28  ;;  %v1876_v18 = vor.u32 %v1874_v1, %v1873_v45  ;;  %v1877_v5 = vrot.slane %v1873_v45, 4  ;;  %v1859_v12 = vor.u32 %v1857_v10, %v10390_v21  ;;  %v8779_v0 = vpop.f32.mrb[20].mxu0 }
 0x11b   : > { %2108 = vst [vmem:[#allocation2 + $0x40] sm:$0xf] %v1834_v29  ;;  %2111 = vst [vmem:[#allocation2 + $0x44] sm:$0x1] %v2110_v4  ;;  %v1860_v22 = vrot.slane %v10390_v21, 4  ;;  %v1879_v58 = vshrl.u32 %v8503_v2, 16  ;;  %8813 = vmatprep.mubr.bf16.mxu0 %v9598_v26  ;;  %8844 = vmatpush3.bf16.msra.mxu0 %v9619_v38  ;;  %v1552_v35 = vadd.f32 %v10237_v40, %v528_v53 }
 0x11c   : > { %v1882_v31 = vshll.u32 %v8503_v2, 16  ;;  %v1862_v62 = vshrl.u32 %v8501_v25, 16  ;;  %v1865_v32 = vshll.u32 %v8501_v25, 16  ;;  %v2127_v33 = vsel %vm10272_vm6, %v1876_v18, %v2126_v52  ;;  %v535_v36 = vpop.f32.mrb[21].mxu0  ;;  %8845 = vmatprep.subr.bf16.mxu0 %v9622_v57  ;;  %v2140_v26 = vld [vmem:[#allocation2 + $0x78] sm:$0xf] }
 0x11d   : > { %v2120_v34 = vsel %vm10272_vm6, %v1859_v12, %v2119_v19  ;;  %v1550_v8 = vadd.f32 %v10237_v40, %v520_v59  ;;  %2128 = vst [vmem:[#allocation2 + $0x60] sm:$0xf] %v2127_v33  ;;  %v1881_v38 = vrot.slane %v1879_v58, 7  ;;  %v531_v42 = vadd.f32 %v8776_v60, %v10215_v20  ;;  %v8780_v43 = vpop.f32.mrb[22].mxu0  ;;  %1584 = vst [vmem:[%s10249_s29 + $0x90] sm:$0xff] %v1552_v35 }
 0x11e   : > { %2121 = vst [vmem:[#allocation2 + $0x54] sm:$0xf] %v2120_v34  ;;  %v1864_v39 = vrot.slane %v1862_v62, 7  ;;  %v523_v48 = vadd.f32 %v10215_v20, %v522_v11  ;;  %v8506_v54 = vpack.c.bf16 %v1552_v35, %v1552_v35  ;;  %v544_v49 = vadd.f32 %v8779_v0, %v10215_v20  ;;  %v538_v53 = vpop.f32.mrb[23].mxu0  ;;  %v2133_v9 = vld [vmem:[#allocation2 + $0x6c] sm:$0xf] }
 0x11f   : > { %1582 = vst [vmem:[%s10249_s29 + $0x80] sm:$0xff] %v1550_v8  ;;  %v8504_v40 = vpack.c.bf16 %v1550_v8, %v1550_v8  ;;  %v536_v51 = vadd.f32 %v10215_v20, %v535_v36  ;;  %v1884_v59 = vor.u32 %v1882_v31, %v1881_v38  ;;  %v1886_v63 = vrot.slane %v1881_v38, 4  ;;  %8846 = vmatpush3.bf16.msra.mxu0 %v9622_v57  ;;  %v9629_v34 = vld [vmem:[%s11528_s4 + $0x78] sm:$0xff]  }
 0x120   : > { %v1867_v1 = vor.u32 %v1865_v32, %v1864_v39  ;;  %v1869_v6 = vrot.slane %v1864_v39, 4  ;;  %v1905_v60 = vshrl.u32 %v8506_v54, 16  ;;  %v1908_v10 = vshll.u32 %v8506_v54, 16  ;;  %8847 = vmatprep.subr.bf16.mxu0 %v9624_v37  ;;  %v2137_v54 = vld [vmem:[#allocation2 + $0x74] sm:$0x1] }
 0x121   : > { %v1888_v11 = vshrl.u32 %v8504_v40, 16  ;;  %v1891_v15 = vshll.u32 %v8504_v40, 16  ;;  %v1885_v61 = vsel %vm10279_vm7, %v1877_v5, %v1884_v59  ;;  %v2131_v14 = vsel %vm10286_vm8, %v1886_v63, %v2130_v44  ;;  %v9603_v27 = vld [vmem:[#allocation2 + $0x48] sm:$0xff]   ;;  %v4551_v44 = vld [vmem:[#allocation2 + $0x24] sm:$0xf] }
 0x122   : > { %v1868_v52 = vsel %vm10279_vm7, %v1860_v22, %v1867_v1  ;;  %v2124_v57 = vsel %vm10286_vm8, %v1869_v6, %v2123_v7  ;;  %v9602_v19 = vld [vmem:[#allocation2 + $0x3c] sm:$0xff]   ;;  %2129 = vst [vmem:[#allocation2 + $0x64] sm:$0xf] %v1885_v61  ;;  %2132 = vst [vmem:[#allocation2 + $0x68] sm:$0x1] %v2131_v14  ;;  %v10432_v45 = vrot.slane %v1905_v60, 7  ;;  %v1553_v2 = vadd.f32 %v10239_v41, %v531_v42 }
 0x123   : > { %2122 = vst [vmem:[#allocation2 + $0x58] sm:$0xf] %v1868_v52  ;;  %2125 = vst [vmem:[#allocation2 + $0x5c] sm:$0x1] %v2124_v57  ;;  %v10434_v21 = vrot.slane %v1888_v11, 7  ;;  %v1551_v25 = vadd.f32 %v10239_v41, %v523_v48  ;;  %v1556_v28 = vadd.f32 %v10243_v46, %v544_v49  ;;  %v1554_v29 = vadd.f32 %v10243_v46, %v536_v51  ;;  %v10442_v5 = vpop.f32.mrb[24].mxu0 }
 0x124   : > { %v547_v4 = vadd.f32 %v8780_v43, %v10215_v20  ;;  %v539_v18 = vadd.f32 %v10215_v20, %v538_v53  ;;  %8814 = vmatmul.mubr.bf16.gmra.mrb[40].mxu0 %v9602_v19  ;;  %v1910_v12 = vor.u32 %v1908_v10, %v10432_v45  ;;  %v1911_v41 = vrot.slane %v10432_v45, 4  ;;  %1585 = vst [vmem:[%s10249_s29 + $0x98] sm:$0xff] %v1553_v2  ;;  %v10450_v46 = vpop.f32.mrb[25].mxu0  ;;  %v2144_v7 = vld [vmem:[#allocation2 + $0x80] sm:$0x1] }
 0x125   : > { %v1893_v22 = vor.u32 %v1891_v15, %v10434_v21  ;;  %v1894_v58 = vrot.slane %v10434_v21, 4  ;;  %1583 = vst [vmem:[%s10249_s29 + $0x88] sm:$0xff] %v1551_v25  ;;  %8817 = vmatprep.mubr.bf16.mxu0 %v9603_v27  ;;  %8848 = vmatpush3.bf16.msra.mxu0 %v9624_v37  ;;  %v8507_v31 = vpack.c.bf16 %v1553_v2, %v1553_v2  ;;  %1588 = vst [vmem:[%s10249_s29 + $0xb0] sm:$0xff] %v1556_v28  ;;  %v10454_v33 = vpop.f32.mrb[26].mxu0  ;;  %v2154_v63 = vld [vmem:[#allocation2 + $0x90] sm:$0xf] }
 0x126   : > { %v8505_v62 = vpack.c.bf16 %v1551_v25, %v1551_v25  ;;  %v8510_v32 = vpack.c.bf16 %v1556_v28, %v1556_v28  ;;  %1586 = vst [vmem:[%s10249_s29 + $0xa0] sm:$0xff] %v1554_v29  ;;  %v8508_v0 = vpack.c.bf16 %v1554_v29, %v1554_v29  ;;  %8849 = vmatprep.subr.bf16.mxu0 %v9627_v16  ;;  %v10465_v38 = vpop.f32.mrb[27].mxu0  ;;  %v4674_v61 = vshrl.u32 %v4551_v44, 16  ;;  %v2147_v2 = vld [vmem:[#allocation2 + $0x84] sm:$0xf] }
 0x127   : > { %v2141_v35 = vsel %vm10272_vm6, %v1910_v12, %v2140_v26  ;;  %v2134_v8 = vsel %vm10272_vm6, %v1893_v22, %v2133_v9  ;;  %v1557_v36 = vadd.f32 %v10245_v47, %v547_v4  ;;  %v1555_v37 = vadd.f32 %v10245_v47, %v539_v18  ;;  %v4554_v29 = vld [vmem:[#allocation2 + $0x30] sm:$0xf] }
 0x128   : > { %2142 = vst [vmem:[#allocation2 + $0x78] sm:$0xf] %v2141_v35  ;;  %2135 = vst [vmem:[#allocation2 + $0x6c] sm:$0xf] %v2134_v8  ;;  %v1913_v39 = vshrl.u32 %v8507_v31, 16  ;;  %v1916_v42 = vshll.u32 %v8507_v31, 16 }
 0x129   : > { %v1896_v48 = vshrl.u32 %v8505_v62, 16  ;;  %v1899_v43 = vshll.u32 %v8505_v62, 16  ;;  %v1939_v40 = vshrl.u32 %v8510_v32, 16  ;;  %v1942_v49 = vshll.u32 %v8510_v32, 16  ;;  %1589 = vst [vmem:[%s10249_s29 + $0xb8] sm:$0xff] %v1557_v36  ;;  %1587 = vst [vmem:[%s10249_s29 + $0xa8] sm:$0xff] %v1555_v37  ;;  %8850 = vmatpush3.bf16.msra.mxu0 %v9627_v16 }
 0x12a   : > { %v1922_v51 = vshrl.u32 %v8508_v0, 16  ;;  %v1925_v53 = vshll.u32 %v8508_v0, 16  ;;  %v1915_v47 = vrot.slane %v1913_v39, 7  ;;  %v8511_v1 = vpack.c.bf16 %v1557_v36, %v1557_v36  ;;  %v9606_v60 = vld [vmem:[#allocation2 + $0x54] sm:$0xff]   ;;  %v9608_v10 = vld [vmem:[#allocation2 + $0x60] sm:$0xff]   ;;  %8851 = vmatprep.subr.bf16.mxu0 %v9629_v34  ;;  %v10475_v25 = vpop.f32.mrb[28].mxu0 }
 0x12b   : > { %v1898_v59 = vrot.slane %v1896_v48, 7  ;;  %v10469_v6 = vpack.c.bf16 %v1555_v37, %v1555_v37  ;;  %v10471_v11 = vrot.slane %v1939_v40, 7  ;;  %v4677_v14 = vshll.u32 %v4551_v44, 16  ;;  %v10481_v4 = vpop.f32.mrb[29].mxu0  ;;  %v4552_v62 = vld [vmem:[#allocation2 + $0x28] sm:$0xf] }
 0x12c   : > { %v10473_v15 = vrot.slane %v1922_v51, 7  ;;  %v1918_v52 = vor.u32 %v1916_v42, %v1915_v47  ;;  %v1920_v57 = vrot.slane %v1915_v47, 4  ;;  %8818 = vmatmul.mubr.bf16.gmra.mrb[44].mxu0 %v9606_v60  ;;  %v4553_v32 = vld [vmem:[#allocation2 + $0x2c] sm:$0x1]  ;;  %v10495_v0 = vpop.f32.mrb[30].mxu0  ;;  %v4676_v36 = vrot.slane %v4674_v61, 4 }
 0x12d   : > { %v1901_v16 = vor.u32 %v1899_v43, %v1898_v59  ;;  %v1903_v19 = vrot.slane %v1898_v59, 4  ;;  %v1944_v27 = vor.u32 %v1942_v49, %v10471_v11  ;;  %v1945_v26 = vrot.slane %v10471_v11, 4  ;;  %8821 = vmatprep.mubr.bf16.mxu0 %v9608_v10  ;;  %8852 = vmatpush3.bf16.msra.mxu0 %v9629_v34  ;;  %v2158_v42 = vld [vmem:[#allocation2 + $0x98] sm:$0x1]  ;;  %v4568_v17 = vld [vmem:[#allocation2 + $0x68] sm:$0x1] }
 0x12e   : > { %v1927_v9 = vor.u32 %v1925_v53, %v10473_v15  ;;  %v1928_v28 = vrot.slane %v10473_v15, 4  ;;  %v1919_v18 = vsel %vm10279_vm7, %v1911_v41, %v1918_v52  ;;  %v2145_v12 = vsel %vm10286_vm8, %v1920_v57, %v2144_v7  ;;  %v4556_v15 = vld [vmem:[#allocation2 + $0x38] sm:$0x1] }
 0x12f   : > { %v1902_v22 = vsel %vm10279_vm7, %v1894_v58, %v1901_v16  ;;  %v2138_v31 = vsel %vm10286_vm8, %v1903_v19, %v2137_v54  ;;  %2143 = vst [vmem:[#allocation2 + $0x7c] sm:$0xf] %v1919_v18  ;;  %2146 = vst [vmem:[#allocation2 + $0x80] sm:$0x1] %v2145_v12  ;;  %v2155_v45 = vsel %vm10272_vm6, %v1944_v27, %v2154_v63  ;;  %v1947_v41 = vshrl.u32 %v8511_v1, 16  ;;  %v10501_v58 = vpop.f32.mrb[31].mxu0 }
 0x130   : > { %2136 = vst [vmem:[#allocation2 + $0x70] sm:$0xf] %v1902_v22  ;;  %2139 = vst [vmem:[#allocation2 + $0x74] sm:$0x1] %v2138_v31  ;;  %v2148_v21 = vsel %vm10272_vm6, %v1927_v9, %v2147_v2  ;;  %v1950_v34 = vshll.u32 %v8511_v1, 16  ;;  %v1930_v35 = vshrl.u32 %v10469_v6, 16 }
 0x131   : > { %2156 = vst [vmem:[#allocation2 + $0x90] sm:$0xf] %v2155_v45  ;;  %2149 = vst [vmem:[#allocation2 + $0x84] sm:$0xf] %v2148_v21  ;;  %v1933_v8 = vshll.u32 %v10469_v6, 16  ;;  %v4679_v37 = vrot.slane %v4677_v14, 5  ;;  %v563_v45 = vadd.f32 %v10454_v33, %v10215_v20 }
 0x132   : > { %v1949_v39 = vrot.slane %v1947_v41, 7  ;;  %v4683_v48 = vshll.u32 %v4552_v62, 16  ;;  %v4687_v43 = vshrl.u32 %v4552_v62, 16  ;;  %v4693_v44 = vshll.u32 %v4553_v32, 16  ;;  %v2151_v54 = vld [vmem:[#allocation2 + $0x8c] sm:$0x1] }
 0x133   : > { %v1932_v7 = vrot.slane %v1930_v35, 7  ;;  %v4680_v40 = vor.u32 %v4679_v37, %v4676_v36  ;;  %v4698_v49 = vshrl.u32 %v4554_v29, 16  ;;  %v4701_v51 = vshll.u32 %v4554_v29, 16  ;;  %v4555_v1 = vld [vmem:[#allocation2 + $0x34] sm:$0xf] }
 0x134   : > { %v1952_v53 = vor.u32 %v1950_v34, %v1949_v39  ;;  %v1954_v47 = vrot.slane %v1949_v39, 4  ;;  %v4685_v59 = vrot.slane %v4683_v48, 5  ;;  %v4689_v63 = vrot.slane %v4687_v43, 4  ;;  %v4557_v21 = vld [vmem:[#allocation2 + $0x3c] sm:$0xf] }
 0x135   : > { %v1935_v60 = vor.u32 %v1933_v8, %v1932_v7  ;;  %v1937_v10 = vrot.slane %v1932_v7, 4  ;;  %v4681_v6 = vrot.slane %v4680_v40, 4  ;;  %v4695_v11 = vrot.slane %v4693_v44, 5 }
 0x136   : > { %v1953_v61 = vsel %vm10279_vm7, %v1945_v26, %v1952_v53  ;;  %v2159_v14 = vsel %vm10286_vm8, %v1954_v47, %v2158_v42  ;;  %v4690_v57 = vor.u32 %v4689_v63, %v4685_v59  ;;  %v4700_v16 = vrot.slane %v4698_v49, 4  ;;  %v9613_v31 = vld [vmem:[#allocation2 + $0x78] sm:$0xff]  }
 0x137   : > { %2157 = vst [vmem:[#allocation2 + $0x94] sm:$0xf] %v1953_v61  ;;  %2160 = vst [vmem:[#allocation2 + $0x98] sm:$0x1] %v2159_v14  ;;  %v1936_v19 = vsel %vm10279_vm7, %v1928_v28, %v1935_v60  ;;  %v2152_v2 = vsel %vm10286_vm8, %v1937_v10, %v2151_v54  ;;  %v4686_v27 = vsel %vm10511_vm11, %v4681_v6, %v4685_v59  ;;  %v4703_v26 = vrot.slane %v4701_v51, 5  ;;  %v9611_v9 = vld [vmem:[#allocation2 + $0x6c] sm:$0xff]  }
 0x138   : > { %2150 = vst [vmem:[#allocation2 + $0x88] sm:$0xf] %v1936_v19  ;;  %2153 = vst [vmem:[#allocation2 + $0x8c] sm:$0x1] %v2152_v2  ;;  %v4691_v29 = vrot.slane %v4690_v57, 4  ;;  %v4707_v18 = vshll.u32 %v4555_v1, 16  ;;  %v560_v32 = vadd.f32 %v10442_v5, %v10215_v20  ;;  %v552_v28 = vadd.f32 %v10215_v20, %v10450_v46  ;;  %8822 = vmatmul.mubr.bf16.gmra.mrb[48].mxu0 %v9611_v9 }
 0x139   : > { %v4711_v12 = vshrl.u32 %v4555_v1, 16  ;;  %v4717_v22 = vshll.u32 %v4556_v15, 16  ;;  %v4704_v62 = vor.u32 %v4703_v26, %v4700_v16  ;;  %8825 = vmatprep.mubr.bf16.mxu0 %v9613_v31  ;;  %v1561_v33 = vadd.f32 %v10255_v24, %v563_v45  ;;  %v4558_v51 = vld [vmem:[#allocation2 + $0x40] sm:$0xf]  ;;  %v2168_v1 = vld [vmem:[#allocation2 + $0xa8] sm:$0xf] }
 0x13a   : > { %v4696_v41 = vsel %vm10511_vm11, %v4691_v29, %v4695_v11  ;;  %v4709_v34 = vrot.slane %v4707_v18, 5  ;;  %v1560_v37 = vadd.f32 %v10253_v50, %v560_v32  ;;  %v1558_v46 = vadd.f32 %v10253_v50, %v552_v28  ;;  %v10546_v15 = vld [vmem:[%s11528_s4 + $0x80] sm:$0xff]   ;;  %v9607_v57 = vld [vmem:[%s11528_s4 + $0x148] sm:$0xff]   ;;  %v2161_v2 = vld [vmem:[#allocation2 + $0x9c] sm:$0xf] }
 0x13b   : > { %v4713_v35 = vrot.slane %v4711_v12, 4  ;;  %v4719_v8 = vrot.slane %v4717_v22, 5  ;;  %v8264_v36 = vcombine.low %v4686_v27, %v4696_v41  ;;  %v4705_v5 = vrot.slane %v4704_v62, 4  ;;  %1593 = vst [vmem:[%s10249_s29 + $0xd8] sm:$0xff] %v1561_v33  ;;  %8885 = vmatprep.subr.bf16.mxu0 %v10546_v15  ;;  %v2172_v62 = vld [vmem:[#allocation2 + $0xb0] sm:$0x1] }
 0x13c   : > { %v555_v42 = vadd.f32 %v10215_v20, %v10465_v38  ;;  %v4722_v48 = vshrl.u32 %v4557_v21, 16  ;;  %1592 = vst [vmem:[%s10249_s29 + $0xd0] sm:$0xff] %v1560_v37  ;;  %v8514_v44 = vpack.c.bf16 %v1560_v37, %v1560_v37  ;;  %1590 = vst [vmem:[%s10249_s29 + $0xc0] sm:$0xff] %v1558_v46  ;;  %v8512_v7 = vpack.c.bf16 %v1558_v46, %v1558_v46  ;;  %v2165_v32 = vld [vmem:[#allocation2 + $0xa4] sm:$0x1] }
 0x13d   : > { %v4714_v39 = vor.u32 %v4713_v35, %v4709_v34  ;;  %9001 = vmatprep.mubr.bf16.mxu1 %v8264_v36  ;;  %v4710_v43 = vsel %vm10511_vm11, %v4705_v5, %v4709_v34  ;;  %v4725_v54 = vshll.u32 %v4557_v21, 16  ;;  %v8515_v50 = vpack.c.bf16 %v1561_v33, %v1561_v33  ;;  %v9703_v28 = vld [vmem:[%s11528_s4 + $0x140] sm:$0xff]   ;;  %v9610_v33 = vld [vmem:[%s11528_s4 + $0x150] sm:$0xff]  }
 0x13e   : > { %v1559_v49 = vadd.f32 %v10255_v24, %v555_v42  ;;  %v4724_v53 = vrot.slane %v4722_v48, 4  ;;  %v1973_v47 = vshrl.u32 %v8514_v44, 16  ;;  %v1976_v20 = vshll.u32 %v8514_v44, 16  ;;  %v9618_v19 = vld [vmem:[#allocation2 + $0x90] sm:$0xff]   ;;  %v4559_v34 = vld [vmem:[#allocation2 + $0x44] sm:$0x1] }
 0x13f   : > { %v4715_v40 = vrot.slane %v4714_v39, 4  ;;  %v1956_v38 = vshrl.u32 %v8512_v7, 16  ;;  %v1959_v59 = vshll.u32 %v8512_v7, 16  ;;  %v1981_v60 = vshrl.u32 %v8515_v50, 16  ;;  %v9616_v11 = vld [vmem:[#allocation2 + $0x84] sm:$0xff]  }
 0x140   : > { %v1984_v10 = vshll.u32 %v8515_v50, 16  ;;  %1591 = vst [vmem:[%s10249_s29 + $0xc8] sm:$0xff] %v1559_v49  ;;  %v8513_v6 = vpack.c.bf16 %v1559_v49, %v1559_v49  ;;  %v1975_v61 = vrot.slane %v1973_v47, 7  ;;  %v4727_v16 = vrot.slane %v4725_v54, 5  ;;  %8826 = vmatmul.mubr.bf16.gmra.mrb[52].mxu0 %v9616_v11  ;;  %v4561_v39 = vld [vmem:[#allocation2 + $0x4c] sm:$0xf] }
 0x141   : > { %v4720_v63 = vsel %vm10511_vm11, %v4715_v40, %v4719_v8  ;;  %v1958_v14 = vrot.slane %v1956_v38, 7  ;;  %v1983_v27 = vrot.slane %v1981_v60, 7  ;;  %v4731_v29 = vshll.u32 %v4558_v51, 16  ;;  %8829 = vmatprep.mubr.bf16.mxu0 %v9618_v19  ;;  %v4560_v8 = vld [vmem:[#allocation2 + $0x48] sm:$0xf]  ;;  %v9615_v60 = vld [vmem:[%s11528_s4 + $0x158] sm:$0xff]  }
 0x142   : > { %v8265_v24 = vcombine.low %v4710_v43, %v4720_v63  ;;  %v1964_v26 = vshrl.u32 %v8513_v6, 16  ;;  %v1967_v9 = vshll.u32 %v8513_v6, 16  ;;  %v1978_v18 = vor.u32 %v1976_v20, %v1975_v61  ;;  %v4562_v50 = vld [vmem:[#allocation2 + $0x50] sm:$0x1] }
 0x143   : > { %v1979_v12 = vrot.slane %v1975_v61, 4  ;;  %v1961_v22 = vor.u32 %v1959_v59, %v1958_v14  ;;  %v1962_v31 = vrot.slane %v1958_v14, 4  ;;  %v1986_v45 = vor.u32 %v1984_v10, %v1983_v27  ;;  %v9704_v14 = vld [vmem:[%s11527_s3] ss:$0 sm:$0xff] }
 0x144   : > { %9002 = vmatmul.mubr.bf16.vlgmr.msra.gmra.mrb[0].mxu1 %v8265_v24  ;;  %v1988_v21 = vrot.slane %v1983_v27, 4  ;;  %v1966_v41 = vrot.slane %v1964_v26, 7  ;;  %v4728_v35 = vor.u32 %v4727_v16, %v4724_v53  ;;  %v2169_v36 = vsel %vm10272_vm6, %v1978_v18, %v2168_v1 }
 0x145   : > { %9030 = vmatpush3.bf16.msra.mxu1 %v9703_v28  ;;  %v2162_v5 = vsel %vm10272_vm6, %v1961_v22, %v2161_v2  ;;  %v4733_v37 = vrot.slane %v4731_v29, 5  ;;  %v4735_v46 = vshrl.u32 %v4558_v51, 16  ;;  %2170 = vst [vmem:[#allocation2 + $0xa8] sm:$0xf] %v2169_v36  ;;  %v1987_v42 = vsel %vm10279_vm7, %v1979_v12, %v1986_v45  ;;  %v4563_v29 = vld [vmem:[#allocation2 + $0x54] sm:$0xf] }
 0x146   : > { %9031 = vmatprep.subr.bf16.mxu1 %v9607_v57  ;;  %2163 = vst [vmem:[#allocation2 + $0x9c] sm:$0xf] %v2162_v5  ;;  %v2173_v48 = vsel %vm10286_vm8, %v1988_v21, %v2172_v62  ;;  %v1969_v43 = vor.u32 %v1967_v9, %v1966_v41  ;;  %v1971_v44 = vrot.slane %v1966_v41, 4  ;;  %2171 = vst [vmem:[#allocation2 + $0xac] sm:$0xf] %v1987_v42  ;;  %v4729_v7 = vrot.slane %v4728_v35, 4 }
 0x147   : > { %2174 = vst [vmem:[#allocation2 + $0xb0] sm:$0x1] %v2173_v48  ;;  %v4737_v54 = vrot.slane %v4735_v46, 4  ;;  %v4741_v40 = vshll.u32 %v4559_v34, 16  ;;  %v4746_v49 = vshrl.u32 %v4560_v8, 16  ;;  %v4749_v47 = vshll.u32 %v4560_v8, 16 }
 0x148   : > { %v1970_v51 = vsel %vm10279_vm7, %v1962_v31, %v1969_v43  ;;  %v2166_v53 = vsel %vm10286_vm8, %v1971_v44, %v2165_v32  ;;  %v4755_v20 = vshll.u32 %v4561_v39, 16  ;;  %v4734_v38 = vsel %vm10511_vm11, %v4729_v7, %v4733_v37  ;;  %v2182_v42 = vld [vmem:[#allocation2 + $0xc0] sm:$0xf]  ;;  %v2175_v48 = vld [vmem:[#allocation2 + $0xb4] sm:$0xf] }
 0x149   : > { %9032 = vmatpush3.bf16.msra.mxu1 %v9607_v57  ;;  %2164 = vst [vmem:[#allocation2 + $0xa0] sm:$0xf] %v1970_v51  ;;  %2167 = vst [vmem:[#allocation2 + $0xa4] sm:$0x1] %v2166_v53  ;;  %v4738_v59 = vor.u32 %v4737_v54, %v4733_v37  ;;  %v4743_v63 = vrot.slane %v4741_v40, 5  ;;  %v4748_v1 = vrot.slane %v4746_v49, 4  ;;  %v576_v57 = vadd.f32 %v9704_v14, %v10475_v25 }
 0x14a   : > { %9033 = vmatprep.subr.bf16.mxu1 %v9610_v33  ;;  %v4751_v10 = vrot.slane %v4749_v47, 5  ;;  %v4757_v6 = vrot.slane %v4755_v20, 5  ;;  %v4759_v11 = vshrl.u32 %v4561_v39, 16  ;;  %v4765_v24 = vshll.u32 %v4562_v50, 16  ;;  %v9625_v39 = vld [vmem:[%s11528_s4 + $0x168] sm:$0xff]  }
 0x14b   : > { %v4739_v61 = vrot.slane %v4738_v59, 4  ;;  %v568_v16 = vadd.f32 %v9704_v14, %v10481_v4  ;;  %v579_v19 = vadd.f32 %v9704_v14, %v10495_v0  ;;  %v571_v9 = vadd.f32 %v9704_v14, %v10501_v58  ;;  %v9620_v0 = vld [vmem:[%s11528_s4 + $0x160] sm:$0xff]   ;;  %v2186_v49 = vld [vmem:[#allocation2 + $0xc8] sm:$0x1]  ;;  %v4564_v20 = vld [vmem:[#allocation2 + $0x58] sm:$0xf] }
 0x14c   : > { %v4752_v2 = vor.u32 %v4751_v10, %v4748_v1  ;;  %v4761_v27 = vrot.slane %v4759_v11, 4  ;;  %v4767_v26 = vrot.slane %v4765_v24, 5  ;;  %v1564_v12 = vadd.f32 %v10259_v55, %v576_v57  ;;  %v9628_v11 = vld [vmem:[%s11528_s4 + $0x170] sm:$0xff]  }
 0x14d   : > { %9034 = vmatpush3.bf16.msra.mxu1 %v9610_v33  ;;  %v4744_v18 = vsel %vm10511_vm11, %v4739_v61, %v4743_v63  ;;  %v1562_v25 = vadd.f32 %v10259_v55, %v568_v16  ;;  %v1565_v4 = vadd.f32 %v10261_v56, %v579_v19  ;;  %v1563_v62 = vadd.f32 %v10261_v56, %v571_v9  ;;  %v9623_v46 = vld [vmem:[#allocation2 + $0xa8] sm:$0xff]   ;;  %v4565_v16 = vld [vmem:[#allocation2 + $0x5c] sm:$0x1]  ;;  %v4566_v9 = vld [vmem:[#allocation2 + $0x60] sm:$0xf] }
 0x14e   : > { %9035 = vmatprep.subr.bf16.mxu1 %v9615_v60  ;;  %v8266_v22 = vcombine.low %v4734_v38, %v4744_v18  ;;  %v4753_v58 = vrot.slane %v4752_v2, 4  ;;  %v4762_v31 = vor.u32 %v4761_v27, %v4757_v6  ;;  %1596 = vst [vmem:[%s10249_s29 + $0xf0] sm:$0xff] %v1564_v12  ;;  %v8518_v32 = vpack.c.bf16 %v1564_v12, %v1564_v12 }
 0x14f   : > { %1594 = vst [vmem:[%s10249_s29 + $0xe0] sm:$0xff] %v1562_v25  ;;  %v8516_v28 = vpack.c.bf16 %v1562_v25, %v1562_v25  ;;  %1597 = vst [vmem:[%s10249_s29 + $0xf8] sm:$0xff] %v1565_v4  ;;  %v8519_v45 = vpack.c.bf16 %v1565_v4, %v1565_v4  ;;  %v4770_v55 = vshrl.u32 %v4563_v29, 16  ;;  %v8517_v34 = vpack.c.bf16 %v1563_v62, %v1563_v62 }
 0x150   : > { %9005 = vmatprep.mubr.bf16.mxu1 %v8266_v22  ;;  %v4758_v21 = vsel %vm10511_vm11, %v4753_v58, %v4757_v6  ;;  %v4763_v41 = vrot.slane %v4762_v31, 4  ;;  %1595 = vst [vmem:[%s10249_s29 + $0xe8] sm:$0xff] %v1563_v62  ;;  %v4773_v35 = vshll.u32 %v4563_v29, 16  ;;  %v9621_v8 = vld [vmem:[#allocation2 + $0x9c] sm:$0xff]   ;;  %v2007_v36 = vshrl.u32 %v8518_v32, 16 }
 0x151   : > { %9036 = vmatpush3.bf16.msra.mxu1 %v9615_v60  ;;  %v2010_v5 = vshll.u32 %v8518_v32, 16  ;;  %v1990_v56 = vshrl.u32 %v8516_v28, 16  ;;  %v1993_v37 = vshll.u32 %v8516_v28, 16  ;;  %v2015_v43 = vshrl.u32 %v8519_v45, 16  ;;  %8830 = vmatmul.mubr.bf16.gmra.mrb[56].mxu0 %v9621_v8  ;;  %v2179_v6 = vld [vmem:[#allocation2 + $0xbc] sm:$0x1] }
 0x152   : > { %9037 = vmatprep.subr.bf16.mxu1 %v9620_v0  ;;  %v4768_v33 = vsel %vm10511_vm11, %v4763_v41, %v4767_v26  ;;  %v2018_v44 = vshll.u32 %v8519_v45, 16  ;;  %v1998_v7 = vshrl.u32 %v8517_v34, 16  ;;  %v2009_v40 = vrot.slane %v2007_v36, 7  ;;  %8833 = vmatprep.mubr.bf16.mxu0 %v9623_v46  ;;  %v4567_v29 = vld [vmem:[#allocation2 + $0x64] sm:$0xf]  ;;  %v9630_v62 = vld [vmem:[%s11528_s4 + $0x178] sm:$0xff]  }
 0x153   : > { %v8267_v54 = vcombine.low %v4758_v21, %v4768_v33  ;;  %v1992_v50 = vrot.slane %v1990_v56, 7  ;;  %v2001_v51 = vshll.u32 %v8517_v34, 16  ;;  %v2017_v53 = vrot.slane %v2015_v43, 7  ;;  %v4569_v45 = vld [vmem:[#allocation2 + $0x6c] sm:$0xf] }
 0x154   : > { %v2000_v47 = vrot.slane %v1998_v7, 7  ;;  %v4772_v38 = vrot.slane %v4770_v55, 4  ;;  %v4775_v59 = vrot.slane %v4773_v35, 5  ;;  %v2012_v63 = vor.u32 %v2010_v5, %v2009_v40  ;;  %v4570_v35 = vld [vmem:[#allocation2 + $0x70] sm:$0xf] }
 0x155   : > { %9038 = vmatpush3.bf16.msra.mxu1 %v9620_v0  ;;  %v2013_v1 = vrot.slane %v2009_v40, 4  ;;  %v1995_v60 = vor.u32 %v1993_v37, %v1992_v50  ;;  %v1996_v10 = vrot.slane %v1992_v50, 4  ;;  %v2020_v24 = vor.u32 %v2018_v44, %v2017_v53  ;;  %v4571_v37 = vld [vmem:[#allocation2 + $0x74] sm:$0x1]  ;;  %v4572_v40 = vld [vmem:[#allocation2 + $0x78] sm:$0xf] }
 0x156   : > { %9006 = vmatmul.mubr.bf16.gmra.mrb[4].mxu1 %v8267_v54  ;;  %9039 = vmatprep.subr.bf16.mxu1 %v9625_v39  ;;  %v2022_v61 = vrot.slane %v2017_v53, 4  ;;  %v2003_v14 = vor.u32 %v2001_v51, %v2000_v47  ;;  %v2005_v57 = vrot.slane %v2000_v47, 4  ;;  %v2183_v19 = vsel %vm10272_vm6, %v2012_v63, %v2182_v42  ;;  %v4573_v47 = vld [vmem:[#allocation2 + $0x7c] sm:$0xf] }
 0x157   : > { %v2176_v2 = vsel %vm10272_vm6, %v1995_v60, %v2175_v48  ;;  %v4776_v27 = vor.u32 %v4775_v59, %v4772_v38  ;;  %v4779_v26 = vshll.u32 %v4564_v20, 16  ;;  %2184 = vst [vmem:[#allocation2 + $0xc0] sm:$0xf] %v2183_v19  ;;  %v2021_v18 = vsel %vm10279_vm7, %v2013_v1, %v2020_v24  ;;  %v10625_v48 = vld [vmem:[%s11528_s4 + $0x180] sm:$0xff]  }
 0x158   : > { %2177 = vst [vmem:[#allocation2 + $0xb4] sm:$0xf] %v2176_v2  ;;  %v2187_v12 = vsel %vm10286_vm8, %v2022_v61, %v2186_v49  ;;  %v2004_v25 = vsel %vm10279_vm7, %v1996_v10, %v2003_v14  ;;  %v2180_v4 = vsel %vm10286_vm8, %v2005_v57, %v2179_v6  ;;  %2185 = vst [vmem:[#allocation2 + $0xc4] sm:$0xf] %v2021_v18  ;;  %v4783_v58 = vshrl.u32 %v4564_v20, 16 }
 0x159   : > { %9040 = vmatpush3.bf16.msra.mxu1 %v9625_v39  ;;  %2188 = vst [vmem:[#allocation2 + $0xc8] sm:$0x1] %v2187_v12  ;;  %2178 = vst [vmem:[#allocation2 + $0xb8] sm:$0xf] %v2004_v25  ;;  %v4777_v0 = vrot.slane %v4776_v27, 4  ;;  %v4781_v22 = vrot.slane %v4779_v26, 5 }
 0x15a   : > { %2181 = vst [vmem:[#allocation2 + $0xbc] sm:$0x1] %v2180_v4  ;;  %v4789_v31 = vshll.u32 %v4565_v16, 16  ;;  %9041 = vmatprep.subr.bf16.mxu1 %v9628_v11  ;;  %v4794_v23 = vshrl.u32 %v4566_v9, 16  ;;  %v4797_v32 = vshll.u32 %v4566_v9, 16  ;;  %v4803_v28 = vshll.u32 %v4567_v29, 16 }
 0x15b   : > { %v4807_v30 = vshrl.u32 %v4567_v29, 16  ;;  %v4782_v55 = vsel %vm10511_vm11, %v4777_v0, %v4781_v22  ;;  %v4785_v21 = vrot.slane %v4783_v58, 4  ;;  %v4813_v34 = vshll.u32 %v4568_v17, 16  ;;  %v4574_v6 = vld [vmem:[#allocation2 + $0x80] sm:$0x1] }
 0x15c   : > { %v4791_v41 = vrot.slane %v4789_v31, 5  ;;  %v4796_v8 = vrot.slane %v4794_v23, 4  ;;  %v4799_v36 = vrot.slane %v4797_v32, 5  ;;  %v4805_v5 = vrot.slane %v4803_v28, 5  ;;  %v4575_v19 = vld [vmem:[#allocation2 + $0x84] sm:$0xf] }
 0x15d   : > { %v4809_v56 = vrot.slane %v4807_v30, 4  ;;  %9042 = vmatpush3.bf16.msra.mxu1 %v9628_v11  ;;  %v4786_v46 = vor.u32 %v4785_v21, %v4781_v22  ;;  %v4815_v39 = vrot.slane %v4813_v34, 5  ;;  %v4818_v33 = vshrl.u32 %v4569_v45, 16  ;;  %v4576_v4 = vld [vmem:[#allocation2 + $0x88] sm:$0xf] }
 0x15e   : > { %v4821_v42 = vshll.u32 %v4569_v45, 16  ;;  %9043 = vmatprep.subr.bf16.mxu1 %v9630_v62  ;;  %v4800_v43 = vor.u32 %v4799_v36, %v4796_v8  ;;  %v4827_v7 = vshll.u32 %v4570_v35, 16  ;;  %v4831_v54 = vshrl.u32 %v4570_v35, 16  ;;  %v4577_v22 = vld [vmem:[#allocation2 + $0x8c] sm:$0x1] }
 0x15f   : > { %v4810_v44 = vor.u32 %v4809_v56, %v4805_v5  ;;  %v4787_v50 = vrot.slane %v4786_v46, 4  ;;  %v4820_v49 = vrot.slane %v4818_v33, 4  ;;  %v4837_v53 = vshll.u32 %v4571_v37, 16  ;;  %v4578_v30 = vld [vmem:[#allocation2 + $0x90] sm:$0xf] }
 0x160   : > { %v4823_v51 = vrot.slane %v4821_v42, 5  ;;  %v4801_v20 = vrot.slane %v4800_v43, 4  ;;  %v4829_v59 = vrot.slane %v4827_v7, 5  ;;  %v4833_v63 = vrot.slane %v4831_v54, 4  ;;  %v9626_v24 = vld [vmem:[#allocation2 + $0xb4] sm:$0xff]  }
 0x161   : > { %v4811_v38 = vrot.slane %v4810_v44, 4  ;;  %9044 = vmatpush3.bf16.msra.mxu1 %v9630_v62  ;;  %v4792_v1 = vsel %vm10511_vm11, %v4787_v50, %v4791_v41  ;;  %v4839_v10 = vrot.slane %v4837_v53, 5  ;;  %v4842_v11 = vshrl.u32 %v4572_v40, 16  ;;  %8834 = vmatmul.mubr.bf16.gmra.mrb[60].mxu0 %v9626_v24  ;;  %v4579_v37 = vld [vmem:[#allocation2 + $0x94] sm:$0xf] }
 0x162   : > { %v4824_v60 = vor.u32 %v4823_v51, %v4820_v49  ;;  %9077 = vmatprep.subr.bf16.mxu1 %v10625_v48  ;;  %v8268_v61 = vcombine.low %v4782_v55, %v4792_v1  ;;  %v4806_v14 = vsel %vm10511_vm11, %v4801_v20, %v4805_v5  ;;  %v4834_v16 = vor.u32 %v4833_v63, %v4829_v59  ;;  %v4580_v7 = vld [vmem:[#allocation2 + $0x98] sm:$0x1]  ;;  %v4581_v51 = vld [vmem:[#allocation2 + $0x9c] sm:$0xf] }
 0x163   : > { %v4816_v57 = vsel %vm10511_vm11, %v4811_v38, %v4815_v39  ;;  %v4844_v26 = vrot.slane %v4842_v11, 4  ;;  %v4845_v9 = vshll.u32 %v4572_v40, 16  ;;  %v4851_v18 = vshll.u32 %v4573_v47, 16 }
 0x164   : > { %v8269_v2 = vcombine.low %v4806_v14, %v4816_v57  ;;  %v4825_v27 = vrot.slane %v4824_v60, 4  ;;  %9009 = vmatprep.mubr.bf16.mxu1 %v8268_v61  ;;  %v4835_v29 = vrot.slane %v4834_v16, 4  ;;  %v4855_v12 = vshrl.u32 %v4573_v47, 16  ;;  %v4584_v14 = vld [vmem:[#allocation2 + $0xa8] sm:$0xf] }
 0x165   : > { %v4861_v25 = vshll.u32 %v4574_v6, 16  ;;  %v4847_v0 = vrot.slane %v4845_v9, 5  ;;  %v4866_v58 = vshrl.u32 %v4575_v19, 16  ;;  %v4869_v31 = vshll.u32 %v4575_v19, 16  ;;  %v4583_v19 = vld [vmem:[#allocation2 + $0xa4] sm:$0x1] }
 0x166   : > { %9010 = vmatmul.mubr.bf16.gmra.mrb[8].mxu1 %v8269_v2  ;;  %v4830_v17 = vsel %vm10511_vm11, %v4825_v27, %v4829_v59  ;;  %v4840_v62 = vsel %vm10511_vm11, %v4835_v29, %v4839_v10  ;;  %v4853_v23 = vrot.slane %v4851_v18, 5  ;;  %v4857_v32 = vrot.slane %v4855_v12, 4  ;;  %v4582_v59 = vld [vmem:[#allocation2 + $0xa0] sm:$0xf]  ;;  %v4585_v12 = vld [vmem:[#allocation2 + $0xac] sm:$0xf] }
 0x167   : > { %v4863_v28 = vrot.slane %v4861_v25, 5  ;;  %v8270_v45 = vcombine.low %v4830_v17, %v4840_v62  ;;  %v4848_v55 = vor.u32 %v4847_v0, %v4844_v26  ;;  %v4868_v21 = vrot.slane %v4866_v58, 4 }
 0x168   : > { %v4871_v41 = vrot.slane %v4869_v31, 5  ;;  %v4858_v34 = vor.u32 %v4857_v32, %v4853_v23  ;;  %v4875_v35 = vshll.u32 %v4576_v4, 16  ;;  %v4879_v8 = vshrl.u32 %v4576_v4, 16  ;;  %v4586_v32 = vld [vmem:[#allocation2 + $0xb0] sm:$0x1] }
 0x169   : > { %v4885_v36 = vshll.u32 %v4577_v22, 16  ;;  %9013 = vmatprep.mubr.bf16.mxu1 %v8270_v45  ;;  %v4849_v5 = vrot.slane %v4848_v55, 4  ;;  %v4890_v46 = vshrl.u32 %v4578_v30, 16  ;;  %v4893_v39 = vshll.u32 %v4578_v30, 16 }
 0x16a   : > { %v4872_v56 = vor.u32 %v4871_v41, %v4868_v21  ;;  %v4859_v33 = vrot.slane %v4858_v34, 4  ;;  %v4877_v42 = vrot.slane %v4875_v35, 5  ;;  %v4881_v43 = vrot.slane %v4879_v8, 4  ;;  %v2678_v35 = vld [vmem:[#allocation2 + $0x4] sm:$0xf] }
 0x16b   : > { %v4887_v44 = vrot.slane %v4885_v36, 5  ;;  %v4854_v54 = vsel %vm10511_vm11, %v4849_v5, %v4853_v23  ;;  %v4892_v50 = vrot.slane %v4890_v46, 4  ;;  %v4895_v49 = vrot.slane %v4893_v39, 5 }
 0x16c   : > { %v4873_v40 = vrot.slane %v4872_v56, 4  ;;  %v4864_v53 = vsel %vm10511_vm11, %v4859_v33, %v4863_v28  ;;  %v4882_v47 = vor.u32 %v4881_v43, %v4877_v42  ;;  %v4899_v20 = vshll.u32 %v4579_v37, 16 }
 0x16d   : > { %v4903_v38 = vshrl.u32 %v4579_v37, 16  ;;  %v8271_v63 = vcombine.low %v4854_v54, %v4864_v53  ;;  %v4896_v60 = vor.u32 %v4895_v49, %v4892_v50  ;;  %v4909_v10 = vshll.u32 %v4580_v7, 16 }
 0x16e   : > { %v4878_v1 = vsel %vm10511_vm11, %v4873_v40, %v4877_v42  ;;  %v4883_v6 = vrot.slane %v4882_v47, 4  ;;  %v4901_v11 = vrot.slane %v4899_v20, 5  ;;  %v4914_v61 = vshrl.u32 %v4581_v51, 16  ;;  %v2680_v40 = vld [vmem:[#allocation2 + $0xc] sm:$0xf] }
 0x16f   : > { %v4905_v24 = vrot.slane %v4903_v38, 4  ;;  %9014 = vmatmul.mubr.bf16.gmra.mrb[12].mxu1 %v8271_v63  ;;  %v4897_v57 = vrot.slane %v4896_v60, 4  ;;  %v4911_v16 = vrot.slane %v4909_v10, 5  ;;  %v4917_v2 = vshll.u32 %v4581_v51, 16  ;;  %v2681_v47 = vld [vmem:[#allocation2 + $0x10] sm:$0xf] }
 0x170   : > { %v4923_v27 = vshll.u32 %v4582_v59, 16  ;;  %v4888_v26 = vsel %vm10511_vm11, %v4883_v6, %v4887_v44  ;;  %v4916_v29 = vrot.slane %v4914_v61, 4  ;;  %v4927_v18 = vshrl.u32 %v4582_v59, 16  ;;  %v2679_v44 = vld [vmem:[#allocation2 + $0x8] sm:$0x1] }
 0x171   : > { %v4906_v9 = vor.u32 %v4905_v24, %v4901_v11  ;;  %v8272_v25 = vcombine.low %v4878_v1, %v4888_v26  ;;  %v4902_v4 = vsel %vm10511_vm11, %v4897_v57, %v4901_v11  ;;  %v4919_v17 = vrot.slane %v4917_v2, 5  ;;  %v2682_v24 = vld [vmem:[#allocation2 + $0x14] sm:$0x1] }
 0x172   : > { %v4925_v0 = vrot.slane %v4923_v27, 5  ;;  %v4929_v58 = vrot.slane %v4927_v18, 4  ;;  %v4933_v31 = vshll.u32 %v4583_v19, 16  ;;  %v4938_v62 = vshrl.u32 %v4584_v14, 16  ;;  %v2684_v27 = vld [vmem:[#allocation2 + $0x1c] sm:$0xf] }
 0x173   : > { %v4907_v22 = vrot.slane %v4906_v9, 4  ;;  %9017 = vmatprep.mubr.bf16.mxu1 %v8272_v25  ;;  %v4920_v23 = vor.u32 %v4919_v17, %v4916_v29  ;;  %v4941_v28 = vshll.u32 %v4584_v14, 16  ;;  %v4947_v30 = vshll.u32 %v4585_v12, 16  ;;  %v2683_v14 = vld [vmem:[#allocation2 + $0x18] sm:$0xf] }
 0x174   : > { %v4951_v45 = vshrl.u32 %v4585_v12, 16  ;;  %v4930_v21 = vor.u32 %v4929_v58, %v4925_v0  ;;  %v4935_v41 = vrot.slane %v4933_v31, 5  ;;  %v4940_v34 = vrot.slane %v4938_v62, 4 }
 0x175   : > { %v4912_v55 = vsel %vm10511_vm11, %v4907_v22, %v4911_v16  ;;  %v4921_v36 = vrot.slane %v4920_v23, 4  ;;  %v4943_v5 = vrot.slane %v4941_v28, 5  ;;  %v4949_v56 = vrot.slane %v4947_v30, 5  ;;  %v4587_v23 = vld [vmem:[#allocation2 + $0xb4] sm:$0xf] }
 0x176   : > { %v8273_v8 = vcombine.low %v4902_v4, %v4912_v55  ;;  %v4931_v37 = vrot.slane %v4930_v21, 4  ;;  %v4953_v46 = vrot.slane %v4951_v45, 4  ;;  %v4957_v39 = vshll.u32 %v4586_v32, 16  ;;  %v2685_v4 = vld [vmem:[#allocation2 + $0x20] sm:$0x1] }
 0x177   : > { %v2767_v33 = vor.u32 %v10317_v13, %v10315_v3  ;;  %v4926_v42 = vsel %vm10511_vm11, %v4921_v36, %v4925_v0  ;;  %v4944_v43 = vor.u32 %v4943_v5, %v4940_v34  ;;  %v2770_v7 = vshll.u32 %v2678_v35, 16  ;;  %v4588_v55 = vld [vmem:[#allocation2 + $0xb8] sm:$0xf] }
 0x178   : > { %9018 = vmatmul.mubr.bf16.gmra.mrb[16].mxu1 %v8273_v8  ;;  %v2774_v54 = vshrl.u32 %v2678_v35, 16  ;;  %v4936_v50 = vsel %vm10511_vm11, %v4931_v37, %v4935_v41  ;;  %v4954_v49 = vor.u32 %v4953_v46, %v4949_v56  ;;  %v4959_v51 = vrot.slane %v4957_v39, 5 }
 0x179   : > { %v2768_v53 = vrot.slane %v2767_v33, 4  ;;  %v8274_v20 = vcombine.low %v4926_v42, %v4936_v50  ;;  %v4945_v38 = vrot.slane %v4944_v43, 4  ;;  %v2772_v59 = vrot.slane %v2770_v7, 5  ;;  %v4589_v33 = vld [vmem:[#allocation2 + $0xbc] sm:$0x1] }
 0x17a   : > { %v2776_v3 = vrot.slane %v2774_v54, 4  ;;  %v4955_v13 = vrot.slane %v4954_v49, 4  ;;  %v2780_v63 = vshll.u32 %v2679_v44, 16  ;;  %v2785_v1 = vshrl.u32 %v2680_v40, 16 }
 0x17b   : > { %v2788_v60 = vshll.u32 %v2680_v40, 16  ;;  %9021 = vmatprep.mubr.bf16.mxu1 %v8274_v20  ;;  %v4950_v10 = vsel %vm10511_vm11, %v4945_v38, %v4949_v56  ;;  %v2773_v6 = vsel %vm10511_vm11, %v2768_v53, %v2772_v59  ;;  %v2794_v61 = vshll.u32 %v2681_v47, 16  ;;  %v4590_v40 = vld [vmem:[#allocation2 + $0xc0] sm:$0xf] }
 0x17c   : > { %v2777_v11 = vor.u32 %v2776_v3, %v2772_v59  ;;  %v4960_v57 = vsel %vm10511_vm11, %v4955_v13, %v4959_v51  ;;  %v2782_v16 = vrot.slane %v2780_v63, 5  ;;  %v2787_v19 = vrot.slane %v2785_v1, 4  ;;  %v4591_v3 = vld [vmem:[#allocation2 + $0xc4] sm:$0xf]  ;;  %v9636_v13 = vld [vmem:[%s11528_s4 + $0x88] sm:$0xff]  }
 0x17d   : > { %v2790_v2 = vrot.slane %v2788_v60, 5  ;;  %v8275_v26 = vcombine.low %v4950_v10, %v4960_v57  ;;  %v2796_v29 = vrot.slane %v2794_v61, 5  ;;  %v2798_v18 = vshrl.u32 %v2681_v47, 16  ;;  %v4592_v60 = vld [vmem:[#allocation2 + $0xc8] sm:$0x1] }
 0x17e   : > { %v2778_v9 = vrot.slane %v2777_v11, 4  ;;  %v2804_v25 = vshll.u32 %v2682_v24, 16  ;;  %v2809_v17 = vshrl.u32 %v2683_v14, 16  ;;  %v2812_v0 = vshll.u32 %v2683_v14, 16  ;;  %v5363_v11 = vld [vmem:[#allocation2 + $0xc] sm:$0xe] }
 0x17f   : > { %v2791_v12 = vor.u32 %v2790_v2, %v2787_v19  ;;  %v2800_v58 = vrot.slane %v2798_v18, 4  ;;  %v2818_v31 = vshll.u32 %v2684_v27, 16  ;;  %v2822_v62 = vshrl.u32 %v2684_v27, 16  ;;  %v5364_v24 = vld [vmem:[#allocation2 + $0x10] sm:$0xf] }
 0x180   : > { %9022 = vmatmul.mubr.bf16.gmra.mrb[20].mxu1 %v8275_v26  ;;  %v2783_v22 = vsel %vm10511_vm11, %v2778_v9, %v2782_v16  ;;  %v2806_v30 = vrot.slane %v2804_v25, 5  ;;  %v2811_v45 = vrot.slane %v2809_v17, 4  ;;  %v2814_v41 = vrot.slane %v2812_v0, 5  ;;  %v9637_v25 = vld [vmem:[%s11528_s4 + $0x90] sm:$0xff]  }
 0x181   : > { %v8126_v32 = vcombine.low %v2773_v6, %v2783_v22  ;;  %v2792_v28 = vrot.slane %v2791_v12, 4  ;;  %v2801_v21 = vor.u32 %v2800_v58, %v2796_v29  ;;  %v2820_v34 = vrot.slane %v2818_v31, 5  ;;  %v5365_v12 = vld [vmem:[#allocation2 + $0x14] sm:$0x1]  ;;  %v2686_v22 = vld [vmem:[#allocation2 + $0x24] sm:$0xf] }
 0x182   : > { %v2824_v35 = vrot.slane %v2822_v62, 4  ;;  %v2828_v36 = vshll.u32 %v2685_v4, 16  ;;  %v4962_v5 = vshrl.u32 %v4587_v23, 16  ;;  %v4965_v56 = vshll.u32 %v4587_v23, 16 }
 0x183   : > { %8853 = vmatprep.mubr.bf16.mxu0 %v8126_v32  ;;  %v2797_v8 = vsel %vm10511_vm11, %v2792_v28, %v2796_v29  ;;  %v2802_v37 = vrot.slane %v2801_v21, 4  ;;  %v2815_v46 = vor.u32 %v2814_v41, %v2811_v45  ;;  %v4971_v42 = vshll.u32 %v4588_v55, 16  ;;  %v2687_v32 = vld [vmem:[#allocation2 + $0x28] sm:$0xf]  ;;  %v2688_v21 = vld [vmem:[#allocation2 + $0x2c] sm:$0x1] }
 0x184   : > { %v2825_v39 = vor.u32 %v2824_v35, %v2820_v34  ;;  %v2830_v43 = vrot.slane %v2828_v36, 5  ;;  %v4964_v44 = vrot.slane %v4962_v5, 4  ;;  %v4967_v7 = vrot.slane %v4965_v56, 5  ;;  %v2689_v41 = vld [vmem:[#allocation2 + $0x30] sm:$0xf]  ;;  %v9639_v56 = vld [vmem:[%s11528_s4 + $0x98] sm:$0xff]  }
 0x185   : > { %v4975_v54 = vshrl.u32 %v4588_v55, 16  ;;  %v2807_v50 = vsel %vm10511_vm11, %v2802_v37, %v2806_v30  ;;  %v2816_v49 = vrot.slane %v2815_v46, 4  ;;  %v4973_v53 = vrot.slane %v4971_v42, 5  ;;  %v2690_v5 = vld [vmem:[#allocation2 + $0x34] sm:$0xf] }
 0x186   : > { %v2826_v51 = vrot.slane %v2825_v39, 4  ;;  %v8127_v47 = vcombine.low %v2797_v8, %v2807_v50  ;;  %v4968_v20 = vor.u32 %v4967_v7, %v4964_v44  ;;  %v4981_v59 = vshll.u32 %v4589_v33, 16  ;;  %v2691_v42 = vld [vmem:[#allocation2 + $0x38] sm:$0x1] }
 0x187   : > { %v4977_v38 = vrot.slane %v4975_v54, 4  ;;  %v2821_v63 = vsel %vm10511_vm11, %v2816_v49, %v2820_v34  ;;  %v4986_v10 = vshrl.u32 %v4590_v40, 16  ;;  %v4989_v6 = vshll.u32 %v4590_v40, 16 }
 0x188   : > { %v2831_v1 = vsel %vm10511_vm11, %v2826_v51, %v2830_v43  ;;  %8854 = vmatmul.mubr.bf16.vlgmr.msra.gmra.mrb[32].mxu0 %v8127_v47  ;;  %v4969_v14 = vrot.slane %v4968_v20, 4  ;;  %v4983_v16 = vrot.slane %v4981_v59, 5  ;;  %v4995_v27 = vshll.u32 %v4591_v3, 16  ;;  %v5366_v43 = vld [vmem:[#allocation2 + $0x18] sm:$0xe] }
 0x189   : > { %v8128_v61 = vcombine.low %v2821_v63, %v2831_v1  ;;  %v4978_v57 = vor.u32 %v4977_v38, %v4973_v53  ;;  %v4988_v19 = vrot.slane %v4986_v10, 4  ;;  %v4991_v2 = vrot.slane %v4989_v6, 5  ;;  %8886 = vmatpush3.bf16.msra.mxu0 %v10546_v15  ;;  %v5367_v47 = vld [vmem:[#allocation2 + $0x1c] sm:$0xf]  ;;  %v9640_v63 = vld [vmem:[%s11528_s4 + $0xa0] sm:$0xff]  }
 0x18a   : > { %v4999_v26 = vshrl.u32 %v4591_v3, 16  ;;  %v4974_v9 = vsel %vm10511_vm11, %v4969_v14, %v4973_v53  ;;  %v5005_v18 = vshll.u32 %v4592_v60, 16  ;;  %8887 = vmatprep.subr.bf16.mxu0 %v9636_v13  ;;  %v4997_v17 = vrot.slane %v4995_v27, 5 }
 0x18b   : > { %8857 = vmatprep.mubr.bf16.mxu0 %v8128_v61  ;;  %v4979_v29 = vrot.slane %v4978_v57, 4  ;;  %v4992_v4 = vor.u32 %v4991_v2, %v4988_v19  ;;  %v8286_v62 = vrot.slane %v5363_v11, 9  ;;  %v5493_v23 = vrot.slane %v5364_v24, 5  ;;  %v5369_v11 = vld [vmem:[#allocation2 + $0x24] sm:$0xe] }
 0x18c   : > { %v5001_v0 = vrot.slane %v4999_v26, 4  ;;  %v5007_v58 = vrot.slane %v5005_v18, 5  ;;  %v5496_v55 = vrot.slane %v5365_v12, 5  ;;  %v2833_v8 = vshrl.u32 %v2686_v22, 16 }
 0x18d   : > { %v4984_v15 = vsel %vm10511_vm11, %v4979_v29, %v4983_v16  ;;  %v4993_v30 = vrot.slane %v4992_v4, 4  ;;  %8888 = vmatpush3.bf16.msra.mxu0 %v9636_v13  ;;  %v5494_v34 = vsel %vm10683_vm14, %v8286_v62, %v5493_v23  ;;  %v5495_v35 = vrot.slane %v5493_v23, 4  ;;  %v5368_v13 = vld [vmem:[#allocation2 + $0x20] sm:$0x1]  ;;  %v5370_v16 = vld [vmem:[#allocation2 + $0x28] sm:$0xf] }
 0x18e   : > { %v8276_v28 = vcombine.low %v4974_v9, %v4984_v15  ;;  %v5002_v45 = vor.u32 %v5001_v0, %v4997_v17  ;;  %v2836_v36 = vshll.u32 %v2686_v22, 16  ;;  %8889 = vmatprep.subr.bf16.mxu0 %v9637_v25  ;;  %v2842_v39 = vshll.u32 %v2687_v32, 16  ;;  %v5371_v9 = vld [vmem:[#allocation2 + $0x2c] sm:$0x1]  ;;  %v2692_v4 = vld [vmem:[#allocation2 + $0x3c] sm:$0xf] }
 0x18f   : > { %v4998_v37 = vsel %vm10511_vm11, %v4993_v30, %v4997_v17  ;;  %v2846_v33 = vshrl.u32 %v2687_v32, 16  ;;  %v5497_v44 = vsel %vm10683_vm14, %v5495_v35, %v5496_v55  ;;  %v2835_v7 = vrot.slane %v2833_v8, 4  ;;  %v9642_v17 = vld [vmem:[%s11528_s4 + $0xa8] sm:$0xff]  }
 0x190   : > { %9025 = vmatprep.mubr.bf16.mxu1 %v8276_v28  ;;  %v5003_v46 = vrot.slane %v5002_v45, 4  ;;  %v2838_v54 = vrot.slane %v2836_v36, 5  ;;  %v2852_v40 = vshll.u32 %v2688_v21, 16  ;;  %v8318_v49 = vcombine.low %v5494_v34, %v5497_v44  ;;  %v2693_v21 = vld [vmem:[#allocation2 + $0x40] sm:$0xf]  ;;  %v9632_v44 = vld [vmem:[%s11528_s4 + $0x188] sm:$0xff]  }
 0x191   : > { %v2844_v51 = vrot.slane %v2842_v39, 5  ;;  %v2848_v53 = vrot.slane %v2846_v33, 4  ;;  %8890 = vmatpush3.bf16.msra.mxu0 %v9637_v25  ;;  %v2857_v3 = vshrl.u32 %v2689_v41, 16  ;;  %v2860_v60 = vshll.u32 %v2689_v41, 16  ;;  %v2694_v36 = vld [vmem:[#allocation2 + $0x44] sm:$0x1] }
 0x192   : > { %v5008_v50 = vsel %vm10511_vm11, %v5003_v46, %v5007_v58  ;;  %v2839_v38 = vor.u32 %v2838_v54, %v2835_v7  ;;  %v2854_v59 = vrot.slane %v2852_v40, 5  ;;  %8891 = vmatprep.subr.bf16.mxu0 %v9639_v56  ;;  %v2866_v10 = vshll.u32 %v2690_v5, 16 }
 0x193   : > { %v8277_v20 = vcombine.low %v4998_v37, %v5008_v50  ;;  %v2849_v1 = vor.u32 %v2848_v53, %v2844_v51  ;;  %v2870_v6 = vshrl.u32 %v2690_v5, 16  ;;  %v2859_v61 = vrot.slane %v2857_v3, 4  ;;  %v9643_v53 = vld [vmem:[%s11528_s4 + $0xb0] sm:$0xff]   ;;  %v5374_v3 = vld [vmem:[#allocation2 + $0x38] sm:$0x1] }
 0x194   : > { %v2840_v24 = vrot.slane %v2839_v38, 4  ;;  %v2876_v14 = vshll.u32 %v2691_v42, 16  ;;  %v8287_v57 = vrot.slane %v5366_v43, 9  ;;  %v2862_v2 = vrot.slane %v2860_v60, 5  ;;  %v2696_v42 = vld [vmem:[#allocation2 + $0x4c] sm:$0xf] }
 0x195   : > { %9026 = vmatmul.mubr.bf16.gmra.mrb[24].mxu1 %v8277_v20  ;;  %v2850_v19 = vrot.slane %v2849_v1, 4  ;;  %v2868_v27 = vrot.slane %v2866_v10, 5  ;;  %v2872_v26 = vrot.slane %v2870_v6, 4  ;;  %8892 = vmatpush3.bf16.msra.mxu0 %v9639_v56  ;;  %v5500_v12 = vrot.slane %v5367_v47, 5  ;;  %v2695_v56 = vld [vmem:[#allocation2 + $0x48] sm:$0xf] }
 0x196   : > { %9045 = vmatprep.mubr.bf16.mxu1 %v8318_v49  ;;  %v2845_v29 = vsel %vm10511_vm11, %v2840_v24, %v2844_v51  ;;  %v2878_v18 = vrot.slane %v2876_v14, 5  ;;  %v5503_v25 = vrot.slane %v5368_v13, 5  ;;  %8893 = vmatprep.subr.bf16.mxu0 %v9640_v63  ;;  %v2863_v22 = vor.u32 %v2862_v2, %v2859_v61  ;;  %v2697_v43 = vld [vmem:[#allocation2 + $0x50] sm:$0x1]  ;;  %v5372_v49 = vld [vmem:[#allocation2 + $0x30] sm:$0xe] }
 0x197   : > { %v2855_v0 = vsel %vm10511_vm11, %v2850_v19, %v2854_v59  ;;  %v2873_v15 = vor.u32 %v2872_v26, %v2868_v27  ;;  %v8288_v58 = vrot.slane %v5369_v11, 9  ;;  %v5501_v23 = vsel %vm10683_vm14, %v8287_v57, %v5500_v12  ;;  %v5373_v51 = vld [vmem:[#allocation2 + $0x34] sm:$0xf]  ;;  %v9645_v6 = vld [vmem:[%s11528_s4 + $0xb8] sm:$0xff]  }
 0x198   : > { %v8129_v62 = vcombine.low %v2845_v29, %v2855_v0  ;;  %v5502_v32 = vrot.slane %v5500_v12, 4  ;;  %v5507_v28 = vrot.slane %v5370_v16, 5  ;;  %v2864_v30 = vrot.slane %v2863_v22, 4  ;;  %v9633_v13 = vld [vmem:[%s11528_s4 + $0x190] sm:$0xff]   ;;  %v5375_v57 = vld [vmem:[#allocation2 + $0x3c] sm:$0xe] }
 0x199   : > { %v2874_v45 = vrot.slane %v2873_v15, 4  ;;  %v5510_v55 = vrot.slane %v5371_v9, 5  ;;  %v2881_v41 = vshrl.u32 %v2692_v4, 16  ;;  %8894 = vmatpush3.bf16.msra.mxu0 %v9640_v63  ;;  %v2884_v5 = vshll.u32 %v2692_v4, 16  ;;  %v5377_v12 = vld [vmem:[#allocation2 + $0x44] sm:$0x1] }
 0x19a   : > { %8858 = vmatmul.mubr.bf16.gmra.mrb[36].mxu0 %v8129_v62  ;;  %v5504_v34 = vsel %vm10683_vm14, %v5502_v32, %v5503_v25  ;;  %v5508_v35 = vsel %vm10683_vm14, %v8288_v58, %v5507_v28  ;;  %v5509_v8 = vrot.slane %v5507_v28, 4  ;;  %8895 = vmatprep.subr.bf16.mxu0 %v9642_v17  ;;  %v2869_v37 = vsel %vm10511_vm11, %v2864_v30, %v2868_v27  ;;  %v2698_v22 = vld [vmem:[#allocation2 + $0x54] sm:$0xf]  ;;  %v2699_v32 = vld [vmem:[#allocation2 + $0x58] sm:$0xf] }
 0x19b   : > { %v2879_v46 = vsel %vm10511_vm11, %v2874_v45, %v2878_v18  ;;  %v8319_v39 = vcombine.low %v5501_v23, %v5504_v34  ;;  %v2883_v33 = vrot.slane %v2881_v41, 4  ;;  %v2886_v40 = vrot.slane %v2884_v5, 5  ;;  %v2700_v28 = vld [vmem:[#allocation2 + $0x5c] sm:$0x1]  ;;  %v10743_v45 = vld [vmem:[%s11528_s4 + $0xc0] sm:$0xff]  }
 0x19c   : > { %v8130_v7 = vcombine.low %v2869_v37, %v2879_v46  ;;  %v5511_v54 = vsel %vm10683_vm14, %v5509_v8, %v5510_v55  ;;  %v2890_v50 = vshll.u32 %v2693_v21, 16  ;;  %v2894_v20 = vshrl.u32 %v2693_v21, 16  ;;  %v9635_v30 = vld [vmem:[%s11528_s4 + $0x198] sm:$0xff]  }
 0x19d   : > { %9046 = vmatmul.mubr.bf16.vlgmr.msra.gmra.mrb[28].mxu1 %v8319_v39  ;;  %v8320_v47 = vcombine.low %v5508_v35, %v5511_v54  ;;  %v2900_v38 = vshll.u32 %v2694_v36, 16  ;;  %v2905_v59 = vshrl.u32 %v2695_v56, 16  ;;  %8896 = vmatpush3.bf16.msra.mxu0 %v9642_v17  ;;  %v2887_v63 = vor.u32 %v2886_v40, %v2883_v33  ;;  %v2701_v33 = vld [vmem:[#allocation2 + $0x60] sm:$0xf]  ;;  %v2703_v40 = vld [vmem:[#allocation2 + $0x68] sm:$0x1] }
 0x19e   : > { %8861 = vmatprep.mubr.bf16.mxu0 %v8130_v7  ;;  %9078 = vmatpush3.bf16.msra.mxu1 %v10625_v48  ;;  %v2892_v1 = vrot.slane %v2890_v50, 5  ;;  %v2908_v60 = vshll.u32 %v2695_v56, 16  ;;  %v2914_v10 = vshll.u32 %v2696_v42, 16  ;;  %v2896_v11 = vrot.slane %v2894_v20, 4  ;;  %v5376_v48 = vld [vmem:[#allocation2 + $0x40] sm:$0xf] }
 0x19f   : > { %9049 = vmatprep.mubr.bf16.mxu1 %v8320_v47  ;;  %v2902_v24 = vrot.slane %v2900_v38, 5  ;;  %v2907_v61 = vrot.slane %v2905_v59, 4  ;;  %v2918_v14 = vshrl.u32 %v2696_v42, 16  ;;  %9079 = vmatprep.subr.bf16.mxu1 %v9632_v44  ;;  %v2888_v16 = vrot.slane %v2887_v63, 4  ;;  %v2702_v42 = vld [vmem:[#allocation2 + $0x64] sm:$0xf] }
 0x1a0   : > { %v2910_v19 = vrot.slane %v2908_v60, 5  ;;  %v2916_v2 = vrot.slane %v2914_v10, 5  ;;  %v2924_v27 = vshll.u32 %v2697_v43, 16  ;;  %8897 = vmatprep.subr.bf16.mxu0 %v9643_v53  ;;  %v2897_v26 = vor.u32 %v2896_v11, %v2892_v1  ;;  %v9638_v50 = vld [vmem:[%s11528_s4 + $0x1a0] sm:$0xff]   ;;  %v5378_v20 = vld [vmem:[#allocation2 + $0x48] sm:$0xe] }
 0x1a1   : > { %v2920_v9 = vrot.slane %v2918_v14, 4  ;;  %v8289_v29 = vrot.slane %v5372_v49, 9  ;;  %v5514_v18 = vrot.slane %v5373_v51, 5  ;;  %8898 = vmatpush3.bf16.msra.mxu0 %v9643_v53  ;;  %v2893_v25 = vsel %vm10511_vm11, %v2888_v16, %v2892_v1  ;;  %v5379_v63 = vld [vmem:[#allocation2 + $0x4c] sm:$0xf] }
 0x1a2   : > { %v2911_v4 = vor.u32 %v2910_v19, %v2907_v61  ;;  %v2926_v17 = vrot.slane %v2924_v27, 5  ;;  %v5517_v0 = vrot.slane %v5374_v3, 5  ;;  %9080 = vmatpush3.bf16.msra.mxu1 %v9632_v44  ;;  %8899 = vmatprep.subr.bf16.mxu0 %v9645_v6  ;;  %v2898_v15 = vrot.slane %v2897_v26, 4  ;;  %v5380_v11 = vld [vmem:[#allocation2 + $0x50] sm:$0x1] }
 0x1a3   : > { %v2921_v58 = vor.u32 %v2920_v9, %v2916_v2  ;;  %v5515_v62 = vsel %vm10683_vm14, %v8289_v29, %v5514_v18  ;;  %v5516_v23 = vrot.slane %v5514_v18, 4  ;;  %9081 = vmatprep.subr.bf16.mxu1 %v9633_v13  ;;  %v8290_v21 = vrot.slane %v5375_v57, 9  ;;  %v5381_v16 = vld [vmem:[#allocation2 + $0x54] sm:$0xe]  ;;  %v5382_v19 = vld [vmem:[#allocation2 + $0x58] sm:$0xf] }
 0x1a4   : > { %v2912_v55 = vrot.slane %v2911_v4, 4  ;;  %v5521_v41 = vrot.slane %v5376_v48, 5  ;;  %v5524_v34 = vrot.slane %v5377_v12, 5  ;;  %v2903_v35 = vsel %vm10511_vm11, %v2898_v15, %v2902_v24  ;;  %v5383_v29 = vld [vmem:[#allocation2 + $0x5c] sm:$0x1] }
 0x1a5   : > { %v2922_v8 = vrot.slane %v2921_v58, 4  ;;  %v5518_v36 = vsel %vm10683_vm14, %v5516_v23, %v5517_v0  ;;  %v2929_v5 = vshrl.u32 %v2698_v22, 16  ;;  %8900 = vmatpush3.bf16.msra.mxu0 %v9645_v6  ;;  %v8131_v56 = vcombine.low %v2893_v25, %v2903_v35  ;;  %v2704_v58 = vld [vmem:[#allocation2 + $0x6c] sm:$0xf] }
 0x1a6   : > { %v2917_v37 = vsel %vm10511_vm11, %v2912_v55, %v2916_v2  ;;  %v8321_v46 = vcombine.low %v5515_v62, %v5518_v36  ;;  %v5522_v39 = vsel %vm10683_vm14, %v8290_v21, %v5521_v41  ;;  %9082 = vmatpush3.bf16.msra.mxu1 %v9633_v13  ;;  %v5523_v44 = vrot.slane %v5521_v41, 4  ;;  %8933 = vmatprep.subr.bf16.mxu0 %v10743_v45  ;;  %v9641_v2 = vld [vmem:[%s11528_s4 + $0x1a8] sm:$0xff]   ;;  %v2705_v62 = vld [vmem:[#allocation2 + $0x70] sm:$0xf]  ;;  %v2706_v55 = vld [vmem:[#allocation2 + $0x74] sm:$0x1] }
 0x1a7   : > { %v2927_v43 = vsel %vm10511_vm11, %v2922_v8, %v2926_v17  ;;  %v2931_v7 = vrot.slane %v2929_v5, 4  ;;  %v2932_v54 = vshll.u32 %v2698_v22, 16  ;;  %9083 = vmatprep.subr.bf16.mxu1 %v9635_v30  ;;  %8862 = vmatmul.mubr.bf16.gmra.mrb[40].mxu0 %v8131_v56  ;;  %v2938_v51 = vshll.u32 %v2699_v32, 16  ;;  %v9644_v21 = vld [vmem:[%s11528_s4 + $0x1b0] sm:$0xff]   ;;  %v2707_v36 = vld [vmem:[#allocation2 + $0x78] sm:$0xf] }
 0x1a8   : > { %v8132_v49 = vcombine.low %v2917_v37, %v2927_v43  ;;  %9050 = vmatmul.mubr.bf16.gmra.mrb[0].mxu1 %v8321_v46  ;;  %v2942_v53 = vshrl.u32 %v2699_v32, 16  ;;  %v2948_v47 = vshll.u32 %v2700_v28, 16  ;;  %v5525_v38 = vsel %vm10683_vm14, %v5523_v44, %v5524_v34  ;;  %v2708_v44 = vld [vmem:[#allocation2 + $0x7c] sm:$0xf] }
 0x1a9   : > { %v2934_v59 = vrot.slane %v2932_v54, 5  ;;  %v2953_v3 = vshrl.u32 %v2701_v33, 16  ;;  %v2956_v13 = vshll.u32 %v2701_v33, 16  ;;  %v8322_v1 = vcombine.low %v5522_v39, %v5525_v38 }
 0x1aa   : > { %8865 = vmatprep.mubr.bf16.mxu0 %v8132_v49  ;;  %v2940_v60 = vrot.slane %v2938_v51, 5  ;;  %v2944_v10 = vrot.slane %v2942_v53, 4  ;;  %v2950_v6 = vrot.slane %v2948_v47, 5  ;;  %9084 = vmatpush3.bf16.msra.mxu1 %v9635_v30  ;;  %v2962_v57 = vshll.u32 %v2702_v42, 16  ;;  %v2709_v51 = vld [vmem:[#allocation2 + $0x80] sm:$0x1] }
 0x1ab   : > { %v2935_v24 = vor.u32 %v2934_v59, %v2931_v7  ;;  %v2955_v61 = vrot.slane %v2953_v3, 4  ;;  %v2958_v14 = vrot.slane %v2956_v13, 5  ;;  %9085 = vmatprep.subr.bf16.mxu1 %v9638_v50  ;;  %9053 = vmatprep.mubr.bf16.mxu1 %v8322_v1  ;;  %v2966_v48 = vshrl.u32 %v2702_v42, 16  ;;  %v9646_v7 = vld [vmem:[%s11528_s4 + $0x1b8] sm:$0xff]   ;;  %v5384_v53 = vld [vmem:[#allocation2 + $0x60] sm:$0xe] }
 0x1ac   : > { %v2945_v27 = vor.u32 %v2944_v10, %v2940_v60  ;;  %v2972_v26 = vshll.u32 %v2703_v40, 16  ;;  %v8291_v9 = vrot.slane %v5378_v20, 9  ;;  %v2964_v25 = vrot.slane %v2962_v57, 5  ;;  %v5385_v47 = vld [vmem:[#allocation2 + $0x64] sm:$0xf] }
 0x1ad   : > { %v2936_v18 = vrot.slane %v2935_v24, 4  ;;  %v2959_v12 = vor.u32 %v2958_v14, %v2955_v61  ;;  %v5528_v4 = vrot.slane %v5379_v63, 5  ;;  %v2968_v0 = vrot.slane %v2966_v48, 4  ;;  %v5386_v61 = vld [vmem:[#allocation2 + $0x68] sm:$0x1]  ;;  %v10789_v48 = vld [vmem:[%s11528_s4 + $0x1c0] sm:$0xff]  }
 0x1ae   : > { %v2946_v17 = vrot.slane %v2945_v27, 4  ;;  %v2974_v22 = vrot.slane %v2972_v26, 5  ;;  %v5531_v15 = vrot.slane %v5380_v11, 5  ;;  %9086 = vmatpush3.bf16.msra.mxu1 %v9638_v50  ;;  %v8292_v35 = vrot.slane %v5381_v16, 9  ;;  %v5388_v27 = vld [vmem:[#allocation2 + $0x70] sm:$0xf] }
 0x1af   : > { %v2941_v23 = vsel %vm10511_vm11, %v2936_v18, %v2940_v60  ;;  %v2960_v32 = vrot.slane %v2959_v12, 4  ;;  %v5529_v28 = vsel %vm10683_vm14, %v8291_v9, %v5528_v4  ;;  %v5530_v30 = vrot.slane %v5528_v4, 4  ;;  %9087 = vmatprep.subr.bf16.mxu1 %v9641_v2  ;;  %v5389_v12 = vld [vmem:[#allocation2 + $0x74] sm:$0x1] }
 0x1b0   : > { %v2951_v41 = vsel %vm10511_vm11, %v2946_v17, %v2950_v6  ;;  %v2969_v34 = vor.u32 %v2968_v0, %v2964_v25  ;;  %v5535_v8 = vrot.slane %v5382_v19, 5  ;;  %v5538_v46 = vrot.slane %v5383_v29, 5 }
 0x1b1   : > { %v8133_v5 = vcombine.low %v2941_v23, %v2951_v41  ;;  %v2965_v56 = vsel %vm10511_vm11, %v2960_v32, %v2964_v25  ;;  %v5532_v37 = vsel %vm10683_vm14, %v5530_v30, %v5531_v15  ;;  %v2977_v54 = vshrl.u32 %v2704_v58, 16 }
 0x1b2   : > { %v2970_v39 = vrot.slane %v2969_v34, 4  ;;  %v8323_v33 = vcombine.low %v5529_v28, %v5532_v37  ;;  %v5536_v42 = vsel %vm10683_vm14, %v8292_v35, %v5535_v8  ;;  %v5537_v43 = vrot.slane %v5535_v8, 4  ;;  %9088 = vmatpush3.bf16.msra.mxu1 %v9641_v2  ;;  %v5387_v2 = vld [vmem:[#allocation2 + $0x6c] sm:$0xe]  ;;  %v2711_v8 = vld [vmem:[#allocation2 + $0x88] sm:$0xf] }
 0x1b3   : > { %8866 = vmatmul.mubr.bf16.gmra.mrb[44].mxu0 %v8133_v5  ;;  %v2980_v40 = vshll.u32 %v2704_v58, 16  ;;  %v2986_v50 = vshll.u32 %v2705_v62, 16  ;;  %v2990_v49 = vshrl.u32 %v2705_v62, 16  ;;  %9089 = vmatprep.subr.bf16.mxu1 %v9644_v21  ;;  %v2996_v59 = vshll.u32 %v2706_v55, 16 }
 0x1b4   : > { %v2975_v20 = vsel %vm10511_vm11, %v2970_v39, %v2974_v22  ;;  %9054 = vmatmul.mubr.bf16.gmra.mrb[4].mxu1 %v8323_v33  ;;  %v5539_v38 = vsel %vm10683_vm14, %v5537_v43, %v5538_v46  ;;  %v3001_v3 = vshrl.u32 %v2707_v36, 16  ;;  %v2979_v1 = vrot.slane %v2977_v54, 4  ;;  %v2710_v22 = vld [vmem:[#allocation2 + $0x84] sm:$0xf]  ;;  %v2712_v46 = vld [vmem:[#allocation2 + $0x8c] sm:$0x1] }
 0x1b5   : > { %v8134_v13 = vcombine.low %v2965_v56, %v2975_v20  ;;  %v8324_v63 = vcombine.low %v5536_v42, %v5539_v38  ;;  %v2982_v60 = vrot.slane %v2980_v40, 5  ;;  %v2988_v10 = vrot.slane %v2986_v50, 5 }
 0x1b6   : > { %v2992_v6 = vrot.slane %v2990_v49, 4  ;;  %v2998_v11 = vrot.slane %v2996_v59, 5  ;;  %v3003_v24 = vrot.slane %v3001_v3, 4  ;;  %9090 = vmatpush3.bf16.msra.mxu1 %v9644_v21  ;;  %v3004_v57 = vshll.u32 %v2707_v36, 16  ;;  %v5390_v59 = vld [vmem:[#allocation2 + $0x78] sm:$0xe] }
 0x1b7   : > { %8869 = vmatprep.mubr.bf16.mxu0 %v8134_v13  ;;  %9057 = vmatprep.mubr.bf16.mxu1 %v8324_v63  ;;  %v2983_v14 = vor.u32 %v2982_v60, %v2979_v1  ;;  %v3010_v16 = vshll.u32 %v2708_v44, 16  ;;  %v3014_v19 = vshrl.u32 %v2708_v44, 16  ;;  %v3020_v9 = vshll.u32 %v2709_v51, 16  ;;  %v2713_v44 = vld [vmem:[#allocation2 + $0x90] sm:$0xf] }
 0x1b8   : > { %v2993_v26 = vor.u32 %v2992_v6, %v2988_v10  ;;  %v8293_v29 = vrot.slane %v5384_v53, 9  ;;  %v5542_v18 = vrot.slane %v5385_v47, 5  ;;  %9091 = vmatprep.subr.bf16.mxu1 %v9646_v7  ;;  %v3006_v4 = vrot.slane %v3004_v57, 5  ;;  %v2715_v51 = vld [vmem:[#allocation2 + $0x98] sm:$0x1] }
 0x1b9   : > { %v2984_v25 = vrot.slane %v2983_v14, 4  ;;  %v3012_v17 = vrot.slane %v3010_v16, 5  ;;  %v3016_v0 = vrot.slane %v3014_v19, 4  ;;  %v3022_v58 = vrot.slane %v3020_v9, 5  ;;  %v5391_v60 = vld [vmem:[#allocation2 + $0x7c] sm:$0xf] }
 0x1ba   : > { %v2994_v15 = vrot.slane %v2993_v26, 4  ;;  %v5543_v62 = vsel %vm10683_vm14, %v8293_v29, %v5542_v18  ;;  %v5544_v23 = vrot.slane %v5542_v18, 4  ;;  %9092 = vmatpush3.bf16.msra.mxu1 %v9646_v7  ;;  %v3007_v28 = vor.u32 %v3006_v4, %v3003_v24  ;;  %v2714_v7 = vld [vmem:[#allocation2 + $0x94] sm:$0xf]  ;;  %v5394_v18 = vld [vmem:[#allocation2 + $0x88] sm:$0xf] }
 0x1bb   : > { %v2989_v32 = vsel %vm10511_vm11, %v2984_v25, %v2988_v10  ;;  %v3017_v30 = vor.u32 %v3016_v0, %v3012_v17  ;;  %v5545_v55 = vrot.slane %v5386_v61, 5  ;;  %9125 = vmatprep.subr.bf16.mxu1 %v10789_v48  ;;  %v8294_v41 = vrot.slane %v5387_v2, 9  ;;  %v5392_v61 = vld [vmem:[#allocation2 + $0x80] sm:$0x1]  ;;  %v5393_v2 = vld [vmem:[#allocation2 + $0x84] sm:$0xe] }
 0x1bc   : > { %v2999_v21 = vsel %vm10511_vm11, %v2994_v15, %v2998_v11  ;;  %v5549_v34 = vrot.slane %v5388_v27, 5  ;;  %v5552_v35 = vrot.slane %v5389_v12, 5  ;;  %v3008_v5 = vrot.slane %v3007_v28, 4  ;;  %v5395_v0 = vld [vmem:[#allocation2 + $0x8c] sm:$0x1] }
 0x1bd   : > { %v8135_v36 = vcombine.low %v2989_v32, %v2999_v21  ;;  %v3018_v56 = vrot.slane %v3017_v30, 4  ;;  %v5546_v37 = vsel %vm10683_vm14, %v5544_v23, %v5545_v55  ;;  %v3025_v43 = vshrl.u32 %v2710_v22, 16  ;;  %v2716_v23 = vld [vmem:[#allocation2 + $0x9c] sm:$0xf]  ;;  %v2717_v21 = vld [vmem:[#allocation2 + $0xa0] sm:$0xf] }
 0x1be   : > { %v8325_v39 = vcombine.low %v5543_v62, %v5546_v37  ;;  %v5550_v33 = vsel %vm10683_vm14, %v8294_v41, %v5549_v34  ;;  %v5551_v42 = vrot.slane %v5549_v34, 4  ;;  %v3013_v54 = vsel %vm10511_vm11, %v3008_v5, %v3012_v17 }
 0x1bf   : > { %8870 = vmatmul.mubr.bf16.gmra.mrb[48].mxu0 %v8135_v36  ;;  %v3023_v40 = vsel %vm10511_vm11, %v3018_v56, %v3022_v58  ;;  %v3028_v50 = vshll.u32 %v2710_v22, 16  ;;  %v3034_v49 = vshll.u32 %v2711_v8, 16  ;;  %v3027_v20 = vrot.slane %v3025_v43, 4 }
 0x1c0   : > { %v8136_v53 = vcombine.low %v3013_v54, %v3023_v40  ;;  %9058 = vmatmul.mubr.bf16.gmra.mrb[8].mxu1 %v8325_v39  ;;  %v5553_v47 = vsel %vm10683_vm14, %v5551_v42, %v5552_v35  ;;  %v3038_v38 = vshrl.u32 %v2711_v8, 16  ;;  %v3044_v1 = vshll.u32 %v2712_v46, 16  ;;  %v2718_v42 = vld [vmem:[#allocation2 + $0xa4] sm:$0x1] }
 0x1c1   : > { %v8326_v3 = vcombine.low %v5550_v33, %v5553_v47  ;;  %v3030_v13 = vrot.slane %v3028_v50, 5  ;;  %v3036_v63 = vrot.slane %v3034_v49, 5  ;;  %v3049_v6 = vshrl.u32 %v2713_v44, 16  ;;  %v2720_v49 = vld [vmem:[#allocation2 + $0xac] sm:$0xf] }
 0x1c2   : > { %8873 = vmatprep.mubr.bf16.mxu0 %v8136_v53  ;;  %v3040_v10 = vrot.slane %v3038_v38, 4  ;;  %v3052_v11 = vshll.u32 %v2713_v44, 16  ;;  %v3058_v24 = vshll.u32 %v2714_v7, 16  ;;  %v3046_v57 = vrot.slane %v3044_v1, 5  ;;  %v2719_v44 = vld [vmem:[#allocation2 + $0xa8] sm:$0xf] }
 0x1c3   : > { %9061 = vmatprep.mubr.bf16.mxu1 %v8326_v3  ;;  %v3031_v14 = vor.u32 %v3030_v13, %v3027_v20  ;;  %v3062_v16 = vshrl.u32 %v2714_v7, 16  ;;  %v3068_v19 = vshll.u32 %v2715_v51, 16  ;;  %v3051_v26 = vrot.slane %v3049_v6, 4  ;;  %v2721_v51 = vld [vmem:[#allocation2 + $0xb0] sm:$0x1] }
 0x1c4   : > { %v3041_v27 = vor.u32 %v3040_v10, %v3036_v63  ;;  %v3054_v9 = vrot.slane %v3052_v11, 5  ;;  %v3060_v29 = vrot.slane %v3058_v24, 5  ;;  %v8295_v17 = vrot.slane %v5390_v59, 9  ;;  %v5396_v59 = vld [vmem:[#allocation2 + $0x90] sm:$0xe] }
 0x1c5   : > { %v3032_v12 = vrot.slane %v3031_v14, 4  ;;  %v3064_v25 = vrot.slane %v3062_v16, 4  ;;  %v3070_v4 = vrot.slane %v3068_v19, 5  ;;  %v5556_v58 = vrot.slane %v5391_v60, 5  ;;  %v5397_v60 = vld [vmem:[#allocation2 + $0x94] sm:$0xf] }
 0x1c6   : > { %v3042_v22 = vrot.slane %v3041_v27, 4  ;;  %v3055_v15 = vor.u32 %v3054_v9, %v3051_v26  ;;  %v5559_v62 = vrot.slane %v5392_v61, 5  ;;  %v8296_v30 = vrot.slane %v5393_v2, 9  ;;  %v5398_v10 = vld [vmem:[#allocation2 + $0x98] sm:$0x1] }
 0x1c7   : > { %v3037_v32 = vsel %vm10511_vm11, %v3032_v12, %v3036_v63  ;;  %v3065_v28 = vor.u32 %v3064_v25, %v3060_v29  ;;  %v5563_v55 = vrot.slane %v5394_v18, 5  ;;  %v5557_v35 = vsel %vm10683_vm14, %v8295_v17, %v5556_v58  ;;  %v5399_v14 = vld [vmem:[#allocation2 + $0x9c] sm:$0xe]  ;;  %v5400_v18 = vld [vmem:[#allocation2 + $0xa0] sm:$0xf] }
 0x1c8   : > { %v3047_v41 = vsel %vm10511_vm11, %v3042_v22, %v3046_v57  ;;  %v3056_v34 = vrot.slane %v3055_v15, 4  ;;  %v5558_v8 = vrot.slane %v5556_v58, 4  ;;  %v5566_v33 = vrot.slane %v5395_v0, 5 }
 0x1c9   : > { %v8137_v36 = vcombine.low %v3037_v32, %v3047_v41  ;;  %v3066_v5 = vrot.slane %v3065_v28, 4  ;;  %v5564_v56 = vsel %vm10683_vm14, %v8296_v30, %v5563_v55  ;;  %v5565_v37 = vrot.slane %v5563_v55, 4  ;;  %v2722_v55 = vld [vmem:[#allocation2 + $0xb4] sm:$0xf] }
 0x1ca   : > { %v3061_v46 = vsel %vm10511_vm11, %v3056_v34, %v3060_v29  ;;  %v5560_v39 = vsel %vm10683_vm14, %v5558_v8, %v5559_v62  ;;  %v3073_v43 = vshrl.u32 %v2716_v23, 16  ;;  %v3076_v40 = vshll.u32 %v2716_v23, 16  ;;  %v5401_v62 = vld [vmem:[#allocation2 + $0xa4] sm:$0x1] }
 0x1cb   : > { %8874 = vmatmul.mubr.bf16.gmra.mrb[52].mxu0 %v8137_v36  ;;  %v3071_v7 = vsel %vm10511_vm11, %v3066_v5, %v3070_v4  ;;  %v8327_v54 = vcombine.low %v5557_v35, %v5560_v39  ;;  %v3082_v50 = vshll.u32 %v2717_v21, 16  ;;  %v5567_v47 = vsel %vm10683_vm14, %v5565_v37, %v5566_v33  ;;  %v2724_v36 = vld [vmem:[#allocation2 + $0xbc] sm:$0x1]  ;;  %v5402_v39 = vld [vmem:[#allocation2 + $0xa8] sm:$0xe] }
 0x1cc   : > { %v8138_v53 = vcombine.low %v3061_v46, %v3071_v7  ;;  %v3075_v20 = vrot.slane %v3073_v43, 4  ;;  %v3086_v38 = vshrl.u32 %v2717_v21, 16  ;;  %v8328_v3 = vcombine.low %v5564_v56, %v5567_v47  ;;  %v2723_v21 = vld [vmem:[#allocation2 + $0xb8] sm:$0xf]  ;;  %v5403_v33 = vld [vmem:[#allocation2 + $0xac] sm:$0xf] }
 0x1cd   : > { %9062 = vmatmul.mubr.bf16.gmra.mrb[12].mxu1 %v8327_v54  ;;  %v3078_v13 = vrot.slane %v3076_v40, 5  ;;  %v3084_v63 = vrot.slane %v3082_v50, 5  ;;  %v3092_v1 = vshll.u32 %v2718_v42, 16  ;;  %v3097_v11 = vshrl.u32 %v2719_v44, 16  ;;  %v5404_v54 = vld [vmem:[#allocation2 + $0xb0] sm:$0x1] }
 0x1ce   : > { %8877 = vmatprep.mubr.bf16.mxu0 %v8138_v53  ;;  %v3088_v6 = vrot.slane %v3086_v38, 4  ;;  %v3100_v24 = vshll.u32 %v2719_v44, 16  ;;  %v3106_v61 = vshll.u32 %v2720_v49, 16  ;;  %9065 = vmatprep.mubr.bf16.mxu1 %v8328_v3  ;;  %v3110_v19 = vshrl.u32 %v2720_v49, 16  ;;  %v5405_v53 = vld [vmem:[#allocation2 + $0xb4] sm:$0xe] }
 0x1cf   : > { %v3079_v57 = vor.u32 %v3078_v13, %v3075_v20  ;;  %v3094_v16 = vrot.slane %v3092_v1, 5  ;;  %v3116_v2 = vshll.u32 %v2721_v51, 16  ;;  %v3099_v26 = vrot.slane %v3097_v11, 4  ;;  %v5406_v47 = vld [vmem:[#allocation2 + $0xb8] sm:$0xf] }
 0x1d0   : > { %v3089_v27 = vor.u32 %v3088_v6, %v3084_v63  ;;  %v3102_v9 = vrot.slane %v3100_v24, 5  ;;  %v3108_v29 = vrot.slane %v3106_v61, 5  ;;  %v3112_v25 = vrot.slane %v3110_v19, 4  ;;  %v5407_v13 = vld [vmem:[#allocation2 + $0xbc] sm:$0x1] }
 0x1d1   : > { %v3080_v12 = vrot.slane %v3079_v57, 4  ;;  %v3118_v4 = vrot.slane %v3116_v2, 5  ;;  %v8297_v17 = vrot.slane %v5396_v59, 9  ;;  %v5570_v15 = vrot.slane %v5397_v60, 5  ;;  %v3499_v11 = vld [vmem:[#allocation2 + $0x4] sm:$0xf] }
 0x1d2   : > { %v3090_v0 = vrot.slane %v3089_v27, 4  ;;  %v3103_v22 = vor.u32 %v3102_v9, %v3099_v26  ;;  %v5573_v58 = vrot.slane %v5398_v10, 5  ;;  %v3113_v32 = vor.u32 %v3112_v25, %v3108_v29  ;;  %v3500_v57 = vld [vmem:[#allocation2 + $0x8] sm:$0x1] }
 0x1d3   : > { %v3085_v23 = vsel %vm10511_vm11, %v3080_v12, %v3084_v63  ;;  %v8298_v28 = vrot.slane %v5399_v14, 9  ;;  %v5577_v30 = vrot.slane %v5400_v18, 5  ;;  %v5571_v35 = vsel %vm10683_vm14, %v8297_v17, %v5570_v15  ;;  %v3498_v63 = vld [vmem:[#allocation2] sm:$0xe] }
 0x1d4   : > { %v3095_v41 = vsel %vm10511_vm11, %v3090_v0, %v3094_v16  ;;  %v3104_v34 = vrot.slane %v3103_v22, 4  ;;  %v5572_v8 = vrot.slane %v5570_v15, 4  ;;  %v3114_v56 = vrot.slane %v3113_v32, 4 }
 0x1d5   : > { %v8139_v5 = vcombine.low %v3085_v23, %v3095_v41  ;;  %v5578_v37 = vsel %vm10683_vm14, %v8298_v28, %v5577_v30  ;;  %v5579_v46 = vrot.slane %v5577_v30, 4  ;;  %v5580_v44 = vrot.slane %v5401_v62, 5  ;;  %v3502_v62 = vld [vmem:[#allocation2 + $0x10] sm:$0xf] }
 0x1d6   : > { %v3109_v42 = vsel %vm10511_vm11, %v3104_v34, %v3108_v29  ;;  %v5574_v43 = vsel %vm10683_vm14, %v5572_v8, %v5573_v58  ;;  %v3121_v7 = vshrl.u32 %v2722_v55, 16  ;;  %v3119_v40 = vsel %vm10511_vm11, %v3114_v56, %v3118_v4  ;;  %v3503_v8 = vld [vmem:[#allocation2 + $0x14] sm:$0x1]  ;;  %v3501_v56 = vld [vmem:[#allocation2 + $0xc] sm:$0xe] }
 0x1d7   : > { %8878 = vmatmul.mubr.bf16.gmra.mrb[56].mxu0 %v8139_v5  ;;  %v8329_v50 = vcombine.low %v5571_v35, %v5574_v43  ;;  %v3124_v49 = vshll.u32 %v2722_v55, 16  ;;  %v3130_v51 = vshll.u32 %v2723_v21, 16  ;;  %v8140_v20 = vcombine.low %v3109_v42, %v3119_v40  ;;  %v3505_v55 = vld [vmem:[#allocation2 + $0x1c] sm:$0xf]  ;;  %v5410_v43 = vld [vmem:[#allocation2 + $0xc8] sm:$0x1] }
 0x1d8   : > { %v5581_v38 = vsel %vm10683_vm14, %v5579_v46, %v5580_v44  ;;  %v3123_v59 = vrot.slane %v3121_v7, 4  ;;  %v3134_v3 = vshrl.u32 %v2723_v21, 16  ;;  %v3140_v6 = vshll.u32 %v2724_v36, 16  ;;  %v5409_v36 = vld [vmem:[#allocation2 + $0xc4] sm:$0xf] }
 0x1d9   : > { %9066 = vmatmul.mubr.bf16.gmra.mrb[16].mxu1 %v8329_v50  ;;  %v8330_v1 = vcombine.low %v5578_v37, %v5581_v38  ;;  %v3126_v60 = vrot.slane %v3124_v49, 5  ;;  %v3132_v10 = vrot.slane %v3130_v51, 5  ;;  %8881 = vmatprep.mubr.bf16.mxu0 %v8140_v20  ;;  %v8299_v61 = vrot.slane %v5402_v39, 9  ;;  %v3506_v46 = vld [vmem:[#allocation2 + $0x20] sm:$0x1] }
 0x1da   : > { %v3136_v24 = vrot.slane %v3134_v3, 4  ;;  %v5584_v14 = vrot.slane %v5403_v33, 5  ;;  %v3142_v19 = vrot.slane %v3140_v6, 5  ;;  %v5587_v2 = vrot.slane %v5404_v54, 5  ;;  %v5408_v39 = vld [vmem:[#allocation2 + $0xc0] sm:$0xe] }
 0x1db   : > { %9069 = vmatprep.mubr.bf16.mxu1 %v8330_v1  ;;  %v3127_v16 = vor.u32 %v3126_v60, %v3123_v59  ;;  %v5591_v27 = vrot.slane %v5406_v47, 5  ;;  %v8300_v18 = vrot.slane %v5405_v53, 9  ;;  %v5594_v4 = vrot.slane %v5407_v13, 5  ;;  %v3508_v40 = vld [vmem:[#allocation2 + $0x28] sm:$0xf] }
 0x1dc   : > { %v3137_v26 = vor.u32 %v3136_v24, %v3132_v10  ;;  %v5585_v9 = vsel %vm10683_vm14, %v8299_v61, %v5584_v14  ;;  %v5586_v29 = vrot.slane %v5584_v14, 4  ;;  %v8150_v17 = vrot.slane %v3498_v63, 9  ;;  %v3504_v49 = vld [vmem:[#allocation2 + $0x18] sm:$0xe]  ;;  %v3511_v59 = vld [vmem:[#allocation2 + $0x34] sm:$0xf] }
 0x1dd   : > { %v3128_v12 = vrot.slane %v3127_v16, 4  ;;  %v5593_v25 = vrot.slane %v5591_v27, 4  ;;  %v3631_v15 = vrot.slane %v3499_v11, 5  ;;  %v3634_v58 = vrot.slane %v3500_v57, 5  ;;  %v9647_v16 = vld [vmem:[#allocation2 + $0x18] sm:$0xff]  }
 0x1de   : > { %v3138_v0 = vrot.slane %v3137_v26, 4  ;;  %v5588_v22 = vsel %vm10683_vm14, %v5586_v29, %v5587_v2  ;;  %v5592_v28 = vsel %vm10683_vm14, %v8300_v18, %v5591_v27  ;;  %v3638_v37 = vrot.slane %v3502_v62, 5  ;;  %v9661_v2 = vld [vmem:[%s11528_s4 + $0xc8] sm:$0xff]   ;;  %v3507_v29 = vld [vmem:[#allocation2 + $0x24] sm:$0xe] }
 0x1df   : > { %v3133_v23 = vsel %vm10511_vm11, %v3128_v12, %v3132_v10  ;;  %v8331_v32 = vcombine.low %v5585_v9, %v5588_v22  ;;  %v5595_v30 = vsel %vm10683_vm14, %v5593_v25, %v5594_v4  ;;  %v3632_v34 = vsel %vm10683_vm14, %v8150_v17, %v3631_v15  ;;  %v3512_v9 = vld [vmem:[#allocation2 + $0x38] sm:$0x1]  ;;  %v3514_v12 = vld [vmem:[#allocation2 + $0x40] sm:$0xf]  ;;  %v3510_v4 = vld [vmem:[#allocation2 + $0x30] sm:$0xe] }
 0x1e0   : > { %v3143_v21 = vsel %vm10511_vm11, %v3138_v0, %v3142_v19  ;;  %v8332_v41 = vcombine.low %v5592_v28, %v5595_v30  ;;  %v3633_v35 = vrot.slane %v3631_v15, 4  ;;  %v3645_v42 = vrot.slane %v3505_v55, 5  ;;  %v3509_v19 = vld [vmem:[#allocation2 + $0x2c] sm:$0x1]  ;;  %v9662_v22 = vld [vmem:[%s11528_s4 + $0xd0] sm:$0xff]  }
 0x1e1   : > { %v8141_v5 = vcombine.low %v3133_v23, %v3143_v21  ;;  %9070 = vmatmul.mubr.bf16.gmra.mrb[20].mxu1 %v8331_v32  ;;  %v3640_v7 = vrot.slane %v3638_v37, 4  ;;  %v5598_v54 = vrot.slane %v5409_v36, 5  ;;  %v3641_v50 = vrot.slane %v3503_v8, 5  ;;  %v3517_v17 = vld [vmem:[#allocation2 + $0x4c] sm:$0xf]  ;;  %v9650_v8 = vld [vmem:[#allocation2 + $0x30] sm:$0xff]  }
 0x1e2   : > { %9073 = vmatprep.mubr.bf16.mxu1 %v8332_v41  ;;  %v3635_v33 = vsel %vm10683_vm14, %v3633_v35, %v3634_v58  ;;  %v3647_v51 = vrot.slane %v3645_v42, 4  ;;  %v3648_v53 = vrot.slane %v3506_v46, 5  ;;  %v8301_v47 = vrot.slane %v5408_v39, 9  ;;  %v3515_v41 = vld [vmem:[#allocation2 + $0x44] sm:$0x1] }
 0x1e3   : > { %8882 = vmatmul.mubr.bf16.gmra.mrb[60].mxu0 %v8141_v5  ;;  %v8182_v44 = vcombine.low %v3632_v34, %v3635_v33  ;;  %v5600_v20 = vrot.slane %v5598_v54, 4  ;;  %v5601_v38 = vrot.slane %v5410_v43, 5  ;;  %v8151_v3 = vrot.slane %v3501_v56, 9  ;;  %v9651_v34 = vld [vmem:[%s11528_s4 + $0x1c8] sm:$0xff]   ;;  %v3518_v5 = vld [vmem:[#allocation2 + $0x50] sm:$0x1] }
 0x1e4   : > { %v3642_v13 = vsel %vm10683_vm14, %v3640_v7, %v3641_v50  ;;  %v3652_v63 = vrot.slane %v3508_v40, 5  ;;  %v8152_v1 = vrot.slane %v3504_v49, 9  ;;  %v3649_v60 = vsel %vm10683_vm14, %v3647_v51, %v3648_v53  ;;  %v9666_v56 = vld [vmem:[%s11528_s4 + $0xd8] sm:$0xff]   ;;  %v3523_v43 = vld [vmem:[#allocation2 + $0x64] sm:$0xf] }
 0x1e5   : > { %8901 = vmatprep.mubr.bf16.mxu0 %v8182_v44  ;;  %v5599_v10 = vsel %vm10683_vm14, %v8301_v47, %v5598_v54  ;;  %v5602_v6 = vsel %vm10683_vm14, %v5600_v20, %v5601_v38  ;;  %v3639_v11 = vsel %vm10683_vm14, %v8151_v3, %v3638_v37  ;;  %v3659_v61 = vrot.slane %v3511_v59, 5  ;;  %v3513_v37 = vld [vmem:[#allocation2 + $0x3c] sm:$0xe]  ;;  %v3520_v39 = vld [vmem:[#allocation2 + $0x58] sm:$0xf]  ;;  %v9654_v44 = vld [vmem:[%s11528_s4 + $0x1d0] sm:$0xff]  }
 0x1e6   : > { %v8333_v24 = vcombine.low %v5599_v10, %v5602_v6  ;;  %v8183_v14 = vcombine.low %v3639_v11, %v3642_v13  ;;  %v3646_v57 = vsel %vm10683_vm14, %v8152_v1, %v3645_v42  ;;  %v3654_v26 = vrot.slane %v3652_v63, 4  ;;  %v3516_v42 = vld [vmem:[#allocation2 + $0x48] sm:$0xe]  ;;  %v9667_v50 = vld [vmem:[%s11528_s4 + $0xe0] sm:$0xff]   ;;  %v3521_v13 = vld [vmem:[#allocation2 + $0x5c] sm:$0x1] }
 0x1e7   : > { %v8184_v27 = vcombine.low %v3646_v57, %v3649_v60  ;;  %v3661_v18 = vrot.slane %v3659_v61, 4  ;;  %v3655_v25 = vrot.slane %v3509_v19, 5  ;;  %v3662_v0 = vrot.slane %v3512_v9, 5  ;;  %v9652_v20 = vld [vmem:[#allocation2 + $0x3c] sm:$0xff]   ;;  %v9653_v3 = vld [vmem:[#allocation2 + $0x48] sm:$0xff]  }
 0x1e8   : > { %v8153_v15 = vrot.slane %v3507_v29, 9  ;;  %v3666_v62 = vrot.slane %v3514_v12, 5  ;;  %v8154_v23 = vrot.slane %v3510_v4, 9  ;;  %v3673_v28 = vrot.slane %v3517_v17, 5  ;;  %v3524_v10 = vld [vmem:[#allocation2 + $0x68] sm:$0x1] }
 0x1e9   : > { %9074 = vmatmul.mubr.bf16.gmra.mrb[24].mxu1 %v8333_v24  ;;  %v3656_v58 = vsel %vm10683_vm14, %v3654_v26, %v3655_v25  ;;  %v3663_v32 = vsel %vm10683_vm14, %v3661_v18, %v3662_v0  ;;  %v3669_v33 = vrot.slane %v3515_v41, 5  ;;  %v3676_v7 = vrot.slane %v3518_v5, 5  ;;  %v9671_v6 = vld [vmem:[%s11528_s4 + $0xe8] sm:$0xff]   ;;  %v3519_v11 = vld [vmem:[#allocation2 + $0x54] sm:$0xe] }
 0x1ea   : > { %9093 = vmatprep.mubr.bf16.mxu1 %v9647_v16  ;;  %v3653_v30 = vsel %vm10683_vm14, %v8153_v15, %v3652_v63  ;;  %v3660_v21 = vsel %vm10683_vm14, %v8154_v23, %v3659_v61  ;;  %v3668_v36 = vrot.slane %v3666_v62, 4  ;;  %v3675_v46 = vrot.slane %v3673_v28, 4  ;;  %v9658_v63 = vld [vmem:[%s11528_s4 + $0x1d8] sm:$0xff]   ;;  %v3526_v61 = vld [vmem:[#allocation2 + $0x70] sm:$0xf]  ;;  %v9656_v15 = vld [vmem:[#allocation2 + $0x60] sm:$0xff]  }
 0x1eb   : > { %8902 = vmatmul.mubr.bf16.vlgmr.msra.gmra.mrb[32].mxu0 %v8183_v14  ;;  %v8185_v55 = vcombine.low %v3653_v30, %v3656_v58  ;;  %v8186_v35 = vcombine.low %v3660_v21, %v3663_v32  ;;  %v8155_v54 = vrot.slane %v3513_v37, 9  ;;  %v8156_v49 = vrot.slane %v3516_v42, 9  ;;  %v3522_v57 = vld [vmem:[#allocation2 + $0x60] sm:$0xe]  ;;  %v3529_v16 = vld [vmem:[#allocation2 + $0x7c] sm:$0xf] }
 0x1ec   : > { %8905 = vmatprep.mubr.bf16.mxu0 %v8184_v27  ;;  %8934 = vmatpush3.bf16.msra.mxu0 %v10743_v45  ;;  %v9649_v45 = vld [vmem:[#allocation2 + $0x24] sm:$0xff]   ;;  %v3670_v40 = vsel %vm10683_vm14, %v3668_v36, %v3669_v33  ;;  %v3677_v51 = vsel %vm10683_vm14, %v3675_v46, %v3676_v7  ;;  %v3687_v53 = vrot.slane %v3523_v43, 5  ;;  %v3683_v14 = vrot.slane %v3521_v13, 5  ;;  %v9672_v29 = vld [vmem:[%s11528_s4 + $0xf0] sm:$0xff]  }
 0x1ed   : > { %8935 = vmatprep.subr.bf16.mxu0 %v9661_v2  ;;  %v3667_v47 = vsel %vm10683_vm14, %v8155_v54, %v3666_v62  ;;  %v3674_v59 = vsel %vm10683_vm14, %v8156_v49, %v3673_v28  ;;  %v3690_v19 = vrot.slane %v3524_v10, 5  ;;  %v8157_v27 = vrot.slane %v3519_v11, 9  ;;  %v9655_v17 = vld [vmem:[#allocation2 + $0x54] sm:$0xff]   ;;  %v9668_v62 = vld [vmem:[%s11528_s4 + $0x1e8] sm:$0xff]   ;;  %v3530_v28 = vld [vmem:[#allocation2 + $0x80] sm:$0x1] }
 0x1ee   : > { %v8187_v38 = vcombine.low %v3667_v47, %v3670_v40  ;;  %v8188_v1 = vcombine.low %v3674_v59, %v3677_v51  ;;  %v3689_v24 = vrot.slane %v3687_v53, 4  ;;  %v3694_v9 = vrot.slane %v3526_v61, 5  ;;  %v3527_v58 = vld [vmem:[#allocation2 + $0x74] sm:$0x1]  ;;  %v10927_v30 = vld [vmem:[#allocation2 + $0x88] sm:$0xf] }
 0x1ef   : > { %v8158_v18 = vrot.slane %v3522_v57, 9  ;;  %v3701_v25 = vrot.slane %v3529_v16, 5  ;;  %v3697_v41 = vrot.slane %v3527_v58, 5  ;;  %v3708_v36 = vrot.slane %v10927_v30, 5  ;;  %v9674_v5 = vld [vmem:[%s11528_s4 + $0x1f0] sm:$0xff]   ;;  %v9660_v40 = vld [vmem:[#allocation2 + $0x78] sm:$0xff]  }
 0x1f0   : > { %8936 = vmatpush3.bf16.msra.mxu0 %v9661_v2  ;;  %v9663_v2 = vld [vmem:[%s11528_s4 + $0x1e0] sm:$0xff]   ;;  %v3691_v12 = vsel %vm10683_vm14, %v3689_v24, %v3690_v19  ;;  %v3696_v32 = vrot.slane %v3694_v9, 4  ;;  %v9659_v43 = vld [vmem:[#allocation2 + $0x6c] sm:$0xff]   ;;  %v9680_v49 = vld [vmem:[%s11528_s4 + $0x1f8] sm:$0xff]  }
 0x1f1   : > { %8937 = vmatprep.subr.bf16.mxu0 %v9662_v22  ;;  %9094 = vmatmul.mubr.bf16.vlgmr.msra.gmra.mrb[28].mxu1 %v9649_v45  ;;  %v9677_v45 = vld [vmem:[%s11528_s4 + $0xf8] sm:$0xff]   ;;  %v3703_v21 = vrot.slane %v3701_v25, 4  ;;  %v10947_v47 = vld [vmem:[#allocation2 + $0xa0] sm:$0xf]  ;;  %v6411_v19 = vld [vmem:[#allocation2 + $0x24] sm:$0xf] }
 0x1f2   : > { %9126 = vmatpush3.bf16.msra.mxu1 %v10789_v48  ;;  %9097 = vmatprep.mubr.bf16.mxu1 %v9650_v8  ;;  %v3680_v48 = vrot.slane %v3520_v39, 5  ;;  %v3704_v8 = vrot.slane %v3530_v28, 5  ;;  %v3698_v37 = vsel %vm10683_vm14, %v3696_v32, %v3697_v41  ;;  %v3722_v11 = vrot.slane %v10947_v47, 5  ;;  %v10964_v61 = vld [vmem:[%s11528_s4 + $0x200] sm:$0xff]   ;;  %v3542_v58 = vld [vmem:[#allocation2 + $0xb0] sm:$0x1] }
 0x1f3   : > { %8906 = vmatmul.mubr.bf16.gmra.mrb[36].mxu0 %v8185_v55  ;;  %9127 = vmatprep.subr.bf16.mxu1 %v9651_v34  ;;  %v3525_v55 = vld [vmem:[#allocation2 + $0x6c] sm:$0xe]  ;;  %v6516_v32 = vshll.u32 %v6411_v19, 16  ;;  %v3543_v30 = vld [vmem:[#allocation2 + $0xb4] sm:$0xe] }
 0x1f4   : > { %8909 = vmatprep.mubr.bf16.mxu0 %v8186_v35  ;;  %8938 = vmatpush3.bf16.msra.mxu0 %v9662_v22  ;;  %v3682_v60 = vrot.slane %v3680_v48, 4  ;;  %v3681_v4 = vsel %vm10683_vm14, %v8157_v27, %v3680_v48  ;;  %v3688_v22 = vsel %vm10683_vm14, %v8158_v18, %v3687_v53  ;;  %v3535_v35 = vld [vmem:[#allocation2 + $0x94] sm:$0xf]  ;;  %v3705_v39 = vsel %vm10683_vm14, %v3703_v21, %v3704_v8  ;;  %v3531_v48 = vld [vmem:[#allocation2 + $0x84] sm:$0xe] }
 0x1f5   : > { %8939 = vmatprep.subr.bf16.mxu0 %v9666_v56  ;;  %v8190_v23 = vcombine.low %v3688_v22, %v3691_v12  ;;  %v3715_v33 = vrot.slane %v3535_v35, 5  ;;  %v3536_v53 = vld [vmem:[#allocation2 + $0x98] sm:$0x1]  ;;  %v3540_v22 = vld [vmem:[#allocation2 + $0xa8] sm:$0xe] }
 0x1f6   : > { %9128 = vmatpush3.bf16.msra.mxu1 %v9651_v34  ;;  %v3684_v26 = vsel %vm10683_vm14, %v3682_v60, %v3683_v14  ;;  %v3528_v34 = vld [vmem:[#allocation2 + $0x78] sm:$0xe]  ;;  %v3545_v41 = vld [vmem:[#allocation2 + $0xbc] sm:$0x1] }
 0x1f7   : > { %9129 = vmatprep.subr.bf16.mxu1 %v9654_v44  ;;  %v8189_v0 = vcombine.low %v3681_v4, %v3684_v26  ;;  %v8160_v46 = vrot.slane %v3528_v34, 9  ;;  %v3717_v13 = vrot.slane %v3715_v33, 4  ;;  %v6408_v60 = vld [vmem:[#allocation2 + $0x18] sm:$0xf]  ;;  %v9664_v26 = vld [vmem:[#allocation2 + $0x84] sm:$0xff]  }
 0x1f8   : > { %8940 = vmatpush3.bf16.msra.mxu0 %v9666_v56  ;;  %v8159_v56 = vrot.slane %v3525_v55, 9  ;;  %v6489_v18 = vshrl.u32 %v6408_v60, 16  ;;  %v6492_v12 = vshll.u32 %v6408_v60, 16  ;;  %v6410_v34 = vld [vmem:[#allocation2 + $0x20] sm:$0x1] }
 0x1f9   : > { %9098 = vmatmul.mubr.bf16.gmra.mrb[0].mxu1 %v9652_v20  ;;  %8941 = vmatprep.subr.bf16.mxu0 %v9667_v50  ;;  %v3702_v54 = vsel %vm10683_vm14, %v8160_v46, %v3701_v25  ;;  %v10949_v20 = vld [vmem:[#allocation2 + $0xac] sm:$0xf]  ;;  %v8164_v46 = vrot.slane %v3540_v22, 9  ;;  %v6416_v22 = vld [vmem:[#allocation2 + $0x38] sm:$0x1] }
 0x1fa   : > { %9101 = vmatprep.mubr.bf16.mxu1 %v9653_v3  ;;  %9130 = vmatpush3.bf16.msra.mxu1 %v9654_v44  ;;  %v3695_v42 = vsel %vm10683_vm14, %v8159_v56, %v3694_v9  ;;  %v3533_v44 = vld [vmem:[#allocation2 + $0x8c] sm:$0x1]  ;;  %v8192_v51 = vcombine.low %v3702_v54, %v3705_v39  ;;  %v3534_v3 = vld [vmem:[#allocation2 + $0x90] sm:$0xe]  ;;  %v3729_v24 = vrot.slane %v10949_v20, 5  ;;  %v6491_v35 = vrot.slane %v6489_v18, 4 }
 0x1fb   : > { %8910 = vmatmul.mubr.bf16.gmra.mrb[40].mxu0 %v8187_v38  ;;  %9131 = vmatprep.subr.bf16.mxu1 %v9658_v63  ;;  %v8191_v7 = vcombine.low %v3695_v42, %v3698_v37  ;;  %v10954_v38 = vld [vmem:[%s11528_s4 + $0x100] sm:$0xff]   ;;  %v3711_v59 = vrot.slane %v3533_v44, 5  ;;  %v8162_v14 = vrot.slane %v3534_v3, 9  ;;  %v9665_v9 = vld [vmem:[#allocation2 + $0x90] sm:$0xff]   ;;  %v6494_v8 = vrot.slane %v6492_v12, 5 }
 0x1fc   : > { %8913 = vmatprep.mubr.bf16.mxu0 %v8188_v1  ;;  %8942 = vmatpush3.bf16.msra.mxu0 %v9667_v50  ;;  %v3710_v50 = vrot.slane %v3708_v36, 4  ;;  %v8161_v1 = vrot.slane %v3531_v48, 9  ;;  %v3732_v56 = vrot.slane %v3542_v58, 5  ;;  %v6412_v37 = vld [vmem:[#allocation2 + $0x28] sm:$0xf]  ;;  %v8165_v39 = vrot.slane %v3543_v30, 9 }
 0x1fd   : > { %8943 = vmatprep.subr.bf16.mxu0 %v9671_v6  ;;  %v3716_v4 = vsel %vm10683_vm14, %v8162_v14, %v3715_v33  ;;  %v6518_v42 = vrot.slane %v6516_v32, 5  ;;  %v6495_v48 = vor.u32 %v6494_v8, %v6491_v35  ;;  %v3739_v3 = vrot.slane %v3545_v41, 5 }
 0x1fe   : > { %9132 = vmatpush3.bf16.msra.mxu1 %v9658_v63  ;;  %v6409_v63 = vld [vmem:[#allocation2 + $0x1c] sm:$0xf]  ;;  %v3712_v10 = vsel %vm10683_vm14, %v3710_v50, %v3711_v59  ;;  %v6508_v50 = vshll.u32 %v6410_v34, 16  ;;  %v3730_v60 = vsel %vm10683_vm14, %v8164_v46, %v3729_v24  ;;  %v9675_v34 = vld [vmem:[#allocation2 + $0xb4] sm:$0xff]   ;;  %v9676_v46 = vld [vmem:[#allocation2 + $0xc0] sm:$0xff]  }
 0x1ff   : > { %9133 = vmatprep.subr.bf16.mxu1 %v9663_v2  ;;  %v6498_v57 = vshll.u32 %v6409_v63, 16  ;;  %v6502_v16 = vshrl.u32 %v6409_v63, 16  ;;  %v9669_v59 = vld [vmem:[#allocation2 + $0x9c] sm:$0xff]  }
 0x200   : > { %8944 = vmatpush3.bf16.msra.mxu0 %v9671_v6  ;;  %v3718_v6 = vrot.slane %v3536_v53, 5  ;;  %v6526_v53 = vshrl.u32 %v6412_v37, 16  ;;  %v6510_v20 = vrot.slane %v6508_v50, 5 }
 0x201   : > { %9102 = vmatmul.mubr.bf16.gmra.mrb[4].mxu1 %v9655_v17  ;;  %8945 = vmatprep.subr.bf16.mxu0 %v9672_v29  ;;  %v3537_v17 = vld [vmem:[#allocation2 + $0x9c] sm:$0xe]  ;;  %v10975_v55 = vrot.slane %v6498_v57, 5  ;;  %v6504_v21 = vrot.slane %v6502_v16, 4  ;;  %v6415_v57 = vld [vmem:[#allocation2 + $0x34] sm:$0xf] }
 0x202   : > { %9105 = vmatprep.mubr.bf16.mxu1 %v9656_v15  ;;  %9134 = vmatpush3.bf16.msra.mxu1 %v9663_v2  ;;  %v3709_v2 = vsel %vm10683_vm14, %v8161_v1, %v3708_v36  ;;  %v3719_v27 = vsel %vm10683_vm14, %v3717_v13, %v3718_v6  ;;  %v3724_v15 = vrot.slane %v3722_v11, 4  ;;  %v8163_v36 = vrot.slane %v3537_v17, 9 }
 0x203   : > { %8914 = vmatmul.mubr.bf16.gmra.mrb[44].mxu0 %v8189_v0  ;;  %9135 = vmatprep.subr.bf16.mxu1 %v9668_v62  ;;  %v8193_v25 = vcombine.low %v3709_v2, %v3712_v10  ;;  %v3539_v0 = vld [vmem:[#allocation2 + $0xa4] sm:$0x1]  ;;  %v8194_v28 = vcombine.low %v3716_v4, %v3719_v27  ;;  %v9670_v10 = vld [vmem:[#allocation2 + $0xa8] sm:$0xff]   ;;  %v6496_v27 = vrot.slane %v6495_v48, 4  ;;  %v6546_v12 = vshll.u32 %v6415_v57, 16 }
 0x204   : > { %8917 = vmatprep.mubr.bf16.mxu0 %v8190_v23  ;;  %8946 = vmatpush3.bf16.msra.mxu0 %v9672_v29  ;;  %v3544_v29 = vld [vmem:[#allocation2 + $0xb8] sm:$0xf]  ;;  %v6513_v23 = vshrl.u32 %v6411_v19, 16  ;;  %v3723_v47 = vsel %vm10683_vm14, %v8163_v36, %v3722_v11  ;;  %v6421_v4 = vld [vmem:[#allocation2 + $0x4c] sm:$0xf] }
 0x205   : > { %8947 = vmatprep.subr.bf16.mxu0 %v9677_v45  ;;  %v6598_v41 = vshrl.u32 %v6421_v4, 16  ;;  %v11004_v8 = vrot.slane %v6546_v12, 5 }
 0x206   : > { %9136 = vmatpush3.bf16.msra.mxu1 %v9668_v62  ;;  %v3731_v62 = vrot.slane %v3729_v24, 4  ;;  %v6515_v33 = vrot.slane %v6513_v23, 4  ;;  %v6528_v24 = vrot.slane %v6526_v53, 4  ;;  %v6426_v53 = vld [vmem:[#allocation2 + $0x60] sm:$0xf] }
 0x207   : > { %9137 = vmatprep.subr.bf16.mxu1 %v9674_v5  ;;  %v6600_v50 = vrot.slane %v6598_v41, 4 }
 0x208   : > { %8948 = vmatpush3.bf16.msra.mxu0 %v9677_v45  ;;  %v3736_v45 = vrot.slane %v3544_v29, 5  ;;  %v6519_v14 = vor.u32 %v6518_v42, %v6515_v33 }
 0x209   : > { %9106 = vmatmul.mubr.bf16.gmra.mrb[8].mxu1 %v9659_v43  ;;  %8981 = vmatprep.subr.bf16.mxu0 %v10954_v38  ;;  %v6414_v43 = vld [vmem:[#allocation2 + $0x30] sm:$0xf] }
 0x20a   : > { %9109 = vmatprep.mubr.bf16.mxu1 %v9660_v40  ;;  %9138 = vmatpush3.bf16.msra.mxu1 %v9674_v5  ;;  %v3725_v5 = vrot.slane %v3539_v0, 5  ;;  %v3738_v54 = vrot.slane %v3736_v45, 4  ;;  %v6505_v40 = vor.u32 %v6504_v21, %v10975_v55  ;;  %v6537_v13 = vshrl.u32 %v6414_v43, 16 }
 0x20b   : > { %8918 = vmatmul.mubr.bf16.gmra.mrb[48].mxu0 %v8191_v7  ;;  %9139 = vmatprep.subr.bf16.mxu1 %v9680_v49  ;;  %v3733_v7 = vsel %vm10683_vm14, %v3731_v62, %v3732_v56  ;;  %v6540_v63 = vshll.u32 %v6414_v43, 16  ;;  %v3737_v6 = vsel %vm10683_vm14, %v8165_v39, %v3736_v45  ;;  %v10994_v0 = vrot.slane %v6519_v14, 4  ;;  %v6417_v62 = vld [vmem:[#allocation2 + $0x3c] sm:$0xf]  ;;  %v6420_v45 = vld [vmem:[#allocation2 + $0x48] sm:$0xf] }
 0x20c   : > { %8921 = vmatprep.mubr.bf16.mxu0 %v8192_v51  ;;  %v3726_v44 = vsel %vm10683_vm14, %v3724_v15, %v3725_v5  ;;  %v6522_v51 = vshll.u32 %v6412_v37, 16  ;;  %v8196_v16 = vcombine.low %v3730_v60, %v3733_v7  ;;  %v3740_v11 = vsel %vm10683_vm14, %v3738_v54, %v3739_v3  ;;  %v6424_v56 = vld [vmem:[#allocation2 + $0x58] sm:$0xf]  ;;  %v9673_v37 = vld [vmem:[#allocation2 + $0xc] sm:$0xff]  }
 0x20d   : > { %v8195_v1 = vcombine.low %v3723_v47, %v3726_v44  ;;  %v6506_v19 = vrot.slane %v6505_v40, 4  ;;  %v6539_v29 = vrot.slane %v6537_v13, 4  ;;  %v6542_v18 = vrot.slane %v6540_v63, 5  ;;  %v6423_v40 = vld [vmem:[#allocation2 + $0x54] sm:$0xf]  ;;  %v9681_v47 = vld [vmem:[#allocation2 + $0xcc] sm:$0xff]  }
 0x20e   : > { %9140 = vmatpush3.bf16.msra.mxu1 %v9680_v49  ;;  %v6413_v49 = vld [vmem:[#allocation2 + $0x2c] sm:$0x1]  ;;  %v8197_v17 = vcombine.low %v3737_v6, %v3740_v11  ;;  %v6594_v21 = vshll.u32 %v6421_v4, 16  ;;  %v6556_v5 = vshll.u32 %v6416_v22, 16  ;;  %v6561_v33 = vshrl.u32 %v6417_v62, 16 }
 0x20f   : > { %9173 = vmatprep.subr.bf16.mxu1 %v10964_v61  ;;  %v6532_v2 = vshll.u32 %v6413_v49, 16  ;;  %v6511_v15 = vsel %vm10511_vm11, %v6506_v19, %v6510_v20  ;;  %v6543_v35 = vor.u32 %v6542_v18, %v6539_v29  ;;  %v6564_v42 = vshll.u32 %v6417_v62, 16  ;;  %v9678_v29 = vld [vmem:[#allocation2 + $0x18] sm:$0xff]   ;;  %v6429_v62 = vld [vmem:[#allocation2 + $0x6c] sm:$0xf] }
 0x210   : > { %v6585_v7 = vshrl.u32 %v6420_v45, 16  ;;  %v6588_v54 = vshll.u32 %v6420_v45, 16  ;;  %v11012_v48 = vrot.slane %v6594_v21, 5  ;;  %v6618_v49 = vshll.u32 %v6424_v56, 16 }
 0x211   : > { %9110 = vmatmul.mubr.bf16.gmra.mrb[12].mxu1 %v9664_v26  ;;  %v10992_v26 = vrot.slane %v6522_v51, 5  ;;  %v10998_v58 = vrot.slane %v6532_v2, 5  ;;  %v6622_v51 = vshrl.u32 %v6424_v56, 16  ;;  %v11014_v3 = vrot.slane %v6543_v35, 4  ;;  %v6430_v56 = vld [vmem:[#allocation2 + $0x70] sm:$0xf] }
 0x212   : > { %9113 = vmatprep.mubr.bf16.mxu1 %v9665_v9  ;;  %v6418_v9 = vld [vmem:[#allocation2 + $0x40] sm:$0xf]  ;;  %v11017_v63 = vrot.slane %v6556_v5, 5  ;;  %v6563_v60 = vrot.slane %v6561_v33, 4  ;;  %v6609_v6 = vshrl.u32 %v6423_v40, 16  ;;  %v6612_v14 = vshll.u32 %v6423_v40, 16 }
 0x213   : > { %8922 = vmatmul.mubr.bf16.gmra.mrb[52].mxu0 %v8193_v25  ;;  %v6550_v25 = vshrl.u32 %v6415_v57, 16  ;;  %v6570_v23 = vshll.u32 %v6418_v9, 16  ;;  %v6574_v32 = vshrl.u32 %v6418_v9, 16  ;;  %v6529_v30 = vor.u32 %v6528_v24, %v10992_v26  ;;  %v6427_v57 = vld [vmem:[#allocation2 + $0x64] sm:$0xf] }
 0x214   : > { %8925 = vmatprep.mubr.bf16.mxu0 %v8194_v28  ;;  %v6501_v28 = vsel %vm10511_vm11, %v6496_v27, %v10975_v55  ;;  %v6525_v55 = vsel %vm10511_vm11, %v10994_v0, %v10992_v26  ;;  %v6587_v11 = vrot.slane %v6585_v7, 4  ;;  %v6590_v19 = vrot.slane %v6588_v54, 5 }
 0x215   : > { %v6552_v36 = vrot.slane %v6550_v25, 4  ;;  %v8398_v39 = vcombine.low %v6501_v28, %v6511_v15  ;;  %v11010_v43 = vrot.slane %v6570_v23, 5  ;;  %v6576_v44 = vrot.slane %v6574_v32, 4  ;;  %v9679_v23 = vld [vmem:[#allocation2 + $0x24] sm:$0xff]  }
 0x216   : > { %v6633_v2 = vshrl.u32 %v6426_v53, 16  ;;  %v6636_v27 = vshll.u32 %v6426_v53, 16  ;;  %v6601_v26 = vor.u32 %v6600_v50, %v11012_v48  ;;  %v11021_v24 = vrot.slane %v6618_v49, 5  ;;  %v6428_v50 = vld [vmem:[#allocation2 + $0x68] sm:$0x1] }
 0x217   : > { %v6553_v13 = vor.u32 %v6552_v36, %v11004_v8  ;;  %v6577_v20 = vor.u32 %v6576_v44, %v11010_v43  ;;  %v6624_v9 = vrot.slane %v6622_v51, 4  ;;  %v6642_v25 = vshll.u32 %v6427_v57, 16 }
 0x218   : > { %v6646_v4 = vshrl.u32 %v6427_v57, 16  ;;  %v6611_v22 = vrot.slane %v6609_v6, 4  ;;  %v6614_v15 = vrot.slane %v6612_v14, 5  ;;  %v6591_v28 = vor.u32 %v6590_v19, %v6587_v11  ;;  %v9687_v6 = vld [vmem:[%s11528_s4 + $0x208] sm:$0xff]   ;;  %v6431_v11 = vld [vmem:[#allocation2 + $0x74] sm:$0x1] }
 0x219   : > { %9114 = vmatmul.mubr.bf16.gmra.mrb[16].mxu1 %v9669_v59  ;;  %v6530_v59 = vrot.slane %v6529_v30, 4  ;;  %v6554_v12 = vrot.slane %v6553_v13, 4  ;;  %v6425_v30 = vld [vmem:[#allocation2 + $0x5c] sm:$0x1]  ;;  %v6635_v45 = vrot.slane %v6633_v2, 4  ;;  %v6638_v21 = vrot.slane %v6636_v27, 5 }
 0x21a   : > { %9117 = vmatprep.mubr.bf16.mxu1 %v9670_v10  ;;  %v6566_v10 = vrot.slane %v6564_v42, 5  ;;  %v6625_v35 = vor.u32 %v6624_v9, %v11021_v24  ;;  %v11027_v36 = vrot.slane %v6642_v25, 5  ;;  %v6648_v5 = vrot.slane %v6646_v4, 4  ;;  %v9707_v19 = vld [vmem:[%s11528_s4 + $0x110] sm:$0xff]   ;;  %v9683_v2 = vld [vmem:[#allocation2 + $0x3c] sm:$0xff]  }
 0x21b   : > { %8926 = vmatmul.mubr.bf16.gmra.mrb[56].mxu0 %v8195_v1  ;;  %v6419_v1 = vld [vmem:[#allocation2 + $0x44] sm:$0x1]  ;;  %v6535_v18 = vsel %vm10511_vm11, %v6530_v59, %v10998_v58  ;;  %v6602_v58 = vrot.slane %v6601_v26, 4  ;;  %v6615_v44 = vor.u32 %v6614_v15, %v6611_v22  ;;  %v6628_v7 = vshll.u32 %v6425_v30, 16  ;;  %v9682_v59 = vld [vmem:[#allocation2 + $0x30] sm:$0xff]  }
 0x21c   : > { %8929 = vmatprep.mubr.bf16.mxu0 %v8196_v16  ;;  %v6422_v16 = vld [vmem:[#allocation2 + $0x50] sm:$0x1]  ;;  %v6567_v32 = vor.u32 %v6566_v10, %v6563_v60  ;;  %v8399_v41 = vcombine.low %v6525_v55, %v6535_v18  ;;  %v6559_v55 = vsel %vm10511_vm11, %v6554_v12, %v11017_v63  ;;  %v6592_v40 = vrot.slane %v6591_v28, 4  ;;  %v6432_v26 = vld [vmem:[#allocation2 + $0x78] sm:$0xf] }
 0x21d   : > { %v6604_v0 = vshll.u32 %v6422_v16, 16  ;;  %v6626_v53 = vrot.slane %v6625_v35, 4  ;;  %v6649_v13 = vor.u32 %v6648_v5, %v11027_v36  ;;  %v6670_v10 = vshrl.u32 %v6430_v56, 16  ;;  %v6433_v25 = vld [vmem:[#allocation2 + $0x7c] sm:$0xf] }
 0x21e   : > { %v6568_v54 = vrot.slane %v6567_v32, 4  ;;  %v6549_v63 = vsel %vm10511_vm11, %v11014_v3, %v11004_v8  ;;  %v6616_v14 = vrot.slane %v6615_v44, 4  ;;  %v6630_v57 = vrot.slane %v6628_v7, 5  ;;  %v6436_v4 = vld [vmem:[#allocation2 + $0x88] sm:$0xf] }
 0x21f   : > { %v6606_v42 = vrot.slane %v6604_v0, 5  ;;  %v6652_v16 = vshll.u32 %v6428_v50, 16  ;;  %v8400_v27 = vcombine.low %v6549_v63, %v6559_v55  ;;  %v6597_v3 = vsel %vm10511_vm11, %v6592_v40, %v11012_v48  ;;  %v6439_v22 = vld [vmem:[#allocation2 + $0x94] sm:$0xf]  ;;  %v6438_v5 = vld [vmem:[#allocation2 + $0x90] sm:$0xf] }
 0x220   : > { %v6573_v8 = vsel %vm10511_vm11, %v6568_v54, %v11010_v43  ;;  %v6631_v18 = vsel %vm10511_vm11, %v6626_v53, %v6630_v57  ;;  %v9690_v43 = vld [vmem:[%s11528_s4 + $0x210] sm:$0xff]   ;;  %v11067_v48 = vrot.slane %v6649_v13, 4  ;;  %v6672_v0 = vrot.slane %v6670_v10, 4  ;;  %v6441_v55 = vld [vmem:[#allocation2 + $0x9c] sm:$0xf] }
 0x221   : > { %9118 = vmatmul.mubr.bf16.gmra.mrb[20].mxu1 %v9675_v34  ;;  %v6578_v34 = vrot.slane %v6577_v20, 4  ;;  %v6607_v51 = vsel %vm10511_vm11, %v6602_v58, %v6606_v42  ;;  %v6621_v15 = vsel %vm10511_vm11, %v6616_v14, %v11021_v24  ;;  %v6684_v32 = vshll.u32 %v6432_v26, 16  ;;  %v9685_v24 = vld [vmem:[#allocation2 + $0x48] sm:$0xff]   ;;  %v9693_v42 = vld [vmem:[%s11528_s4 + $0x218] sm:$0xff]  }
 0x222   : > { %9121 = vmatprep.mubr.bf16.mxu1 %v9676_v46  ;;  %v6660_v46 = vshll.u32 %v6429_v62, 16  ;;  %v11074_v28 = vcombine.low %v6621_v15, %v6631_v18  ;;  %v6714_v58 = vshll.u32 %v6436_v4, 16  ;;  %v6718_v35 = vshrl.u32 %v6436_v4, 16  ;;  %v6440_v18 = vld [vmem:[#allocation2 + $0x98] sm:$0x1] }
 0x223   : > { %8930 = vmatmul.mubr.bf16.gmra.mrb[60].mxu0 %v8197_v17  ;;  %v6580_v17 = vshll.u32 %v6419_v1, 16  ;;  %v11097_v40 = vrot.slane %v6684_v32, 5  ;;  %v6732_v13 = vshll.u32 %v6438_v5, 16  ;;  %v6753_v14 = vshrl.u32 %v6441_v55, 16 }
 0x224   : > { %8949 = vmatprep.mubr.bf16.mxu0 %v9673_v37  ;;  %v6657_v37 = vshrl.u32 %v6429_v62, 16  ;;  %v6662_v60 = vrot.slane %v6660_v46, 5  ;;  %v11072_v62 = vrot.slane %v6652_v16, 5  ;;  %v9686_v46 = vld [vmem:[#allocation2 + $0x54] sm:$0xff]   ;;  %v6720_v10 = vrot.slane %v6718_v35, 4 }
 0x225   : > { %v6582_v33 = vrot.slane %v6580_v17, 5  ;;  %v6756_v57 = vshll.u32 %v6441_v55, 16  ;;  %v6734_v4 = vrot.slane %v6732_v13, 5  ;;  %v6755_v15 = vrot.slane %v6753_v14, 4 }
 0x226   : > { %v6659_v1 = vrot.slane %v6657_v37, 4  ;;  %v6742_v37 = vshrl.u32 %v6439_v22, 16 }
 0x227   : > { %v6583_v49 = vsel %vm10511_vm11, %v6578_v34, %v6582_v33  ;;  %v9708_v34 = vld [vmem:[%s11528_s4 + $0x118] sm:$0xff]   ;;  %v6655_v33 = vsel %vm10511_vm11, %v11067_v48, %v11072_v62  ;;  %v9688_v48 = vld [vmem:[#allocation2 + $0x60] sm:$0xff]   ;;  %v6758_v62 = vrot.slane %v6756_v57, 5 }
 0x228   : > { %v8401_v9 = vcombine.low %v6573_v8, %v6583_v49  ;;  %v6663_v17 = vor.u32 %v6662_v60, %v6659_v1  ;;  %v6442_v49 = vld [vmem:[#allocation2 + $0xa0] sm:$0xf]  ;;  %v11104_v60 = vrot.slane %v6714_v58, 5 }
 0x229   : > { %9122 = vmatmul.mubr.bf16.gmra.mrb[24].mxu1 %v9681_v47  ;;  %v6666_v47 = vshll.u32 %v6430_v56, 16  ;;  %v6738_v56 = vshll.u32 %v6439_v22, 16  ;;  %v9709_v1 = vld [vmem:[%s11528_s4 + $0x120] sm:$0xff]   ;;  %v6762_v16 = vshll.u32 %v6442_v49, 16 }
 0x22a   : > { %9141 = vmatprep.mubr.bf16.mxu1 %v8398_v39  ;;  %v9706_v39 = vld [vmem:[%s11528_s4 + $0x108] sm:$0xff]   ;;  %v11090_v44 = vrot.slane %v6663_v17, 4 }
 0x22b   : > { %8950 = vmatmul.mubr.bf16.vlgmr.msra.gmra.mrb[32].mxu0 %v9678_v29  ;;  %v8402_v29 = vcombine.low %v6597_v3, %v6607_v51  ;;  %v11062_v12 = vrot.slane %v6666_v47, 5  ;;  %v6434_v51 = vld [vmem:[#allocation2 + $0x80] sm:$0x1]  ;;  %v11106_v63 = vrot.slane %v6738_v56, 5  ;;  %v9711_v56 = vld [vmem:[%s11528_s4 + $0x130] sm:$0xff]  }
 0x22c   : > { %8953 = vmatprep.mubr.bf16.mxu0 %v9679_v23  ;;  %8982 = vmatpush3.bf16.msra.mxu0 %v10954_v38  ;;  %v6639_v38 = vor.u32 %v6638_v21, %v6635_v45  ;;  %v6681_v23 = vshrl.u32 %v6432_v26, 16  ;;  %v6690_v45 = vshll.u32 %v6433_v25, 16  ;;  %v6694_v21 = vshrl.u32 %v6433_v25, 16 }
 0x22d   : > { %8983 = vmatprep.subr.bf16.mxu0 %v9706_v39  ;;  %v6673_v7 = vor.u32 %v6672_v0, %v11062_v12  ;;  %v6669_v0 = vsel %vm10511_vm11, %v11090_v44, %v11062_v12  ;;  %v9699_v12 = vld [vmem:[%s11528_s4 + $0x228] sm:$0xff]  }
 0x22e   : > { %v11057_v20 = vrot.slane %v6639_v38, 4  ;;  %v11095_v54 = vrot.slane %v6681_v23, 4  ;;  %v11099_v53 = vrot.slane %v6690_v45, 5  ;;  %v6696_v47 = vrot.slane %v6694_v21, 4  ;;  %v6444_v45 = vld [vmem:[#allocation2 + $0xa8] sm:$0xf] }
 0x22f   : > { %v11128_v23 = vrot.slane %v6762_v16, 5  ;;  %v6780_v44 = vshll.u32 %v6444_v45, 16 }
 0x230   : > { %8984 = vmatpush3.bf16.msra.mxu0 %v9706_v39  ;;  %v6645_v30 = vsel %vm10511_vm11, %v11057_v20, %v11027_v36  ;;  %v6687_v26 = vor.u32 %v11097_v40, %v11095_v54 }
 0x231   : > { %8985 = vmatprep.subr.bf16.mxu0 %v9707_v19  ;;  %9142 = vmatmul.mubr.bf16.vlgmr.msra.gmra.mrb[28].mxu1 %v8399_v41  ;;  %v6435_v41 = vld [vmem:[#allocation2 + $0x84] sm:$0xf]  ;;  %v8404_v17 = vcombine.low %v6645_v30, %v6655_v33  ;;  %v6748_v30 = vshll.u32 %v6440_v18, 16  ;;  %v6782_v16 = vrot.slane %v6780_v44, 5  ;;  %v9702_v18 = vld [vmem:[%s11528_s4 + $0x238] sm:$0xff]  }
 0x232   : > { %9174 = vmatpush3.bf16.msra.mxu1 %v10964_v61  ;;  %9145 = vmatprep.mubr.bf16.mxu1 %v8400_v27  ;;  %v6676_v61 = vshll.u32 %v6431_v11, 16  ;;  %v6705_v50 = vshrl.u32 %v6435_v41, 16  ;;  %v6708_v38 = vshll.u32 %v6435_v41, 16  ;;  %v6766_v11 = vshrl.u32 %v6442_v49, 16  ;;  %v9696_v27 = vld [vmem:[%s11528_s4 + $0x220] sm:$0xff]   ;;  %v9701_v49 = vld [vmem:[%s11528_s4 + $0x230] sm:$0xff]  }
 0x233   : > { %8954 = vmatmul.mubr.bf16.gmra.mrb[36].mxu0 %v9682_v59  ;;  %9175 = vmatprep.subr.bf16.mxu1 %v9687_v6  ;;  %v6729_v59 = vshrl.u32 %v6438_v5, 16  ;;  %v6445_v41 = vld [vmem:[#allocation2 + $0xac] sm:$0xf]  ;;  %v6688_v58 = vrot.slane %v6687_v26, 4  ;;  %v6443_v33 = vld [vmem:[#allocation2 + $0xa4] sm:$0x1] }
 0x234   : > { %8957 = vmatprep.mubr.bf16.mxu0 %v9683_v2  ;;  %8986 = vmatpush3.bf16.msra.mxu0 %v9707_v19  ;;  %v11093_v39 = vrot.slane %v6676_v61, 5  ;;  %v6674_v19 = vrot.slane %v6673_v7, 4  ;;  %v6700_v2 = vshll.u32 %v6434_v51, 16  ;;  %v6707_v8 = vrot.slane %v6705_v50, 4 }
 0x235   : > { %8987 = vmatprep.subr.bf16.mxu0 %v9708_v34  ;;  %v6710_v3 = vrot.slane %v6708_v38, 5  ;;  %v6731_v25 = vrot.slane %v6729_v59, 4  ;;  %v6721_v61 = vor.u32 %v6720_v10, %v11104_v60  ;;  %v6768_v32 = vrot.slane %v6766_v11, 4  ;;  %v9712_v10 = vld [vmem:[%s11528_s4 + $0x138] sm:$0xff]  }
 0x236   : > { %9176 = vmatpush3.bf16.msra.mxu1 %v9687_v6  ;;  %v6744_v6 = vrot.slane %v6742_v37, 4  ;;  %v6702_v21 = vrot.slane %v6700_v2, 5  ;;  %v6790_v55 = vshrl.u32 %v6445_v41, 16  ;;  %v6750_v38 = vrot.slane %v6748_v30, 5 }
 0x237   : > { %9177 = vmatprep.subr.bf16.mxu1 %v9690_v43  ;;  %v6711_v36 = vor.u32 %v6710_v3, %v6707_v8  ;;  %v6735_v5 = vor.u32 %v6734_v4, %v6731_v25  ;;  %v6722_v37 = vrot.slane %v6721_v61, 4  ;;  %v6769_v7 = vor.u32 %v6768_v32, %v11128_v23  ;;  %v9691_v8 = vld [vmem:[#allocation2 + $0x78] sm:$0xff]   ;;  %v9692_v25 = vld [vmem:[#allocation2 + $0x84] sm:$0xff]  }
 0x238   : > { %8988 = vmatpush3.bf16.msra.mxu0 %v9708_v34  ;;  %v6745_v22 = vor.u32 %v6744_v6, %v11106_v63  ;;  %v9689_v34 = vld [vmem:[#allocation2 + $0x6c] sm:$0xff]   ;;  %v6693_v51 = vsel %vm10511_vm11, %v6688_v58, %v11099_v53  ;;  %v6772_v13 = vshll.u32 %v6443_v33, 16  ;;  %v6792_v2 = vrot.slane %v6790_v55, 4 }
 0x239   : > { %9146 = vmatmul.mubr.bf16.gmra.mrb[0].mxu1 %v8401_v9  ;;  %8989 = vmatprep.subr.bf16.mxu0 %v9709_v1  ;;  %v6697_v9 = vor.u32 %v6696_v47, %v11099_v53  ;;  %v6712_v40 = vrot.slane %v6711_v36, 4  ;;  %v6736_v59 = vrot.slane %v6735_v5, 4  ;;  %v6770_v11 = vrot.slane %v6769_v7, 4  ;;  %v6453_v33 = vld [vmem:[#allocation2 + $0xcc] sm:$0xf]  ;;  %v9694_v55 = vld [vmem:[#allocation2 + $0x90] sm:$0xff]  }
 0x23a   : > { %9149 = vmatprep.mubr.bf16.mxu1 %v8402_v29  ;;  %9178 = vmatpush3.bf16.msra.mxu1 %v9690_v43  ;;  %v6437_v29 = vld [vmem:[#allocation2 + $0x8c] sm:$0x1] }
 0x23b   : > { %8958 = vmatmul.mubr.bf16.gmra.mrb[40].mxu0 %v9685_v24  ;;  %9179 = vmatprep.subr.bf16.mxu1 %v9693_v42  ;;  %v9710_v43 = vld [vmem:[%s11528_s4 + $0x128] sm:$0xff]   ;;  %v6724_v20 = vshll.u32 %v6437_v29, 16  ;;  %v6679_v24 = vsel %vm10511_vm11, %v6674_v19, %v11093_v39  ;;  %v6698_v35 = vrot.slane %v6697_v9, 4  ;;  %v6786_v39 = vshll.u32 %v6445_v41, 16  ;;  %v4546_v29 = vld [vmem:[#allocation2 + $0x10] sm:$0xf] }
 0x23c   : > { %8961 = vmatprep.mubr.bf16.mxu0 %v9686_v46  ;;  %8990 = vmatpush3.bf16.msra.mxu0 %v9709_v1  ;;  %v6746_v46 = vrot.slane %v6745_v22, 4  ;;  %v8405_v54 = vcombine.low %v6669_v0, %v6679_v24  ;;  %v6446_v1 = vld [vmem:[#allocation2 + $0xb0] sm:$0x1]  ;;  %v6717_v26 = vsel %vm10511_vm11, %v6712_v40, %v11104_v60  ;;  %v6450_v41 = vld [vmem:[#allocation2 + $0xc0] sm:$0xf] }
 0x23d   : > { %8991 = vmatprep.subr.bf16.mxu0 %v9710_v43  ;;  %v6726_v50 = vrot.slane %v6724_v20, 5  ;;  %v6703_v47 = vsel %vm10511_vm11, %v6698_v35, %v6702_v21  ;;  %v11156_v19 = vrot.slane %v6786_v39, 5  ;;  %v6796_v9 = vshll.u32 %v6446_v1, 16  ;;  %v6454_v39 = vld [vmem:[#allocation2 + $0xd0] sm:$0xf] }
 0x23e   : > { %9180 = vmatpush3.bf16.msra.mxu1 %v9693_v42  ;;  %v6777_v42 = vshrl.u32 %v6444_v45, 16  ;;  %v6751_v14 = vsel %vm10511_vm11, %v6746_v46, %v6750_v38  ;;  %v8406_v3 = vcombine.low %v6693_v51, %v6703_v47  ;;  %v4635_v21 = vshll.u32 %v4546_v29, 16  ;;  %v6449_v51 = vld [vmem:[#allocation2 + $0xbc] sm:$0x1] }
 0x23f   : > { %9181 = vmatprep.subr.bf16.mxu1 %v9696_v27  ;;  %v6727_v6 = vsel %vm10511_vm11, %v6722_v37, %v6726_v50  ;;  %v11173_v36 = vrot.slane %v6796_v9, 5  ;;  %v4639_v20 = vshrl.u32 %v4546_v29, 16  ;;  %v6828_v7 = vshll.u32 %v6450_v41, 16  ;;  %v6452_v29 = vld [vmem:[#allocation2 + $0xc8] sm:$0x1] }
 0x240   : > { %8992 = vmatpush3.bf16.msra.mxu0 %v9710_v43  ;;  %v6779_v57 = vrot.slane %v6777_v42, 4  ;;  %v8407_v4 = vcombine.low %v6717_v26, %v6727_v6  ;;  %v6741_v43 = vsel %vm10511_vm11, %v6736_v59, %v11106_v63  ;;  %v6793_v63 = vor.u32 %v6792_v2, %v11156_v19 }
 0x241   : > { %9150 = vmatmul.mubr.bf16.gmra.mrb[4].mxu1 %v11074_v28  ;;  %8993 = vmatprep.subr.bf16.mxu0 %v9711_v56  ;;  %v6759_v28 = vor.u32 %v6758_v62, %v6755_v15  ;;  %v8408_v60 = vcombine.low %v6741_v43, %v6751_v14  ;;  %v6447_v15 = vld [vmem:[#allocation2 + $0xb4] sm:$0xf]  ;;  %v6451_v62 = vld [vmem:[#allocation2 + $0xc4] sm:$0xf]  ;;  %v11179_v44 = vrot.slane %v4635_v21, 5  ;;  %v4641_v40 = vrot.slane %v4639_v20, 4 }
 0x242   : > { %9153 = vmatprep.mubr.bf16.mxu1 %v8404_v17  ;;  %9182 = vmatpush3.bf16.msra.mxu1 %v9696_v27  ;;  %v4545_v27 = vld [vmem:[#allocation2 + $0xc] sm:$0xf]  ;;  %v6448_v17 = vld [vmem:[#allocation2 + $0xb8] sm:$0xf]  ;;  %v6783_v0 = vor.u32 %v6782_v16, %v6779_v57  ;;  %v6801_v24 = vshrl.u32 %v6447_v15, 16  ;;  %v6804_v58 = vshll.u32 %v6447_v15, 16 }
 0x243   : > { %8962 = vmatmul.mubr.bf16.gmra.mrb[44].mxu0 %v9688_v48  ;;  %9183 = vmatprep.subr.bf16.mxu1 %v9699_v12  ;;  %v6760_v53 = vrot.slane %v6759_v28, 4  ;;  %v6774_v48 = vrot.slane %v6772_v13, 5  ;;  %v4626_v61 = vshrl.u32 %v4545_v27, 16  ;;  %v4629_v22 = vshll.u32 %v4545_v27, 16 }
 0x244   : > { %8965 = vmatprep.mubr.bf16.mxu0 %v9689_v34  ;;  %8994 = vmatpush3.bf16.msra.mxu0 %v9711_v56  ;;  %v6810_v30 = vshll.u32 %v6448_v17, 16  ;;  %v4547_v34 = vld [vmem:[#allocation2 + $0x14] sm:$0x1]  ;;  %v6834_v35 = vshll.u32 %v6451_v62, 16  ;;  %v6838_v5 = vshrl.u32 %v6451_v62, 16  ;;  %v6784_v56 = vrot.slane %v6783_v0, 4 }
 0x245   : > { %8995 = vmatprep.subr.bf16.mxu0 %v9712_v10  ;;  %v6765_v32 = vsel %vm10511_vm11, %v6760_v53, %v11128_v23  ;;  %v6775_v45 = vsel %vm10511_vm11, %v6770_v11, %v6774_v48  ;;  %v11175_v37 = vrot.slane %v4626_v61, 4  ;;  %v11177_v46 = vrot.slane %v4629_v22, 5 }
 0x246   : > { %9184 = vmatpush3.bf16.msra.mxu1 %v9699_v12  ;;  %v6814_v12 = vshrl.u32 %v6448_v17, 16  ;;  %v8409_v23 = vcombine.low %v6765_v32, %v6775_v45  ;;  %v6794_v42 = vrot.slane %v6793_v63, 4  ;;  %v6825_v28 = vshrl.u32 %v6450_v41, 16  ;;  %v6455_v32 = vld [vmem:[#allocation2 + $0xd4] sm:$0x1]  ;;  %v9697_v45 = vld [vmem:[#allocation2 + $0xa8] sm:$0xff]  }
 0x247   : > { %9185 = vmatprep.subr.bf16.mxu1 %v9701_v49  ;;  %v4645_v50 = vshll.u32 %v4547_v34, 16  ;;  %v11181_v38 = vrot.slane %v6810_v30, 5  ;;  %v6803_v47 = vrot.slane %v6801_v24, 4  ;;  %v6806_v59 = vrot.slane %v6804_v58, 5  ;;  %v9698_v30 = vld [vmem:[#allocation2 + $0xb4] sm:$0xff]  }
 0x248   : > { %8996 = vmatpush3.bf16.msra.mxu0 %v9712_v10  ;;  %v11183_v13 = vrot.slane %v6834_v35, 5  ;;  %v6840_v1 = vrot.slane %v6838_v5, 4  ;;  %v4549_v10 = vld [vmem:[#allocation2 + $0x1c] sm:$0xf]  ;;  %v6849_v6 = vshrl.u32 %v6453_v33, 16  ;;  %v6852_v14 = vshll.u32 %v6453_v33, 16 }
 0x249   : > { %9154 = vmatmul.mubr.bf16.gmra.mrb[8].mxu1 %v8405_v54  ;;  %v9695_v54 = vld [vmem:[#allocation2 + $0x9c] sm:$0xff]   ;;  %v6858_v57 = vshll.u32 %v6454_v39, 16  ;;  %v6862_v16 = vshrl.u32 %v6454_v39, 16  ;;  %v6789_v53 = vsel %vm10511_vm11, %v6784_v56, %v11156_v19  ;;  %v4632_v11 = vor.u32 %v11177_v46, %v11175_v37 }
 0x24a   : > { %9157 = vmatprep.mubr.bf16.mxu1 %v8406_v3  ;;  %9186 = vmatpush3.bf16.msra.mxu1 %v9701_v49  ;;  %v6816_v49 = vrot.slane %v6814_v12, 4  ;;  %v6827_v2 = vrot.slane %v6825_v28, 4  ;;  %v6830_v27 = vrot.slane %v6828_v7, 5  ;;  %v4642_v3 = vor.u32 %v4641_v40, %v11179_v44  ;;  %v7227_v37 = vld [vmem:[#allocation2 + $0x1c] sm:$0xf] }
 0x24b   : > { %8966 = vmatmul.mubr.bf16.gmra.mrb[48].mxu0 %v9691_v8  ;;  %9187 = vmatprep.subr.bf16.mxu1 %v9702_v18  ;;  %v6799_v8 = vsel %vm10511_vm11, %v6794_v42, %v11173_v36  ;;  %v6820_v9 = vshll.u32 %v6449_v51, 16  ;;  %v4659_v19 = vshll.u32 %v4549_v10, 16  ;;  %v4663_v43 = vshrl.u32 %v4549_v10, 16  ;;  %v4550_v39 = vld [vmem:[#allocation2 + $0x20] sm:$0x1] }
 0x24c   : > { %8969 = vmatprep.mubr.bf16.mxu0 %v9692_v25  ;;  %v6817_v26 = vor.u32 %v6816_v49, %v11181_v38  ;;  %v6807_v25 = vor.u32 %v6806_v59, %v6803_v47  ;;  %v6851_v48 = vrot.slane %v6849_v6, 4  ;;  %v6854_v17 = vrot.slane %v6852_v14, 5 }
 0x24d   : > { %v6864_v0 = vrot.slane %v6862_v16, 4  ;;  %v6831_v61 = vor.u32 %v6830_v27, %v6827_v2  ;;  %v6844_v22 = vshll.u32 %v6452_v29, 16  ;;  %v8410_v63 = vcombine.low %v6789_v53, %v6799_v8  ;;  %v7226_v27 = vld [vmem:[#allocation2 + $0x18] sm:$0xe] }
 0x24e   : > { %9188 = vmatpush3.bf16.msra.mxu1 %v9702_v18  ;;  %v4548_v18 = vld [vmem:[#allocation2 + $0x18] sm:$0xf]  ;;  %v4643_v21 = vrot.slane %v4642_v3, 4  ;;  %v4647_v36 = vrot.slane %v4645_v50, 5  ;;  %v6818_v20 = vrot.slane %v6817_v26, 4  ;;  %v6822_v12 = vrot.slane %v6820_v9, 5 }
 0x24f   : > { %v4650_v15 = vshrl.u32 %v4548_v18, 16  ;;  %v4653_v62 = vshll.u32 %v4548_v18, 16  ;;  %v4661_v34 = vrot.slane %v4659_v19, 5  ;;  %v4665_v24 = vrot.slane %v4663_v43, 4  ;;  %v7230_v3 = vld [vmem:[#allocation2 + $0x28] sm:$0xf] }
 0x250   : > { %v6808_v58 = vrot.slane %v6807_v25, 4  ;;  %v6855_v35 = vor.u32 %v6854_v17, %v6851_v48  ;;  %v6868_v56 = vshll.u32 %v6455_v32, 16  ;;  %v6832_v46 = vrot.slane %v6831_v61, 4  ;;  %v7233_v9 = vld [vmem:[#allocation2 + $0x34] sm:$0xf] }
 0x251   : > { %9158 = vmatmul.mubr.bf16.gmra.mrb[12].mxu1 %v8407_v4  ;;  %v6841_v4 = vor.u32 %v6840_v1, %v11183_v13  ;;  %v6846_v33 = vrot.slane %v6844_v22, 5  ;;  %v4652_v42 = vrot.slane %v4650_v15, 4  ;;  %v4655_v28 = vrot.slane %v4653_v62, 5  ;;  %v7231_v61 = vld [vmem:[#allocation2 + $0x2c] sm:$0x1] }
 0x252   : > { %9161 = vmatprep.mubr.bf16.mxu1 %v8408_v60  ;;  %v11196_v60 = vrot.slane %v6858_v57, 5  ;;  %v4633_v7 = vrot.slane %v4632_v11, 4  ;;  %v4666_v40 = vor.u32 %v4665_v24, %v4661_v34  ;;  %v7356_v50 = vrot.slane %v7227_v37, 5  ;;  %v9700_v57 = vld [vmem:[#allocation2 + $0xc0] sm:$0xff]   ;;  %v7234_v32 = vld [vmem:[#allocation2 + $0x38] sm:$0x1] }
 0x253   : > { %8970 = vmatmul.mubr.bf16.gmra.mrb[52].mxu0 %v9694_v55  ;;  %v6842_v41 = vrot.slane %v6841_v4, 4  ;;  %v4648_v55 = vsel %vm10511_vm11, %v4643_v21, %v4647_v36  ;;  %v6813_v49 = vsel %vm10511_vm11, %v6808_v58, %v11181_v38  ;;  %v6856_v51 = vrot.slane %v6855_v35, 4  ;;  %v7228_v11 = vld [vmem:[#allocation2 + $0x20] sm:$0x1] }
 0x254   : > { %8973 = vmatprep.mubr.bf16.mxu0 %v9695_v54  ;;  %v6865_v5 = vor.u32 %v6864_v0, %v11196_v60  ;;  %v6870_v59 = vrot.slane %v6868_v56, 5  ;;  %v6837_v10 = vsel %vm10511_vm11, %v6832_v46, %v11183_v13  ;;  %v4656_v6 = vor.u32 %v4655_v28, %v4652_v42  ;;  %v7236_v21 = vld [vmem:[#allocation2 + $0x40] sm:$0xf]  ;;  %v7237_v46 = vld [vmem:[#allocation2 + $0x44] sm:$0x1] }
 0x255   : > { %v6847_v54 = vsel %vm10511_vm11, %v6842_v41, %v6846_v33  ;;  %v4669_v14 = vshll.u32 %v4550_v39, 16  ;;  %v4638_v16 = vsel %vm10511_vm11, %v4633_v7, %v11179_v44  ;;  %v4667_v38 = vrot.slane %v4666_v40, 4  ;;  %v7240_v28 = vld [vmem:[#allocation2 + $0x50] sm:$0x1]  ;;  %v7235_v7 = vld [vmem:[#allocation2 + $0x3c] sm:$0xe] }
 0x256   : > { %v6866_v47 = vrot.slane %v6865_v5, 4  ;;  %v8412_v53 = vcombine.low %v6837_v10, %v6847_v54  ;;  %v8262_v2 = vcombine.low %v4638_v16, %v4648_v55  ;;  %v7358_v8 = vrot.slane %v7356_v50, 4  ;;  %v7242_v39 = vld [vmem:[#allocation2 + $0x58] sm:$0xf]  ;;  %v7238_v54 = vld [vmem:[#allocation2 + $0x48] sm:$0xe] }
 0x257   : > { %v6861_v13 = vsel %vm10511_vm11, %v6856_v51, %v11196_v60  ;;  %v4657_v44 = vrot.slane %v4656_v6, 4  ;;  %v4671_v29 = vrot.slane %v4669_v14, 5  ;;  %v7359_v18 = vrot.slane %v7228_v11, 5  ;;  %v7245_v40 = vld [vmem:[#allocation2 + $0x64] sm:$0xf] }
 0x258   : > { %v6871_v26 = vsel %vm10511_vm11, %v6866_v47, %v6870_v59  ;;  %v8422_v25 = vrot.slane %v7226_v27, 9  ;;  %v7363_v4 = vrot.slane %v7230_v3, 5  ;;  %v7370_v17 = vrot.slane %v7233_v9, 5  ;;  %v7243_v16 = vld [vmem:[#allocation2 + $0x5c] sm:$0x1] }
 0x259   : > { %9162 = vmatmul.mubr.bf16.gmra.mrb[16].mxu1 %v8409_v23  ;;  %v6823_v23 = vsel %vm10511_vm11, %v6818_v20, %v6822_v12  ;;  %v4672_v19 = vsel %vm10511_vm11, %v4667_v38, %v4671_v29  ;;  %v8413_v43 = vcombine.low %v6861_v13, %v6871_v26  ;;  %v7360_v48 = vsel %vm10683_vm14, %v7358_v8, %v7359_v18  ;;  %v7232_v20 = vld [vmem:[#allocation2 + $0x30] sm:$0xe]  ;;  %v7241_v38 = vld [vmem:[#allocation2 + $0x54] sm:$0xe]  ;;  %v7244_v13 = vld [vmem:[#allocation2 + $0x60] sm:$0xe] }
 0x25a   : > { %9165 = vmatprep.mubr.bf16.mxu1 %v8410_v63  ;;  %v8411_v1 = vcombine.low %v6813_v49, %v6823_v23  ;;  %v4662_v60 = vsel %vm10511_vm11, %v4657_v44, %v4661_v34  ;;  %v7357_v0 = vsel %vm10683_vm14, %v8422_v25, %v7356_v50  ;;  %v7365_v62 = vrot.slane %v7363_v4, 4  ;;  %v7248_v8 = vld [vmem:[#allocation2 + $0x70] sm:$0xf]  ;;  %v7251_v26 = vld [vmem:[#allocation2 + $0x7c] sm:$0xf] }
 0x25b   : > { %8974 = vmatmul.mubr.bf16.gmra.mrb[56].mxu0 %v9697_v45  ;;  %v8263_v22 = vcombine.low %v4662_v60, %v4672_v19  ;;  %v8454_v15 = vcombine.low %v7357_v0, %v7360_v48  ;;  %v7229_v45 = vld [vmem:[#allocation2 + $0x24] sm:$0xe]  ;;  %v7372_v63 = vrot.slane %v7370_v17, 4  ;;  %v7366_v36 = vrot.slane %v7231_v61, 5  ;;  %v7249_v60 = vld [vmem:[#allocation2 + $0x74] sm:$0x1] }
 0x25c   : > { %8977 = vmatprep.mubr.bf16.mxu0 %v9698_v30  ;;  %v7239_v30 = vld [vmem:[#allocation2 + $0x4c] sm:$0xf]  ;;  %v7373_v12 = vrot.slane %v7234_v32, 5  ;;  %v8423_v52 = vrot.slane %v7229_v45, 9  ;;  %v7377_v34 = vrot.slane %v7236_v21, 5  ;;  %v8424_v24 = vrot.slane %v7232_v20, 9 }
 0x25d   : > { %v7367_v41 = vsel %vm10683_vm14, %v7365_v62, %v7366_v36  ;;  %v7384_v35 = vrot.slane %v7239_v30, 5  ;;  %v7380_v55 = vrot.slane %v7237_v46, 5  ;;  %v7387_v50 = vrot.slane %v7240_v28, 5  ;;  %v7254_v32 = vld [vmem:[#allocation2 + $0x88] sm:$0xf] }
 0x25e   : > { %v7374_v58 = vsel %vm10683_vm14, %v7372_v63, %v7373_v12  ;;  %v7364_v5 = vsel %vm10683_vm14, %v8423_v52, %v7363_v4  ;;  %v7371_v37 = vsel %vm10683_vm14, %v8424_v24, %v7370_v17  ;;  %v7379_v42 = vrot.slane %v7377_v34, 4  ;;  %v7250_v63 = vld [vmem:[#allocation2 + $0x78] sm:$0xe]  ;;  %v7257_v21 = vld [vmem:[#allocation2 + $0x94] sm:$0xf] }
 0x25f   : > { %v8455_v56 = vcombine.low %v7364_v5, %v7367_v41  ;;  %v8456_v33 = vcombine.low %v7371_v37, %v7374_v58  ;;  %v7386_v23 = vrot.slane %v7384_v35, 4  ;;  %v8425_v49 = vrot.slane %v7235_v7, 9  ;;  %v7255_v5 = vld [vmem:[#allocation2 + $0x8c] sm:$0x1]  ;;  %v7258_v46 = vld [vmem:[#allocation2 + $0x98] sm:$0x1] }
 0x260   : > { %v7381_v51 = vsel %vm10683_vm14, %v7379_v42, %v7380_v55  ;;  %v7391_v47 = vrot.slane %v7242_v39, 5  ;;  %v8426_v59 = vrot.slane %v7238_v54, 9  ;;  %v7398_v10 = vrot.slane %v7245_v40, 5  ;;  %v7260_v28 = vld [vmem:[#allocation2 + $0xa0] sm:$0xf] }
 0x261   : > { %9166 = vmatmul.mubr.bf16.gmra.mrb[20].mxu1 %v8411_v1  ;;  %v7388_v1 = vsel %vm10683_vm14, %v7386_v23, %v7387_v50  ;;  %v7378_v6 = vsel %vm10683_vm14, %v8425_v49, %v7377_v34  ;;  %v7394_v3 = vrot.slane %v7243_v16, 5  ;;  %v8427_v44 = vrot.slane %v7241_v38, 9  ;;  %v7256_v23 = vld [vmem:[#allocation2 + $0x90] sm:$0xe]  ;;  %v7263_v39 = vld [vmem:[#allocation2 + $0xac] sm:$0xf] }
 0x262   : > { %9169 = vmatprep.mubr.bf16.mxu1 %v8412_v53  ;;  %v8457_v14 = vcombine.low %v7378_v6, %v7381_v51  ;;  %v7393_v11 = vrot.slane %v7391_v47, 4  ;;  %v7400_v27 = vrot.slane %v7398_v10, 4  ;;  %v7405_v18 = vrot.slane %v7248_v8, 5  ;;  %v7261_v6 = vld [vmem:[#allocation2 + $0xa4] sm:$0x1] }
 0x263   : > { %8978 = vmatmul.mubr.bf16.gmra.mrb[60].mxu0 %v9700_v57  ;;  %v7385_v57 = vsel %vm10683_vm14, %v8426_v59, %v7384_v35  ;;  %v8428_v25 = vrot.slane %v7244_v13, 9  ;;  %v7412_v19 = vrot.slane %v7251_v26, 5  ;;  %v7408_v45 = vrot.slane %v7249_v60, 5  ;;  %v7264_v16 = vld [vmem:[#allocation2 + $0xb0] sm:$0x1] }
 0x264   : > { %8997 = vmatprep.mubr.bf16.mxu0 %v8262_v2  ;;  %v8458_v53 = vcombine.low %v7385_v57, %v7388_v1  ;;  %v7246_v2 = vld [vmem:[#allocation2 + $0x68] sm:$0x1]  ;;  %v7395_v29 = vsel %vm10683_vm14, %v7393_v11, %v7394_v3  ;;  %v7407_v61 = vrot.slane %v7405_v18, 4  ;;  %v7419_v12 = vrot.slane %v7254_v32, 5  ;;  %v7269_v8 = vld [vmem:[#allocation2 + $0xc4] sm:$0xf] }
 0x265   : > { %v7401_v9 = vrot.slane %v7246_v2, 5  ;;  %v7399_v17 = vsel %vm10683_vm14, %v8428_v25, %v7398_v10  ;;  %v7414_v62 = vrot.slane %v7412_v19, 4  ;;  %v8430_v52 = vrot.slane %v7250_v63, 9  ;;  %v7266_v2 = vld [vmem:[#allocation2 + $0xb8] sm:$0xf] }
 0x266   : > { %v7409_v30 = vsel %vm10683_vm14, %v7407_v61, %v7408_v45  ;;  %v7426_v34 = vrot.slane %v7257_v21, 5  ;;  %v7421_v37 = vrot.slane %v7419_v12, 4  ;;  %v7422_v7 = vrot.slane %v7255_v5, 5  ;;  %v7265_v61 = vld [vmem:[#allocation2 + $0xb4] sm:$0xe] }
 0x267   : > { %v7402_v4 = vsel %vm10683_vm14, %v7400_v27, %v7401_v9  ;;  %v7413_v35 = vsel %vm10683_vm14, %v8430_v52, %v7412_v19  ;;  %v7429_v55 = vrot.slane %v7258_v46, 5  ;;  %v7433_v50 = vrot.slane %v7260_v28, 5  ;;  %v7262_v27 = vld [vmem:[#allocation2 + $0xa8] sm:$0xe]  ;;  %v7271_v63 = vld [vmem:[#allocation2 + $0xcc] sm:$0xe] }
 0x268   : > { %v8460_v0 = vcombine.low %v7399_v17, %v7402_v4  ;;  %v7428_v42 = vrot.slane %v7426_v34, 4  ;;  %v7423_v40 = vsel %vm10683_vm14, %v7421_v37, %v7422_v7  ;;  %v8432_v49 = vrot.slane %v7256_v23, 9  ;;  %v7273_v21 = vld [vmem:[#allocation2 + $0xd4] sm:$0x1] }
 0x269   : > { %9170 = vmatmul.mubr.bf16.gmra.mrb[24].mxu1 %v8413_v43  ;;  %v7392_v43 = vsel %vm10683_vm14, %v8427_v44, %v7391_v47  ;;  %v7440_v47 = vrot.slane %v7263_v39, 5  ;;  %v7435_v57 = vrot.slane %v7433_v50, 4  ;;  %v7436_v38 = vrot.slane %v7261_v6, 5 }
 0x26a   : > { %9189 = vmatprep.mubr.bf16.mxu1 %v8454_v15  ;;  %v8459_v48 = vcombine.low %v7392_v43, %v7395_v29  ;;  %v7247_v15 = vld [vmem:[#allocation2 + $0x6c] sm:$0xe]  ;;  %v7430_v51 = vsel %vm10683_vm14, %v7428_v42, %v7429_v55  ;;  %v7427_v10 = vsel %vm10683_vm14, %v8432_v49, %v7426_v34  ;;  %v7443_v3 = vrot.slane %v7264_v16, 5  ;;  %v7267_v43 = vld [vmem:[#allocation2 + $0xbc] sm:$0x1] }
 0x26b   : > { %8998 = vmatmul.mubr.bf16.vlgmr.msra.gmra.mrb[32].mxu0 %v8263_v22  ;;  %v7252_v22 = vld [vmem:[#allocation2 + $0x80] sm:$0x1]  ;;  %v8429_v20 = vrot.slane %v7247_v15, 9  ;;  %v7442_v11 = vrot.slane %v7440_v47, 4  ;;  %v7437_v26 = vsel %vm10683_vm14, %v7435_v57, %v7436_v38  ;;  %v7447_v9 = vrot.slane %v7266_v2, 5 }
 0x26c   : > { %v7415_v36 = vrot.slane %v7252_v22, 5  ;;  %v8434_v44 = vrot.slane %v7262_v27, 9  ;;  %v7450_v15 = vrot.slane %v7267_v43, 5 }
 0x26d   : > { %v7406_v24 = vsel %vm10683_vm14, %v8429_v20, %v7405_v18  ;;  %v7444_v29 = vsel %vm10683_vm14, %v7442_v11, %v7443_v3  ;;  %v7454_v18 = vrot.slane %v7269_v8, 5  ;;  %v7449_v60 = vrot.slane %v7447_v9, 4 }
 0x26e   : > { %v7416_v41 = vsel %vm10683_vm14, %v7414_v62, %v7415_v36  ;;  %v8461_v58 = vcombine.low %v7406_v24, %v7409_v30  ;;  %v7441_v19 = vsel %vm10683_vm14, %v8434_v44, %v7440_v47  ;;  %v7268_v62 = vld [vmem:[#allocation2 + $0xc0] sm:$0xe]  ;;  %v8435_v36 = vrot.slane %v7265_v61, 9 }
 0x26f   : > { %v8466_v17 = vcombine.low %v7441_v19, %v7444_v29  ;;  %v7456_v22 = vrot.slane %v7454_v18, 4  ;;  %v7451_v20 = vsel %vm10683_vm14, %v7449_v60, %v7450_v15  ;;  %v8436_v30 = vrot.slane %v7268_v62, 9 }
 0x270   : > { %v7448_v52 = vsel %vm10683_vm14, %v8435_v36, %v7447_v9  ;;  %v7464_v24 = vrot.slane %v7273_v21, 5 }
 0x271   : > { %9190 = vmatmul.mubr.bf16.vlgmr.msra.gmra.mrb[28].mxu1 %v8455_v56  ;;  %v8462_v56 = vcombine.low %v7413_v35, %v7416_v41  ;;  %v8437_v41 = vrot.slane %v7271_v63, 9  ;;  %v7455_v35 = vsel %vm10683_vm14, %v8436_v30, %v7454_v18 }
 0x272   : > { %9193 = vmatprep.mubr.bf16.mxu1 %v8456_v33  ;;  %v7253_v33 = vld [vmem:[#allocation2 + $0x84] sm:$0xe] }
 0x273   : > { %v8431_v54 = vrot.slane %v7253_v33, 9 }
 0x275   : > { %v7420_v59 = vsel %vm10683_vm14, %v8431_v54, %v7419_v12 }
 0x276   : > { %v8463_v1 = vcombine.low %v7420_v59, %v7423_v40 }
 0x279   : > { %9194 = vmatmul.mubr.bf16.gmra.mrb[0].mxu1 %v8457_v14  ;;  %v8464_v14 = vcombine.low %v7427_v10, %v7430_v51 }
 0x27a   : > { %9197 = vmatprep.mubr.bf16.mxu1 %v8458_v53  ;;  %v7259_v53 = vld [vmem:[#allocation2 + $0x9c] sm:$0xe] }
 0x27b   : > { %v8433_v13 = vrot.slane %v7259_v53, 9 }
 0x27d   : > { %v7434_v25 = vsel %vm10683_vm14, %v8433_v13, %v7433_v50 }
 0x27e   : > { %v8465_v4 = vcombine.low %v7434_v25, %v7437_v26 }
 0x281   : > { %9198 = vmatmul.mubr.bf16.gmra.mrb[4].mxu1 %v8459_v48  ;;  %v7272_v48 = vld [vmem:[#allocation2 + $0xd0] sm:$0xf] }
 0x282   : > { %9201 = vmatprep.mubr.bf16.mxu1 %v8460_v0  ;;  %v7270_v0 = vld [vmem:[#allocation2 + $0xc8] sm:$0x1]  ;;  %v7461_v32 = vrot.slane %v7272_v48, 5 }
 0x283   : > { %v7457_v45 = vrot.slane %v7270_v0, 5 }
 0x284   : > { %v7463_v34 = vrot.slane %v7461_v32, 4 }
 0x285   : > { %v7458_v12 = vsel %vm10683_vm14, %v7456_v22, %v7457_v45 }
 0x286   : > { %v8468_v5 = vcombine.low %v7455_v35, %v7458_v12  ;;  %v7465_v37 = vsel %vm10683_vm14, %v7463_v34, %v7464_v24 }
 0x289   : > { %9202 = vmatmul.mubr.bf16.gmra.mrb[8].mxu1 %v8461_v58  ;;  %v8467_v58 = vcombine.low %v7448_v52, %v7451_v20 }
 0x28a   : > { %9205 = vmatprep.mubr.bf16.mxu1 %v8462_v56  ;;  %v7462_v56 = vsel %vm10683_vm14, %v8437_v41, %v7461_v32 }
 0x28b   : > { %v8469_v46 = vcombine.low %v7462_v56, %v7465_v37 }
 0x291   : > { %9206 = vmatmul.mubr.bf16.gmra.mrb[12].mxu1 %v8463_v1 }
 0x292   : > { %9209 = vmatprep.mubr.bf16.mxu1 %v8464_v14 }
 0x299   : > { %9210 = vmatmul.mubr.bf16.gmra.mrb[16].mxu1 %v8465_v4 }
 0x29a   : > { %9213 = vmatprep.mubr.bf16.mxu1 %v8466_v17 }
 0x2a1   : > { %9214 = vmatmul.mubr.bf16.gmra.mrb[20].mxu1 %v8467_v58 }
 0x2a2   : > { %9217 = vmatprep.mubr.bf16.mxu1 %v8468_v5 }
 0x2a9   : > { %9218 = vmatmul.mubr.bf16.gmra.mrb[24].mxu1 %v8469_v46 }
 0x306   : > { %v11298_v33 = vpop.f32.mrb[36].mxu0 }
 0x307   : > { %v11300_v42 = vpop.f32.mrb[37].mxu0 }
 0x308   : > { %9726 = shalt.err (!%p9723_p3)
}
 0x309   : > { %s9727_s29 = scalar_lea.hbm %s11293_s22, 4096  ;;  %s9731_s21 = scalar_lea.hbm %s11530_s6, 8192 }
 0x30a   : > { %p9728_p4 = scmp.ne.s32.totalorder %s11293_s22, %s9727_s29  ;;  %p9732_p9 = scmp.lt.u32.totalorder %s11293_s22, %s11530_s6 }
 0x30b   : > { %p9733_p10 = scmp.lt.u32.totalorder %s9731_s21, %s9727_s29  ;;  %p9735_p12 = scmp.lt.u32.totalorder %s9727_s29, %s11293_s22 }
 0x30c   : > { %p9729_p7 = pnand %p9728_p4, %p9894_p5 }
 0x30d   : > { %p9734_p11 = por %p9733_p10, %p9732_p9 }
 0x30e   : > { %p9730_p8 = pneg %p9729_p7 }
 0x30f   : > { %p9736_p13 = por %p9735_p12, %p9734_p11 }
 0x311   : > { %p9737_p0 = pnand %p9736_p13, %p9730_p8 }
 0x313   : > { %9740 = shalt.err (!%p9737_p0)
}
 0x314   : > { %s9813_s13 = smov 128   ;;  %s9814_s17 = smov 8   ;;  %v8956_v31 = vpop.f32.mrb[38].mxu0  ;;  %v11376_v29 = vld [vmem:[%s11529_s5] ss:$0 sm:$0xff] }
 0x315   : > { %9525 = dma.vmem_to_hbm [thread:$0]  (%p9894_p5), %s11296_s8, 4096, %s11293_s22, %s7885_s9, %s9813_s13, %s9813_s13, %s9814_s17   ;;  %v4373_v28 = vpop.f32.mrb[39].mxu0  ;;  %v9245_v62 = vadd.f32 %v11298_v33, %v11376_v29  ;;  %v9247_v32 = vadd.f32 %v11376_v29, %v11300_v42  ;;  %v9249_v63 = vadd.f32 %v8956_v31, %v11376_v29 }
 0x316   : > { %v8959_v7 = vpop.f32.mrb[40].mxu0  ;;  %s11384_s9 = scalar_lea.vmem [#allocation6], %s8029_s23  ;;  %v9251_v20 = vadd.f32 %v11376_v29, %v4373_v28  ;;  %s11474_s19 = scalar_lea.hbm %s11531_s7, %s8520_s18 }
 0x317   : > { %v4386_v23 = vpop.f32.mrb[41].mxu0  ;;  %v9253_v24 = vadd.f32 %v8959_v7, %v11376_v29  ;;  %s7919_s23 = sshll.u32 %s11384_s9, 4  ;;  %s7890_s21 = scalar_lea.sflag [#allocation7], %s10208_s20  ;;  %s11476_s23 = int_to_ptr.vmem [resolvable:$true] %s7919_s23 }
 0x318   : > { %v11329_v39 = vpop.f32.mrb[42].mxu0  ;;  %v9255_v58 = vadd.f32 %v11376_v29, %v4386_v23  ;;  %s9741_s14 = scalar_lea.vmem %s11476_s23, 4096  ;;  %s9815_s15 = smov [#allocation6]  }
 0x319   : > { %v11331_v55 = vpop.f32.mrb[43].mxu0  ;;  %v9257_v5 = vadd.f32 %v11329_v39, %v11376_v29  ;;  %p9742_p1 = scmp.ne.s32.totalorder %s11476_s23, %s9741_s14  ;;  %s9745_s28 = sshll.u32 %s9815_s15, 4  ;;  %s9746_s28 = int_to_ptr.vmem [resolvable:$false] %s9745_s28 }
 0x31a   : > { %v11333_v54 = vpop.f32.mrb[44].mxu0  ;;  %v9259_v46 = vadd.f32 %v11376_v29, %v11331_v55  ;;  %s9747_s22 = scalar_lea.vmem %s9746_s28, 8192  ;;  %p9748_p4 = scmp.lt.s32.totalorder %s11476_s23, %s9746_s28 }
 0x31b   : > { %v11335_v40 = vpop.f32.mrb[45].mxu0  ;;  %v9261_v23 = vadd.f32 %v11333_v54, %v11376_v29  ;;  %p9743_p2 = pnand %p9742_p1, %p9894_p5  ;;  %p9749_p7 = scmp.lt.s32.totalorder %s9747_s22, %s9741_s14 }
 0x31c   : > { %v11337_v50 = vpop.f32.mrb[46].mxu0  ;;  %v9263_v39 = vadd.f32 %v11376_v29, %v11335_v40 }
 0x31d   : > { %v11339_v49 = vpop.f32.mrb[47].mxu0  ;;  %p9744_p3 = pneg %p9743_p2  ;;  %p9750_p8 = por %p9749_p7, %p9748_p4 }
 0x31e   : > { %v11341_v51 = vpop.f32.mrb[48].mxu0 }
 0x31f   : > { %v11343_v47 = vpop.f32.mrb[49].mxu0  ;;  %v9269_v40 = vadd.f32 %v11341_v51, %v11376_v29  ;;  %p9751_p9 = pnand %p9750_p8, %p9744_p3 }
 0x320   : > { %v11345_v59 = vpop.f32.mrb[50].mxu0 }
 0x321   : > { %v11347_v1 = vpop.f32.mrb[51].mxu0 }
 0x326   : > { %v11349_v10 = vpop.f32.mrb[52].mxu0 }
 0x327   : > { %v11351_v6 = vpop.f32.mrb[53].mxu0 }
 0x328   : > { %v11353_v14 = vpop.f32.mrb[54].mxu0 }
 0x329   : > { %v11355_v57 = vpop.f32.mrb[55].mxu0 }
 0x32e   : > { %v11357_v16 = vpop.f32.mrb[56].mxu0 }
 0x32f   : > { %v11359_v53 = vpop.f32.mrb[57].mxu0 }
 0x330   : > { %v11361_v11 = vpop.f32.mrb[58].mxu0 }
 0x331   : > { %v11363_v2 = vpop.f32.mrb[59].mxu0 }
 0x336   : > { %v11365_v38 = vpop.f32.mrb[60].mxu0 }
 0x337   : > { %v11367_v27 = vpop.f32.mrb[61].mxu0 }
 0x338   : > { %v11369_v8 = vpop.f32.mrb[62].mxu0 }
 0x339   : > { %v11371_v3 = vpop.f32.mrb[63].mxu0 }
 0x33e   : > { %v8999_v13 = vpop.f32.mrb[32].mxu0 }
 0x33f   : > { %v5172_v26 = vpop.f32.mrb[33].mxu0  ;;  %v9237_v18 = vadd.f32 %v8999_v13, %v11376_v29  ;;  %v9265_v13 = vadd.f32 %v11337_v50, %v11376_v29  ;;  %v9271_v50 = vadd.f32 %v11376_v29, %v11343_v47  ;;  %v9277_v47 = vadd.f32 %v11349_v10, %v11376_v29 }
 0x340   : > { %v9000_v9 = vpop.f32.mrb[34].mxu0  ;;  %v9239_v25 = vadd.f32 %v11376_v29, %v5172_v26 }
 0x341   : > { %v5175_v44 = vpop.f32.mrb[35].mxu0  ;;  %v9241_v19 = vadd.f32 %v9000_v9, %v11376_v29 }
 0x342   : > { %v9243_v17 = vadd.f32 %v11376_v29, %v5175_v44  ;;  %v9267_v44 = vadd.f32 %v11376_v29, %v11339_v49 }
 0x344   : > { %v9191_v4 = vpop.f32.mrb[28].mxu1 }
 0x345   : > { %v9238_v43 = vadd.f32 %v9237_v18, %v9191_v4  ;;  %v7629_v48 = vpop.f32.mrb[29].mxu1 }
 0x346   : > { %v9240_v60 = vadd.f32 %v9239_v25, %v7629_v48  ;;  %v9192_v0 = vpop.f32.mrb[30].mxu1 }
 0x347   : > { %7854 = vst [vmem:[%s11384_s9 + $0x10] sm:$0xff] %v9238_v43  ;;  %v9242_v61 = vadd.f32 %v9241_v19, %v9192_v0  ;;  %v7632_v22 = vpop.f32.mrb[31].mxu1  ;;  %v9273_v43 = vadd.f32 %v11345_v59, %v11376_v29  ;;  %v9279_v59 = vadd.f32 %v11376_v29, %v11351_v6  ;;  %v9285_v6 = vadd.f32 %v11357_v16, %v11376_v29 }
 0x348   : > { %7852 = vst [vmem:[%s11384_s9] sm:$0xff] %v9240_v60  ;;  %v9244_v15 = vadd.f32 %v9243_v17, %v7632_v22  ;;  %v9275_v60 = vadd.f32 %v11376_v29, %v11347_v1 }
 0x349   : > { %7855 = vst [vmem:[%s11384_s9 + $0x18] sm:$0xff] %v9242_v61 }
 0x34a   : > { %7853 = vst [vmem:[%s11384_s9 + $0x8] sm:$0xff] %v9244_v15 }
 0x34c   : > { %v9195_v45 = vpop.f32.mrb[0].mxu1 }
 0x34d   : > { %v9246_v21 = vadd.f32 %v9245_v62, %v9195_v45  ;;  %v7645_v36 = vpop.f32.mrb[1].mxu1  ;;  %v9281_v62 = vadd.f32 %v11353_v14, %v11376_v29  ;;  %v9287_v14 = vadd.f32 %v11376_v29, %v11359_v53  ;;  %v9293_v53 = vadd.f32 %v11365_v38, %v11376_v29 }
 0x34e   : > { %v9248_v30 = vadd.f32 %v9247_v32, %v7645_v36  ;;  %v9196_v12 = vpop.f32.mrb[2].mxu1 }
 0x34f   : > { %7858 = vst [vmem:[%s11384_s9 + $0x30] sm:$0xff] %v9246_v21  ;;  %v9250_v52 = vadd.f32 %v9249_v63, %v9196_v12  ;;  %v7648_v41 = vpop.f32.mrb[3].mxu1  ;;  %v9283_v63 = vadd.f32 %v11376_v29, %v11355_v57  ;;  %v9289_v12 = vadd.f32 %v11361_v11, %v11376_v29  ;;  %v9295_v11 = vadd.f32 %v11376_v29, %v11367_v27 }
 0x350   : > { %7856 = vst [vmem:[%s11384_s9 + $0x20] sm:$0xff] %v9248_v30  ;;  %v9252_v34 = vadd.f32 %v9251_v20, %v7648_v41 }
 0x351   : > { %7859 = vst [vmem:[%s11384_s9 + $0x38] sm:$0xff] %v9250_v52 }
 0x352   : > { %7857 = vst [vmem:[%s11384_s9 + $0x28] sm:$0xff] %v9252_v34  ;;  %v9291_v34 = vadd.f32 %v11376_v29, %v11363_v2 }
 0x354   : > { %v9199_v35 = vpop.f32.mrb[4].mxu1 }
 0x355   : > { %v9254_v56 = vadd.f32 %v9253_v24, %v9199_v35  ;;  %v7661_v37 = vpop.f32.mrb[5].mxu1 }
 0x356   : > { %v9256_v33 = vadd.f32 %v9255_v58, %v7661_v37  ;;  %v9200_v42 = vpop.f32.mrb[6].mxu1 }
 0x357   : > { %7862 = vst [vmem:[%s11384_s9 + $0x50] sm:$0xff] %v9254_v56  ;;  %v9258_v31 = vadd.f32 %v9257_v5, %v9200_v42  ;;  %v7664_v28 = vpop.f32.mrb[7].mxu1  ;;  %v9297_v56 = vadd.f32 %v11369_v8, %v11376_v29 }
 0x358   : > { %7860 = vst [vmem:[%s11384_s9 + $0x40] sm:$0xff] %v9256_v33  ;;  %v9260_v7 = vadd.f32 %v9259_v46, %v7664_v28  ;;  %v9299_v33 = vadd.f32 %v11376_v29, %v11371_v3 }
 0x359   : > { %7863 = vst [vmem:[%s11384_s9 + $0x58] sm:$0xff] %v9258_v31 }
 0x35a   : > { %7861 = vst [vmem:[%s11384_s9 + $0x48] sm:$0xff] %v9260_v7 }
 0x35c   : > { %v9203_v55 = vpop.f32.mrb[8].mxu1 }
 0x35d   : > { %v9262_v26 = vadd.f32 %v9261_v23, %v9203_v55  ;;  %v7677_v9 = vpop.f32.mrb[9].mxu1 }
 0x35e   : > { %v9264_v18 = vadd.f32 %v9263_v39, %v7677_v9  ;;  %v9204_v25 = vpop.f32.mrb[10].mxu1 }
 0x35f   : > { %7866 = vst [vmem:[%s11384_s9 + $0x70] sm:$0xff] %v9262_v26  ;;  %v9266_v4 = vadd.f32 %v9265_v13, %v9204_v25  ;;  %v7680_v19 = vpop.f32.mrb[11].mxu1 }
 0x360   : > { %7864 = vst [vmem:[%s11384_s9 + $0x60] sm:$0xff] %v9264_v18  ;;  %v9268_v54 = vadd.f32 %v9267_v44, %v7680_v19 }
 0x361   : > { %7867 = vst [vmem:[%s11384_s9 + $0x78] sm:$0xff] %v9266_v4 }
 0x362   : > { %7865 = vst [vmem:[%s11384_s9 + $0x68] sm:$0xff] %v9268_v54 }
 0x364   : > { %v9207_v49 = vpop.f32.mrb[12].mxu1 }
 0x365   : > { %v9270_v48 = vadd.f32 %v9269_v40, %v9207_v49  ;;  %v7693_v17 = vpop.f32.mrb[13].mxu1 }
 0x366   : > { %v9272_v0 = vadd.f32 %v9271_v50, %v7693_v17  ;;  %v9208_v61 = vpop.f32.mrb[14].mxu1 }
 0x367   : > { %7870 = vst [vmem:[%s11384_s9 + $0x90] sm:$0xff] %v9270_v48  ;;  %v9274_v22 = vadd.f32 %v9273_v43, %v9208_v61  ;;  %v7696_v15 = vpop.f32.mrb[15].mxu1 }
 0x368   : > { %7868 = vst [vmem:[%s11384_s9 + $0x80] sm:$0xff] %v9272_v0  ;;  %v9276_v51 = vadd.f32 %v9275_v60, %v7696_v15 }
 0x369   : > { %7871 = vst [vmem:[%s11384_s9 + $0x98] sm:$0xff] %v9274_v22 }
 0x36a   : > { %7869 = vst [vmem:[%s11384_s9 + $0x88] sm:$0xff] %v9276_v51 }
 0x36c   : > { %v9211_v1 = vpop.f32.mrb[16].mxu1 }
 0x36d   : > { %v9278_v32 = vadd.f32 %v9277_v47, %v9211_v1  ;;  %v7709_v45 = vpop.f32.mrb[17].mxu1 }
 0x36e   : > { %v9280_v21 = vadd.f32 %v9279_v59, %v7709_v45  ;;  %v9212_v36 = vpop.f32.mrb[18].mxu1 }
 0x36f   : > { %7874 = vst [vmem:[%s11384_s9 + $0xb0] sm:$0xff] %v9278_v32  ;;  %v9282_v20 = vadd.f32 %v9281_v62, %v9212_v36  ;;  %v7712_v30 = vpop.f32.mrb[19].mxu1 }
 0x370   : > { %7872 = vst [vmem:[%s11384_s9 + $0xa0] sm:$0xff] %v9280_v21  ;;  %v9284_v10 = vadd.f32 %v9283_v63, %v7712_v30 }
 0x371   : > { %7875 = vst [vmem:[%s11384_s9 + $0xb8] sm:$0xff] %v9282_v20 }
 0x372   : > { %7873 = vst [vmem:[%s11384_s9 + $0xa8] sm:$0xff] %v9284_v10 }
 0x374   : > { %v9215_v57 = vpop.f32.mrb[20].mxu1 }
 0x375   : > { %v9286_v52 = vadd.f32 %v9285_v6, %v9215_v57  ;;  %v7725_v41 = vpop.f32.mrb[21].mxu1 }
 0x376   : > { %v9288_v24 = vadd.f32 %v9287_v14, %v7725_v41  ;;  %v9216_v58 = vpop.f32.mrb[22].mxu1 }
 0x377   : > { %7878 = vst [vmem:[%s11384_s9 + $0xd0] sm:$0xff] %v9286_v52  ;;  %v9290_v35 = vadd.f32 %v9289_v12, %v9216_v58  ;;  %v7728_v5 = vpop.f32.mrb[23].mxu1 }
 0x378   : > { %7876 = vst [vmem:[%s11384_s9 + $0xc0] sm:$0xff] %v9288_v24  ;;  %v9292_v16 = vadd.f32 %v9291_v34, %v7728_v5 }
 0x379   : > { %7879 = vst [vmem:[%s11384_s9 + $0xd8] sm:$0xff] %v9290_v35 }
 0x37a   : > { %7877 = vst [vmem:[%s11384_s9 + $0xc8] sm:$0xff] %v9292_v16 }
 0x37c   : > { %v9219_v2 = vpop.f32.mrb[24].mxu1 }
 0x37d   : > { %v9294_v37 = vadd.f32 %v9293_v53, %v9219_v2  ;;  %v7741_v46 = vpop.f32.mrb[25].mxu1 }
 0x37e   : > { %v9296_v42 = vadd.f32 %v9295_v11, %v7741_v46  ;;  %v9220_v31 = vpop.f32.mrb[26].mxu1 }
 0x37f   : > { %7882 = vst [vmem:[%s11384_s9 + $0xf0] sm:$0xff] %v9294_v37  ;;  %v9298_v38 = vadd.f32 %v9297_v56, %v9220_v31  ;;  %v7744_v28 = vpop.f32.mrb[27].mxu1 }
 0x380   : > { %7880 = vst [vmem:[%s11384_s9 + $0xe0] sm:$0xff] %v9296_v42  ;;  %v9300_v27 = vadd.f32 %v9299_v33, %v7744_v28 }
 0x381   : > { %7883 = vst [vmem:[%s11384_s9 + $0xf8] sm:$0xff] %v9298_v38 }
 0x382   : > { %7881 = vst [vmem:[%s11384_s9 + $0xe8] sm:$0xff] %v9300_v27 }
 0x383   : > { %9754 = shalt.err (!%p9751_p9)
}
 0x384   : > { %s9755_s18 = scalar_lea.hbm %s11474_s19, 4096  ;;  %s9759_s29 = scalar_lea.hbm %s11531_s7, 8192 }
 0x385   : > { %p9756_p10 = scmp.ne.s32.totalorder %s11474_s19, %s9755_s18  ;;  %p9760_p13 = scmp.lt.u32.totalorder %s11474_s19, %s11531_s7 }
 0x386   : > { %p9761_p0 = scmp.lt.u32.totalorder %s9759_s29, %s9755_s18  ;;  %p9763_p2 = scmp.lt.u32.totalorder %s9755_s18, %s11474_s19 }
 0x387   : > { %p9757_p11 = pnand %p9756_p10, %p9894_p5 }
 0x388   : > { %p9762_p1 = por %p9761_p0, %p9760_p13 }
 0x389   : > { %p9758_p12 = pneg %p9757_p11 }
 0x38a   : > { %p9764_p3 = por %p9763_p2, %p9762_p1 }
 0x38c   : > { %p9765_p4 = pnand %p9764_p3, %p9758_p12 }
 0x38e   : > { %9768 = shalt.err (!%p9765_p4)
}
 0x38f   : > { %9526 = dma.vmem_to_hbm [thread:$0]  (%p9894_p5), %s11476_s23, 4096, %s11474_s19, %s7890_s21, %s9813_s13, %s9813_s13, %s9814_s17  }
 0x390 PF: > { %p9536_p7 = scmp.ge.s32.totalorder %s9807_s27, 2  ;;  %s7934_s14 = sand.u32 1, %s9795_s24  }
 0x391   : > { %s7935_s28 = scalar_lea.sflag [#allocation5], %s7934_s14 }
 0x392   : > { %p9530_p8 = pnand %p9536_p7, %p9898_p6 }
 0x394   : > { %9786 = dma.done.wait (!%p9530_p8), %s7935_s28, 4096  }
 0x395   : > { %9788 = vsyncadd (!%p9530_p8), %s7935_s28, 4294963200  ;;  %s7944_s11 = scalar_lea.sflag [#allocation7], %s7934_s14 }
 0x396   : > { %9790 = dma.done.wait (!%p9530_p8), %s7944_s11, 4096  }
 0x397   : > { %9792 = vsyncadd (!%p9530_p8), %s7944_s11, 4294963200  ;;  %p21_p5 = scmp.ge.s32.totalorder %s9881_s30, 4   ;;  %s11544_s24 = smov %s9799_s25 }
 0x398   : > { %s11545_s25 = smov %s9803_s26  ;;  %s11546_s26 = smov %s9892_s10 }
 0x399   : > { %s11547_s27 = smov %s9881_s30  ;;  %23 = sbr.rel (!%p21_p5) target bundleno = 5 (0x5), region = 109 }
 0x3a0   :  { %7949 = vsyncpa [#allocation5], 1 }
 0x3a1   :  { %7951 = vsyncpa [#allocation5 + $0x1], 1 }
 0x3a2   :  { %7952 = vsyncpa [#allocation7], 1 }
 0x3a3   :  { %7954 = vsyncpa [#allocation7 + $0x1], 1 }

</bundles_post_ra>
